<compile_context>
chip_gen: v5e
topology: v5e:2x2
jax: 0.10.0
libtpu: 0.0.40
codegen_flags: <defaults>
</compile_context>

<pallas_src>
import math

import jax
import jax.numpy as jnp
from jax import lax
from jax.experimental import pallas as pl
from jax.experimental.pallas import tpu as pltpu

# ----------------------------- config (scaled down, structurally faithful) ---
D_MODEL = 128          # d_model (scaled down from 512)
NHEAD = 4              # nhead   (scaled down from 8)
HEAD_DIM = D_MODEL // NHEAD
NUM_ENC = 2            # num_encoder_layers (scaled down from 6)
NUM_DEC = 2            # num_decoder_layers (scaled down from 6)
DIM_FF = 256           # dim_feedforward (scaled down from 2048)
VOCAB = 1000           # input_dim == output_dim
VOCAB_PAD = 1024       # lane-dense fc_out width (multiple of 128), sliced back to VOCAB
EPS = 1e-5             # PyTorch LayerNorm default eps


# ----------------------------- in-kernel helpers (VMEM-resident values) ------
def _ln(x, g, b):
    mean = jnp.mean(x, axis=-1, keepdims=True)
    var = jnp.mean(jnp.square(x - mean), axis=-1, keepdims=True)
    return (x - mean) * lax.rsqrt(var + EPS) * g + b


def _dot(x, w_ref, b_ref):
    # bf16 MXU inputs, fp32 accumulation, fp32 bias add.
    return (jnp.dot(x.astype(jnp.bfloat16), w_ref[...],
                    preferred_element_type=jnp.float32) + b_ref[...])


def _mha(q, k, v):
    """q: (Sq, E), k/v: (Sk, E) -> (Sq, E). Per-head attention, fully in VMEM."""
    scale = 1.0 / math.sqrt(HEAD_DIM)
    outs = []
    for h in range(NHEAD):
        lo, hi = h * HEAD_DIM, (h + 1) * HEAD_DIM
        qh = q[:, lo:hi].astype(jnp.bfloat16)
        kh = k[:, lo:hi].astype(jnp.bfloat16)
        vh = v[:, lo:hi].astype(jnp.bfloat16)
        # contract on head dim directly (no explicit transpose of k)
        s = lax.dot_general(qh, kh, (((1,), (1,)), ((), ())),
                            preferred_element_type=jnp.float32) * scale
        m = jnp.max(s, axis=-1, keepdims=True)
        p = jnp.exp(s - m)
        p = p * pl.reciprocal(jnp.sum(p, axis=-1, keepdims=True), approx=True)
        outs.append(jnp.dot(p.astype(jnp.bfloat16), vh,
                            preferred_element_type=jnp.float32))
    return jnp.concatenate(outs, axis=-1)


# ----------------------------- fused Pallas kernels --------------------------
def _encoder_layer_kernel(x_ref, wqkv_ref, bqkv_ref, wo_ref, bo_ref,
                          g1_ref, be1_ref,
                          w1_ref, b1_ref, w2_ref, b2_ref,
                          g2_ref, be2_ref, o_ref):
    x = x_ref[0]                                           # (S, E) fp32
    qkv = _dot(x, wqkv_ref, bqkv_ref)                      # (S, 3E) fused QKV proj
    q = qkv[:, :D_MODEL]
    k = qkv[:, D_MODEL:2 * D_MODEL]
    v = qkv[:, 2 * D_MODEL:]
    a = _dot(_mha(q, k, v), wo_ref, bo_ref)                # attention + out proj
    h1 = _ln(x + a, g1_ref[...], be1_ref[...])             # fused residual + LN1
    f = jnp.maximum(_dot(h1, w1_ref, b1_ref), 0.0)         # fused FFN
    f = _dot(f, w2_ref, b2_ref)
    o_ref[0] = _ln(h1 + f, g2_ref[...], be2_ref[...])      # fused residual + LN2


def _decoder_layer_kernel(y_ref, mem_ref,
                          sa_wqkv_ref, sa_bqkv_ref, sa_wo_ref, sa_bo_ref,
                          g1_ref, be1_ref,
                          ca_wqkv_ref, ca_bqkv_ref, ca_wo_ref, ca_bo_ref,
                          g2_ref, be2_ref,
                          w1_ref, b1_ref, w2_ref, b2_ref,
                          g3_ref, be3_ref, o_ref):
    y = y_ref[0]                                           # (S_tgt, E)
    mem = mem_ref[0]                                       # (S_src, E)
    # self-attention (unmasked, matching the reference forward which passes no masks)
    qkv = _dot(y, sa_wqkv_ref, sa_bqkv_ref)
    a = _dot(_mha(qkv[:, :D_MODEL], qkv[:, D_MODEL:2 * D_MODEL],
                  qkv[:, 2 * D_MODEL:]), sa_wo_ref, sa_bo_ref)
    h1 = _ln(y + a, g1_ref[...], be1_ref[...])
    # cross-attention: q from decoder state, k/v from encoder memory
    qc = (jnp.dot(h1.astype(jnp.bfloat16), ca_wqkv_ref[:, :D_MODEL],
                  preferred_element_type=jnp.float32) + ca_bqkv_ref[:, :D_MODEL])
    kv = (jnp.dot(mem.astype(jnp.bfloat16), ca_wqkv_ref[:, D_MODEL:],
                  preferred_element_type=jnp.float32) + ca_bqkv_ref[:, D_MODEL:])
    c = _dot(_mha(qc, kv[:, :D_MODEL], kv[:, D_MODEL:]), ca_wo_ref, ca_bo_ref)
    h2 = _ln(h1 + c, g2_ref[...], be2_ref[...])
    # feed-forward
    f = jnp.maximum(_dot(h2, w1_ref, b1_ref), 0.0)
    f = _dot(f, w2_ref, b2_ref)
    o_ref[0] = _ln(h2 + f, g3_ref[...], be3_ref[...])


def _layernorm_kernel(x_ref, g_ref, b_ref, o_ref):
    o_ref[0] = _ln(x_ref[0], g_ref[...], b_ref[...])


def _head_kernel(y_ref, g_ref, b_ref, w_ref, bias_ref, o_ref):
    # decoder final LayerNorm + fc_out (lane-dense padded vocab) in one kernel
    y = _ln(y_ref[0], g_ref[...], b_ref[...])
    o_ref[0] = (jnp.dot(y.astype(jnp.bfloat16), w_ref[...],
                        preferred_element_type=jnp.float32) + bias_ref[...])


# ----------------------------- pallas_call wrappers ---------------------------
_PARALLEL = pltpu.CompilerParams(dimension_semantics=("parallel",))


def _bcast_spec(shape):
    return pl.BlockSpec(shape, lambda b: (0,) * len(shape))


def _rows_spec(S, E):
    return pl.BlockSpec((1, S, E), lambda b: (b, 0, 0))


def encoder_layer(x, p):
    B, S, E = x.shape
    return pl.pallas_call(
        _encoder_layer_kernel,
        out_shape=jax.ShapeDtypeStruct((B, S, E), jnp.float32),
        grid=(B,),
        in_specs=[
            _rows_spec(S, E),
            _bcast_spec((E, 3 * E)), _bcast_spec((1, 3 * E)),
            _bcast_spec((E, E)), _bcast_spec((1, E)),
            _bcast_spec((1, E)), _bcast_spec((1, E)),
            _bcast_spec((E, DIM_FF)), _bcast_spec((1, DIM_FF)),
            _bcast_spec((DIM_FF, E)), _bcast_spec((1, E)),
            _bcast_spec((1, E)), _bcast_spec((1, E)),
        ],
        out_specs=_rows_spec(S, E),
        compiler_params=_PARALLEL,
    )(x, p["sa"]["wqkv"], p["sa"]["bqkv"], p["sa"]["wo"], p["sa"]["bo"],
      p["norm1_g"], p["norm1_b"],
      p["w1"], p["b1"], p["w2"], p["b2"],
      p["norm2_g"], p["norm2_b"])


def decoder_layer(y, memory, p):
    B, S, E = y.shape
    Smem = memory.shape[1]
    return pl.pallas_call(
        _decoder_layer_kernel,
        out_shape=jax.ShapeDtypeStruct((B, S, E), jnp.float32),
        grid=(B,),
        in_specs=[
            _rows_spec(S, E),
            _rows_spec(Smem, E),
            _bcast_spec((E, 3 * E)), _bcast_spec((1, 3 * E)),
            _bcast_spec((E, E)), _bcast_spec((1, E)),
            _bcast_spec((1, E)), _bcast_spec((1, E)),
            _bcast_spec((E, 3 * E)), _bcast_spec((1, 3 * E)),
            _bcast_spec((E, E)), _bcast_spec((1, E)),
            _bcast_spec((1, E)), _bcast_spec((1, E)),
            _bcast_spec((E, DIM_FF)), _bcast_spec((1, DIM_FF)),
            _bcast_spec((DIM_FF, E)), _bcast_spec((1, E)),
            _bcast_spec((1, E)), _bcast_spec((1, E)),
        ],
        out_specs=_rows_spec(S, E),
        compiler_params=_PARALLEL,
    )(y, memory,
      p["sa"]["wqkv"], p["sa"]["bqkv"], p["sa"]["wo"], p["sa"]["bo"],
      p["norm1_g"], p["norm1_b"],
      p["ca"]["wqkv"], p["ca"]["bqkv"], p["ca"]["wo"], p["ca"]["bo"],
      p["norm2_g"], p["norm2_b"],
      p["w1"], p["b1"], p["w2"], p["b2"],
      p["norm3_g"], p["norm3_b"])


def layernorm(x, g, b):
    B, S, E = x.shape
    return pl.pallas_call(
        _layernorm_kernel,
        out_shape=jax.ShapeDtypeStruct((B, S, E), jnp.float32),
        grid=(B,),
        in_specs=[_rows_spec(S, E), _bcast_spec((1, E)), _bcast_spec((1, E))],
        out_specs=_rows_spec(S, E),
        compiler_params=_PARALLEL,
    )(x, g, b)


def head(y, g, b, w, bias):
    B, S, E = y.shape
    V = w.shape[1]
    return pl.pallas_call(
        _head_kernel,
        out_shape=jax.ShapeDtypeStruct((B, S, V), jnp.float32),
        grid=(B,),
        in_specs=[_rows_spec(S, E), _bcast_spec((1, E)), _bcast_spec((1, E)),
                  _bcast_spec((E, V)), _bcast_spec((1, V))],
        out_specs=pl.BlockSpec((1, S, V), lambda bb: (bb, 0, 0)),
        compiler_params=_PARALLEL,
    )(y, g, b, w, bias)


# ----------------------------- model forward ---------------------------------
def transformer_model_forward(params, src_tokens, tgt_tokens):
    # src_tokens: (S_src, B) int32, tgt_tokens: (S_tgt, B) int32
    scale = math.sqrt(float(D_MODEL))
    # embedding gather kept in plain JAX; activations held batch-major (B, S, E)
    src = jnp.take(params["embedding"], src_tokens.T, axis=0) * scale
    tgt = jnp.take(params["embedding"], tgt_tokens.T, axis=0) * scale

    x = src
    for lp in params["enc_layers"]:
        x = encoder_layer(x, lp)
    memory = layernorm(x, params["enc_norm_g"], params["enc_norm_b"])

    y = tgt
    for lp in params["dec_layers"]:
        y = decoder_layer(y, memory, lp)

    logits = head(y, params["dec_norm_g"], params["dec_norm_b"],
                  params["fc_w"], params["fc_b"])          # (B, S_tgt, VOCAB_PAD)
    logits = logits[:, :, :VOCAB]                          # drop lane padding
    return jnp.transpose(logits, (1, 0, 2))                # (S_tgt, B, VOCAB)


# ----------------------------- deterministic parameter init ------------------
def _init_linear(key, in_dim, out_dim):
    kw, kb = jax.random.split(key)
    bound = 1.0 / math.sqrt(in_dim)
    w = jax.random.uniform(kw, (in_dim, out_dim), jnp.float32, -bound, bound)
    b = jax.random.uniform(kb, (1, out_dim), jnp.float32, -bound, bound)
    return w, b


def _init_mha(key):
    ks = jax.random.split(key, 4)
    wq, bq = _init_linear(ks[0], D_MODEL, D_MODEL)
    wk, bk = _init_linear(ks[1], D_MODEL, D_MODEL)
    wv, bv = _init_linear(ks[2], D_MODEL, D_MODEL)
    wo, bo = _init_linear(ks[3], D_MODEL, D_MODEL)
    return dict(
        wqkv=jnp.concatenate([wq, wk, wv], axis=1).astype(jnp.bfloat16),
        bqkv=jnp.concatenate([bq, bk, bv], axis=1),
        wo=wo.astype(jnp.bfloat16), bo=bo)


def _ln_params():
    return jnp.ones((1, D_MODEL), jnp.float32), jnp.zeros((1, D_MODEL), jnp.float32)


def _init_enc_layer(key):
    ks = jax.random.split(key, 3)
    g1, b1 = _ln_params()
    g2, b2 = _ln_params()
    w1, bb1 = _init_linear(ks[1], D_MODEL, DIM_FF)
    w2, bb2 = _init_linear(ks[2], DIM_FF, D_MODEL)
    return dict(sa=_init_mha(ks[0]),
                norm1_g=g1, norm1_b=b1, norm2_g=g2, norm2_b=b2,
                w1=w1.astype(jnp.bfloat16), b1=bb1,
                w2=w2.astype(jnp.bfloat16), b2=bb2)


def _init_dec_layer(key):
    ks = jax.random.split(key, 4)
    g1, b1 = _ln_params()
    g2, b2 = _ln_params()
    g3, b3 = _ln_params()
    w1, bb1 = _init_linear(ks[2], D_MODEL, DIM_FF)
    w2, bb2 = _init_linear(ks[3], DIM_FF, D_MODEL)
    return dict(sa=_init_mha(ks[0]), ca=_init_mha(ks[1]),
                norm1_g=g1, norm1_b=b1, norm2_g=g2, norm2_b=b2,
                norm3_g=g3, norm3_b=b3,
                w1=w1.astype(jnp.bfloat16), b1=bb1,
                w2=w2.astype(jnp.bfloat16), b2=bb2)


def init_params(key):
    k_emb, k_enc, k_dec, k_fc = jax.random.split(key, 4)
    emb = jax.random.normal(k_emb, (VOCAB, D_MODEL), jnp.float32)   # like nn.Embedding N(0,1)
    enc_keys = jax.random.split(k_enc, NUM_ENC)
    dec_keys = jax.random.split(k_dec, NUM_DEC)
    fc_w, fc_b = _init_linear(k_fc, D_MODEL, VOCAB)
    # pad fc_out to a lane-dense vocab width; padded columns are zero and sliced off later
    fc_w_pad = jnp.zeros((D_MODEL, VOCAB_PAD), jnp.float32).at[:, :VOCAB].set(fc_w)
    fc_b_pad = jnp.zeros((1, VOCAB_PAD), jnp.float32).at[:, :VOCAB].set(fc_b)
    eg, eb = _ln_params()
    dg, db = _ln_params()
    return dict(
        embedding=emb,
        enc_layers=[_init_enc_layer(k) for k in enc_keys],
        dec_layers=[_init_dec_layer(k) for k in dec_keys],
        enc_norm_g=eg, enc_norm_b=eb, dec_norm_g=dg, dec_norm_b=db,
        fc_w=fc_w_pad.astype(jnp.bfloat16), fc_b=fc_b_pad,
    )


# ----------------------------- main -------------------------------------------
if __name__ == "__main__":
    key = jax.random.PRNGKey(0)
    k_params, k_src, k_tgt = jax.random.split(key, 3)

    params = init_params(k_params)

    S_SRC, S_TGT, BATCH = 8, 8, 2
    src = jax.random.randint(k_src, (S_SRC, BATCH), 0, VOCAB, dtype=jnp.int32)
    tgt = jax.random.randint(k_tgt, (S_TGT, BATCH), 0, VOCAB, dtype=jnp.int32)

    fwd = jax.jit(transformer_model_forward)
    out = fwd(params, src, tgt)
    out = jax.block_until_ready(out)

    assert out.shape == (S_TGT, BATCH, VOCAB), out.shape
    assert out.dtype == jnp.float32
    assert bool(jnp.all(jnp.isfinite(out)))
    print("KERNEL_OK")
</pallas_src>

<mosaic_0001>
module attributes {stable_mosaic.version = 11 : i64} {
  func.func @_decoder_layer_kernel(%arg0: i32, %arg1: memref<1x8x128xf32, #tpu.memory_space<vmem>>, %arg2: memref<1x8x128xf32, #tpu.memory_space<vmem>>, %arg3: memref<128x384xbf16, #tpu.memory_space<vmem>>, %arg4: memref<1x384xf32, #tpu.memory_space<vmem>>, %arg5: memref<128x128xbf16, #tpu.memory_space<vmem>>, %arg6: memref<1x128xf32, #tpu.memory_space<vmem>>, %arg7: memref<1x128xf32, #tpu.memory_space<vmem>>, %arg8: memref<1x128xf32, #tpu.memory_space<vmem>>, %arg9: memref<128x384xbf16, #tpu.memory_space<vmem>>, %arg10: memref<1x384xf32, #tpu.memory_space<vmem>>, %arg11: memref<128x128xbf16, #tpu.memory_space<vmem>>, %arg12: memref<1x128xf32, #tpu.memory_space<vmem>>, %arg13: memref<1x128xf32, #tpu.memory_space<vmem>>, %arg14: memref<1x128xf32, #tpu.memory_space<vmem>>, %arg15: memref<128x256xbf16, #tpu.memory_space<vmem>>, %arg16: memref<1x256xf32, #tpu.memory_space<vmem>>, %arg17: memref<256x128xbf16, #tpu.memory_space<vmem>>, %arg18: memref<1x128xf32, #tpu.memory_space<vmem>>, %arg19: memref<1x128xf32, #tpu.memory_space<vmem>>, %arg20: memref<1x128xf32, #tpu.memory_space<vmem>>, %arg21: memref<1x8x128xf32, #tpu.memory_space<vmem>>) attributes {dimension_semantics = [#tpu.dimension_semantics<parallel>], iteration_bounds = array<i64: 2>, scalar_prefetch = 0 : i64, scratch_operands = 0 : i64, tpu.core_type = #tpu.core_type<tc>, window_params = [{transform_indices = @transform_0, window_bounds = array<i64: 1, 8, 128>}, {transform_indices = @transform_1, window_bounds = array<i64: 1, 8, 128>}, {pipeline_mode = #tpu.pipeline_mode<synchronous>, transform_indices = @transform_2, window_bounds = array<i64: 128, 384>}, {pipeline_mode = #tpu.pipeline_mode<synchronous>, transform_indices = @transform_3, window_bounds = array<i64: 1, 384>}, {pipeline_mode = #tpu.pipeline_mode<synchronous>, transform_indices = @transform_4, window_bounds = array<i64: 128, 128>}, {pipeline_mode = #tpu.pipeline_mode<synchronous>, transform_indices = @transform_5, window_bounds = array<i64: 1, 128>}, {pipeline_mode = #tpu.pipeline_mode<synchronous>, transform_indices = @transform_6, window_bounds = array<i64: 1, 128>}, {pipeline_mode = #tpu.pipeline_mode<synchronous>, transform_indices = @transform_7, window_bounds = array<i64: 1, 128>}, {pipeline_mode = #tpu.pipeline_mode<synchronous>, transform_indices = @transform_8, window_bounds = array<i64: 128, 384>}, {pipeline_mode = #tpu.pipeline_mode<synchronous>, transform_indices = @transform_9, window_bounds = array<i64: 1, 384>}, {pipeline_mode = #tpu.pipeline_mode<synchronous>, transform_indices = @transform_10, window_bounds = array<i64: 128, 128>}, {pipeline_mode = #tpu.pipeline_mode<synchronous>, transform_indices = @transform_11, window_bounds = array<i64: 1, 128>}, {pipeline_mode = #tpu.pipeline_mode<synchronous>, transform_indices = @transform_12, window_bounds = array<i64: 1, 128>}, {pipeline_mode = #tpu.pipeline_mode<synchronous>, transform_indices = @transform_13, window_bounds = array<i64: 1, 128>}, {pipeline_mode = #tpu.pipeline_mode<synchronous>, transform_indices = @transform_14, window_bounds = array<i64: 128, 256>}, {pipeline_mode = #tpu.pipeline_mode<synchronous>, transform_indices = @transform_15, window_bounds = array<i64: 1, 256>}, {pipeline_mode = #tpu.pipeline_mode<synchronous>, transform_indices = @transform_16, window_bounds = array<i64: 256, 128>}, {pipeline_mode = #tpu.pipeline_mode<synchronous>, transform_indices = @transform_17, window_bounds = array<i64: 1, 128>}, {pipeline_mode = #tpu.pipeline_mode<synchronous>, transform_indices = @transform_18, window_bounds = array<i64: 1, 128>}, {pipeline_mode = #tpu.pipeline_mode<synchronous>, transform_indices = @transform_19, window_bounds = array<i64: 1, 128>}, {transform_indices = @transform_20, window_bounds = array<i64: 1, 8, 128>}]} {
    %c0 = arith.constant 0 : index
    %c0_0 = arith.constant 0 : index
    %c0_1 = arith.constant 0 : index
    %0 = vector.load %arg1[%c0, %c0_0, %c0_1] : memref<1x8x128xf32, #tpu.memory_space<vmem>>, vector<1x8x128xf32>
    %1 = vector.shape_cast %0 : vector<1x8x128xf32> to vector<8x128xf32>
    %c0_2 = arith.constant 0 : index
    %c0_3 = arith.constant 0 : index
    %c0_4 = arith.constant 0 : index
    %2 = vector.load %arg2[%c0_2, %c0_3, %c0_4] : memref<1x8x128xf32, #tpu.memory_space<vmem>>, vector<1x8x128xf32>
    %3 = vector.shape_cast %2 : vector<1x8x128xf32> to vector<8x128xf32>
    %4 = arith.truncf %1 : vector<8x128xf32> to vector<8x128xbf16>
    %c0_5 = arith.constant 0 : index
    %c0_6 = arith.constant 0 : index
    %5 = vector.load %arg3[%c0_5, %c0_6] : memref<128x384xbf16, #tpu.memory_space<vmem>>, vector<128x384xbf16>
    %cst = arith.constant dense<0.000000e+00> : vector<8x384xf32>
    %6 = tpu.matmul %4, %5, %cst {dimension_numbers = #tpu.dot_dimension_numbers<[1], [0], [0], [1], [0, 0, 1, 1], [], []>} : vector<8x128xbf16>, vector<128x384xbf16>, vector<8x384xf32> -> vector<8x384xf32>
    %c0_7 = arith.constant 0 : index
    %c0_8 = arith.constant 0 : index
    %7 = vector.load %arg4[%c0_7, %c0_8] : memref<1x384xf32, #tpu.memory_space<vmem>>, vector<1x384xf32>
    %8 = vector.broadcast %7 : vector<1x384xf32> to vector<8x384xf32>
    %9 = arith.addf %6, %8 : vector<8x384xf32>
    %10 = vector.extract_strided_slice %9 {offsets = [0, 0], sizes = [8, 128], strides = [1, 1]} : vector<8x384xf32> to vector<8x128xf32>
    %11 = vector.extract_strided_slice %9 {offsets = [0, 128], sizes = [8, 128], strides = [1, 1]} : vector<8x384xf32> to vector<8x128xf32>
    %12 = vector.extract_strided_slice %9 {offsets = [0, 256], sizes = [8, 128], strides = [1, 1]} : vector<8x384xf32> to vector<8x128xf32>
    %13 = vector.extract_strided_slice %10 {offsets = [0, 0], sizes = [8, 32], strides = [1, 1]} : vector<8x128xf32> to vector<8x32xf32>
    %14 = arith.truncf %13 : vector<8x32xf32> to vector<8x32xbf16>
    %15 = vector.extract_strided_slice %11 {offsets = [0, 0], sizes = [8, 32], strides = [1, 1]} : vector<8x128xf32> to vector<8x32xf32>
    %16 = arith.truncf %15 : vector<8x32xf32> to vector<8x32xbf16>
    %17 = vector.extract_strided_slice %12 {offsets = [0, 0], sizes = [8, 32], strides = [1, 1]} : vector<8x128xf32> to vector<8x32xf32>
    %18 = arith.truncf %17 : vector<8x32xf32> to vector<8x32xbf16>
    %cst_9 = arith.constant dense<0.000000e+00> : vector<8x8xf32>
    %19 = tpu.matmul %14, %16, %cst_9 {dimension_numbers = #tpu.dot_dimension_numbers<[1], [1], [0], [0], [0, 0, 1, 0], [], []>} : vector<8x32xbf16>, vector<8x32xbf16>, vector<8x8xf32> -> vector<8x8xf32>
    %cst_10 = arith.constant 0.176776692 : f32
    %20 = vector.broadcast %cst_10 : f32 to vector<8x8xf32>
    %21 = arith.mulf %19, %20 : vector<8x8xf32>
    %cst_11 = arith.constant dense<0xFF800000> : vector<8xf32>
    %22 = vector.multi_reduction <maximumf>, %21, %cst_11 [1] : vector<8x8xf32> to vector<8xf32>
    %23 = vector.shape_cast %22 : vector<8xf32> to vector<8x1xf32>
    %24 = vector.broadcast %23 : vector<8x1xf32> to vector<8x8xf32>
    %25 = arith.subf %21, %24 : vector<8x8xf32>
    %26 = math.exp %25 : vector<8x8xf32>
    %cst_12 = arith.constant dense<0.000000e+00> : vector<8xf32>
    %27 = vector.multi_reduction <add>, %26, %cst_12 [1] : vector<8x8xf32> to vector<8xf32>
    %28 = vector.shape_cast %27 : vector<8xf32> to vector<8x1xf32>
    %29 = tpu.reciprocal %28 {approx = true} : vector<8x1xf32> -> vector<8x1xf32>
    %30 = vector.broadcast %29 : vector<8x1xf32> to vector<8x8xf32>
    %31 = arith.mulf %26, %30 : vector<8x8xf32>
    %32 = arith.truncf %31 : vector<8x8xf32> to vector<8x8xbf16>
    %cst_13 = arith.constant dense<0.000000e+00> : vector<8x32xf32>
    %33 = tpu.matmul %32, %18, %cst_13 {dimension_numbers = #tpu.dot_dimension_numbers<[1], [0], [0], [1], [0, 0, 1, 1], [], []>} : vector<8x8xbf16>, vector<8x32xbf16>, vector<8x32xf32> -> vector<8x32xf32>
    %34 = vector.extract_strided_slice %10 {offsets = [0, 32], sizes = [8, 32], strides = [1, 1]} : vector<8x128xf32> to vector<8x32xf32>
    %35 = arith.truncf %34 : vector<8x32xf32> to vector<8x32xbf16>
    %36 = vector.extract_strided_slice %11 {offsets = [0, 32], sizes = [8, 32], strides = [1, 1]} : vector<8x128xf32> to vector<8x32xf32>
    %37 = arith.truncf %36 : vector<8x32xf32> to vector<8x32xbf16>
    %38 = vector.extract_strided_slice %12 {offsets = [0, 32], sizes = [8, 32], strides = [1, 1]} : vector<8x128xf32> to vector<8x32xf32>
    %39 = arith.truncf %38 : vector<8x32xf32> to vector<8x32xbf16>
    %cst_14 = arith.constant dense<0.000000e+00> : vector<8x8xf32>
    %40 = tpu.matmul %35, %37, %cst_14 {dimension_numbers = #tpu.dot_dimension_numbers<[1], [1], [0], [0], [0, 0, 1, 0], [], []>} : vector<8x32xbf16>, vector<8x32xbf16>, vector<8x8xf32> -> vector<8x8xf32>
    %cst_15 = arith.constant 0.176776692 : f32
    %41 = vector.broadcast %cst_15 : f32 to vector<8x8xf32>
    %42 = arith.mulf %40, %41 : vector<8x8xf32>
    %cst_16 = arith.constant dense<0xFF800000> : vector<8xf32>
    %43 = vector.multi_reduction <maximumf>, %42, %cst_16 [1] : vector<8x8xf32> to vector<8xf32>
    %44 = vector.shape_cast %43 : vector<8xf32> to vector<8x1xf32>
    %45 = vector.broadcast %44 : vector<8x1xf32> to vector<8x8xf32>
    %46 = arith.subf %42, %45 : vector<8x8xf32>
    %47 = math.exp %46 : vector<8x8xf32>
    %cst_17 = arith.constant dense<0.000000e+00> : vector<8xf32>
    %48 = vector.multi_reduction <add>, %47, %cst_17 [1] : vector<8x8xf32> to vector<8xf32>
    %49 = vector.shape_cast %48 : vector<8xf32> to vector<8x1xf32>
    %50 = tpu.reciprocal %49 {approx = true} : vector<8x1xf32> -> vector<8x1xf32>
    %51 = vector.broadcast %50 : vector<8x1xf32> to vector<8x8xf32>
    %52 = arith.mulf %47, %51 : vector<8x8xf32>
    %53 = arith.truncf %52 : vector<8x8xf32> to vector<8x8xbf16>
    %cst_18 = arith.constant dense<0.000000e+00> : vector<8x32xf32>
    %54 = tpu.matmul %53, %39, %cst_18 {dimension_numbers = #tpu.dot_dimension_numbers<[1], [0], [0], [1], [0, 0, 1, 1], [], []>} : vector<8x8xbf16>, vector<8x32xbf16>, vector<8x32xf32> -> vector<8x32xf32>
    %55 = vector.extract_strided_slice %10 {offsets = [0, 64], sizes = [8, 32], strides = [1, 1]} : vector<8x128xf32> to vector<8x32xf32>
    %56 = arith.truncf %55 : vector<8x32xf32> to vector<8x32xbf16>
    %57 = vector.extract_strided_slice %11 {offsets = [0, 64], sizes = [8, 32], strides = [1, 1]} : vector<8x128xf32> to vector<8x32xf32>
    %58 = arith.truncf %57 : vector<8x32xf32> to vector<8x32xbf16>
    %59 = vector.extract_strided_slice %12 {offsets = [0, 64], sizes = [8, 32], strides = [1, 1]} : vector<8x128xf32> to vector<8x32xf32>
    %60 = arith.truncf %59 : vector<8x32xf32> to vector<8x32xbf16>
    %cst_19 = arith.constant dense<0.000000e+00> : vector<8x8xf32>
    %61 = tpu.matmul %56, %58, %cst_19 {dimension_numbers = #tpu.dot_dimension_numbers<[1], [1], [0], [0], [0, 0, 1, 0], [], []>} : vector<8x32xbf16>, vector<8x32xbf16>, vector<8x8xf32> -> vector<8x8xf32>
    %cst_20 = arith.constant 0.176776692 : f32
    %62 = vector.broadcast %cst_20 : f32 to vector<8x8xf32>
    %63 = arith.mulf %61, %62 : vector<8x8xf32>
    %cst_21 = arith.constant dense<0xFF800000> : vector<8xf32>
    %64 = vector.multi_reduction <maximumf>, %63, %cst_21 [1] : vector<8x8xf32> to vector<8xf32>
    %65 = vector.shape_cast %64 : vector<8xf32> to vector<8x1xf32>
    %66 = vector.broadcast %65 : vector<8x1xf32> to vector<8x8xf32>
    %67 = arith.subf %63, %66 : vector<8x8xf32>
    %68 = math.exp %67 : vector<8x8xf32>
    %cst_22 = arith.constant dense<0.000000e+00> : vector<8xf32>
    %69 = vector.multi_reduction <add>, %68, %cst_22 [1] : vector<8x8xf32> to vector<8xf32>
    %70 = vector.shape_cast %69 : vector<8xf32> to vector<8x1xf32>
    %71 = tpu.reciprocal %70 {approx = true} : vector<8x1xf32> -> vector<8x1xf32>
    %72 = vector.broadcast %71 : vector<8x1xf32> to vector<8x8xf32>
    %73 = arith.mulf %68, %72 : vector<8x8xf32>
    %74 = arith.truncf %73 : vector<8x8xf32> to vector<8x8xbf16>
    %cst_23 = arith.constant dense<0.000000e+00> : vector<8x32xf32>
    %75 = tpu.matmul %74, %60, %cst_23 {dimension_numbers = #tpu.dot_dimension_numbers<[1], [0], [0], [1], [0, 0, 1, 1], [], []>} : vector<8x8xbf16>, vector<8x32xbf16>, vector<8x32xf32> -> vector<8x32xf32>
    %76 = vector.extract_strided_slice %10 {offsets = [0, 96], sizes = [8, 32], strides = [1, 1]} : vector<8x128xf32> to vector<8x32xf32>
    %77 = arith.truncf %76 : vector<8x32xf32> to vector<8x32xbf16>
    %78 = vector.extract_strided_slice %11 {offsets = [0, 96], sizes = [8, 32], strides = [1, 1]} : vector<8x128xf32> to vector<8x32xf32>
    %79 = arith.truncf %78 : vector<8x32xf32> to vector<8x32xbf16>
    %80 = vector.extract_strided_slice %12 {offsets = [0, 96], sizes = [8, 32], strides = [1, 1]} : vector<8x128xf32> to vector<8x32xf32>
    %81 = arith.truncf %80 : vector<8x32xf32> to vector<8x32xbf16>
    %cst_24 = arith.constant dense<0.000000e+00> : vector<8x8xf32>
    %82 = tpu.matmul %77, %79, %cst_24 {dimension_numbers = #tpu.dot_dimension_numbers<[1], [1], [0], [0], [0, 0, 1, 0], [], []>} : vector<8x32xbf16>, vector<8x32xbf16>, vector<8x8xf32> -> vector<8x8xf32>
    %cst_25 = arith.constant 0.176776692 : f32
    %83 = vector.broadcast %cst_25 : f32 to vector<8x8xf32>
    %84 = arith.mulf %82, %83 : vector<8x8xf32>
    %cst_26 = arith.constant dense<0xFF800000> : vector<8xf32>
    %85 = vector.multi_reduction <maximumf>, %84, %cst_26 [1] : vector<8x8xf32> to vector<8xf32>
    %86 = vector.shape_cast %85 : vector<8xf32> to vector<8x1xf32>
    %87 = vector.broadcast %86 : vector<8x1xf32> to vector<8x8xf32>
    %88 = arith.subf %84, %87 : vector<8x8xf32>
    %89 = math.exp %88 : vector<8x8xf32>
    %cst_27 = arith.constant dense<0.000000e+00> : vector<8xf32>
    %90 = vector.multi_reduction <add>, %89, %cst_27 [1] : vector<8x8xf32> to vector<8xf32>
    %91 = vector.shape_cast %90 : vector<8xf32> to vector<8x1xf32>
    %92 = tpu.reciprocal %91 {approx = true} : vector<8x1xf32> -> vector<8x1xf32>
    %93 = vector.broadcast %92 : vector<8x1xf32> to vector<8x8xf32>
    %94 = arith.mulf %89, %93 : vector<8x8xf32>
    %95 = arith.truncf %94 : vector<8x8xf32> to vector<8x8xbf16>
    %cst_28 = arith.constant dense<0.000000e+00> : vector<8x32xf32>
    %96 = tpu.matmul %95, %81, %cst_28 {dimension_numbers = #tpu.dot_dimension_numbers<[1], [0], [0], [1], [0, 0, 1, 1], [], []>} : vector<8x8xbf16>, vector<8x32xbf16>, vector<8x32xf32> -> vector<8x32xf32>
    %97 = tpu.concatenate %33, %54, %75, %96 in 1 : vector<8x32xf32>, vector<8x32xf32>, vector<8x32xf32>, vector<8x32xf32> -> vector<8x128xf32>
    %98 = arith.truncf %97 : vector<8x128xf32> to vector<8x128xbf16>
    %c0_29 = arith.constant 0 : index
    %c0_30 = arith.constant 0 : index
    %99 = vector.load %arg5[%c0_29, %c0_30] : memref<128x128xbf16, #tpu.memory_space<vmem>>, vector<128x128xbf16>
    %cst_31 = arith.constant dense<0.000000e+00> : vector<8x128xf32>
    %100 = tpu.matmul %98, %99, %cst_31 {dimension_numbers = #tpu.dot_dimension_numbers<[1], [0], [0], [1], [0, 0, 1, 1], [], []>} : vector<8x128xbf16>, vector<128x128xbf16>, vector<8x128xf32> -> vector<8x128xf32>
    %c0_32 = arith.constant 0 : index
    %c0_33 = arith.constant 0 : index
    %101 = vector.load %arg6[%c0_32, %c0_33] : memref<1x128xf32, #tpu.memory_space<vmem>>, vector<1x128xf32>
    %102 = vector.broadcast %101 : vector<1x128xf32> to vector<8x128xf32>
    %103 = arith.addf %100, %102 : vector<8x128xf32>
    %104 = arith.addf %1, %103 : vector<8x128xf32>
    %c0_34 = arith.constant 0 : index
    %c0_35 = arith.constant 0 : index
    %105 = vector.load %arg7[%c0_34, %c0_35] : memref<1x128xf32, #tpu.memory_space<vmem>>, vector<1x128xf32>
    %c0_36 = arith.constant 0 : index
    %c0_37 = arith.constant 0 : index
    %106 = vector.load %arg8[%c0_36, %c0_37] : memref<1x128xf32, #tpu.memory_space<vmem>>, vector<1x128xf32>
    %cst_38 = arith.constant dense<0.000000e+00> : vector<8xf32>
    %107 = vector.multi_reduction <add>, %104, %cst_38 [1] : vector<8x128xf32> to vector<8xf32>
    %108 = vector.shape_cast %107 : vector<8xf32> to vector<8x1xf32>
    %cst_39 = arith.constant 1.280000e+02 : f32
    %109 = vector.broadcast %cst_39 : f32 to vector<8x1xf32>
    %110 = arith.divf %108, %109 : vector<8x1xf32>
    %111 = vector.broadcast %110 : vector<8x1xf32> to vector<8x128xf32>
    %112 = arith.subf %104, %111 : vector<8x128xf32>
    %113 = arith.mulf %112, %112 : vector<8x128xf32>
    %cst_40 = arith.constant dense<0.000000e+00> : vector<8xf32>
    %114 = vector.multi_reduction <add>, %113, %cst_40 [1] : vector<8x128xf32> to vector<8xf32>
    %115 = vector.shape_cast %114 : vector<8xf32> to vector<8x1xf32>
    %cst_41 = arith.constant 1.280000e+02 : f32
    %116 = vector.broadcast %cst_41 : f32 to vector<8x1xf32>
    %117 = arith.divf %115, %116 : vector<8x1xf32>
    %118 = vector.broadcast %110 : vector<8x1xf32> to vector<8x128xf32>
    %119 = arith.subf %104, %118 : vector<8x128xf32>
    %cst_42 = arith.constant 9.99999974E-6 : f32
    %120 = vector.broadcast %cst_42 : f32 to vector<8x1xf32>
    %121 = arith.addf %117, %120 : vector<8x1xf32>
    %122 = math.rsqrt %121 : vector<8x1xf32>
    %123 = vector.broadcast %122 : vector<8x1xf32> to vector<8x128xf32>
    %124 = arith.mulf %119, %123 : vector<8x128xf32>
    %125 = vector.broadcast %105 : vector<1x128xf32> to vector<8x128xf32>
    %126 = arith.mulf %124, %125 : vector<8x128xf32>
    %127 = vector.broadcast %106 : vector<1x128xf32> to vector<8x128xf32>
    %128 = arith.addf %126, %127 : vector<8x128xf32>
    %129 = arith.truncf %128 : vector<8x128xf32> to vector<8x128xbf16>
    %c0_43 = arith.constant 0 : index
    %c0_44 = arith.constant 0 : index
    %130 = vector.load %arg9[%c0_43, %c0_44] : memref<128x384xbf16, #tpu.memory_space<vmem>>, vector<128x128xbf16>
    %cst_45 = arith.constant dense<0.000000e+00> : vector<8x128xf32>
    %131 = tpu.matmul %129, %130, %cst_45 {dimension_numbers = #tpu.dot_dimension_numbers<[1], [0], [0], [1], [0, 0, 1, 1], [], []>} : vector<8x128xbf16>, vector<128x128xbf16>, vector<8x128xf32> -> vector<8x128xf32>
    %c0_46 = arith.constant 0 : index
    %c0_47 = arith.constant 0 : index
    %132 = vector.load %arg10[%c0_46, %c0_47] : memref<1x384xf32, #tpu.memory_space<vmem>>, vector<1x128xf32>
    %133 = vector.broadcast %132 : vector<1x128xf32> to vector<8x128xf32>
    %134 = arith.addf %131, %133 : vector<8x128xf32>
    %135 = arith.truncf %3 : vector<8x128xf32> to vector<8x128xbf16>
    %c0_48 = arith.constant 0 : index
    %c128 = arith.constant 128 : index
    %136 = vector.load %arg9[%c0_48, %c128] : memref<128x384xbf16, #tpu.memory_space<vmem>>, vector<128x256xbf16>
    %cst_49 = arith.constant dense<0.000000e+00> : vector<8x256xf32>
    %137 = tpu.matmul %135, %136, %cst_49 {dimension_numbers = #tpu.dot_dimension_numbers<[1], [0], [0], [1], [0, 0, 1, 1], [], []>} : vector<8x128xbf16>, vector<128x256xbf16>, vector<8x256xf32> -> vector<8x256xf32>
    %c0_50 = arith.constant 0 : index
    %c128_51 = arith.constant 128 : index
    %138 = vector.load %arg10[%c0_50, %c128_51] : memref<1x384xf32, #tpu.memory_space<vmem>>, vector<1x256xf32>
    %139 = vector.broadcast %138 : vector<1x256xf32> to vector<8x256xf32>
    %140 = arith.addf %137, %139 : vector<8x256xf32>
    %141 = vector.extract_strided_slice %140 {offsets = [0, 0], sizes = [8, 128], strides = [1, 1]} : vector<8x256xf32> to vector<8x128xf32>
    %142 = vector.extract_strided_slice %140 {offsets = [0, 128], sizes = [8, 128], strides = [1, 1]} : vector<8x256xf32> to vector<8x128xf32>
    %143 = vector.extract_strided_slice %134 {offsets = [0, 0], sizes = [8, 32], strides = [1, 1]} : vector<8x128xf32> to vector<8x32xf32>
    %144 = arith.truncf %143 : vector<8x32xf32> to vector<8x32xbf16>
    %145 = vector.extract_strided_slice %141 {offsets = [0, 0], sizes = [8, 32], strides = [1, 1]} : vector<8x128xf32> to vector<8x32xf32>
    %146 = arith.truncf %145 : vector<8x32xf32> to vector<8x32xbf16>
    %147 = vector.extract_strided_slice %142 {offsets = [0, 0], sizes = [8, 32], strides = [1, 1]} : vector<8x128xf32> to vector<8x32xf32>
    %148 = arith.truncf %147 : vector<8x32xf32> to vector<8x32xbf16>
    %cst_52 = arith.constant dense<0.000000e+00> : vector<8x8xf32>
    %149 = tpu.matmul %144, %146, %cst_52 {dimension_numbers = #tpu.dot_dimension_numbers<[1], [1], [0], [0], [0, 0, 1, 0], [], []>} : vector<8x32xbf16>, vector<8x32xbf16>, vector<8x8xf32> -> vector<8x8xf32>
    %cst_53 = arith.constant 0.176776692 : f32
    %150 = vector.broadcast %cst_53 : f32 to vector<8x8xf32>
    %151 = arith.mulf %149, %150 : vector<8x8xf32>
    %cst_54 = arith.constant dense<0xFF800000> : vector<8xf32>
    %152 = vector.multi_reduction <maximumf>, %151, %cst_54 [1] : vector<8x8xf32> to vector<8xf32>
    %153 = vector.shape_cast %152 : vector<8xf32> to vector<8x1xf32>
    %154 = vector.broadcast %153 : vector<8x1xf32> to vector<8x8xf32>
    %155 = arith.subf %151, %154 : vector<8x8xf32>
    %156 = math.exp %155 : vector<8x8xf32>
    %cst_55 = arith.constant dense<0.000000e+00> : vector<8xf32>
    %157 = vector.multi_reduction <add>, %156, %cst_55 [1] : vector<8x8xf32> to vector<8xf32>
    %158 = vector.shape_cast %157 : vector<8xf32> to vector<8x1xf32>
    %159 = tpu.reciprocal %158 {approx = true} : vector<8x1xf32> -> vector<8x1xf32>
    %160 = vector.broadcast %159 : vector<8x1xf32> to vector<8x8xf32>
    %161 = arith.mulf %156, %160 : vector<8x8xf32>
    %162 = arith.truncf %161 : vector<8x8xf32> to vector<8x8xbf16>
    %cst_56 = arith.constant dense<0.000000e+00> : vector<8x32xf32>
    %163 = tpu.matmul %162, %148, %cst_56 {dimension_numbers = #tpu.dot_dimension_numbers<[1], [0], [0], [1], [0, 0, 1, 1], [], []>} : vector<8x8xbf16>, vector<8x32xbf16>, vector<8x32xf32> -> vector<8x32xf32>
    %164 = vector.extract_strided_slice %134 {offsets = [0, 32], sizes = [8, 32], strides = [1, 1]} : vector<8x128xf32> to vector<8x32xf32>
    %165 = arith.truncf %164 : vector<8x32xf32> to vector<8x32xbf16>
    %166 = vector.extract_strided_slice %141 {offsets = [0, 32], sizes = [8, 32], strides = [1, 1]} : vector<8x128xf32> to vector<8x32xf32>
    %167 = arith.truncf %166 : vector<8x32xf32> to vector<8x32xbf16>
    %168 = vector.extract_strided_slice %142 {offsets = [0, 32], sizes = [8, 32], strides = [1, 1]} : vector<8x128xf32> to vector<8x32xf32>
    %169 = arith.truncf %168 : vector<8x32xf32> to vector<8x32xbf16>
    %cst_57 = arith.constant dense<0.000000e+00> : vector<8x8xf32>
    %170 = tpu.matmul %165, %167, %cst_57 {dimension_numbers = #tpu.dot_dimension_numbers<[1], [1], [0], [0], [0, 0, 1, 0], [], []>} : vector<8x32xbf16>, vector<8x32xbf16>, vector<8x8xf32> -> vector<8x8xf32>
    %cst_58 = arith.constant 0.176776692 : f32
    %171 = vector.broadcast %cst_58 : f32 to vector<8x8xf32>
    %172 = arith.mulf %170, %171 : vector<8x8xf32>
    %cst_59 = arith.constant dense<0xFF800000> : vector<8xf32>
    %173 = vector.multi_reduction <maximumf>, %172, %cst_59 [1] : vector<8x8xf32> to vector<8xf32>
    %174 = vector.shape_cast %173 : vector<8xf32> to vector<8x1xf32>
    %175 = vector.broadcast %174 : vector<8x1xf32> to vector<8x8xf32>
    %176 = arith.subf %172, %175 : vector<8x8xf32>
    %177 = math.exp %176 : vector<8x8xf32>
    %cst_60 = arith.constant dense<0.000000e+00> : vector<8xf32>
    %178 = vector.multi_reduction <add>, %177, %cst_60 [1] : vector<8x8xf32> to vector<8xf32>
    %179 = vector.shape_cast %178 : vector<8xf32> to vector<8x1xf32>
    %180 = tpu.reciprocal %179 {approx = true} : vector<8x1xf32> -> vector<8x1xf32>
    %181 = vector.broadcast %180 : vector<8x1xf32> to vector<8x8xf32>
    %182 = arith.mulf %177, %181 : vector<8x8xf32>
    %183 = arith.truncf %182 : vector<8x8xf32> to vector<8x8xbf16>
    %cst_61 = arith.constant dense<0.000000e+00> : vector<8x32xf32>
    %184 = tpu.matmul %183, %169, %cst_61 {dimension_numbers = #tpu.dot_dimension_numbers<[1], [0], [0], [1], [0, 0, 1, 1], [], []>} : vector<8x8xbf16>, vector<8x32xbf16>, vector<8x32xf32> -> vector<8x32xf32>
    %185 = vector.extract_strided_slice %134 {offsets = [0, 64], sizes = [8, 32], strides = [1, 1]} : vector<8x128xf32> to vector<8x32xf32>
    %186 = arith.truncf %185 : vector<8x32xf32> to vector<8x32xbf16>
    %187 = vector.extract_strided_slice %141 {offsets = [0, 64], sizes = [8, 32], strides = [1, 1]} : vector<8x128xf32> to vector<8x32xf32>
    %188 = arith.truncf %187 : vector<8x32xf32> to vector<8x32xbf16>
    %189 = vector.extract_strided_slice %142 {offsets = [0, 64], sizes = [8, 32], strides = [1, 1]} : vector<8x128xf32> to vector<8x32xf32>
    %190 = arith.truncf %189 : vector<8x32xf32> to vector<8x32xbf16>
    %cst_62 = arith.constant dense<0.000000e+00> : vector<8x8xf32>
    %191 = tpu.matmul %186, %188, %cst_62 {dimension_numbers = #tpu.dot_dimension_numbers<[1], [1], [0], [0], [0, 0, 1, 0], [], []>} : vector<8x32xbf16>, vector<8x32xbf16>, vector<8x8xf32> -> vector<8x8xf32>
    %cst_63 = arith.constant 0.176776692 : f32
    %192 = vector.broadcast %cst_63 : f32 to vector<8x8xf32>
    %193 = arith.mulf %191, %192 : vector<8x8xf32>
    %cst_64 = arith.constant dense<0xFF800000> : vector<8xf32>
    %194 = vector.multi_reduction <maximumf>, %193, %cst_64 [1] : vector<8x8xf32> to vector<8xf32>
    %195 = vector.shape_cast %194 : vector<8xf32> to vector<8x1xf32>
    %196 = vector.broadcast %195 : vector<8x1xf32> to vector<8x8xf32>
    %197 = arith.subf %193, %196 : vector<8x8xf32>
    %198 = math.exp %197 : vector<8x8xf32>
    %cst_65 = arith.constant dense<0.000000e+00> : vector<8xf32>
    %199 = vector.multi_reduction <add>, %198, %cst_65 [1] : vector<8x8xf32> to vector<8xf32>
    %200 = vector.shape_cast %199 : vector<8xf32> to vector<8x1xf32>
    %201 = tpu.reciprocal %200 {approx = true} : vector<8x1xf32> -> vector<8x1xf32>
    %202 = vector.broadcast %201 : vector<8x1xf32> to vector<8x8xf32>
    %203 = arith.mulf %198, %202 : vector<8x8xf32>
    %204 = arith.truncf %203 : vector<8x8xf32> to vector<8x8xbf16>
    %cst_66 = arith.constant dense<0.000000e+00> : vector<8x32xf32>
    %205 = tpu.matmul %204, %190, %cst_66 {dimension_numbers = #tpu.dot_dimension_numbers<[1], [0], [0], [1], [0, 0, 1, 1], [], []>} : vector<8x8xbf16>, vector<8x32xbf16>, vector<8x32xf32> -> vector<8x32xf32>
    %206 = vector.extract_strided_slice %134 {offsets = [0, 96], sizes = [8, 32], strides = [1, 1]} : vector<8x128xf32> to vector<8x32xf32>
    %207 = arith.truncf %206 : vector<8x32xf32> to vector<8x32xbf16>
    %208 = vector.extract_strided_slice %141 {offsets = [0, 96], sizes = [8, 32], strides = [1, 1]} : vector<8x128xf32> to vector<8x32xf32>
    %209 = arith.truncf %208 : vector<8x32xf32> to vector<8x32xbf16>
    %210 = vector.extract_strided_slice %142 {offsets = [0, 96], sizes = [8, 32], strides = [1, 1]} : vector<8x128xf32> to vector<8x32xf32>
    %211 = arith.truncf %210 : vector<8x32xf32> to vector<8x32xbf16>
    %cst_67 = arith.constant dense<0.000000e+00> : vector<8x8xf32>
    %212 = tpu.matmul %207, %209, %cst_67 {dimension_numbers = #tpu.dot_dimension_numbers<[1], [1], [0], [0], [0, 0, 1, 0], [], []>} : vector<8x32xbf16>, vector<8x32xbf16>, vector<8x8xf32> -> vector<8x8xf32>
    %cst_68 = arith.constant 0.176776692 : f32
    %213 = vector.broadcast %cst_68 : f32 to vector<8x8xf32>
    %214 = arith.mulf %212, %213 : vector<8x8xf32>
    %cst_69 = arith.constant dense<0xFF800000> : vector<8xf32>
    %215 = vector.multi_reduction <maximumf>, %214, %cst_69 [1] : vector<8x8xf32> to vector<8xf32>
    %216 = vector.shape_cast %215 : vector<8xf32> to vector<8x1xf32>
    %217 = vector.broadcast %216 : vector<8x1xf32> to vector<8x8xf32>
    %218 = arith.subf %214, %217 : vector<8x8xf32>
    %219 = math.exp %218 : vector<8x8xf32>
    %cst_70 = arith.constant dense<0.000000e+00> : vector<8xf32>
    %220 = vector.multi_reduction <add>, %219, %cst_70 [1] : vector<8x8xf32> to vector<8xf32>
    %221 = vector.shape_cast %220 : vector<8xf32> to vector<8x1xf32>
    %222 = tpu.reciprocal %221 {approx = true} : vector<8x1xf32> -> vector<8x1xf32>
    %223 = vector.broadcast %222 : vector<8x1xf32> to vector<8x8xf32>
    %224 = arith.mulf %219, %223 : vector<8x8xf32>
    %225 = arith.truncf %224 : vector<8x8xf32> to vector<8x8xbf16>
    %cst_71 = arith.constant dense<0.000000e+00> : vector<8x32xf32>
    %226 = tpu.matmul %225, %211, %cst_71 {dimension_numbers = #tpu.dot_dimension_numbers<[1], [0], [0], [1], [0, 0, 1, 1], [], []>} : vector<8x8xbf16>, vector<8x32xbf16>, vector<8x32xf32> -> vector<8x32xf32>
    %227 = tpu.concatenate %163, %184, %205, %226 in 1 : vector<8x32xf32>, vector<8x32xf32>, vector<8x32xf32>, vector<8x32xf32> -> vector<8x128xf32>
    %228 = arith.truncf %227 : vector<8x128xf32> to vector<8x128xbf16>
    %c0_72 = arith.constant 0 : index
    %c0_73 = arith.constant 0 : index
    %229 = vector.load %arg11[%c0_72, %c0_73] : memref<128x128xbf16, #tpu.memory_space<vmem>>, vector<128x128xbf16>
    %cst_74 = arith.constant dense<0.000000e+00> : vector<8x128xf32>
    %230 = tpu.matmul %228, %229, %cst_74 {dimension_numbers = #tpu.dot_dimension_numbers<[1], [0], [0], [1], [0, 0, 1, 1], [], []>} : vector<8x128xbf16>, vector<128x128xbf16>, vector<8x128xf32> -> vector<8x128xf32>
    %c0_75 = arith.constant 0 : index
    %c0_76 = arith.constant 0 : index
    %231 = vector.load %arg12[%c0_75, %c0_76] : memref<1x128xf32, #tpu.memory_space<vmem>>, vector<1x128xf32>
    %232 = vector.broadcast %231 : vector<1x128xf32> to vector<8x128xf32>
    %233 = arith.addf %230, %232 : vector<8x128xf32>
    %234 = arith.addf %128, %233 : vector<8x128xf32>
    %c0_77 = arith.constant 0 : index
    %c0_78 = arith.constant 0 : index
    %235 = vector.load %arg13[%c0_77, %c0_78] : memref<1x128xf32, #tpu.memory_space<vmem>>, vector<1x128xf32>
    %c0_79 = arith.constant 0 : index
    %c0_80 = arith.constant 0 : index
    %236 = vector.load %arg14[%c0_79, %c0_80] : memref<1x128xf32, #tpu.memory_space<vmem>>, vector<1x128xf32>
    %cst_81 = arith.constant dense<0.000000e+00> : vector<8xf32>
    %237 = vector.multi_reduction <add>, %234, %cst_81 [1] : vector<8x128xf32> to vector<8xf32>
    %238 = vector.shape_cast %237 : vector<8xf32> to vector<8x1xf32>
    %cst_82 = arith.constant 1.280000e+02 : f32
    %239 = vector.broadcast %cst_82 : f32 to vector<8x1xf32>
    %240 = arith.divf %238, %239 : vector<8x1xf32>
    %241 = vector.broadcast %240 : vector<8x1xf32> to vector<8x128xf32>
    %242 = arith.subf %234, %241 : vector<8x128xf32>
    %243 = arith.mulf %242, %242 : vector<8x128xf32>
    %cst_83 = arith.constant dense<0.000000e+00> : vector<8xf32>
    %244 = vector.multi_reduction <add>, %243, %cst_83 [1] : vector<8x128xf32> to vector<8xf32>
    %245 = vector.shape_cast %244 : vector<8xf32> to vector<8x1xf32>
    %cst_84 = arith.constant 1.280000e+02 : f32
    %246 = vector.broadcast %cst_84 : f32 to vector<8x1xf32>
    %247 = arith.divf %245, %246 : vector<8x1xf32>
    %248 = vector.broadcast %240 : vector<8x1xf32> to vector<8x128xf32>
    %249 = arith.subf %234, %248 : vector<8x128xf32>
    %cst_85 = arith.constant 9.99999974E-6 : f32
    %250 = vector.broadcast %cst_85 : f32 to vector<8x1xf32>
    %251 = arith.addf %247, %250 : vector<8x1xf32>
    %252 = math.rsqrt %251 : vector<8x1xf32>
    %253 = vector.broadcast %252 : vector<8x1xf32> to vector<8x128xf32>
    %254 = arith.mulf %249, %253 : vector<8x128xf32>
    %255 = vector.broadcast %235 : vector<1x128xf32> to vector<8x128xf32>
    %256 = arith.mulf %254, %255 : vector<8x128xf32>
    %257 = vector.broadcast %236 : vector<1x128xf32> to vector<8x128xf32>
    %258 = arith.addf %256, %257 : vector<8x128xf32>
    %259 = arith.truncf %258 : vector<8x128xf32> to vector<8x128xbf16>
    %c0_86 = arith.constant 0 : index
    %c0_87 = arith.constant 0 : index
    %260 = vector.load %arg15[%c0_86, %c0_87] : memref<128x256xbf16, #tpu.memory_space<vmem>>, vector<128x256xbf16>
    %cst_88 = arith.constant dense<0.000000e+00> : vector<8x256xf32>
    %261 = tpu.matmul %259, %260, %cst_88 {dimension_numbers = #tpu.dot_dimension_numbers<[1], [0], [0], [1], [0, 0, 1, 1], [], []>} : vector<8x128xbf16>, vector<128x256xbf16>, vector<8x256xf32> -> vector<8x256xf32>
    %c0_89 = arith.constant 0 : index
    %c0_90 = arith.constant 0 : index
    %262 = vector.load %arg16[%c0_89, %c0_90] : memref<1x256xf32, #tpu.memory_space<vmem>>, vector<1x256xf32>
    %263 = vector.broadcast %262 : vector<1x256xf32> to vector<8x256xf32>
    %264 = arith.addf %261, %263 : vector<8x256xf32>
    %cst_91 = arith.constant 0.000000e+00 : f32
    %265 = vector.broadcast %cst_91 : f32 to vector<8x256xf32>
    %266 = arith.maximumf %264, %265 : vector<8x256xf32>
    %267 = arith.truncf %266 : vector<8x256xf32> to vector<8x256xbf16>
    %c0_92 = arith.constant 0 : index
    %c0_93 = arith.constant 0 : index
    %268 = vector.load %arg17[%c0_92, %c0_93] : memref<256x128xbf16, #tpu.memory_space<vmem>>, vector<256x128xbf16>
    %cst_94 = arith.constant dense<0.000000e+00> : vector<8x128xf32>
    %269 = tpu.matmul %267, %268, %cst_94 {dimension_numbers = #tpu.dot_dimension_numbers<[1], [0], [0], [1], [0, 0, 1, 1], [], []>} : vector<8x256xbf16>, vector<256x128xbf16>, vector<8x128xf32> -> vector<8x128xf32>
    %c0_95 = arith.constant 0 : index
    %c0_96 = arith.constant 0 : index
    %270 = vector.load %arg18[%c0_95, %c0_96] : memref<1x128xf32, #tpu.memory_space<vmem>>, vector<1x128xf32>
    %271 = vector.broadcast %270 : vector<1x128xf32> to vector<8x128xf32>
    %272 = arith.addf %269, %271 : vector<8x128xf32>
    %273 = arith.addf %258, %272 : vector<8x128xf32>
    %c0_97 = arith.constant 0 : index
    %c0_98 = arith.constant 0 : index
    %274 = vector.load %arg19[%c0_97, %c0_98] : memref<1x128xf32, #tpu.memory_space<vmem>>, vector<1x128xf32>
    %c0_99 = arith.constant 0 : index
    %c0_100 = arith.constant 0 : index
    %275 = vector.load %arg20[%c0_99, %c0_100] : memref<1x128xf32, #tpu.memory_space<vmem>>, vector<1x128xf32>
    %cst_101 = arith.constant dense<0.000000e+00> : vector<8xf32>
    %276 = vector.multi_reduction <add>, %273, %cst_101 [1] : vector<8x128xf32> to vector<8xf32>
    %277 = vector.shape_cast %276 : vector<8xf32> to vector<8x1xf32>
    %cst_102 = arith.constant 1.280000e+02 : f32
    %278 = vector.broadcast %cst_102 : f32 to vector<8x1xf32>
    %279 = arith.divf %277, %278 : vector<8x1xf32>
    %280 = vector.broadcast %279 : vector<8x1xf32> to vector<8x128xf32>
    %281 = arith.subf %273, %280 : vector<8x128xf32>
    %282 = arith.mulf %281, %281 : vector<8x128xf32>
    %cst_103 = arith.constant dense<0.000000e+00> : vector<8xf32>
    %283 = vector.multi_reduction <add>, %282, %cst_103 [1] : vector<8x128xf32> to vector<8xf32>
    %284 = vector.shape_cast %283 : vector<8xf32> to vector<8x1xf32>
    %cst_104 = arith.constant 1.280000e+02 : f32
    %285 = vector.broadcast %cst_104 : f32 to vector<8x1xf32>
    %286 = arith.divf %284, %285 : vector<8x1xf32>
    %287 = vector.broadcast %279 : vector<8x1xf32> to vector<8x128xf32>
    %288 = arith.subf %273, %287 : vector<8x128xf32>
    %cst_105 = arith.constant 9.99999974E-6 : f32
    %289 = vector.broadcast %cst_105 : f32 to vector<8x1xf32>
    %290 = arith.addf %286, %289 : vector<8x1xf32>
    %291 = math.rsqrt %290 : vector<8x1xf32>
    %292 = vector.broadcast %291 : vector<8x1xf32> to vector<8x128xf32>
    %293 = arith.mulf %288, %292 : vector<8x128xf32>
    %294 = vector.broadcast %274 : vector<1x128xf32> to vector<8x128xf32>
    %295 = arith.mulf %293, %294 : vector<8x128xf32>
    %296 = vector.broadcast %275 : vector<1x128xf32> to vector<8x128xf32>
    %297 = arith.addf %295, %296 : vector<8x128xf32>
    %c0_106 = arith.constant 0 : index
    %c0_107 = arith.constant 0 : index
    %c0_108 = arith.constant 0 : index
    %298 = vector.load %arg21[%c0_106, %c0_107, %c0_108] : memref<1x8x128xf32, #tpu.memory_space<vmem>>, vector<1x8x128xf32>
    %299 = vector.shape_cast %298 : vector<1x8x128xf32> to vector<8x128xf32>
    %300 = vector.shape_cast %297 : vector<8x128xf32> to vector<1x8x128xf32>
    tpu.vector_store %arg21[%c0_106, %c0_107, %c0_108], %300 {strides = array<i32>} : memref<1x8x128xf32, #tpu.memory_space<vmem>>, vector<1x8x128xf32>,
    return
  }
  func.func @transform_0(%arg0: i32) -> (i32, i32, i32) {
    %c0_i32 = arith.constant 0 : i32
    %c0_i32_0 = arith.constant 0 : i32
    %c0_i32_1 = arith.constant 0 : i32
    return %arg0, %c0_i32, %c0_i32_0 : i32, i32, i32
  }
  func.func @transform_1(%arg0: i32) -> (i32, i32, i32) {
    %c0_i32 = arith.constant 0 : i32
    %c0_i32_0 = arith.constant 0 : i32
    %c0_i32_1 = arith.constant 0 : i32
    return %arg0, %c0_i32, %c0_i32_0 : i32, i32, i32
  }
  func.func @transform_2(%arg0: i32) -> (i32, i32) {
    %c0_i32 = arith.constant 0 : i32
    %c0_i32_0 = arith.constant 0 : i32
    %c0_i32_1 = arith.constant 0 : i32
    return %c0_i32, %c0_i32_0 : i32, i32
  }
  func.func @transform_3(%arg0: i32) -> (i32, i32) {
    %c0_i32 = arith.constant 0 : i32
    %c0_i32_0 = arith.constant 0 : i32
    %c0_i32_1 = arith.constant 0 : i32
    return %c0_i32, %c0_i32_0 : i32, i32
  }
  func.func @transform_4(%arg0: i32) -> (i32, i32) {
    %c0_i32 = arith.constant 0 : i32
    %c0_i32_0 = arith.constant 0 : i32
    %c0_i32_1 = arith.constant 0 : i32
    return %c0_i32, %c0_i32_0 : i32, i32
  }
  func.func @transform_5(%arg0: i32) -> (i32, i32) {
    %c0_i32 = arith.constant 0 : i32
    %c0_i32_0 = arith.constant 0 : i32
    %c0_i32_1 = arith.constant 0 : i32
    return %c0_i32, %c0_i32_0 : i32, i32
  }
  func.func @transform_6(%arg0: i32) -> (i32, i32) {
    %c0_i32 = arith.constant 0 : i32
    %c0_i32_0 = arith.constant 0 : i32
    %c0_i32_1 = arith.constant 0 : i32
    return %c0_i32, %c0_i32_0 : i32, i32
  }
  func.func @transform_7(%arg0: i32) -> (i32, i32) {
    %c0_i32 = arith.constant 0 : i32
    %c0_i32_0 = arith.constant 0 : i32
    %c0_i32_1 = arith.constant 0 : i32
    return %c0_i32, %c0_i32_0 : i32, i32
  }
  func.func @transform_8(%arg0: i32) -> (i32, i32) {
    %c0_i32 = arith.constant 0 : i32
    %c0_i32_0 = arith.constant 0 : i32
    %c0_i32_1 = arith.constant 0 : i32
    return %c0_i32, %c0_i32_0 : i32, i32
  }
  func.func @transform_9(%arg0: i32) -> (i32, i32) {
    %c0_i32 = arith.constant 0 : i32
    %c0_i32_0 = arith.constant 0 : i32
    %c0_i32_1 = arith.constant 0 : i32
    return %c0_i32, %c0_i32_0 : i32, i32
  }
  func.func @transform_10(%arg0: i32) -> (i32, i32) {
    %c0_i32 = arith.constant 0 : i32
    %c0_i32_0 = arith.constant 0 : i32
    %c0_i32_1 = arith.constant 0 : i32
    return %c0_i32, %c0_i32_0 : i32, i32
  }
  func.func @transform_11(%arg0: i32) -> (i32, i32) {
    %c0_i32 = arith.constant 0 : i32
    %c0_i32_0 = arith.constant 0 : i32
    %c0_i32_1 = arith.constant 0 : i32
    return %c0_i32, %c0_i32_0 : i32, i32
  }
  func.func @transform_12(%arg0: i32) -> (i32, i32) {
    %c0_i32 = arith.constant 0 : i32
    %c0_i32_0 = arith.constant 0 : i32
    %c0_i32_1 = arith.constant 0 : i32
    return %c0_i32, %c0_i32_0 : i32, i32
  }
  func.func @transform_13(%arg0: i32) -> (i32, i32) {
    %c0_i32 = arith.constant 0 : i32
    %c0_i32_0 = arith.constant 0 : i32
    %c0_i32_1 = arith.constant 0 : i32
    return %c0_i32, %c0_i32_0 : i32, i32
  }
  func.func @transform_14(%arg0: i32) -> (i32, i32) {
    %c0_i32 = arith.constant 0 : i32
    %c0_i32_0 = arith.constant 0 : i32
    %c0_i32_1 = arith.constant 0 : i32
    return %c0_i32, %c0_i32_0 : i32, i32
  }
  func.func @transform_15(%arg0: i32) -> (i32, i32) {
    %c0_i32 = arith.constant 0 : i32
    %c0_i32_0 = arith.constant 0 : i32
    %c0_i32_1 = arith.constant 0 : i32
    return %c0_i32, %c0_i32_0 : i32, i32
  }
  func.func @transform_16(%arg0: i32) -> (i32, i32) {
    %c0_i32 = arith.constant 0 : i32
    %c0_i32_0 = arith.constant 0 : i32
    %c0_i32_1 = arith.constant 0 : i32
    return %c0_i32, %c0_i32_0 : i32, i32
  }
  func.func @transform_17(%arg0: i32) -> (i32, i32) {
    %c0_i32 = arith.constant 0 : i32
    %c0_i32_0 = arith.constant 0 : i32
    %c0_i32_1 = arith.constant 0 : i32
    return %c0_i32, %c0_i32_0 : i32, i32
  }
  func.func @transform_18(%arg0: i32) -> (i32, i32) {
    %c0_i32 = arith.constant 0 : i32
    %c0_i32_0 = arith.constant 0 : i32
    %c0_i32_1 = arith.constant 0 : i32
    return %c0_i32, %c0_i32_0 : i32, i32
  }
  func.func @transform_19(%arg0: i32) -> (i32, i32) {
    %c0_i32 = arith.constant 0 : i32
    %c0_i32_0 = arith.constant 0 : i32
    %c0_i32_1 = arith.constant 0 : i32
    return %c0_i32, %c0_i32_0 : i32, i32
  }
  func.func @transform_20(%arg0: i32) -> (i32, i32, i32) {
    %c0_i32 = arith.constant 0 : i32
    %c0_i32_0 = arith.constant 0 : i32
    %c0_i32_1 = arith.constant 0 : i32
    return %arg0, %c0_i32, %c0_i32_0 : i32, i32, i32
  }
}

module attributes {stable_mosaic.version = 11 : i64} {
  func.func @_layernorm_kernel(%arg0: i32, %arg1: memref<1x8x128xf32, #tpu.memory_space<vmem>>, %arg2: memref<1x128xf32, #tpu.memory_space<vmem>>, %arg3: memref<1x128xf32, #tpu.memory_space<vmem>>, %arg4: memref<1x8x128xf32, #tpu.memory_space<vmem>>) attributes {dimension_semantics = [#tpu.dimension_semantics<parallel>], iteration_bounds = array<i64: 2>, scalar_prefetch = 0 : i64, scratch_operands = 0 : i64, tpu.core_type = #tpu.core_type<tc>, window_params = [{transform_indices = @transform_0, window_bounds = array<i64: 1, 8, 128>}, {pipeline_mode = #tpu.pipeline_mode<synchronous>, transform_indices = @transform_1, window_bounds = array<i64: 1, 128>}, {pipeline_mode = #tpu.pipeline_mode<synchronous>, transform_indices = @transform_2, window_bounds = array<i64: 1, 128>}, {transform_indices = @transform_3, window_bounds = array<i64: 1, 8, 128>}]} {
    %c0 = arith.constant 0 : index
    %c0_0 = arith.constant 0 : index
    %c0_1 = arith.constant 0 : index
    %0 = vector.load %arg1[%c0, %c0_0, %c0_1] : memref<1x8x128xf32, #tpu.memory_space<vmem>>, vector<1x8x128xf32>
    %1 = vector.shape_cast %0 : vector<1x8x128xf32> to vector<8x128xf32>
    %c0_2 = arith.constant 0 : index
    %c0_3 = arith.constant 0 : index
    %2 = vector.load %arg2[%c0_2, %c0_3] : memref<1x128xf32, #tpu.memory_space<vmem>>, vector<1x128xf32>
    %c0_4 = arith.constant 0 : index
    %c0_5 = arith.constant 0 : index
    %3 = vector.load %arg3[%c0_4, %c0_5] : memref<1x128xf32, #tpu.memory_space<vmem>>, vector<1x128xf32>
    %cst = arith.constant dense<0.000000e+00> : vector<8xf32>
    %4 = vector.multi_reduction <add>, %1, %cst [1] : vector<8x128xf32> to vector<8xf32>
    %5 = vector.shape_cast %4 : vector<8xf32> to vector<8x1xf32>
    %cst_6 = arith.constant 1.280000e+02 : f32
    %6 = vector.broadcast %cst_6 : f32 to vector<8x1xf32>
    %7 = arith.divf %5, %6 : vector<8x1xf32>
    %8 = vector.broadcast %7 : vector<8x1xf32> to vector<8x128xf32>
    %9 = arith.subf %1, %8 : vector<8x128xf32>
    %10 = arith.mulf %9, %9 : vector<8x128xf32>
    %cst_7 = arith.constant dense<0.000000e+00> : vector<8xf32>
    %11 = vector.multi_reduction <add>, %10, %cst_7 [1] : vector<8x128xf32> to vector<8xf32>
    %12 = vector.shape_cast %11 : vector<8xf32> to vector<8x1xf32>
    %cst_8 = arith.constant 1.280000e+02 : f32
    %13 = vector.broadcast %cst_8 : f32 to vector<8x1xf32>
    %14 = arith.divf %12, %13 : vector<8x1xf32>
    %15 = vector.broadcast %7 : vector<8x1xf32> to vector<8x128xf32>
    %16 = arith.subf %1, %15 : vector<8x128xf32>
    %cst_9 = arith.constant 9.99999974E-6 : f32
    %17 = vector.broadcast %cst_9 : f32 to vector<8x1xf32>
    %18 = arith.addf %14, %17 : vector<8x1xf32>
    %19 = math.rsqrt %18 : vector<8x1xf32>
    %20 = vector.broadcast %19 : vector<8x1xf32> to vector<8x128xf32>
    %21 = arith.mulf %16, %20 : vector<8x128xf32>
    %22 = vector.broadcast %2 : vector<1x128xf32> to vector<8x128xf32>
    %23 = arith.mulf %21, %22 : vector<8x128xf32>
    %24 = vector.broadcast %3 : vector<1x128xf32> to vector<8x128xf32>
    %25 = arith.addf %23, %24 : vector<8x128xf32>
    %c0_10 = arith.constant 0 : index
    %c0_11 = arith.constant 0 : index
    %c0_12 = arith.constant 0 : index
    %26 = vector.load %arg4[%c0_10, %c0_11, %c0_12] : memref<1x8x128xf32, #tpu.memory_space<vmem>>, vector<1x8x128xf32>
    %27 = vector.shape_cast %26 : vector<1x8x128xf32> to vector<8x128xf32>
    %28 = vector.shape_cast %25 : vector<8x128xf32> to vector<1x8x128xf32>
    tpu.vector_store %arg4[%c0_10, %c0_11, %c0_12], %28 {strides = array<i32>} : memref<1x8x128xf32, #tpu.memory_space<vmem>>, vector<1x8x128xf32>,
    return
  }
  func.func @transform_0(%arg0: i32) -> (i32, i32, i32) {
    %c0_i32 = arith.constant 0 : i32
    %c0_i32_0 = arith.constant 0 : i32
    %c0_i32_1 = arith.constant 0 : i32
    return %arg0, %c0_i32, %c0_i32_0 : i32, i32, i32
  }
  func.func @transform_1(%arg0: i32) -> (i32, i32) {
    %c0_i32 = arith.constant 0 : i32
    %c0_i32_0 = arith.constant 0 : i32
    %c0_i32_1 = arith.constant 0 : i32
    return %c0_i32, %c0_i32_0 : i32, i32
  }
  func.func @transform_2(%arg0: i32) -> (i32, i32) {
    %c0_i32 = arith.constant 0 : i32
    %c0_i32_0 = arith.constant 0 : i32
    %c0_i32_1 = arith.constant 0 : i32
    return %c0_i32, %c0_i32_0 : i32, i32
  }
  func.func @transform_3(%arg0: i32) -> (i32, i32, i32) {
    %c0_i32 = arith.constant 0 : i32
    %c0_i32_0 = arith.constant 0 : i32
    %c0_i32_1 = arith.constant 0 : i32
    return %arg0, %c0_i32, %c0_i32_0 : i32, i32, i32
  }
}

module attributes {stable_mosaic.version = 11 : i64} {
  func.func @_encoder_layer_kernel(%arg0: i32, %arg1: memref<1x8x128xf32, #tpu.memory_space<vmem>>, %arg2: memref<128x384xbf16, #tpu.memory_space<vmem>>, %arg3: memref<1x384xf32, #tpu.memory_space<vmem>>, %arg4: memref<128x128xbf16, #tpu.memory_space<vmem>>, %arg5: memref<1x128xf32, #tpu.memory_space<vmem>>, %arg6: memref<1x128xf32, #tpu.memory_space<vmem>>, %arg7: memref<1x128xf32, #tpu.memory_space<vmem>>, %arg8: memref<128x256xbf16, #tpu.memory_space<vmem>>, %arg9: memref<1x256xf32, #tpu.memory_space<vmem>>, %arg10: memref<256x128xbf16, #tpu.memory_space<vmem>>, %arg11: memref<1x128xf32, #tpu.memory_space<vmem>>, %arg12: memref<1x128xf32, #tpu.memory_space<vmem>>, %arg13: memref<1x128xf32, #tpu.memory_space<vmem>>, %arg14: memref<1x8x128xf32, #tpu.memory_space<vmem>>) attributes {dimension_semantics = [#tpu.dimension_semantics<parallel>], iteration_bounds = array<i64: 2>, scalar_prefetch = 0 : i64, scratch_operands = 0 : i64, tpu.core_type = #tpu.core_type<tc>, window_params = [{transform_indices = @transform_0, window_bounds = array<i64: 1, 8, 128>}, {pipeline_mode = #tpu.pipeline_mode<synchronous>, transform_indices = @transform_1, window_bounds = array<i64: 128, 384>}, {pipeline_mode = #tpu.pipeline_mode<synchronous>, transform_indices = @transform_2, window_bounds = array<i64: 1, 384>}, {pipeline_mode = #tpu.pipeline_mode<synchronous>, transform_indices = @transform_3, window_bounds = array<i64: 128, 128>}, {pipeline_mode = #tpu.pipeline_mode<synchronous>, transform_indices = @transform_4, window_bounds = array<i64: 1, 128>}, {pipeline_mode = #tpu.pipeline_mode<synchronous>, transform_indices = @transform_5, window_bounds = array<i64: 1, 128>}, {pipeline_mode = #tpu.pipeline_mode<synchronous>, transform_indices = @transform_6, window_bounds = array<i64: 1, 128>}, {pipeline_mode = #tpu.pipeline_mode<synchronous>, transform_indices = @transform_7, window_bounds = array<i64: 128, 256>}, {pipeline_mode = #tpu.pipeline_mode<synchronous>, transform_indices = @transform_8, window_bounds = array<i64: 1, 256>}, {pipeline_mode = #tpu.pipeline_mode<synchronous>, transform_indices = @transform_9, window_bounds = array<i64: 256, 128>}, {pipeline_mode = #tpu.pipeline_mode<synchronous>, transform_indices = @transform_10, window_bounds = array<i64: 1, 128>}, {pipeline_mode = #tpu.pipeline_mode<synchronous>, transform_indices = @transform_11, window_bounds = array<i64: 1, 128>}, {pipeline_mode = #tpu.pipeline_mode<synchronous>, transform_indices = @transform_12, window_bounds = array<i64: 1, 128>}, {transform_indices = @transform_13, window_bounds = array<i64: 1, 8, 128>}]} {
    %c0 = arith.constant 0 : index
    %c0_0 = arith.constant 0 : index
    %c0_1 = arith.constant 0 : index
    %0 = vector.load %arg1[%c0, %c0_0, %c0_1] : memref<1x8x128xf32, #tpu.memory_space<vmem>>, vector<1x8x128xf32>
    %1 = vector.shape_cast %0 : vector<1x8x128xf32> to vector<8x128xf32>
    %2 = arith.truncf %1 : vector<8x128xf32> to vector<8x128xbf16>
    %c0_2 = arith.constant 0 : index
    %c0_3 = arith.constant 0 : index
    %3 = vector.load %arg2[%c0_2, %c0_3] : memref<128x384xbf16, #tpu.memory_space<vmem>>, vector<128x384xbf16>
    %cst = arith.constant dense<0.000000e+00> : vector<8x384xf32>
    %4 = tpu.matmul %2, %3, %cst {dimension_numbers = #tpu.dot_dimension_numbers<[1], [0], [0], [1], [0, 0, 1, 1], [], []>} : vector<8x128xbf16>, vector<128x384xbf16>, vector<8x384xf32> -> vector<8x384xf32>
    %c0_4 = arith.constant 0 : index
    %c0_5 = arith.constant 0 : index
    %5 = vector.load %arg3[%c0_4, %c0_5] : memref<1x384xf32, #tpu.memory_space<vmem>>, vector<1x384xf32>
    %6 = vector.broadcast %5 : vector<1x384xf32> to vector<8x384xf32>
    %7 = arith.addf %4, %6 : vector<8x384xf32>
    %8 = vector.extract_strided_slice %7 {offsets = [0, 0], sizes = [8, 128], strides = [1, 1]} : vector<8x384xf32> to vector<8x128xf32>
    %9 = vector.extract_strided_slice %7 {offsets = [0, 128], sizes = [8, 128], strides = [1, 1]} : vector<8x384xf32> to vector<8x128xf32>
    %10 = vector.extract_strided_slice %7 {offsets = [0, 256], sizes = [8, 128], strides = [1, 1]} : vector<8x384xf32> to vector<8x128xf32>
    %11 = vector.extract_strided_slice %8 {offsets = [0, 0], sizes = [8, 32], strides = [1, 1]} : vector<8x128xf32> to vector<8x32xf32>
    %12 = arith.truncf %11 : vector<8x32xf32> to vector<8x32xbf16>
    %13 = vector.extract_strided_slice %9 {offsets = [0, 0], sizes = [8, 32], strides = [1, 1]} : vector<8x128xf32> to vector<8x32xf32>
    %14 = arith.truncf %13 : vector<8x32xf32> to vector<8x32xbf16>
    %15 = vector.extract_strided_slice %10 {offsets = [0, 0], sizes = [8, 32], strides = [1, 1]} : vector<8x128xf32> to vector<8x32xf32>
    %16 = arith.truncf %15 : vector<8x32xf32> to vector<8x32xbf16>
    %cst_6 = arith.constant dense<0.000000e+00> : vector<8x8xf32>
    %17 = tpu.matmul %12, %14, %cst_6 {dimension_numbers = #tpu.dot_dimension_numbers<[1], [1], [0], [0], [0, 0, 1, 0], [], []>} : vector<8x32xbf16>, vector<8x32xbf16>, vector<8x8xf32> -> vector<8x8xf32>
    %cst_7 = arith.constant 0.176776692 : f32
    %18 = vector.broadcast %cst_7 : f32 to vector<8x8xf32>
    %19 = arith.mulf %17, %18 : vector<8x8xf32>
    %cst_8 = arith.constant dense<0xFF800000> : vector<8xf32>
    %20 = vector.multi_reduction <maximumf>, %19, %cst_8 [1] : vector<8x8xf32> to vector<8xf32>
    %21 = vector.shape_cast %20 : vector<8xf32> to vector<8x1xf32>
    %22 = vector.broadcast %21 : vector<8x1xf32> to vector<8x8xf32>
    %23 = arith.subf %19, %22 : vector<8x8xf32>
    %24 = math.exp %23 : vector<8x8xf32>
    %cst_9 = arith.constant dense<0.000000e+00> : vector<8xf32>
    %25 = vector.multi_reduction <add>, %24, %cst_9 [1] : vector<8x8xf32> to vector<8xf32>
    %26 = vector.shape_cast %25 : vector<8xf32> to vector<8x1xf32>
    %27 = tpu.reciprocal %26 {approx = true} : vector<8x1xf32> -> vector<8x1xf32>
    %28 = vector.broadcast %27 : vector<8x1xf32> to vector<8x8xf32>
    %29 = arith.mulf %24, %28 : vector<8x8xf32>
    %30 = arith.truncf %29 : vector<8x8xf32> to vector<8x8xbf16>
    %cst_10 = arith.constant dense<0.000000e+00> : vector<8x32xf32>
    %31 = tpu.matmul %30, %16, %cst_10 {dimension_numbers = #tpu.dot_dimension_numbers<[1], [0], [0], [1], [0, 0, 1, 1], [], []>} : vector<8x8xbf16>, vector<8x32xbf16>, vector<8x32xf32> -> vector<8x32xf32>
    %32 = vector.extract_strided_slice %8 {offsets = [0, 32], sizes = [8, 32], strides = [1, 1]} : vector<8x128xf32> to vector<8x32xf32>
    %33 = arith.truncf %32 : vector<8x32xf32> to vector<8x32xbf16>
    %34 = vector.extract_strided_slice %9 {offsets = [0, 32], sizes = [8, 32], strides = [1, 1]} : vector<8x128xf32> to vector<8x32xf32>
    %35 = arith.truncf %34 : vector<8x32xf32> to vector<8x32xbf16>
    %36 = vector.extract_strided_slice %10 {offsets = [0, 32], sizes = [8, 32], strides = [1, 1]} : vector<8x128xf32> to vector<8x32xf32>
    %37 = arith.truncf %36 : vector<8x32xf32> to vector<8x32xbf16>
    %cst_11 = arith.constant dense<0.000000e+00> : vector<8x8xf32>
    %38 = tpu.matmul %33, %35, %cst_11 {dimension_numbers = #tpu.dot_dimension_numbers<[1], [1], [0], [0], [0, 0, 1, 0], [], []>} : vector<8x32xbf16>, vector<8x32xbf16>, vector<8x8xf32> -> vector<8x8xf32>
    %cst_12 = arith.constant 0.176776692 : f32
    %39 = vector.broadcast %cst_12 : f32 to vector<8x8xf32>
    %40 = arith.mulf %38, %39 : vector<8x8xf32>
    %cst_13 = arith.constant dense<0xFF800000> : vector<8xf32>
    %41 = vector.multi_reduction <maximumf>, %40, %cst_13 [1] : vector<8x8xf32> to vector<8xf32>
    %42 = vector.shape_cast %41 : vector<8xf32> to vector<8x1xf32>
    %43 = vector.broadcast %42 : vector<8x1xf32> to vector<8x8xf32>
    %44 = arith.subf %40, %43 : vector<8x8xf32>
    %45 = math.exp %44 : vector<8x8xf32>
    %cst_14 = arith.constant dense<0.000000e+00> : vector<8xf32>
    %46 = vector.multi_reduction <add>, %45, %cst_14 [1] : vector<8x8xf32> to vector<8xf32>
    %47 = vector.shape_cast %46 : vector<8xf32> to vector<8x1xf32>
    %48 = tpu.reciprocal %47 {approx = true} : vector<8x1xf32> -> vector<8x1xf32>
    %49 = vector.broadcast %48 : vector<8x1xf32> to vector<8x8xf32>
    %50 = arith.mulf %45, %49 : vector<8x8xf32>
    %51 = arith.truncf %50 : vector<8x8xf32> to vector<8x8xbf16>
    %cst_15 = arith.constant dense<0.000000e+00> : vector<8x32xf32>
    %52 = tpu.matmul %51, %37, %cst_15 {dimension_numbers = #tpu.dot_dimension_numbers<[1], [0], [0], [1], [0, 0, 1, 1], [], []>} : vector<8x8xbf16>, vector<8x32xbf16>, vector<8x32xf32> -> vector<8x32xf32>
    %53 = vector.extract_strided_slice %8 {offsets = [0, 64], sizes = [8, 32], strides = [1, 1]} : vector<8x128xf32> to vector<8x32xf32>
    %54 = arith.truncf %53 : vector<8x32xf32> to vector<8x32xbf16>
    %55 = vector.extract_strided_slice %9 {offsets = [0, 64], sizes = [8, 32], strides = [1, 1]} : vector<8x128xf32> to vector<8x32xf32>
    %56 = arith.truncf %55 : vector<8x32xf32> to vector<8x32xbf16>
    %57 = vector.extract_strided_slice %10 {offsets = [0, 64], sizes = [8, 32], strides = [1, 1]} : vector<8x128xf32> to vector<8x32xf32>
    %58 = arith.truncf %57 : vector<8x32xf32> to vector<8x32xbf16>
    %cst_16 = arith.constant dense<0.000000e+00> : vector<8x8xf32>
    %59 = tpu.matmul %54, %56, %cst_16 {dimension_numbers = #tpu.dot_dimension_numbers<[1], [1], [0], [0], [0, 0, 1, 0], [], []>} : vector<8x32xbf16>, vector<8x32xbf16>, vector<8x8xf32> -> vector<8x8xf32>
    %cst_17 = arith.constant 0.176776692 : f32
    %60 = vector.broadcast %cst_17 : f32 to vector<8x8xf32>
    %61 = arith.mulf %59, %60 : vector<8x8xf32>
    %cst_18 = arith.constant dense<0xFF800000> : vector<8xf32>
    %62 = vector.multi_reduction <maximumf>, %61, %cst_18 [1] : vector<8x8xf32> to vector<8xf32>
    %63 = vector.shape_cast %62 : vector<8xf32> to vector<8x1xf32>
    %64 = vector.broadcast %63 : vector<8x1xf32> to vector<8x8xf32>
    %65 = arith.subf %61, %64 : vector<8x8xf32>
    %66 = math.exp %65 : vector<8x8xf32>
    %cst_19 = arith.constant dense<0.000000e+00> : vector<8xf32>
    %67 = vector.multi_reduction <add>, %66, %cst_19 [1] : vector<8x8xf32> to vector<8xf32>
    %68 = vector.shape_cast %67 : vector<8xf32> to vector<8x1xf32>
    %69 = tpu.reciprocal %68 {approx = true} : vector<8x1xf32> -> vector<8x1xf32>
    %70 = vector.broadcast %69 : vector<8x1xf32> to vector<8x8xf32>
    %71 = arith.mulf %66, %70 : vector<8x8xf32>
    %72 = arith.truncf %71 : vector<8x8xf32> to vector<8x8xbf16>
    %cst_20 = arith.constant dense<0.000000e+00> : vector<8x32xf32>
    %73 = tpu.matmul %72, %58, %cst_20 {dimension_numbers = #tpu.dot_dimension_numbers<[1], [0], [0], [1], [0, 0, 1, 1], [], []>} : vector<8x8xbf16>, vector<8x32xbf16>, vector<8x32xf32> -> vector<8x32xf32>
    %74 = vector.extract_strided_slice %8 {offsets = [0, 96], sizes = [8, 32], strides = [1, 1]} : vector<8x128xf32> to vector<8x32xf32>
    %75 = arith.truncf %74 : vector<8x32xf32> to vector<8x32xbf16>
    %76 = vector.extract_strided_slice %9 {offsets = [0, 96], sizes = [8, 32], strides = [1, 1]} : vector<8x128xf32> to vector<8x32xf32>
    %77 = arith.truncf %76 : vector<8x32xf32> to vector<8x32xbf16>
    %78 = vector.extract_strided_slice %10 {offsets = [0, 96], sizes = [8, 32], strides = [1, 1]} : vector<8x128xf32> to vector<8x32xf32>
    %79 = arith.truncf %78 : vector<8x32xf32> to vector<8x32xbf16>
    %cst_21 = arith.constant dense<0.000000e+00> : vector<8x8xf32>
    %80 = tpu.matmul %75, %77, %cst_21 {dimension_numbers = #tpu.dot_dimension_numbers<[1], [1], [0], [0], [0, 0, 1, 0], [], []>} : vector<8x32xbf16>, vector<8x32xbf16>, vector<8x8xf32> -> vector<8x8xf32>
    %cst_22 = arith.constant 0.176776692 : f32
    %81 = vector.broadcast %cst_22 : f32 to vector<8x8xf32>
    %82 = arith.mulf %80, %81 : vector<8x8xf32>
    %cst_23 = arith.constant dense<0xFF800000> : vector<8xf32>
    %83 = vector.multi_reduction <maximumf>, %82, %cst_23 [1] : vector<8x8xf32> to vector<8xf32>
    %84 = vector.shape_cast %83 : vector<8xf32> to vector<8x1xf32>
    %85 = vector.broadcast %84 : vector<8x1xf32> to vector<8x8xf32>
    %86 = arith.subf %82, %85 : vector<8x8xf32>
    %87 = math.exp %86 : vector<8x8xf32>
    %cst_24 = arith.constant dense<0.000000e+00> : vector<8xf32>
    %88 = vector.multi_reduction <add>, %87, %cst_24 [1] : vector<8x8xf32> to vector<8xf32>
    %89 = vector.shape_cast %88 : vector<8xf32> to vector<8x1xf32>
    %90 = tpu.reciprocal %89 {approx = true} : vector<8x1xf32> -> vector<8x1xf32>
    %91 = vector.broadcast %90 : vector<8x1xf32> to vector<8x8xf32>
    %92 = arith.mulf %87, %91 : vector<8x8xf32>
    %93 = arith.truncf %92 : vector<8x8xf32> to vector<8x8xbf16>
    %cst_25 = arith.constant dense<0.000000e+00> : vector<8x32xf32>
    %94 = tpu.matmul %93, %79, %cst_25 {dimension_numbers = #tpu.dot_dimension_numbers<[1], [0], [0], [1], [0, 0, 1, 1], [], []>} : vector<8x8xbf16>, vector<8x32xbf16>, vector<8x32xf32> -> vector<8x32xf32>
    %95 = tpu.concatenate %31, %52, %73, %94 in 1 : vector<8x32xf32>, vector<8x32xf32>, vector<8x32xf32>, vector<8x32xf32> -> vector<8x128xf32>
    %96 = arith.truncf %95 : vector<8x128xf32> to vector<8x128xbf16>
    %c0_26 = arith.constant 0 : index
    %c0_27 = arith.constant 0 : index
    %97 = vector.load %arg4[%c0_26, %c0_27] : memref<128x128xbf16, #tpu.memory_space<vmem>>, vector<128x128xbf16>
    %cst_28 = arith.constant dense<0.000000e+00> : vector<8x128xf32>
    %98 = tpu.matmul %96, %97, %cst_28 {dimension_numbers = #tpu.dot_dimension_numbers<[1], [0], [0], [1], [0, 0, 1, 1], [], []>} : vector<8x128xbf16>, vector<128x128xbf16>, vector<8x128xf32> -> vector<8x128xf32>
    %c0_29 = arith.constant 0 : index
    %c0_30 = arith.constant 0 : index
    %99 = vector.load %arg5[%c0_29, %c0_30] : memref<1x128xf32, #tpu.memory_space<vmem>>, vector<1x128xf32>
    %100 = vector.broadcast %99 : vector<1x128xf32> to vector<8x128xf32>
    %101 = arith.addf %98, %100 : vector<8x128xf32>
    %102 = arith.addf %1, %101 : vector<8x128xf32>
    %c0_31 = arith.constant 0 : index
    %c0_32 = arith.constant 0 : index
    %103 = vector.load %arg6[%c0_31, %c0_32] : memref<1x128xf32, #tpu.memory_space<vmem>>, vector<1x128xf32>
    %c0_33 = arith.constant 0 : index
    %c0_34 = arith.constant 0 : index
    %104 = vector.load %arg7[%c0_33, %c0_34] : memref<1x128xf32, #tpu.memory_space<vmem>>, vector<1x128xf32>
    %cst_35 = arith.constant dense<0.000000e+00> : vector<8xf32>
    %105 = vector.multi_reduction <add>, %102, %cst_35 [1] : vector<8x128xf32> to vector<8xf32>
    %106 = vector.shape_cast %105 : vector<8xf32> to vector<8x1xf32>
    %cst_36 = arith.constant 1.280000e+02 : f32
    %107 = vector.broadcast %cst_36 : f32 to vector<8x1xf32>
    %108 = arith.divf %106, %107 : vector<8x1xf32>
    %109 = vector.broadcast %108 : vector<8x1xf32> to vector<8x128xf32>
    %110 = arith.subf %102, %109 : vector<8x128xf32>
    %111 = arith.mulf %110, %110 : vector<8x128xf32>
    %cst_37 = arith.constant dense<0.000000e+00> : vector<8xf32>
    %112 = vector.multi_reduction <add>, %111, %cst_37 [1] : vector<8x128xf32> to vector<8xf32>
    %113 = vector.shape_cast %112 : vector<8xf32> to vector<8x1xf32>
    %cst_38 = arith.constant 1.280000e+02 : f32
    %114 = vector.broadcast %cst_38 : f32 to vector<8x1xf32>
    %115 = arith.divf %113, %114 : vector<8x1xf32>
    %116 = vector.broadcast %108 : vector<8x1xf32> to vector<8x128xf32>
    %117 = arith.subf %102, %116 : vector<8x128xf32>
    %cst_39 = arith.constant 9.99999974E-6 : f32
    %118 = vector.broadcast %cst_39 : f32 to vector<8x1xf32>
    %119 = arith.addf %115, %118 : vector<8x1xf32>
    %120 = math.rsqrt %119 : vector<8x1xf32>
    %121 = vector.broadcast %120 : vector<8x1xf32> to vector<8x128xf32>
    %122 = arith.mulf %117, %121 : vector<8x128xf32>
    %123 = vector.broadcast %103 : vector<1x128xf32> to vector<8x128xf32>
    %124 = arith.mulf %122, %123 : vector<8x128xf32>
    %125 = vector.broadcast %104 : vector<1x128xf32> to vector<8x128xf32>
    %126 = arith.addf %124, %125 : vector<8x128xf32>
    %127 = arith.truncf %126 : vector<8x128xf32> to vector<8x128xbf16>
    %c0_40 = arith.constant 0 : index
    %c0_41 = arith.constant 0 : index
    %128 = vector.load %arg8[%c0_40, %c0_41] : memref<128x256xbf16, #tpu.memory_space<vmem>>, vector<128x256xbf16>
    %cst_42 = arith.constant dense<0.000000e+00> : vector<8x256xf32>
    %129 = tpu.matmul %127, %128, %cst_42 {dimension_numbers = #tpu.dot_dimension_numbers<[1], [0], [0], [1], [0, 0, 1, 1], [], []>} : vector<8x128xbf16>, vector<128x256xbf16>, vector<8x256xf32> -> vector<8x256xf32>
    %c0_43 = arith.constant 0 : index
    %c0_44 = arith.constant 0 : index
    %130 = vector.load %arg9[%c0_43, %c0_44] : memref<1x256xf32, #tpu.memory_space<vmem>>, vector<1x256xf32>
    %131 = vector.broadcast %130 : vector<1x256xf32> to vector<8x256xf32>
    %132 = arith.addf %129, %131 : vector<8x256xf32>
    %cst_45 = arith.constant 0.000000e+00 : f32
    %133 = vector.broadcast %cst_45 : f32 to vector<8x256xf32>
    %134 = arith.maximumf %132, %133 : vector<8x256xf32>
    %135 = arith.truncf %134 : vector<8x256xf32> to vector<8x256xbf16>
    %c0_46 = arith.constant 0 : index
    %c0_47 = arith.constant 0 : index
    %136 = vector.load %arg10[%c0_46, %c0_47] : memref<256x128xbf16, #tpu.memory_space<vmem>>, vector<256x128xbf16>
    %cst_48 = arith.constant dense<0.000000e+00> : vector<8x128xf32>
    %137 = tpu.matmul %135, %136, %cst_48 {dimension_numbers = #tpu.dot_dimension_numbers<[1], [0], [0], [1], [0, 0, 1, 1], [], []>} : vector<8x256xbf16>, vector<256x128xbf16>, vector<8x128xf32> -> vector<8x128xf32>
    %c0_49 = arith.constant 0 : index
    %c0_50 = arith.constant 0 : index
    %138 = vector.load %arg11[%c0_49, %c0_50] : memref<1x128xf32, #tpu.memory_space<vmem>>, vector<1x128xf32>
    %139 = vector.broadcast %138 : vector<1x128xf32> to vector<8x128xf32>
    %140 = arith.addf %137, %139 : vector<8x128xf32>
    %141 = arith.addf %126, %140 : vector<8x128xf32>
    %c0_51 = arith.constant 0 : index
    %c0_52 = arith.constant 0 : index
    %142 = vector.load %arg12[%c0_51, %c0_52] : memref<1x128xf32, #tpu.memory_space<vmem>>, vector<1x128xf32>
    %c0_53 = arith.constant 0 : index
    %c0_54 = arith.constant 0 : index
    %143 = vector.load %arg13[%c0_53, %c0_54] : memref<1x128xf32, #tpu.memory_space<vmem>>, vector<1x128xf32>
    %cst_55 = arith.constant dense<0.000000e+00> : vector<8xf32>
    %144 = vector.multi_reduction <add>, %141, %cst_55 [1] : vector<8x128xf32> to vector<8xf32>
    %145 = vector.shape_cast %144 : vector<8xf32> to vector<8x1xf32>
    %cst_56 = arith.constant 1.280000e+02 : f32
    %146 = vector.broadcast %cst_56 : f32 to vector<8x1xf32>
    %147 = arith.divf %145, %146 : vector<8x1xf32>
    %148 = vector.broadcast %147 : vector<8x1xf32> to vector<8x128xf32>
    %149 = arith.subf %141, %148 : vector<8x128xf32>
    %150 = arith.mulf %149, %149 : vector<8x128xf32>
    %cst_57 = arith.constant dense<0.000000e+00> : vector<8xf32>
    %151 = vector.multi_reduction <add>, %150, %cst_57 [1] : vector<8x128xf32> to vector<8xf32>
    %152 = vector.shape_cast %151 : vector<8xf32> to vector<8x1xf32>
    %cst_58 = arith.constant 1.280000e+02 : f32
    %153 = vector.broadcast %cst_58 : f32 to vector<8x1xf32>
    %154 = arith.divf %152, %153 : vector<8x1xf32>
    %155 = vector.broadcast %147 : vector<8x1xf32> to vector<8x128xf32>
    %156 = arith.subf %141, %155 : vector<8x128xf32>
    %cst_59 = arith.constant 9.99999974E-6 : f32
    %157 = vector.broadcast %cst_59 : f32 to vector<8x1xf32>
    %158 = arith.addf %154, %157 : vector<8x1xf32>
    %159 = math.rsqrt %158 : vector<8x1xf32>
    %160 = vector.broadcast %159 : vector<8x1xf32> to vector<8x128xf32>
    %161 = arith.mulf %156, %160 : vector<8x128xf32>
    %162 = vector.broadcast %142 : vector<1x128xf32> to vector<8x128xf32>
    %163 = arith.mulf %161, %162 : vector<8x128xf32>
    %164 = vector.broadcast %143 : vector<1x128xf32> to vector<8x128xf32>
    %165 = arith.addf %163, %164 : vector<8x128xf32>
    %c0_60 = arith.constant 0 : index
    %c0_61 = arith.constant 0 : index
    %c0_62 = arith.constant 0 : index
    %166 = vector.load %arg14[%c0_60, %c0_61, %c0_62] : memref<1x8x128xf32, #tpu.memory_space<vmem>>, vector<1x8x128xf32>
    %167 = vector.shape_cast %166 : vector<1x8x128xf32> to vector<8x128xf32>
    %168 = vector.shape_cast %165 : vector<8x128xf32> to vector<1x8x128xf32>
    tpu.vector_store %arg14[%c0_60, %c0_61, %c0_62], %168 {strides = array<i32>} : memref<1x8x128xf32, #tpu.memory_space<vmem>>, vector<1x8x128xf32>,
    return
  }
  func.func @transform_0(%arg0: i32) -> (i32, i32, i32) {
    %c0_i32 = arith.constant 0 : i32
    %c0_i32_0 = arith.constant 0 : i32
    %c0_i32_1 = arith.constant 0 : i32
    return %arg0, %c0_i32, %c0_i32_0 : i32, i32, i32
  }
  func.func @transform_1(%arg0: i32) -> (i32, i32) {
    %c0_i32 = arith.constant 0 : i32
    %c0_i32_0 = arith.constant 0 : i32
    %c0_i32_1 = arith.constant 0 : i32
    return %c0_i32, %c0_i32_0 : i32, i32
  }
  func.func @transform_2(%arg0: i32) -> (i32, i32) {
    %c0_i32 = arith.constant 0 : i32
    %c0_i32_0 = arith.constant 0 : i32
    %c0_i32_1 = arith.constant 0 : i32
    return %c0_i32, %c0_i32_0 : i32, i32
  }
  func.func @transform_3(%arg0: i32) -> (i32, i32) {
    %c0_i32 = arith.constant 0 : i32
    %c0_i32_0 = arith.constant 0 : i32
    %c0_i32_1 = arith.constant 0 : i32
    return %c0_i32, %c0_i32_0 : i32, i32
  }
  func.func @transform_4(%arg0: i32) -> (i32, i32) {
    %c0_i32 = arith.constant 0 : i32
    %c0_i32_0 = arith.constant 0 : i32
    %c0_i32_1 = arith.constant 0 : i32
    return %c0_i32, %c0_i32_0 : i32, i32
  }
  func.func @transform_5(%arg0: i32) -> (i32, i32) {
    %c0_i32 = arith.constant 0 : i32
    %c0_i32_0 = arith.constant 0 : i32
    %c0_i32_1 = arith.constant 0 : i32
    return %c0_i32, %c0_i32_0 : i32, i32
  }
  func.func @transform_6(%arg0: i32) -> (i32, i32) {
    %c0_i32 = arith.constant 0 : i32
    %c0_i32_0 = arith.constant 0 : i32
    %c0_i32_1 = arith.constant 0 : i32
    return %c0_i32, %c0_i32_0 : i32, i32
  }
  func.func @transform_7(%arg0: i32) -> (i32, i32) {
    %c0_i32 = arith.constant 0 : i32
    %c0_i32_0 = arith.constant 0 : i32
    %c0_i32_1 = arith.constant 0 : i32
    return %c0_i32, %c0_i32_0 : i32, i32
  }
  func.func @transform_8(%arg0: i32) -> (i32, i32) {
    %c0_i32 = arith.constant 0 : i32
    %c0_i32_0 = arith.constant 0 : i32
    %c0_i32_1 = arith.constant 0 : i32
    return %c0_i32, %c0_i32_0 : i32, i32
  }
  func.func @transform_9(%arg0: i32) -> (i32, i32) {
    %c0_i32 = arith.constant 0 : i32
    %c0_i32_0 = arith.constant 0 : i32
    %c0_i32_1 = arith.constant 0 : i32
    return %c0_i32, %c0_i32_0 : i32, i32
  }
  func.func @transform_10(%arg0: i32) -> (i32, i32) {
    %c0_i32 = arith.constant 0 : i32
    %c0_i32_0 = arith.constant 0 : i32
    %c0_i32_1 = arith.constant 0 : i32
    return %c0_i32, %c0_i32_0 : i32, i32
  }
  func.func @transform_11(%arg0: i32) -> (i32, i32) {
    %c0_i32 = arith.constant 0 : i32
    %c0_i32_0 = arith.constant 0 : i32
    %c0_i32_1 = arith.constant 0 : i32
    return %c0_i32, %c0_i32_0 : i32, i32
  }
  func.func @transform_12(%arg0: i32) -> (i32, i32) {
    %c0_i32 = arith.constant 0 : i32
    %c0_i32_0 = arith.constant 0 : i32
    %c0_i32_1 = arith.constant 0 : i32
    return %c0_i32, %c0_i32_0 : i32, i32
  }
  func.func @transform_13(%arg0: i32) -> (i32, i32, i32) {
    %c0_i32 = arith.constant 0 : i32
    %c0_i32_0 = arith.constant 0 : i32
    %c0_i32_1 = arith.constant 0 : i32
    return %arg0, %c0_i32, %c0_i32_0 : i32, i32, i32
  }
}

module attributes {stable_mosaic.version = 11 : i64} {
  func.func @_encoder_layer_kernel(%arg0: i32, %arg1: memref<1x8x128xf32, #tpu.memory_space<vmem>>, %arg2: memref<128x384xbf16, #tpu.memory_space<vmem>>, %arg3: memref<1x384xf32, #tpu.memory_space<vmem>>, %arg4: memref<128x128xbf16, #tpu.memory_space<vmem>>, %arg5: memref<1x128xf32, #tpu.memory_space<vmem>>, %arg6: memref<1x128xf32, #tpu.memory_space<vmem>>, %arg7: memref<1x128xf32, #tpu.memory_space<vmem>>, %arg8: memref<128x256xbf16, #tpu.memory_space<vmem>>, %arg9: memref<1x256xf32, #tpu.memory_space<vmem>>, %arg10: memref<256x128xbf16, #tpu.memory_space<vmem>>, %arg11: memref<1x128xf32, #tpu.memory_space<vmem>>, %arg12: memref<1x128xf32, #tpu.memory_space<vmem>>, %arg13: memref<1x128xf32, #tpu.memory_space<vmem>>, %arg14: memref<1x8x128xf32, #tpu.memory_space<vmem>>) attributes {dimension_semantics = [#tpu.dimension_semantics<parallel>], iteration_bounds = array<i64: 2>, scalar_prefetch = 0 : i64, scratch_operands = 0 : i64, tpu.core_type = #tpu.core_type<tc>, window_params = [{transform_indices = @transform_0, window_bounds = array<i64: 1, 8, 128>}, {pipeline_mode = #tpu.pipeline_mode<synchronous>, transform_indices = @transform_1, window_bounds = array<i64: 128, 384>}, {pipeline_mode = #tpu.pipeline_mode<synchronous>, transform_indices = @transform_2, window_bounds = array<i64: 1, 384>}, {pipeline_mode = #tpu.pipeline_mode<synchronous>, transform_indices = @transform_3, window_bounds = array<i64: 128, 128>}, {pipeline_mode = #tpu.pipeline_mode<synchronous>, transform_indices = @transform_4, window_bounds = array<i64: 1, 128>}, {pipeline_mode = #tpu.pipeline_mode<synchronous>, transform_indices = @transform_5, window_bounds = array<i64: 1, 128>}, {pipeline_mode = #tpu.pipeline_mode<synchronous>, transform_indices = @transform_6, window_bounds = array<i64: 1, 128>}, {pipeline_mode = #tpu.pipeline_mode<synchronous>, transform_indices = @transform_7, window_bounds = array<i64: 128, 256>}, {pipeline_mode = #tpu.pipeline_mode<synchronous>, transform_indices = @transform_8, window_bounds = array<i64: 1, 256>}, {pipeline_mode = #tpu.pipeline_mode<synchronous>, transform_indices = @transform_9, window_bounds = array<i64: 256, 128>}, {pipeline_mode = #tpu.pipeline_mode<synchronous>, transform_indices = @transform_10, window_bounds = array<i64: 1, 128>}, {pipeline_mode = #tpu.pipeline_mode<synchronous>, transform_indices = @transform_11, window_bounds = array<i64: 1, 128>}, {pipeline_mode = #tpu.pipeline_mode<synchronous>, transform_indices = @transform_12, window_bounds = array<i64: 1, 128>}, {transform_indices = @transform_13, window_bounds = array<i64: 1, 8, 128>}]} {
    %c0 = arith.constant 0 : index
    %c0_0 = arith.constant 0 : index
    %c0_1 = arith.constant 0 : index
    %0 = vector.load %arg1[%c0, %c0_0, %c0_1] : memref<1x8x128xf32, #tpu.memory_space<vmem>>, vector<1x8x128xf32>
    %1 = vector.shape_cast %0 : vector<1x8x128xf32> to vector<8x128xf32>
    %2 = arith.truncf %1 : vector<8x128xf32> to vector<8x128xbf16>
    %c0_2 = arith.constant 0 : index
    %c0_3 = arith.constant 0 : index
    %3 = vector.load %arg2[%c0_2, %c0_3] : memref<128x384xbf16, #tpu.memory_space<vmem>>, vector<128x384xbf16>
    %cst = arith.constant dense<0.000000e+00> : vector<8x384xf32>
    %4 = tpu.matmul %2, %3, %cst {dimension_numbers = #tpu.dot_dimension_numbers<[1], [0], [0], [1], [0, 0, 1, 1], [], []>} : vector<8x128xbf16>, vector<128x384xbf16>, vector<8x384xf32> -> vector<8x384xf32>
    %c0_4 = arith.constant 0 : index
    %c0_5 = arith.constant 0 : index
    %5 = vector.load %arg3[%c0_4, %c0_5] : memref<1x384xf32, #tpu.memory_space<vmem>>, vector<1x384xf32>
    %6 = vector.broadcast %5 : vector<1x384xf32> to vector<8x384xf32>
    %7 = arith.addf %4, %6 : vector<8x384xf32>
    %8 = vector.extract_strided_slice %7 {offsets = [0, 0], sizes = [8, 128], strides = [1, 1]} : vector<8x384xf32> to vector<8x128xf32>
    %9 = vector.extract_strided_slice %7 {offsets = [0, 128], sizes = [8, 128], strides = [1, 1]} : vector<8x384xf32> to vector<8x128xf32>
    %10 = vector.extract_strided_slice %7 {offsets = [0, 256], sizes = [8, 128], strides = [1, 1]} : vector<8x384xf32> to vector<8x128xf32>
    %11 = vector.extract_strided_slice %8 {offsets = [0, 0], sizes = [8, 32], strides = [1, 1]} : vector<8x128xf32> to vector<8x32xf32>
    %12 = arith.truncf %11 : vector<8x32xf32> to vector<8x32xbf16>
    %13 = vector.extract_strided_slice %9 {offsets = [0, 0], sizes = [8, 32], strides = [1, 1]} : vector<8x128xf32> to vector<8x32xf32>
    %14 = arith.truncf %13 : vector<8x32xf32> to vector<8x32xbf16>
    %15 = vector.extract_strided_slice %10 {offsets = [0, 0], sizes = [8, 32], strides = [1, 1]} : vector<8x128xf32> to vector<8x32xf32>
    %16 = arith.truncf %15 : vector<8x32xf32> to vector<8x32xbf16>
    %cst_6 = arith.constant dense<0.000000e+00> : vector<8x8xf32>
    %17 = tpu.matmul %12, %14, %cst_6 {dimension_numbers = #tpu.dot_dimension_numbers<[1], [1], [0], [0], [0, 0, 1, 0], [], []>} : vector<8x32xbf16>, vector<8x32xbf16>, vector<8x8xf32> -> vector<8x8xf32>
    %cst_7 = arith.constant 0.176776692 : f32
    %18 = vector.broadcast %cst_7 : f32 to vector<8x8xf32>
    %19 = arith.mulf %17, %18 : vector<8x8xf32>
    %cst_8 = arith.constant dense<0xFF800000> : vector<8xf32>
    %20 = vector.multi_reduction <maximumf>, %19, %cst_8 [1] : vector<8x8xf32> to vector<8xf32>
    %21 = vector.shape_cast %20 : vector<8xf32> to vector<8x1xf32>
    %22 = vector.broadcast %21 : vector<8x1xf32> to vector<8x8xf32>
    %23 = arith.subf %19, %22 : vector<8x8xf32>
    %24 = math.exp %23 : vector<8x8xf32>
    %cst_9 = arith.constant dense<0.000000e+00> : vector<8xf32>
    %25 = vector.multi_reduction <add>, %24, %cst_9 [1] : vector<8x8xf32> to vector<8xf32>
    %26 = vector.shape_cast %25 : vector<8xf32> to vector<8x1xf32>
    %27 = tpu.reciprocal %26 {approx = true} : vector<8x1xf32> -> vector<8x1xf32>
    %28 = vector.broadcast %27 : vector<8x1xf32> to vector<8x8xf32>
    %29 = arith.mulf %24, %28 : vector<8x8xf32>
    %30 = arith.truncf %29 : vector<8x8xf32> to vector<8x8xbf16>
    %cst_10 = arith.constant dense<0.000000e+00> : vector<8x32xf32>
    %31 = tpu.matmul %30, %16, %cst_10 {dimension_numbers = #tpu.dot_dimension_numbers<[1], [0], [0], [1], [0, 0, 1, 1], [], []>} : vector<8x8xbf16>, vector<8x32xbf16>, vector<8x32xf32> -> vector<8x32xf32>
    %32 = vector.extract_strided_slice %8 {offsets = [0, 32], sizes = [8, 32], strides = [1, 1]} : vector<8x128xf32> to vector<8x32xf32>
    %33 = arith.truncf %32 : vector<8x32xf32> to vector<8x32xbf16>
    %34 = vector.extract_strided_slice %9 {offsets = [0, 32], sizes = [8, 32], strides = [1, 1]} : vector<8x128xf32> to vector<8x32xf32>
    %35 = arith.truncf %34 : vector<8x32xf32> to vector<8x32xbf16>
    %36 = vector.extract_strided_slice %10 {offsets = [0, 32], sizes = [8, 32], strides = [1, 1]} : vector<8x128xf32> to vector<8x32xf32>
    %37 = arith.truncf %36 : vector<8x32xf32> to vector<8x32xbf16>
    %cst_11 = arith.constant dense<0.000000e+00> : vector<8x8xf32>
    %38 = tpu.matmul %33, %35, %cst_11 {dimension_numbers = #tpu.dot_dimension_numbers<[1], [1], [0], [0], [0, 0, 1, 0], [], []>} : vector<8x32xbf16>, vector<8x32xbf16>, vector<8x8xf32> -> vector<8x8xf32>
    %cst_12 = arith.constant 0.176776692 : f32
    %39 = vector.broadcast %cst_12 : f32 to vector<8x8xf32>
    %40 = arith.mulf %38, %39 : vector<8x8xf32>
    %cst_13 = arith.constant dense<0xFF800000> : vector<8xf32>
    %41 = vector.multi_reduction <maximumf>, %40, %cst_13 [1] : vector<8x8xf32> to vector<8xf32>
    %42 = vector.shape_cast %41 : vector<8xf32> to vector<8x1xf32>
    %43 = vector.broadcast %42 : vector<8x1xf32> to vector<8x8xf32>
    %44 = arith.subf %40, %43 : vector<8x8xf32>
    %45 = math.exp %44 : vector<8x8xf32>
    %cst_14 = arith.constant dense<0.000000e+00> : vector<8xf32>
    %46 = vector.multi_reduction <add>, %45, %cst_14 [1] : vector<8x8xf32> to vector<8xf32>
    %47 = vector.shape_cast %46 : vector<8xf32> to vector<8x1xf32>
    %48 = tpu.reciprocal %47 {approx = true} : vector<8x1xf32> -> vector<8x1xf32>
    %49 = vector.broadcast %48 : vector<8x1xf32> to vector<8x8xf32>
    %50 = arith.mulf %45, %49 : vector<8x8xf32>
    %51 = arith.truncf %50 : vector<8x8xf32> to vector<8x8xbf16>
    %cst_15 = arith.constant dense<0.000000e+00> : vector<8x32xf32>
    %52 = tpu.matmul %51, %37, %cst_15 {dimension_numbers = #tpu.dot_dimension_numbers<[1], [0], [0], [1], [0, 0, 1, 1], [], []>} : vector<8x8xbf16>, vector<8x32xbf16>, vector<8x32xf32> -> vector<8x32xf32>
    %53 = vector.extract_strided_slice %8 {offsets = [0, 64], sizes = [8, 32], strides = [1, 1]} : vector<8x128xf32> to vector<8x32xf32>
    %54 = arith.truncf %53 : vector<8x32xf32> to vector<8x32xbf16>
    %55 = vector.extract_strided_slice %9 {offsets = [0, 64], sizes = [8, 32], strides = [1, 1]} : vector<8x128xf32> to vector<8x32xf32>
    %56 = arith.truncf %55 : vector<8x32xf32> to vector<8x32xbf16>
    %57 = vector.extract_strided_slice %10 {offsets = [0, 64], sizes = [8, 32], strides = [1, 1]} : vector<8x128xf32> to vector<8x32xf32>
    %58 = arith.truncf %57 : vector<8x32xf32> to vector<8x32xbf16>
    %cst_16 = arith.constant dense<0.000000e+00> : vector<8x8xf32>
    %59 = tpu.matmul %54, %56, %cst_16 {dimension_numbers = #tpu.dot_dimension_numbers<[1], [1], [0], [0], [0, 0, 1, 0], [], []>} : vector<8x32xbf16>, vector<8x32xbf16>, vector<8x8xf32> -> vector<8x8xf32>
    %cst_17 = arith.constant 0.176776692 : f32
    %60 = vector.broadcast %cst_17 : f32 to vector<8x8xf32>
    %61 = arith.mulf %59, %60 : vector<8x8xf32>
    %cst_18 = arith.constant dense<0xFF800000> : vector<8xf32>
    %62 = vector.multi_reduction <maximumf>, %61, %cst_18 [1] : vector<8x8xf32> to vector<8xf32>
    %63 = vector.shape_cast %62 : vector<8xf32> to vector<8x1xf32>
    %64 = vector.broadcast %63 : vector<8x1xf32> to vector<8x8xf32>
    %65 = arith.subf %61, %64 : vector<8x8xf32>
    %66 = math.exp %65 : vector<8x8xf32>
    %cst_19 = arith.constant dense<0.000000e+00> : vector<8xf32>
    %67 = vector.multi_reduction <add>, %66, %cst_19 [1] : vector<8x8xf32> to vector<8xf32>
    %68 = vector.shape_cast %67 : vector<8xf32> to vector<8x1xf32>
    %69 = tpu.reciprocal %68 {approx = true} : vector<8x1xf32> -> vector<8x1xf32>
    %70 = vector.broadcast %69 : vector<8x1xf32> to vector<8x8xf32>
    %71 = arith.mulf %66, %70 : vector<8x8xf32>
    %72 = arith.truncf %71 : vector<8x8xf32> to vector<8x8xbf16>
    %cst_20 = arith.constant dense<0.000000e+00> : vector<8x32xf32>
    %73 = tpu.matmul %72, %58, %cst_20 {dimension_numbers = #tpu.dot_dimension_numbers<[1], [0], [0], [1], [0, 0, 1, 1], [], []>} : vector<8x8xbf16>, vector<8x32xbf16>, vector<8x32xf32> -> vector<8x32xf32>
    %74 = vector.extract_strided_slice %8 {offsets = [0, 96], sizes = [8, 32], strides = [1, 1]} : vector<8x128xf32> to vector<8x32xf32>
    %75 = arith.truncf %74 : vector<8x32xf32> to vector<8x32xbf16>
    %76 = vector.extract_strided_slice %9 {offsets = [0, 96], sizes = [8, 32], strides = [1, 1]} : vector<8x128xf32> to vector<8x32xf32>
    %77 = arith.truncf %76 : vector<8x32xf32> to vector<8x32xbf16>
    %78 = vector.extract_strided_slice %10 {offsets = [0, 96], sizes = [8, 32], strides = [1, 1]} : vector<8x128xf32> to vector<8x32xf32>
    %79 = arith.truncf %78 : vector<8x32xf32> to vector<8x32xbf16>
    %cst_21 = arith.constant dense<0.000000e+00> : vector<8x8xf32>
    %80 = tpu.matmul %75, %77, %cst_21 {dimension_numbers = #tpu.dot_dimension_numbers<[1], [1], [0], [0], [0, 0, 1, 0], [], []>} : vector<8x32xbf16>, vector<8x32xbf16>, vector<8x8xf32> -> vector<8x8xf32>
    %cst_22 = arith.constant 0.176776692 : f32
    %81 = vector.broadcast %cst_22 : f32 to vector<8x8xf32>
    %82 = arith.mulf %80, %81 : vector<8x8xf32>
    %cst_23 = arith.constant dense<0xFF800000> : vector<8xf32>
    %83 = vector.multi_reduction <maximumf>, %82, %cst_23 [1] : vector<8x8xf32> to vector<8xf32>
    %84 = vector.shape_cast %83 : vector<8xf32> to vector<8x1xf32>
    %85 = vector.broadcast %84 : vector<8x1xf32> to vector<8x8xf32>
    %86 = arith.subf %82, %85 : vector<8x8xf32>
    %87 = math.exp %86 : vector<8x8xf32>
    %cst_24 = arith.constant dense<0.000000e+00> : vector<8xf32>
    %88 = vector.multi_reduction <add>, %87, %cst_24 [1] : vector<8x8xf32> to vector<8xf32>
    %89 = vector.shape_cast %88 : vector<8xf32> to vector<8x1xf32>
    %90 = tpu.reciprocal %89 {approx = true} : vector<8x1xf32> -> vector<8x1xf32>
    %91 = vector.broadcast %90 : vector<8x1xf32> to vector<8x8xf32>
    %92 = arith.mulf %87, %91 : vector<8x8xf32>
    %93 = arith.truncf %92 : vector<8x8xf32> to vector<8x8xbf16>
    %cst_25 = arith.constant dense<0.000000e+00> : vector<8x32xf32>
    %94 = tpu.matmul %93, %79, %cst_25 {dimension_numbers = #tpu.dot_dimension_numbers<[1], [0], [0], [1], [0, 0, 1, 1], [], []>} : vector<8x8xbf16>, vector<8x32xbf16>, vector<8x32xf32> -> vector<8x32xf32>
    %95 = tpu.concatenate %31, %52, %73, %94 in 1 : vector<8x32xf32>, vector<8x32xf32>, vector<8x32xf32>, vector<8x32xf32> -> vector<8x128xf32>
    %96 = arith.truncf %95 : vector<8x128xf32> to vector<8x128xbf16>
    %c0_26 = arith.constant 0 : index
    %c0_27 = arith.constant 0 : index
    %97 = vector.load %arg4[%c0_26, %c0_27] : memref<128x128xbf16, #tpu.memory_space<vmem>>, vector<128x128xbf16>
    %cst_28 = arith.constant dense<0.000000e+00> : vector<8x128xf32>
    %98 = tpu.matmul %96, %97, %cst_28 {dimension_numbers = #tpu.dot_dimension_numbers<[1], [0], [0], [1], [0, 0, 1, 1], [], []>} : vector<8x128xbf16>, vector<128x128xbf16>, vector<8x128xf32> -> vector<8x128xf32>
    %c0_29 = arith.constant 0 : index
    %c0_30 = arith.constant 0 : index
    %99 = vector.load %arg5[%c0_29, %c0_30] : memref<1x128xf32, #tpu.memory_space<vmem>>, vector<1x128xf32>
    %100 = vector.broadcast %99 : vector<1x128xf32> to vector<8x128xf32>
    %101 = arith.addf %98, %100 : vector<8x128xf32>
    %102 = arith.addf %1, %101 : vector<8x128xf32>
    %c0_31 = arith.constant 0 : index
    %c0_32 = arith.constant 0 : index
    %103 = vector.load %arg6[%c0_31, %c0_32] : memref<1x128xf32, #tpu.memory_space<vmem>>, vector<1x128xf32>
    %c0_33 = arith.constant 0 : index
    %c0_34 = arith.constant 0 : index
    %104 = vector.load %arg7[%c0_33, %c0_34] : memref<1x128xf32, #tpu.memory_space<vmem>>, vector<1x128xf32>
    %cst_35 = arith.constant dense<0.000000e+00> : vector<8xf32>
    %105 = vector.multi_reduction <add>, %102, %cst_35 [1] : vector<8x128xf32> to vector<8xf32>
    %106 = vector.shape_cast %105 : vector<8xf32> to vector<8x1xf32>
    %cst_36 = arith.constant 1.280000e+02 : f32
    %107 = vector.broadcast %cst_36 : f32 to vector<8x1xf32>
    %108 = arith.divf %106, %107 : vector<8x1xf32>
    %109 = vector.broadcast %108 : vector<8x1xf32> to vector<8x128xf32>
    %110 = arith.subf %102, %109 : vector<8x128xf32>
    %111 = arith.mulf %110, %110 : vector<8x128xf32>
    %cst_37 = arith.constant dense<0.000000e+00> : vector<8xf32>
    %112 = vector.multi_reduction <add>, %111, %cst_37 [1] : vector<8x128xf32> to vector<8xf32>
    %113 = vector.shape_cast %112 : vector<8xf32> to vector<8x1xf32>
    %cst_38 = arith.constant 1.280000e+02 : f32
    %114 = vector.broadcast %cst_38 : f32 to vector<8x1xf32>
    %115 = arith.divf %113, %114 : vector<8x1xf32>
    %116 = vector.broadcast %108 : vector<8x1xf32> to vector<8x128xf32>
    %117 = arith.subf %102, %116 : vector<8x128xf32>
    %cst_39 = arith.constant 9.99999974E-6 : f32
    %118 = vector.broadcast %cst_39 : f32 to vector<8x1xf32>
    %119 = arith.addf %115, %118 : vector<8x1xf32>
    %120 = math.rsqrt %119 : vector<8x1xf32>
    %121 = vector.broadcast %120 : vector<8x1xf32> to vector<8x128xf32>
    %122 = arith.mulf %117, %121 : vector<8x128xf32>
    %123 = vector.broadcast %103 : vector<1x128xf32> to vector<8x128xf32>
    %124 = arith.mulf %122, %123 : vector<8x128xf32>
    %125 = vector.broadcast %104 : vector<1x128xf32> to vector<8x128xf32>
    %126 = arith.addf %124, %125 : vector<8x128xf32>
    %127 = arith.truncf %126 : vector<8x128xf32> to vector<8x128xbf16>
    %c0_40 = arith.constant 0 : index
    %c0_41 = arith.constant 0 : index
    %128 = vector.load %arg8[%c0_40, %c0_41] : memref<128x256xbf16, #tpu.memory_space<vmem>>, vector<128x256xbf16>
    %cst_42 = arith.constant dense<0.000000e+00> : vector<8x256xf32>
    %129 = tpu.matmul %127, %128, %cst_42 {dimension_numbers = #tpu.dot_dimension_numbers<[1], [0], [0], [1], [0, 0, 1, 1], [], []>} : vector<8x128xbf16>, vector<128x256xbf16>, vector<8x256xf32> -> vector<8x256xf32>
    %c0_43 = arith.constant 0 : index
    %c0_44 = arith.constant 0 : index
    %130 = vector.load %arg9[%c0_43, %c0_44] : memref<1x256xf32, #tpu.memory_space<vmem>>, vector<1x256xf32>
    %131 = vector.broadcast %130 : vector<1x256xf32> to vector<8x256xf32>
    %132 = arith.addf %129, %131 : vector<8x256xf32>
    %cst_45 = arith.constant 0.000000e+00 : f32
    %133 = vector.broadcast %cst_45 : f32 to vector<8x256xf32>
    %134 = arith.maximumf %132, %133 : vector<8x256xf32>
    %135 = arith.truncf %134 : vector<8x256xf32> to vector<8x256xbf16>
    %c0_46 = arith.constant 0 : index
    %c0_47 = arith.constant 0 : index
    %136 = vector.load %arg10[%c0_46, %c0_47] : memref<256x128xbf16, #tpu.memory_space<vmem>>, vector<256x128xbf16>
    %cst_48 = arith.constant dense<0.000000e+00> : vector<8x128xf32>
    %137 = tpu.matmul %135, %136, %cst_48 {dimension_numbers = #tpu.dot_dimension_numbers<[1], [0], [0], [1], [0, 0, 1, 1], [], []>} : vector<8x256xbf16>, vector<256x128xbf16>, vector<8x128xf32> -> vector<8x128xf32>
    %c0_49 = arith.constant 0 : index
    %c0_50 = arith.constant 0 : index
    %138 = vector.load %arg11[%c0_49, %c0_50] : memref<1x128xf32, #tpu.memory_space<vmem>>, vector<1x128xf32>
    %139 = vector.broadcast %138 : vector<1x128xf32> to vector<8x128xf32>
    %140 = arith.addf %137, %139 : vector<8x128xf32>
    %141 = arith.addf %126, %140 : vector<8x128xf32>
    %c0_51 = arith.constant 0 : index
    %c0_52 = arith.constant 0 : index
    %142 = vector.load %arg12[%c0_51, %c0_52] : memref<1x128xf32, #tpu.memory_space<vmem>>, vector<1x128xf32>
    %c0_53 = arith.constant 0 : index
    %c0_54 = arith.constant 0 : index
    %143 = vector.load %arg13[%c0_53, %c0_54] : memref<1x128xf32, #tpu.memory_space<vmem>>, vector<1x128xf32>
    %cst_55 = arith.constant dense<0.000000e+00> : vector<8xf32>
    %144 = vector.multi_reduction <add>, %141, %cst_55 [1] : vector<8x128xf32> to vector<8xf32>
    %145 = vector.shape_cast %144 : vector<8xf32> to vector<8x1xf32>
    %cst_56 = arith.constant 1.280000e+02 : f32
    %146 = vector.broadcast %cst_56 : f32 to vector<8x1xf32>
    %147 = arith.divf %145, %146 : vector<8x1xf32>
    %148 = vector.broadcast %147 : vector<8x1xf32> to vector<8x128xf32>
    %149 = arith.subf %141, %148 : vector<8x128xf32>
    %150 = arith.mulf %149, %149 : vector<8x128xf32>
    %cst_57 = arith.constant dense<0.000000e+00> : vector<8xf32>
    %151 = vector.multi_reduction <add>, %150, %cst_57 [1] : vector<8x128xf32> to vector<8xf32>
    %152 = vector.shape_cast %151 : vector<8xf32> to vector<8x1xf32>
    %cst_58 = arith.constant 1.280000e+02 : f32
    %153 = vector.broadcast %cst_58 : f32 to vector<8x1xf32>
    %154 = arith.divf %152, %153 : vector<8x1xf32>
    %155 = vector.broadcast %147 : vector<8x1xf32> to vector<8x128xf32>
    %156 = arith.subf %141, %155 : vector<8x128xf32>
    %cst_59 = arith.constant 9.99999974E-6 : f32
    %157 = vector.broadcast %cst_59 : f32 to vector<8x1xf32>
    %158 = arith.addf %154, %157 : vector<8x1xf32>
    %159 = math.rsqrt %158 : vector<8x1xf32>
    %160 = vector.broadcast %159 : vector<8x1xf32> to vector<8x128xf32>
    %161 = arith.mulf %156, %160 : vector<8x128xf32>
    %162 = vector.broadcast %142 : vector<1x128xf32> to vector<8x128xf32>
    %163 = arith.mulf %161, %162 : vector<8x128xf32>
    %164 = vector.broadcast %143 : vector<1x128xf32> to vector<8x128xf32>
    %165 = arith.addf %163, %164 : vector<8x128xf32>
    %c0_60 = arith.constant 0 : index
    %c0_61 = arith.constant 0 : index
    %c0_62 = arith.constant 0 : index
    %166 = vector.load %arg14[%c0_60, %c0_61, %c0_62] : memref<1x8x128xf32, #tpu.memory_space<vmem>>, vector<1x8x128xf32>
    %167 = vector.shape_cast %166 : vector<1x8x128xf32> to vector<8x128xf32>
    %168 = vector.shape_cast %165 : vector<8x128xf32> to vector<1x8x128xf32>
    tpu.vector_store %arg14[%c0_60, %c0_61, %c0_62], %168 {strides = array<i32>} : memref<1x8x128xf32, #tpu.memory_space<vmem>>, vector<1x8x128xf32>,
    return
  }
  func.func @transform_0(%arg0: i32) -> (i32, i32, i32) {
    %c0_i32 = arith.constant 0 : i32
    %c0_i32_0 = arith.constant 0 : i32
    %c0_i32_1 = arith.constant 0 : i32
    return %arg0, %c0_i32, %c0_i32_0 : i32, i32, i32
  }
  func.func @transform_1(%arg0: i32) -> (i32, i32) {
    %c0_i32 = arith.constant 0 : i32
    %c0_i32_0 = arith.constant 0 : i32
    %c0_i32_1 = arith.constant 0 : i32
    return %c0_i32, %c0_i32_0 : i32, i32
  }
  func.func @transform_2(%arg0: i32) -> (i32, i32) {
    %c0_i32 = arith.constant 0 : i32
    %c0_i32_0 = arith.constant 0 : i32
    %c0_i32_1 = arith.constant 0 : i32
    return %c0_i32, %c0_i32_0 : i32, i32
  }
  func.func @transform_3(%arg0: i32) -> (i32, i32) {
    %c0_i32 = arith.constant 0 : i32
    %c0_i32_0 = arith.constant 0 : i32
    %c0_i32_1 = arith.constant 0 : i32
    return %c0_i32, %c0_i32_0 : i32, i32
  }
  func.func @transform_4(%arg0: i32) -> (i32, i32) {
    %c0_i32 = arith.constant 0 : i32
    %c0_i32_0 = arith.constant 0 : i32
    %c0_i32_1 = arith.constant 0 : i32
    return %c0_i32, %c0_i32_0 : i32, i32
  }
  func.func @transform_5(%arg0: i32) -> (i32, i32) {
    %c0_i32 = arith.constant 0 : i32
    %c0_i32_0 = arith.constant 0 : i32
    %c0_i32_1 = arith.constant 0 : i32
    return %c0_i32, %c0_i32_0 : i32, i32
  }
  func.func @transform_6(%arg0: i32) -> (i32, i32) {
    %c0_i32 = arith.constant 0 : i32
    %c0_i32_0 = arith.constant 0 : i32
    %c0_i32_1 = arith.constant 0 : i32
    return %c0_i32, %c0_i32_0 : i32, i32
  }
  func.func @transform_7(%arg0: i32) -> (i32, i32) {
    %c0_i32 = arith.constant 0 : i32
    %c0_i32_0 = arith.constant 0 : i32
    %c0_i32_1 = arith.constant 0 : i32
    return %c0_i32, %c0_i32_0 : i32, i32
  }
  func.func @transform_8(%arg0: i32) -> (i32, i32) {
    %c0_i32 = arith.constant 0 : i32
    %c0_i32_0 = arith.constant 0 : i32
    %c0_i32_1 = arith.constant 0 : i32
    return %c0_i32, %c0_i32_0 : i32, i32
  }
  func.func @transform_9(%arg0: i32) -> (i32, i32) {
    %c0_i32 = arith.constant 0 : i32
    %c0_i32_0 = arith.constant 0 : i32
    %c0_i32_1 = arith.constant 0 : i32
    return %c0_i32, %c0_i32_0 : i32, i32
  }
  func.func @transform_10(%arg0: i32) -> (i32, i32) {
    %c0_i32 = arith.constant 0 : i32
    %c0_i32_0 = arith.constant 0 : i32
    %c0_i32_1 = arith.constant 0 : i32
    return %c0_i32, %c0_i32_0 : i32, i32
  }
  func.func @transform_11(%arg0: i32) -> (i32, i32) {
    %c0_i32 = arith.constant 0 : i32
    %c0_i32_0 = arith.constant 0 : i32
    %c0_i32_1 = arith.constant 0 : i32
    return %c0_i32, %c0_i32_0 : i32, i32
  }
  func.func @transform_12(%arg0: i32) -> (i32, i32) {
    %c0_i32 = arith.constant 0 : i32
    %c0_i32_0 = arith.constant 0 : i32
    %c0_i32_1 = arith.constant 0 : i32
    return %c0_i32, %c0_i32_0 : i32, i32
  }
  func.func @transform_13(%arg0: i32) -> (i32, i32, i32) {
    %c0_i32 = arith.constant 0 : i32
    %c0_i32_0 = arith.constant 0 : i32
    %c0_i32_1 = arith.constant 0 : i32
    return %arg0, %c0_i32, %c0_i32_0 : i32, i32, i32
  }
}

module attributes {stable_mosaic.version = 11 : i64} {
  func.func @_decoder_layer_kernel(%arg0: i32, %arg1: memref<1x8x128xf32, #tpu.memory_space<vmem>>, %arg2: memref<1x8x128xf32, #tpu.memory_space<vmem>>, %arg3: memref<128x384xbf16, #tpu.memory_space<vmem>>, %arg4: memref<1x384xf32, #tpu.memory_space<vmem>>, %arg5: memref<128x128xbf16, #tpu.memory_space<vmem>>, %arg6: memref<1x128xf32, #tpu.memory_space<vmem>>, %arg7: memref<1x128xf32, #tpu.memory_space<vmem>>, %arg8: memref<1x128xf32, #tpu.memory_space<vmem>>, %arg9: memref<128x384xbf16, #tpu.memory_space<vmem>>, %arg10: memref<1x384xf32, #tpu.memory_space<vmem>>, %arg11: memref<128x128xbf16, #tpu.memory_space<vmem>>, %arg12: memref<1x128xf32, #tpu.memory_space<vmem>>, %arg13: memref<1x128xf32, #tpu.memory_space<vmem>>, %arg14: memref<1x128xf32, #tpu.memory_space<vmem>>, %arg15: memref<128x256xbf16, #tpu.memory_space<vmem>>, %arg16: memref<1x256xf32, #tpu.memory_space<vmem>>, %arg17: memref<256x128xbf16, #tpu.memory_space<vmem>>, %arg18: memref<1x128xf32, #tpu.memory_space<vmem>>, %arg19: memref<1x128xf32, #tpu.memory_space<vmem>>, %arg20: memref<1x128xf32, #tpu.memory_space<vmem>>, %arg21: memref<1x8x128xf32, #tpu.memory_space<vmem>>) attributes {dimension_semantics = [#tpu.dimension_semantics<parallel>], iteration_bounds = array<i64: 2>, scalar_prefetch = 0 : i64, scratch_operands = 0 : i64, tpu.core_type = #tpu.core_type<tc>, window_params = [{transform_indices = @transform_0, window_bounds = array<i64: 1, 8, 128>}, {transform_indices = @transform_1, window_bounds = array<i64: 1, 8, 128>}, {pipeline_mode = #tpu.pipeline_mode<synchronous>, transform_indices = @transform_2, window_bounds = array<i64: 128, 384>}, {pipeline_mode = #tpu.pipeline_mode<synchronous>, transform_indices = @transform_3, window_bounds = array<i64: 1, 384>}, {pipeline_mode = #tpu.pipeline_mode<synchronous>, transform_indices = @transform_4, window_bounds = array<i64: 128, 128>}, {pipeline_mode = #tpu.pipeline_mode<synchronous>, transform_indices = @transform_5, window_bounds = array<i64: 1, 128>}, {pipeline_mode = #tpu.pipeline_mode<synchronous>, transform_indices = @transform_6, window_bounds = array<i64: 1, 128>}, {pipeline_mode = #tpu.pipeline_mode<synchronous>, transform_indices = @transform_7, window_bounds = array<i64: 1, 128>}, {pipeline_mode = #tpu.pipeline_mode<synchronous>, transform_indices = @transform_8, window_bounds = array<i64: 128, 384>}, {pipeline_mode = #tpu.pipeline_mode<synchronous>, transform_indices = @transform_9, window_bounds = array<i64: 1, 384>}, {pipeline_mode = #tpu.pipeline_mode<synchronous>, transform_indices = @transform_10, window_bounds = array<i64: 128, 128>}, {pipeline_mode = #tpu.pipeline_mode<synchronous>, transform_indices = @transform_11, window_bounds = array<i64: 1, 128>}, {pipeline_mode = #tpu.pipeline_mode<synchronous>, transform_indices = @transform_12, window_bounds = array<i64: 1, 128>}, {pipeline_mode = #tpu.pipeline_mode<synchronous>, transform_indices = @transform_13, window_bounds = array<i64: 1, 128>}, {pipeline_mode = #tpu.pipeline_mode<synchronous>, transform_indices = @transform_14, window_bounds = array<i64: 128, 256>}, {pipeline_mode = #tpu.pipeline_mode<synchronous>, transform_indices = @transform_15, window_bounds = array<i64: 1, 256>}, {pipeline_mode = #tpu.pipeline_mode<synchronous>, transform_indices = @transform_16, window_bounds = array<i64: 256, 128>}, {pipeline_mode = #tpu.pipeline_mode<synchronous>, transform_indices = @transform_17, window_bounds = array<i64: 1, 128>}, {pipeline_mode = #tpu.pipeline_mode<synchronous>, transform_indices = @transform_18, window_bounds = array<i64: 1, 128>}, {pipeline_mode = #tpu.pipeline_mode<synchronous>, transform_indices = @transform_19, window_bounds = array<i64: 1, 128>}, {transform_indices = @transform_20, window_bounds = array<i64: 1, 8, 128>}]} {
    %c0 = arith.constant 0 : index
    %c0_0 = arith.constant 0 : index
    %c0_1 = arith.constant 0 : index
    %0 = vector.load %arg1[%c0, %c0_0, %c0_1] : memref<1x8x128xf32, #tpu.memory_space<vmem>>, vector<1x8x128xf32>
    %1 = vector.shape_cast %0 : vector<1x8x128xf32> to vector<8x128xf32>
    %c0_2 = arith.constant 0 : index
    %c0_3 = arith.constant 0 : index
    %c0_4 = arith.constant 0 : index
    %2 = vector.load %arg2[%c0_2, %c0_3, %c0_4] : memref<1x8x128xf32, #tpu.memory_space<vmem>>, vector<1x8x128xf32>
    %3 = vector.shape_cast %2 : vector<1x8x128xf32> to vector<8x128xf32>
    %4 = arith.truncf %1 : vector<8x128xf32> to vector<8x128xbf16>
    %c0_5 = arith.constant 0 : index
    %c0_6 = arith.constant 0 : index
    %5 = vector.load %arg3[%c0_5, %c0_6] : memref<128x384xbf16, #tpu.memory_space<vmem>>, vector<128x384xbf16>
    %cst = arith.constant dense<0.000000e+00> : vector<8x384xf32>
    %6 = tpu.matmul %4, %5, %cst {dimension_numbers = #tpu.dot_dimension_numbers<[1], [0], [0], [1], [0, 0, 1, 1], [], []>} : vector<8x128xbf16>, vector<128x384xbf16>, vector<8x384xf32> -> vector<8x384xf32>
    %c0_7 = arith.constant 0 : index
    %c0_8 = arith.constant 0 : index
    %7 = vector.load %arg4[%c0_7, %c0_8] : memref<1x384xf32, #tpu.memory_space<vmem>>, vector<1x384xf32>
    %8 = vector.broadcast %7 : vector<1x384xf32> to vector<8x384xf32>
    %9 = arith.addf %6, %8 : vector<8x384xf32>
    %10 = vector.extract_strided_slice %9 {offsets = [0, 0], sizes = [8, 128], strides = [1, 1]} : vector<8x384xf32> to vector<8x128xf32>
    %11 = vector.extract_strided_slice %9 {offsets = [0, 128], sizes = [8, 128], strides = [1, 1]} : vector<8x384xf32> to vector<8x128xf32>
    %12 = vector.extract_strided_slice %9 {offsets = [0, 256], sizes = [8, 128], strides = [1, 1]} : vector<8x384xf32> to vector<8x128xf32>
    %13 = vector.extract_strided_slice %10 {offsets = [0, 0], sizes = [8, 32], strides = [1, 1]} : vector<8x128xf32> to vector<8x32xf32>
    %14 = arith.truncf %13 : vector<8x32xf32> to vector<8x32xbf16>
    %15 = vector.extract_strided_slice %11 {offsets = [0, 0], sizes = [8, 32], strides = [1, 1]} : vector<8x128xf32> to vector<8x32xf32>
    %16 = arith.truncf %15 : vector<8x32xf32> to vector<8x32xbf16>
    %17 = vector.extract_strided_slice %12 {offsets = [0, 0], sizes = [8, 32], strides = [1, 1]} : vector<8x128xf32> to vector<8x32xf32>
    %18 = arith.truncf %17 : vector<8x32xf32> to vector<8x32xbf16>
    %cst_9 = arith.constant dense<0.000000e+00> : vector<8x8xf32>
    %19 = tpu.matmul %14, %16, %cst_9 {dimension_numbers = #tpu.dot_dimension_numbers<[1], [1], [0], [0], [0, 0, 1, 0], [], []>} : vector<8x32xbf16>, vector<8x32xbf16>, vector<8x8xf32> -> vector<8x8xf32>
    %cst_10 = arith.constant 0.176776692 : f32
    %20 = vector.broadcast %cst_10 : f32 to vector<8x8xf32>
    %21 = arith.mulf %19, %20 : vector<8x8xf32>
    %cst_11 = arith.constant dense<0xFF800000> : vector<8xf32>
    %22 = vector.multi_reduction <maximumf>, %21, %cst_11 [1] : vector<8x8xf32> to vector<8xf32>
    %23 = vector.shape_cast %22 : vector<8xf32> to vector<8x1xf32>
    %24 = vector.broadcast %23 : vector<8x1xf32> to vector<8x8xf32>
    %25 = arith.subf %21, %24 : vector<8x8xf32>
    %26 = math.exp %25 : vector<8x8xf32>
    %cst_12 = arith.constant dense<0.000000e+00> : vector<8xf32>
    %27 = vector.multi_reduction <add>, %26, %cst_12 [1] : vector<8x8xf32> to vector<8xf32>
    %28 = vector.shape_cast %27 : vector<8xf32> to vector<8x1xf32>
    %29 = tpu.reciprocal %28 {approx = true} : vector<8x1xf32> -> vector<8x1xf32>
    %30 = vector.broadcast %29 : vector<8x1xf32> to vector<8x8xf32>
    %31 = arith.mulf %26, %30 : vector<8x8xf32>
    %32 = arith.truncf %31 : vector<8x8xf32> to vector<8x8xbf16>
    %cst_13 = arith.constant dense<0.000000e+00> : vector<8x32xf32>
    %33 = tpu.matmul %32, %18, %cst_13 {dimension_numbers = #tpu.dot_dimension_numbers<[1], [0], [0], [1], [0, 0, 1, 1], [], []>} : vector<8x8xbf16>, vector<8x32xbf16>, vector<8x32xf32> -> vector<8x32xf32>
    %34 = vector.extract_strided_slice %10 {offsets = [0, 32], sizes = [8, 32], strides = [1, 1]} : vector<8x128xf32> to vector<8x32xf32>
    %35 = arith.truncf %34 : vector<8x32xf32> to vector<8x32xbf16>
    %36 = vector.extract_strided_slice %11 {offsets = [0, 32], sizes = [8, 32], strides = [1, 1]} : vector<8x128xf32> to vector<8x32xf32>
    %37 = arith.truncf %36 : vector<8x32xf32> to vector<8x32xbf16>
    %38 = vector.extract_strided_slice %12 {offsets = [0, 32], sizes = [8, 32], strides = [1, 1]} : vector<8x128xf32> to vector<8x32xf32>
    %39 = arith.truncf %38 : vector<8x32xf32> to vector<8x32xbf16>
    %cst_14 = arith.constant dense<0.000000e+00> : vector<8x8xf32>
    %40 = tpu.matmul %35, %37, %cst_14 {dimension_numbers = #tpu.dot_dimension_numbers<[1], [1], [0], [0], [0, 0, 1, 0], [], []>} : vector<8x32xbf16>, vector<8x32xbf16>, vector<8x8xf32> -> vector<8x8xf32>
    %cst_15 = arith.constant 0.176776692 : f32
    %41 = vector.broadcast %cst_15 : f32 to vector<8x8xf32>
    %42 = arith.mulf %40, %41 : vector<8x8xf32>
    %cst_16 = arith.constant dense<0xFF800000> : vector<8xf32>
    %43 = vector.multi_reduction <maximumf>, %42, %cst_16 [1] : vector<8x8xf32> to vector<8xf32>
    %44 = vector.shape_cast %43 : vector<8xf32> to vector<8x1xf32>
    %45 = vector.broadcast %44 : vector<8x1xf32> to vector<8x8xf32>
    %46 = arith.subf %42, %45 : vector<8x8xf32>
    %47 = math.exp %46 : vector<8x8xf32>
    %cst_17 = arith.constant dense<0.000000e+00> : vector<8xf32>
    %48 = vector.multi_reduction <add>, %47, %cst_17 [1] : vector<8x8xf32> to vector<8xf32>
    %49 = vector.shape_cast %48 : vector<8xf32> to vector<8x1xf32>
    %50 = tpu.reciprocal %49 {approx = true} : vector<8x1xf32> -> vector<8x1xf32>
    %51 = vector.broadcast %50 : vector<8x1xf32> to vector<8x8xf32>
    %52 = arith.mulf %47, %51 : vector<8x8xf32>
    %53 = arith.truncf %52 : vector<8x8xf32> to vector<8x8xbf16>
    %cst_18 = arith.constant dense<0.000000e+00> : vector<8x32xf32>
    %54 = tpu.matmul %53, %39, %cst_18 {dimension_numbers = #tpu.dot_dimension_numbers<[1], [0], [0], [1], [0, 0, 1, 1], [], []>} : vector<8x8xbf16>, vector<8x32xbf16>, vector<8x32xf32> -> vector<8x32xf32>
    %55 = vector.extract_strided_slice %10 {offsets = [0, 64], sizes = [8, 32], strides = [1, 1]} : vector<8x128xf32> to vector<8x32xf32>
    %56 = arith.truncf %55 : vector<8x32xf32> to vector<8x32xbf16>
    %57 = vector.extract_strided_slice %11 {offsets = [0, 64], sizes = [8, 32], strides = [1, 1]} : vector<8x128xf32> to vector<8x32xf32>
    %58 = arith.truncf %57 : vector<8x32xf32> to vector<8x32xbf16>
    %59 = vector.extract_strided_slice %12 {offsets = [0, 64], sizes = [8, 32], strides = [1, 1]} : vector<8x128xf32> to vector<8x32xf32>
    %60 = arith.truncf %59 : vector<8x32xf32> to vector<8x32xbf16>
    %cst_19 = arith.constant dense<0.000000e+00> : vector<8x8xf32>
    %61 = tpu.matmul %56, %58, %cst_19 {dimension_numbers = #tpu.dot_dimension_numbers<[1], [1], [0], [0], [0, 0, 1, 0], [], []>} : vector<8x32xbf16>, vector<8x32xbf16>, vector<8x8xf32> -> vector<8x8xf32>
    %cst_20 = arith.constant 0.176776692 : f32
    %62 = vector.broadcast %cst_20 : f32 to vector<8x8xf32>
    %63 = arith.mulf %61, %62 : vector<8x8xf32>
    %cst_21 = arith.constant dense<0xFF800000> : vector<8xf32>
    %64 = vector.multi_reduction <maximumf>, %63, %cst_21 [1] : vector<8x8xf32> to vector<8xf32>
    %65 = vector.shape_cast %64 : vector<8xf32> to vector<8x1xf32>
    %66 = vector.broadcast %65 : vector<8x1xf32> to vector<8x8xf32>
    %67 = arith.subf %63, %66 : vector<8x8xf32>
    %68 = math.exp %67 : vector<8x8xf32>
    %cst_22 = arith.constant dense<0.000000e+00> : vector<8xf32>
    %69 = vector.multi_reduction <add>, %68, %cst_22 [1] : vector<8x8xf32> to vector<8xf32>
    %70 = vector.shape_cast %69 : vector<8xf32> to vector<8x1xf32>
    %71 = tpu.reciprocal %70 {approx = true} : vector<8x1xf32> -> vector<8x1xf32>
    %72 = vector.broadcast %71 : vector<8x1xf32> to vector<8x8xf32>
    %73 = arith.mulf %68, %72 : vector<8x8xf32>
    %74 = arith.truncf %73 : vector<8x8xf32> to vector<8x8xbf16>
    %cst_23 = arith.constant dense<0.000000e+00> : vector<8x32xf32>
    %75 = tpu.matmul %74, %60, %cst_23 {dimension_numbers = #tpu.dot_dimension_numbers<[1], [0], [0], [1], [0, 0, 1, 1], [], []>} : vector<8x8xbf16>, vector<8x32xbf16>, vector<8x32xf32> -> vector<8x32xf32>
    %76 = vector.extract_strided_slice %10 {offsets = [0, 96], sizes = [8, 32], strides = [1, 1]} : vector<8x128xf32> to vector<8x32xf32>
    %77 = arith.truncf %76 : vector<8x32xf32> to vector<8x32xbf16>
    %78 = vector.extract_strided_slice %11 {offsets = [0, 96], sizes = [8, 32], strides = [1, 1]} : vector<8x128xf32> to vector<8x32xf32>
    %79 = arith.truncf %78 : vector<8x32xf32> to vector<8x32xbf16>
    %80 = vector.extract_strided_slice %12 {offsets = [0, 96], sizes = [8, 32], strides = [1, 1]} : vector<8x128xf32> to vector<8x32xf32>
    %81 = arith.truncf %80 : vector<8x32xf32> to vector<8x32xbf16>
    %cst_24 = arith.constant dense<0.000000e+00> : vector<8x8xf32>
    %82 = tpu.matmul %77, %79, %cst_24 {dimension_numbers = #tpu.dot_dimension_numbers<[1], [1], [0], [0], [0, 0, 1, 0], [], []>} : vector<8x32xbf16>, vector<8x32xbf16>, vector<8x8xf32> -> vector<8x8xf32>
    %cst_25 = arith.constant 0.176776692 : f32
    %83 = vector.broadcast %cst_25 : f32 to vector<8x8xf32>
    %84 = arith.mulf %82, %83 : vector<8x8xf32>
    %cst_26 = arith.constant dense<0xFF800000> : vector<8xf32>
    %85 = vector.multi_reduction <maximumf>, %84, %cst_26 [1] : vector<8x8xf32> to vector<8xf32>
    %86 = vector.shape_cast %85 : vector<8xf32> to vector<8x1xf32>
    %87 = vector.broadcast %86 : vector<8x1xf32> to vector<8x8xf32>
    %88 = arith.subf %84, %87 : vector<8x8xf32>
    %89 = math.exp %88 : vector<8x8xf32>
    %cst_27 = arith.constant dense<0.000000e+00> : vector<8xf32>
    %90 = vector.multi_reduction <add>, %89, %cst_27 [1] : vector<8x8xf32> to vector<8xf32>
    %91 = vector.shape_cast %90 : vector<8xf32> to vector<8x1xf32>
    %92 = tpu.reciprocal %91 {approx = true} : vector<8x1xf32> -> vector<8x1xf32>
    %93 = vector.broadcast %92 : vector<8x1xf32> to vector<8x8xf32>
    %94 = arith.mulf %89, %93 : vector<8x8xf32>
    %95 = arith.truncf %94 : vector<8x8xf32> to vector<8x8xbf16>
    %cst_28 = arith.constant dense<0.000000e+00> : vector<8x32xf32>
    %96 = tpu.matmul %95, %81, %cst_28 {dimension_numbers = #tpu.dot_dimension_numbers<[1], [0], [0], [1], [0, 0, 1, 1], [], []>} : vector<8x8xbf16>, vector<8x32xbf16>, vector<8x32xf32> -> vector<8x32xf32>
    %97 = tpu.concatenate %33, %54, %75, %96 in 1 : vector<8x32xf32>, vector<8x32xf32>, vector<8x32xf32>, vector<8x32xf32> -> vector<8x128xf32>
    %98 = arith.truncf %97 : vector<8x128xf32> to vector<8x128xbf16>
    %c0_29 = arith.constant 0 : index
    %c0_30 = arith.constant 0 : index
    %99 = vector.load %arg5[%c0_29, %c0_30] : memref<128x128xbf16, #tpu.memory_space<vmem>>, vector<128x128xbf16>
    %cst_31 = arith.constant dense<0.000000e+00> : vector<8x128xf32>
    %100 = tpu.matmul %98, %99, %cst_31 {dimension_numbers = #tpu.dot_dimension_numbers<[1], [0], [0], [1], [0, 0, 1, 1], [], []>} : vector<8x128xbf16>, vector<128x128xbf16>, vector<8x128xf32> -> vector<8x128xf32>
    %c0_32 = arith.constant 0 : index
    %c0_33 = arith.constant 0 : index
    %101 = vector.load %arg6[%c0_32, %c0_33] : memref<1x128xf32, #tpu.memory_space<vmem>>, vector<1x128xf32>
    %102 = vector.broadcast %101 : vector<1x128xf32> to vector<8x128xf32>
    %103 = arith.addf %100, %102 : vector<8x128xf32>
    %104 = arith.addf %1, %103 : vector<8x128xf32>
    %c0_34 = arith.constant 0 : index
    %c0_35 = arith.constant 0 : index
    %105 = vector.load %arg7[%c0_34, %c0_35] : memref<1x128xf32, #tpu.memory_space<vmem>>, vector<1x128xf32>
    %c0_36 = arith.constant 0 : index
    %c0_37 = arith.constant 0 : index
    %106 = vector.load %arg8[%c0_36, %c0_37] : memref<1x128xf32, #tpu.memory_space<vmem>>, vector<1x128xf32>
    %cst_38 = arith.constant dense<0.000000e+00> : vector<8xf32>
    %107 = vector.multi_reduction <add>, %104, %cst_38 [1] : vector<8x128xf32> to vector<8xf32>
    %108 = vector.shape_cast %107 : vector<8xf32> to vector<8x1xf32>
    %cst_39 = arith.constant 1.280000e+02 : f32
    %109 = vector.broadcast %cst_39 : f32 to vector<8x1xf32>
    %110 = arith.divf %108, %109 : vector<8x1xf32>
    %111 = vector.broadcast %110 : vector<8x1xf32> to vector<8x128xf32>
    %112 = arith.subf %104, %111 : vector<8x128xf32>
    %113 = arith.mulf %112, %112 : vector<8x128xf32>
    %cst_40 = arith.constant dense<0.000000e+00> : vector<8xf32>
    %114 = vector.multi_reduction <add>, %113, %cst_40 [1] : vector<8x128xf32> to vector<8xf32>
    %115 = vector.shape_cast %114 : vector<8xf32> to vector<8x1xf32>
    %cst_41 = arith.constant 1.280000e+02 : f32
    %116 = vector.broadcast %cst_41 : f32 to vector<8x1xf32>
    %117 = arith.divf %115, %116 : vector<8x1xf32>
    %118 = vector.broadcast %110 : vector<8x1xf32> to vector<8x128xf32>
    %119 = arith.subf %104, %118 : vector<8x128xf32>
    %cst_42 = arith.constant 9.99999974E-6 : f32
    %120 = vector.broadcast %cst_42 : f32 to vector<8x1xf32>
    %121 = arith.addf %117, %120 : vector<8x1xf32>
    %122 = math.rsqrt %121 : vector<8x1xf32>
    %123 = vector.broadcast %122 : vector<8x1xf32> to vector<8x128xf32>
    %124 = arith.mulf %119, %123 : vector<8x128xf32>
    %125 = vector.broadcast %105 : vector<1x128xf32> to vector<8x128xf32>
    %126 = arith.mulf %124, %125 : vector<8x128xf32>
    %127 = vector.broadcast %106 : vector<1x128xf32> to vector<8x128xf32>
    %128 = arith.addf %126, %127 : vector<8x128xf32>
    %129 = arith.truncf %128 : vector<8x128xf32> to vector<8x128xbf16>
    %c0_43 = arith.constant 0 : index
    %c0_44 = arith.constant 0 : index
    %130 = vector.load %arg9[%c0_43, %c0_44] : memref<128x384xbf16, #tpu.memory_space<vmem>>, vector<128x128xbf16>
    %cst_45 = arith.constant dense<0.000000e+00> : vector<8x128xf32>
    %131 = tpu.matmul %129, %130, %cst_45 {dimension_numbers = #tpu.dot_dimension_numbers<[1], [0], [0], [1], [0, 0, 1, 1], [], []>} : vector<8x128xbf16>, vector<128x128xbf16>, vector<8x128xf32> -> vector<8x128xf32>
    %c0_46 = arith.constant 0 : index
    %c0_47 = arith.constant 0 : index
    %132 = vector.load %arg10[%c0_46, %c0_47] : memref<1x384xf32, #tpu.memory_space<vmem>>, vector<1x128xf32>
    %133 = vector.broadcast %132 : vector<1x128xf32> to vector<8x128xf32>
    %134 = arith.addf %131, %133 : vector<8x128xf32>
    %135 = arith.truncf %3 : vector<8x128xf32> to vector<8x128xbf16>
    %c0_48 = arith.constant 0 : index
    %c128 = arith.constant 128 : index
    %136 = vector.load %arg9[%c0_48, %c128] : memref<128x384xbf16, #tpu.memory_space<vmem>>, vector<128x256xbf16>
    %cst_49 = arith.constant dense<0.000000e+00> : vector<8x256xf32>
    %137 = tpu.matmul %135, %136, %cst_49 {dimension_numbers = #tpu.dot_dimension_numbers<[1], [0], [0], [1], [0, 0, 1, 1], [], []>} : vector<8x128xbf16>, vector<128x256xbf16>, vector<8x256xf32> -> vector<8x256xf32>
    %c0_50 = arith.constant 0 : index
    %c128_51 = arith.constant 128 : index
    %138 = vector.load %arg10[%c0_50, %c128_51] : memref<1x384xf32, #tpu.memory_space<vmem>>, vector<1x256xf32>
    %139 = vector.broadcast %138 : vector<1x256xf32> to vector<8x256xf32>
    %140 = arith.addf %137, %139 : vector<8x256xf32>
    %141 = vector.extract_strided_slice %140 {offsets = [0, 0], sizes = [8, 128], strides = [1, 1]} : vector<8x256xf32> to vector<8x128xf32>
    %142 = vector.extract_strided_slice %140 {offsets = [0, 128], sizes = [8, 128], strides = [1, 1]} : vector<8x256xf32> to vector<8x128xf32>
    %143 = vector.extract_strided_slice %134 {offsets = [0, 0], sizes = [8, 32], strides = [1, 1]} : vector<8x128xf32> to vector<8x32xf32>
    %144 = arith.truncf %143 : vector<8x32xf32> to vector<8x32xbf16>
    %145 = vector.extract_strided_slice %141 {offsets = [0, 0], sizes = [8, 32], strides = [1, 1]} : vector<8x128xf32> to vector<8x32xf32>
    %146 = arith.truncf %145 : vector<8x32xf32> to vector<8x32xbf16>
    %147 = vector.extract_strided_slice %142 {offsets = [0, 0], sizes = [8, 32], strides = [1, 1]} : vector<8x128xf32> to vector<8x32xf32>
    %148 = arith.truncf %147 : vector<8x32xf32> to vector<8x32xbf16>
    %cst_52 = arith.constant dense<0.000000e+00> : vector<8x8xf32>
    %149 = tpu.matmul %144, %146, %cst_52 {dimension_numbers = #tpu.dot_dimension_numbers<[1], [1], [0], [0], [0, 0, 1, 0], [], []>} : vector<8x32xbf16>, vector<8x32xbf16>, vector<8x8xf32> -> vector<8x8xf32>
    %cst_53 = arith.constant 0.176776692 : f32
    %150 = vector.broadcast %cst_53 : f32 to vector<8x8xf32>
    %151 = arith.mulf %149, %150 : vector<8x8xf32>
    %cst_54 = arith.constant dense<0xFF800000> : vector<8xf32>
    %152 = vector.multi_reduction <maximumf>, %151, %cst_54 [1] : vector<8x8xf32> to vector<8xf32>
    %153 = vector.shape_cast %152 : vector<8xf32> to vector<8x1xf32>
    %154 = vector.broadcast %153 : vector<8x1xf32> to vector<8x8xf32>
    %155 = arith.subf %151, %154 : vector<8x8xf32>
    %156 = math.exp %155 : vector<8x8xf32>
    %cst_55 = arith.constant dense<0.000000e+00> : vector<8xf32>
    %157 = vector.multi_reduction <add>, %156, %cst_55 [1] : vector<8x8xf32> to vector<8xf32>
    %158 = vector.shape_cast %157 : vector<8xf32> to vector<8x1xf32>
    %159 = tpu.reciprocal %158 {approx = true} : vector<8x1xf32> -> vector<8x1xf32>
    %160 = vector.broadcast %159 : vector<8x1xf32> to vector<8x8xf32>
    %161 = arith.mulf %156, %160 : vector<8x8xf32>
    %162 = arith.truncf %161 : vector<8x8xf32> to vector<8x8xbf16>
    %cst_56 = arith.constant dense<0.000000e+00> : vector<8x32xf32>
    %163 = tpu.matmul %162, %148, %cst_56 {dimension_numbers = #tpu.dot_dimension_numbers<[1], [0], [0], [1], [0, 0, 1, 1], [], []>} : vector<8x8xbf16>, vector<8x32xbf16>, vector<8x32xf32> -> vector<8x32xf32>
    %164 = vector.extract_strided_slice %134 {offsets = [0, 32], sizes = [8, 32], strides = [1, 1]} : vector<8x128xf32> to vector<8x32xf32>
    %165 = arith.truncf %164 : vector<8x32xf32> to vector<8x32xbf16>
    %166 = vector.extract_strided_slice %141 {offsets = [0, 32], sizes = [8, 32], strides = [1, 1]} : vector<8x128xf32> to vector<8x32xf32>
    %167 = arith.truncf %166 : vector<8x32xf32> to vector<8x32xbf16>
    %168 = vector.extract_strided_slice %142 {offsets = [0, 32], sizes = [8, 32], strides = [1, 1]} : vector<8x128xf32> to vector<8x32xf32>
    %169 = arith.truncf %168 : vector<8x32xf32> to vector<8x32xbf16>
    %cst_57 = arith.constant dense<0.000000e+00> : vector<8x8xf32>
    %170 = tpu.matmul %165, %167, %cst_57 {dimension_numbers = #tpu.dot_dimension_numbers<[1], [1], [0], [0], [0, 0, 1, 0], [], []>} : vector<8x32xbf16>, vector<8x32xbf16>, vector<8x8xf32> -> vector<8x8xf32>
    %cst_58 = arith.constant 0.176776692 : f32
    %171 = vector.broadcast %cst_58 : f32 to vector<8x8xf32>
    %172 = arith.mulf %170, %171 : vector<8x8xf32>
    %cst_59 = arith.constant dense<0xFF800000> : vector<8xf32>
    %173 = vector.multi_reduction <maximumf>, %172, %cst_59 [1] : vector<8x8xf32> to vector<8xf32>
    %174 = vector.shape_cast %173 : vector<8xf32> to vector<8x1xf32>
    %175 = vector.broadcast %174 : vector<8x1xf32> to vector<8x8xf32>
    %176 = arith.subf %172, %175 : vector<8x8xf32>
    %177 = math.exp %176 : vector<8x8xf32>
    %cst_60 = arith.constant dense<0.000000e+00> : vector<8xf32>
    %178 = vector.multi_reduction <add>, %177, %cst_60 [1] : vector<8x8xf32> to vector<8xf32>
    %179 = vector.shape_cast %178 : vector<8xf32> to vector<8x1xf32>
    %180 = tpu.reciprocal %179 {approx = true} : vector<8x1xf32> -> vector<8x1xf32>
    %181 = vector.broadcast %180 : vector<8x1xf32> to vector<8x8xf32>
    %182 = arith.mulf %177, %181 : vector<8x8xf32>
    %183 = arith.truncf %182 : vector<8x8xf32> to vector<8x8xbf16>
    %cst_61 = arith.constant dense<0.000000e+00> : vector<8x32xf32>
    %184 = tpu.matmul %183, %169, %cst_61 {dimension_numbers = #tpu.dot_dimension_numbers<[1], [0], [0], [1], [0, 0, 1, 1], [], []>} : vector<8x8xbf16>, vector<8x32xbf16>, vector<8x32xf32> -> vector<8x32xf32>
    %185 = vector.extract_strided_slice %134 {offsets = [0, 64], sizes = [8, 32], strides = [1, 1]} : vector<8x128xf32> to vector<8x32xf32>
    %186 = arith.truncf %185 : vector<8x32xf32> to vector<8x32xbf16>
    %187 = vector.extract_strided_slice %141 {offsets = [0, 64], sizes = [8, 32], strides = [1, 1]} : vector<8x128xf32> to vector<8x32xf32>
    %188 = arith.truncf %187 : vector<8x32xf32> to vector<8x32xbf16>
    %189 = vector.extract_strided_slice %142 {offsets = [0, 64], sizes = [8, 32], strides = [1, 1]} : vector<8x128xf32> to vector<8x32xf32>
    %190 = arith.truncf %189 : vector<8x32xf32> to vector<8x32xbf16>
    %cst_62 = arith.constant dense<0.000000e+00> : vector<8x8xf32>
    %191 = tpu.matmul %186, %188, %cst_62 {dimension_numbers = #tpu.dot_dimension_numbers<[1], [1], [0], [0], [0, 0, 1, 0], [], []>} : vector<8x32xbf16>, vector<8x32xbf16>, vector<8x8xf32> -> vector<8x8xf32>
    %cst_63 = arith.constant 0.176776692 : f32
    %192 = vector.broadcast %cst_63 : f32 to vector<8x8xf32>
    %193 = arith.mulf %191, %192 : vector<8x8xf32>
    %cst_64 = arith.constant dense<0xFF800000> : vector<8xf32>
    %194 = vector.multi_reduction <maximumf>, %193, %cst_64 [1] : vector<8x8xf32> to vector<8xf32>
    %195 = vector.shape_cast %194 : vector<8xf32> to vector<8x1xf32>
    %196 = vector.broadcast %195 : vector<8x1xf32> to vector<8x8xf32>
    %197 = arith.subf %193, %196 : vector<8x8xf32>
    %198 = math.exp %197 : vector<8x8xf32>
    %cst_65 = arith.constant dense<0.000000e+00> : vector<8xf32>
    %199 = vector.multi_reduction <add>, %198, %cst_65 [1] : vector<8x8xf32> to vector<8xf32>
    %200 = vector.shape_cast %199 : vector<8xf32> to vector<8x1xf32>
    %201 = tpu.reciprocal %200 {approx = true} : vector<8x1xf32> -> vector<8x1xf32>
    %202 = vector.broadcast %201 : vector<8x1xf32> to vector<8x8xf32>
    %203 = arith.mulf %198, %202 : vector<8x8xf32>
    %204 = arith.truncf %203 : vector<8x8xf32> to vector<8x8xbf16>
    %cst_66 = arith.constant dense<0.000000e+00> : vector<8x32xf32>
    %205 = tpu.matmul %204, %190, %cst_66 {dimension_numbers = #tpu.dot_dimension_numbers<[1], [0], [0], [1], [0, 0, 1, 1], [], []>} : vector<8x8xbf16>, vector<8x32xbf16>, vector<8x32xf32> -> vector<8x32xf32>
    %206 = vector.extract_strided_slice %134 {offsets = [0, 96], sizes = [8, 32], strides = [1, 1]} : vector<8x128xf32> to vector<8x32xf32>
    %207 = arith.truncf %206 : vector<8x32xf32> to vector<8x32xbf16>
    %208 = vector.extract_strided_slice %141 {offsets = [0, 96], sizes = [8, 32], strides = [1, 1]} : vector<8x128xf32> to vector<8x32xf32>
    %209 = arith.truncf %208 : vector<8x32xf32> to vector<8x32xbf16>
    %210 = vector.extract_strided_slice %142 {offsets = [0, 96], sizes = [8, 32], strides = [1, 1]} : vector<8x128xf32> to vector<8x32xf32>
    %211 = arith.truncf %210 : vector<8x32xf32> to vector<8x32xbf16>
    %cst_67 = arith.constant dense<0.000000e+00> : vector<8x8xf32>
    %212 = tpu.matmul %207, %209, %cst_67 {dimension_numbers = #tpu.dot_dimension_numbers<[1], [1], [0], [0], [0, 0, 1, 0], [], []>} : vector<8x32xbf16>, vector<8x32xbf16>, vector<8x8xf32> -> vector<8x8xf32>
    %cst_68 = arith.constant 0.176776692 : f32
    %213 = vector.broadcast %cst_68 : f32 to vector<8x8xf32>
    %214 = arith.mulf %212, %213 : vector<8x8xf32>
    %cst_69 = arith.constant dense<0xFF800000> : vector<8xf32>
    %215 = vector.multi_reduction <maximumf>, %214, %cst_69 [1] : vector<8x8xf32> to vector<8xf32>
    %216 = vector.shape_cast %215 : vector<8xf32> to vector<8x1xf32>
    %217 = vector.broadcast %216 : vector<8x1xf32> to vector<8x8xf32>
    %218 = arith.subf %214, %217 : vector<8x8xf32>
    %219 = math.exp %218 : vector<8x8xf32>
    %cst_70 = arith.constant dense<0.000000e+00> : vector<8xf32>
    %220 = vector.multi_reduction <add>, %219, %cst_70 [1] : vector<8x8xf32> to vector<8xf32>
    %221 = vector.shape_cast %220 : vector<8xf32> to vector<8x1xf32>
    %222 = tpu.reciprocal %221 {approx = true} : vector<8x1xf32> -> vector<8x1xf32>
    %223 = vector.broadcast %222 : vector<8x1xf32> to vector<8x8xf32>
    %224 = arith.mulf %219, %223 : vector<8x8xf32>
    %225 = arith.truncf %224 : vector<8x8xf32> to vector<8x8xbf16>
    %cst_71 = arith.constant dense<0.000000e+00> : vector<8x32xf32>
    %226 = tpu.matmul %225, %211, %cst_71 {dimension_numbers = #tpu.dot_dimension_numbers<[1], [0], [0], [1], [0, 0, 1, 1], [], []>} : vector<8x8xbf16>, vector<8x32xbf16>, vector<8x32xf32> -> vector<8x32xf32>
    %227 = tpu.concatenate %163, %184, %205, %226 in 1 : vector<8x32xf32>, vector<8x32xf32>, vector<8x32xf32>, vector<8x32xf32> -> vector<8x128xf32>
    %228 = arith.truncf %227 : vector<8x128xf32> to vector<8x128xbf16>
    %c0_72 = arith.constant 0 : index
    %c0_73 = arith.constant 0 : index
    %229 = vector.load %arg11[%c0_72, %c0_73] : memref<128x128xbf16, #tpu.memory_space<vmem>>, vector<128x128xbf16>
    %cst_74 = arith.constant dense<0.000000e+00> : vector<8x128xf32>
    %230 = tpu.matmul %228, %229, %cst_74 {dimension_numbers = #tpu.dot_dimension_numbers<[1], [0], [0], [1], [0, 0, 1, 1], [], []>} : vector<8x128xbf16>, vector<128x128xbf16>, vector<8x128xf32> -> vector<8x128xf32>
    %c0_75 = arith.constant 0 : index
    %c0_76 = arith.constant 0 : index
    %231 = vector.load %arg12[%c0_75, %c0_76] : memref<1x128xf32, #tpu.memory_space<vmem>>, vector<1x128xf32>
    %232 = vector.broadcast %231 : vector<1x128xf32> to vector<8x128xf32>
    %233 = arith.addf %230, %232 : vector<8x128xf32>
    %234 = arith.addf %128, %233 : vector<8x128xf32>
    %c0_77 = arith.constant 0 : index
    %c0_78 = arith.constant 0 : index
    %235 = vector.load %arg13[%c0_77, %c0_78] : memref<1x128xf32, #tpu.memory_space<vmem>>, vector<1x128xf32>
    %c0_79 = arith.constant 0 : index
    %c0_80 = arith.constant 0 : index
    %236 = vector.load %arg14[%c0_79, %c0_80] : memref<1x128xf32, #tpu.memory_space<vmem>>, vector<1x128xf32>
    %cst_81 = arith.constant dense<0.000000e+00> : vector<8xf32>
    %237 = vector.multi_reduction <add>, %234, %cst_81 [1] : vector<8x128xf32> to vector<8xf32>
    %238 = vector.shape_cast %237 : vector<8xf32> to vector<8x1xf32>
    %cst_82 = arith.constant 1.280000e+02 : f32
    %239 = vector.broadcast %cst_82 : f32 to vector<8x1xf32>
    %240 = arith.divf %238, %239 : vector<8x1xf32>
    %241 = vector.broadcast %240 : vector<8x1xf32> to vector<8x128xf32>
    %242 = arith.subf %234, %241 : vector<8x128xf32>
    %243 = arith.mulf %242, %242 : vector<8x128xf32>
    %cst_83 = arith.constant dense<0.000000e+00> : vector<8xf32>
    %244 = vector.multi_reduction <add>, %243, %cst_83 [1] : vector<8x128xf32> to vector<8xf32>
    %245 = vector.shape_cast %244 : vector<8xf32> to vector<8x1xf32>
    %cst_84 = arith.constant 1.280000e+02 : f32
    %246 = vector.broadcast %cst_84 : f32 to vector<8x1xf32>
    %247 = arith.divf %245, %246 : vector<8x1xf32>
    %248 = vector.broadcast %240 : vector<8x1xf32> to vector<8x128xf32>
    %249 = arith.subf %234, %248 : vector<8x128xf32>
    %cst_85 = arith.constant 9.99999974E-6 : f32
    %250 = vector.broadcast %cst_85 : f32 to vector<8x1xf32>
    %251 = arith.addf %247, %250 : vector<8x1xf32>
    %252 = math.rsqrt %251 : vector<8x1xf32>
    %253 = vector.broadcast %252 : vector<8x1xf32> to vector<8x128xf32>
    %254 = arith.mulf %249, %253 : vector<8x128xf32>
    %255 = vector.broadcast %235 : vector<1x128xf32> to vector<8x128xf32>
    %256 = arith.mulf %254, %255 : vector<8x128xf32>
    %257 = vector.broadcast %236 : vector<1x128xf32> to vector<8x128xf32>
    %258 = arith.addf %256, %257 : vector<8x128xf32>
    %259 = arith.truncf %258 : vector<8x128xf32> to vector<8x128xbf16>
    %c0_86 = arith.constant 0 : index
    %c0_87 = arith.constant 0 : index
    %260 = vector.load %arg15[%c0_86, %c0_87] : memref<128x256xbf16, #tpu.memory_space<vmem>>, vector<128x256xbf16>
    %cst_88 = arith.constant dense<0.000000e+00> : vector<8x256xf32>
    %261 = tpu.matmul %259, %260, %cst_88 {dimension_numbers = #tpu.dot_dimension_numbers<[1], [0], [0], [1], [0, 0, 1, 1], [], []>} : vector<8x128xbf16>, vector<128x256xbf16>, vector<8x256xf32> -> vector<8x256xf32>
    %c0_89 = arith.constant 0 : index
    %c0_90 = arith.constant 0 : index
    %262 = vector.load %arg16[%c0_89, %c0_90] : memref<1x256xf32, #tpu.memory_space<vmem>>, vector<1x256xf32>
    %263 = vector.broadcast %262 : vector<1x256xf32> to vector<8x256xf32>
    %264 = arith.addf %261, %263 : vector<8x256xf32>
    %cst_91 = arith.constant 0.000000e+00 : f32
    %265 = vector.broadcast %cst_91 : f32 to vector<8x256xf32>
    %266 = arith.maximumf %264, %265 : vector<8x256xf32>
    %267 = arith.truncf %266 : vector<8x256xf32> to vector<8x256xbf16>
    %c0_92 = arith.constant 0 : index
    %c0_93 = arith.constant 0 : index
    %268 = vector.load %arg17[%c0_92, %c0_93] : memref<256x128xbf16, #tpu.memory_space<vmem>>, vector<256x128xbf16>
    %cst_94 = arith.constant dense<0.000000e+00> : vector<8x128xf32>
    %269 = tpu.matmul %267, %268, %cst_94 {dimension_numbers = #tpu.dot_dimension_numbers<[1], [0], [0], [1], [0, 0, 1, 1], [], []>} : vector<8x256xbf16>, vector<256x128xbf16>, vector<8x128xf32> -> vector<8x128xf32>
    %c0_95 = arith.constant 0 : index
    %c0_96 = arith.constant 0 : index
    %270 = vector.load %arg18[%c0_95, %c0_96] : memref<1x128xf32, #tpu.memory_space<vmem>>, vector<1x128xf32>
    %271 = vector.broadcast %270 : vector<1x128xf32> to vector<8x128xf32>
    %272 = arith.addf %269, %271 : vector<8x128xf32>
    %273 = arith.addf %258, %272 : vector<8x128xf32>
    %c0_97 = arith.constant 0 : index
    %c0_98 = arith.constant 0 : index
    %274 = vector.load %arg19[%c0_97, %c0_98] : memref<1x128xf32, #tpu.memory_space<vmem>>, vector<1x128xf32>
    %c0_99 = arith.constant 0 : index
    %c0_100 = arith.constant 0 : index
    %275 = vector.load %arg20[%c0_99, %c0_100] : memref<1x128xf32, #tpu.memory_space<vmem>>, vector<1x128xf32>
    %cst_101 = arith.constant dense<0.000000e+00> : vector<8xf32>
    %276 = vector.multi_reduction <add>, %273, %cst_101 [1] : vector<8x128xf32> to vector<8xf32>
    %277 = vector.shape_cast %276 : vector<8xf32> to vector<8x1xf32>
    %cst_102 = arith.constant 1.280000e+02 : f32
    %278 = vector.broadcast %cst_102 : f32 to vector<8x1xf32>
    %279 = arith.divf %277, %278 : vector<8x1xf32>
    %280 = vector.broadcast %279 : vector<8x1xf32> to vector<8x128xf32>
    %281 = arith.subf %273, %280 : vector<8x128xf32>
    %282 = arith.mulf %281, %281 : vector<8x128xf32>
    %cst_103 = arith.constant dense<0.000000e+00> : vector<8xf32>
    %283 = vector.multi_reduction <add>, %282, %cst_103 [1] : vector<8x128xf32> to vector<8xf32>
    %284 = vector.shape_cast %283 : vector<8xf32> to vector<8x1xf32>
    %cst_104 = arith.constant 1.280000e+02 : f32
    %285 = vector.broadcast %cst_104 : f32 to vector<8x1xf32>
    %286 = arith.divf %284, %285 : vector<8x1xf32>
    %287 = vector.broadcast %279 : vector<8x1xf32> to vector<8x128xf32>
    %288 = arith.subf %273, %287 : vector<8x128xf32>
    %cst_105 = arith.constant 9.99999974E-6 : f32
    %289 = vector.broadcast %cst_105 : f32 to vector<8x1xf32>
    %290 = arith.addf %286, %289 : vector<8x1xf32>
    %291 = math.rsqrt %290 : vector<8x1xf32>
    %292 = vector.broadcast %291 : vector<8x1xf32> to vector<8x128xf32>
    %293 = arith.mulf %288, %292 : vector<8x128xf32>
    %294 = vector.broadcast %274 : vector<1x128xf32> to vector<8x128xf32>
    %295 = arith.mulf %293, %294 : vector<8x128xf32>
    %296 = vector.broadcast %275 : vector<1x128xf32> to vector<8x128xf32>
    %297 = arith.addf %295, %296 : vector<8x128xf32>
    %c0_106 = arith.constant 0 : index
    %c0_107 = arith.constant 0 : index
    %c0_108 = arith.constant 0 : index
    %298 = vector.load %arg21[%c0_106, %c0_107, %c0_108] : memref<1x8x128xf32, #tpu.memory_space<vmem>>, vector<1x8x128xf32>
    %299 = vector.shape_cast %298 : vector<1x8x128xf32> to vector<8x128xf32>
    %300 = vector.shape_cast %297 : vector<8x128xf32> to vector<1x8x128xf32>
    tpu.vector_store %arg21[%c0_106, %c0_107, %c0_108], %300 {strides = array<i32>} : memref<1x8x128xf32, #tpu.memory_space<vmem>>, vector<1x8x128xf32>,
    return
  }
  func.func @transform_0(%arg0: i32) -> (i32, i32, i32) {
    %c0_i32 = arith.constant 0 : i32
    %c0_i32_0 = arith.constant 0 : i32
    %c0_i32_1 = arith.constant 0 : i32
    return %arg0, %c0_i32, %c0_i32_0 : i32, i32, i32
  }
  func.func @transform_1(%arg0: i32) -> (i32, i32, i32) {
    %c0_i32 = arith.constant 0 : i32
    %c0_i32_0 = arith.constant 0 : i32
    %c0_i32_1 = arith.constant 0 : i32
    return %arg0, %c0_i32, %c0_i32_0 : i32, i32, i32
  }
  func.func @transform_2(%arg0: i32) -> (i32, i32) {
    %c0_i32 = arith.constant 0 : i32
    %c0_i32_0 = arith.constant 0 : i32
    %c0_i32_1 = arith.constant 0 : i32
    return %c0_i32, %c0_i32_0 : i32, i32
  }
  func.func @transform_3(%arg0: i32) -> (i32, i32) {
    %c0_i32 = arith.constant 0 : i32
    %c0_i32_0 = arith.constant 0 : i32
    %c0_i32_1 = arith.constant 0 : i32
    return %c0_i32, %c0_i32_0 : i32, i32
  }
  func.func @transform_4(%arg0: i32) -> (i32, i32) {
    %c0_i32 = arith.constant 0 : i32
    %c0_i32_0 = arith.constant 0 : i32
    %c0_i32_1 = arith.constant 0 : i32
    return %c0_i32, %c0_i32_0 : i32, i32
  }
  func.func @transform_5(%arg0: i32) -> (i32, i32) {
    %c0_i32 = arith.constant 0 : i32
    %c0_i32_0 = arith.constant 0 : i32
    %c0_i32_1 = arith.constant 0 : i32
    return %c0_i32, %c0_i32_0 : i32, i32
  }
  func.func @transform_6(%arg0: i32) -> (i32, i32) {
    %c0_i32 = arith.constant 0 : i32
    %c0_i32_0 = arith.constant 0 : i32
    %c0_i32_1 = arith.constant 0 : i32
    return %c0_i32, %c0_i32_0 : i32, i32
  }
  func.func @transform_7(%arg0: i32) -> (i32, i32) {
    %c0_i32 = arith.constant 0 : i32
    %c0_i32_0 = arith.constant 0 : i32
    %c0_i32_1 = arith.constant 0 : i32
    return %c0_i32, %c0_i32_0 : i32, i32
  }
  func.func @transform_8(%arg0: i32) -> (i32, i32) {
    %c0_i32 = arith.constant 0 : i32
    %c0_i32_0 = arith.constant 0 : i32
    %c0_i32_1 = arith.constant 0 : i32
    return %c0_i32, %c0_i32_0 : i32, i32
  }
  func.func @transform_9(%arg0: i32) -> (i32, i32) {
    %c0_i32 = arith.constant 0 : i32
    %c0_i32_0 = arith.constant 0 : i32
    %c0_i32_1 = arith.constant 0 : i32
    return %c0_i32, %c0_i32_0 : i32, i32
  }
  func.func @transform_10(%arg0: i32) -> (i32, i32) {
    %c0_i32 = arith.constant 0 : i32
    %c0_i32_0 = arith.constant 0 : i32
    %c0_i32_1 = arith.constant 0 : i32
    return %c0_i32, %c0_i32_0 : i32, i32
  }
  func.func @transform_11(%arg0: i32) -> (i32, i32) {
    %c0_i32 = arith.constant 0 : i32
    %c0_i32_0 = arith.constant 0 : i32
    %c0_i32_1 = arith.constant 0 : i32
    return %c0_i32, %c0_i32_0 : i32, i32
  }
  func.func @transform_12(%arg0: i32) -> (i32, i32) {
    %c0_i32 = arith.constant 0 : i32
    %c0_i32_0 = arith.constant 0 : i32
    %c0_i32_1 = arith.constant 0 : i32
    return %c0_i32, %c0_i32_0 : i32, i32
  }
  func.func @transform_13(%arg0: i32) -> (i32, i32) {
    %c0_i32 = arith.constant 0 : i32
    %c0_i32_0 = arith.constant 0 : i32
    %c0_i32_1 = arith.constant 0 : i32
    return %c0_i32, %c0_i32_0 : i32, i32
  }
  func.func @transform_14(%arg0: i32) -> (i32, i32) {
    %c0_i32 = arith.constant 0 : i32
    %c0_i32_0 = arith.constant 0 : i32
    %c0_i32_1 = arith.constant 0 : i32
    return %c0_i32, %c0_i32_0 : i32, i32
  }
  func.func @transform_15(%arg0: i32) -> (i32, i32) {
    %c0_i32 = arith.constant 0 : i32
    %c0_i32_0 = arith.constant 0 : i32
    %c0_i32_1 = arith.constant 0 : i32
    return %c0_i32, %c0_i32_0 : i32, i32
  }
  func.func @transform_16(%arg0: i32) -> (i32, i32) {
    %c0_i32 = arith.constant 0 : i32
    %c0_i32_0 = arith.constant 0 : i32
    %c0_i32_1 = arith.constant 0 : i32
    return %c0_i32, %c0_i32_0 : i32, i32
  }
  func.func @transform_17(%arg0: i32) -> (i32, i32) {
    %c0_i32 = arith.constant 0 : i32
    %c0_i32_0 = arith.constant 0 : i32
    %c0_i32_1 = arith.constant 0 : i32
    return %c0_i32, %c0_i32_0 : i32, i32
  }
  func.func @transform_18(%arg0: i32) -> (i32, i32) {
    %c0_i32 = arith.constant 0 : i32
    %c0_i32_0 = arith.constant 0 : i32
    %c0_i32_1 = arith.constant 0 : i32
    return %c0_i32, %c0_i32_0 : i32, i32
  }
  func.func @transform_19(%arg0: i32) -> (i32, i32) {
    %c0_i32 = arith.constant 0 : i32
    %c0_i32_0 = arith.constant 0 : i32
    %c0_i32_1 = arith.constant 0 : i32
    return %c0_i32, %c0_i32_0 : i32, i32
  }
  func.func @transform_20(%arg0: i32) -> (i32, i32, i32) {
    %c0_i32 = arith.constant 0 : i32
    %c0_i32_0 = arith.constant 0 : i32
    %c0_i32_1 = arith.constant 0 : i32
    return %arg0, %c0_i32, %c0_i32_0 : i32, i32, i32
  }
}

module attributes {stable_mosaic.version = 11 : i64} {
  func.func @_head_kernel(%arg0: i32, %arg1: memref<1x8x128xf32, #tpu.memory_space<vmem>>, %arg2: memref<1x128xf32, #tpu.memory_space<vmem>>, %arg3: memref<1x128xf32, #tpu.memory_space<vmem>>, %arg4: memref<128x1024xbf16, #tpu.memory_space<vmem>>, %arg5: memref<1x1024xf32, #tpu.memory_space<vmem>>, %arg6: memref<1x8x1024xf32, #tpu.memory_space<vmem>>) attributes {dimension_semantics = [#tpu.dimension_semantics<parallel>], iteration_bounds = array<i64: 2>, scalar_prefetch = 0 : i64, scratch_operands = 0 : i64, tpu.core_type = #tpu.core_type<tc>, window_params = [{transform_indices = @transform_0, window_bounds = array<i64: 1, 8, 128>}, {pipeline_mode = #tpu.pipeline_mode<synchronous>, transform_indices = @transform_1, window_bounds = array<i64: 1, 128>}, {pipeline_mode = #tpu.pipeline_mode<synchronous>, transform_indices = @transform_2, window_bounds = array<i64: 1, 128>}, {pipeline_mode = #tpu.pipeline_mode<synchronous>, transform_indices = @transform_3, window_bounds = array<i64: 128, 1024>}, {pipeline_mode = #tpu.pipeline_mode<synchronous>, transform_indices = @transform_4, window_bounds = array<i64: 1, 1024>}, {transform_indices = @transform_5, window_bounds = array<i64: 1, 8, 1024>}]} {
    %c0 = arith.constant 0 : index
    %c0_0 = arith.constant 0 : index
    %c0_1 = arith.constant 0 : index
    %0 = vector.load %arg1[%c0, %c0_0, %c0_1] : memref<1x8x128xf32, #tpu.memory_space<vmem>>, vector<1x8x128xf32>
    %1 = vector.shape_cast %0 : vector<1x8x128xf32> to vector<8x128xf32>
    %c0_2 = arith.constant 0 : index
    %c0_3 = arith.constant 0 : index
    %2 = vector.load %arg2[%c0_2, %c0_3] : memref<1x128xf32, #tpu.memory_space<vmem>>, vector<1x128xf32>
    %c0_4 = arith.constant 0 : index
    %c0_5 = arith.constant 0 : index
    %3 = vector.load %arg3[%c0_4, %c0_5] : memref<1x128xf32, #tpu.memory_space<vmem>>, vector<1x128xf32>
    %cst = arith.constant dense<0.000000e+00> : vector<8xf32>
    %4 = vector.multi_reduction <add>, %1, %cst [1] : vector<8x128xf32> to vector<8xf32>
    %5 = vector.shape_cast %4 : vector<8xf32> to vector<8x1xf32>
    %cst_6 = arith.constant 1.280000e+02 : f32
    %6 = vector.broadcast %cst_6 : f32 to vector<8x1xf32>
    %7 = arith.divf %5, %6 : vector<8x1xf32>
    %8 = vector.broadcast %7 : vector<8x1xf32> to vector<8x128xf32>
    %9 = arith.subf %1, %8 : vector<8x128xf32>
    %10 = arith.mulf %9, %9 : vector<8x128xf32>
    %cst_7 = arith.constant dense<0.000000e+00> : vector<8xf32>
    %11 = vector.multi_reduction <add>, %10, %cst_7 [1] : vector<8x128xf32> to vector<8xf32>
    %12 = vector.shape_cast %11 : vector<8xf32> to vector<8x1xf32>
    %cst_8 = arith.constant 1.280000e+02 : f32
    %13 = vector.broadcast %cst_8 : f32 to vector<8x1xf32>
    %14 = arith.divf %12, %13 : vector<8x1xf32>
    %15 = vector.broadcast %7 : vector<8x1xf32> to vector<8x128xf32>
    %16 = arith.subf %1, %15 : vector<8x128xf32>
    %cst_9 = arith.constant 9.99999974E-6 : f32
    %17 = vector.broadcast %cst_9 : f32 to vector<8x1xf32>
    %18 = arith.addf %14, %17 : vector<8x1xf32>
    %19 = math.rsqrt %18 : vector<8x1xf32>
    %20 = vector.broadcast %19 : vector<8x1xf32> to vector<8x128xf32>
    %21 = arith.mulf %16, %20 : vector<8x128xf32>
    %22 = vector.broadcast %2 : vector<1x128xf32> to vector<8x128xf32>
    %23 = arith.mulf %21, %22 : vector<8x128xf32>
    %24 = vector.broadcast %3 : vector<1x128xf32> to vector<8x128xf32>
    %25 = arith.addf %23, %24 : vector<8x128xf32>
    %26 = arith.truncf %25 : vector<8x128xf32> to vector<8x128xbf16>
    %c0_10 = arith.constant 0 : index
    %c0_11 = arith.constant 0 : index
    %27 = vector.load %arg4[%c0_10, %c0_11] : memref<128x1024xbf16, #tpu.memory_space<vmem>>, vector<128x1024xbf16>
    %cst_12 = arith.constant dense<0.000000e+00> : vector<8x1024xf32>
    %28 = tpu.matmul %26, %27, %cst_12 {dimension_numbers = #tpu.dot_dimension_numbers<[1], [0], [0], [1], [0, 0, 1, 1], [], []>} : vector<8x128xbf16>, vector<128x1024xbf16>, vector<8x1024xf32> -> vector<8x1024xf32>
    %c0_13 = arith.constant 0 : index
    %c0_14 = arith.constant 0 : index
    %29 = vector.load %arg5[%c0_13, %c0_14] : memref<1x1024xf32, #tpu.memory_space<vmem>>, vector<1x1024xf32>
    %30 = vector.broadcast %29 : vector<1x1024xf32> to vector<8x1024xf32>
    %31 = arith.addf %28, %30 : vector<8x1024xf32>
    %c0_15 = arith.constant 0 : index
    %c0_16 = arith.constant 0 : index
    %c0_17 = arith.constant 0 : index
    %32 = vector.load %arg6[%c0_15, %c0_16, %c0_17] : memref<1x8x1024xf32, #tpu.memory_space<vmem>>, vector<1x8x1024xf32>
    %33 = vector.shape_cast %32 : vector<1x8x1024xf32> to vector<8x1024xf32>
    %34 = vector.shape_cast %31 : vector<8x1024xf32> to vector<1x8x1024xf32>
    tpu.vector_store %arg6[%c0_15, %c0_16, %c0_17], %34 {strides = array<i32>} : memref<1x8x1024xf32, #tpu.memory_space<vmem>>, vector<1x8x1024xf32>,
    return
  }
  func.func @transform_0(%arg0: i32) -> (i32, i32, i32) {
    %c0_i32 = arith.constant 0 : i32
    %c0_i32_0 = arith.constant 0 : i32
    %c0_i32_1 = arith.constant 0 : i32
    return %arg0, %c0_i32, %c0_i32_0 : i32, i32, i32
  }
  func.func @transform_1(%arg0: i32) -> (i32, i32) {
    %c0_i32 = arith.constant 0 : i32
    %c0_i32_0 = arith.constant 0 : i32
    %c0_i32_1 = arith.constant 0 : i32
    return %c0_i32, %c0_i32_0 : i32, i32
  }
  func.func @transform_2(%arg0: i32) -> (i32, i32) {
    %c0_i32 = arith.constant 0 : i32
    %c0_i32_0 = arith.constant 0 : i32
    %c0_i32_1 = arith.constant 0 : i32
    return %c0_i32, %c0_i32_0 : i32, i32
  }
  func.func @transform_3(%arg0: i32) -> (i32, i32) {
    %c0_i32 = arith.constant 0 : i32
    %c0_i32_0 = arith.constant 0 : i32
    %c0_i32_1 = arith.constant 0 : i32
    return %c0_i32, %c0_i32_0 : i32, i32
  }
  func.func @transform_4(%arg0: i32) -> (i32, i32) {
    %c0_i32 = arith.constant 0 : i32
    %c0_i32_0 = arith.constant 0 : i32
    %c0_i32_1 = arith.constant 0 : i32
    return %c0_i32, %c0_i32_0 : i32, i32
  }
  func.func @transform_5(%arg0: i32) -> (i32, i32, i32) {
    %c0_i32 = arith.constant 0 : i32
    %c0_i32_0 = arith.constant 0 : i32
    %c0_i32_1 = arith.constant 0 : i32
    return %arg0, %c0_i32, %c0_i32_0 : i32, i32, i32
  }
}

</mosaic_0001>

<bundles_post_ra>
// kernel: transformer_model_forward.8
= control target key start
LH: loop header
LB: loop body
LE: loop exit
PB: predicated region body
PF: predicated region fallthrough
CT: control target
= control target key end

     0   :  { %s311_s12 = smov 0   ;;  %s341_s0 = inlined_call_operand.vmem [shape: f32[2,8,128], index: 0, kind: input, shape index: {}]   ;;  %s342_s1 = inlined_call_operand.vmem [shape: f32[1,128], index: 1, kind: input, shape index: {}]   ;;  %s343_s2 = inlined_call_operand.vmem [shape: f32[1,128], index: 2, kind: input, shape index: {}]   ;;  %s344_s3 = inlined_call_operand.vmem [shape: f32[2,8,128], index: 3, kind: output, shape index: {}]  }
   0x1 LB: > { %s258_s13 = sadd.s32 4294967295, %s288_s12   ;;  %p262_p0 = scmp.ge.s32.totalorder %s288_s12, 1  ;;  %s288_s12 = sphi %s311_s12, %s13_s12  }
   0x2   : > { %p136_p1 = scmp.lt.s32.totalorder %s288_s12, 3 }
   0x4   : > { %p137_p2 = pnand %p262_p0, %p136_p1 }
   0x5   : > { %p158_p3 = scmp.lt.s32.totalorder (!%p137_p2), %s258_s13, 1 }
   0x6   : > { %140 = sbr.rel (%p137_p2) target bundleno = 282 (0x11a), region = 32 }
   0xb   : > { %s346_s13 = smov (!%p158_p3, %s258_s13), 1  ;;  %v290_v1 = vmov 128.0   ;;  %v276_v21 = vld [vmem:[%s342_s1] ss:$0 sm:$0xff] }
   0xc   : > { %s263_s14 = sshll.u32 %s346_s13, 3  ;;  %278 = vrcp.f32 %v290_v1  ;;  %v277_v23 = vld [vmem:[%s343_s2] ss:$0 sm:$0xff] }
   0xd   : > { %s161_s17 = scalar_lea.vmem %s341_s0, %s263_s14  ;;  %s165_s24 = scalar_lea.vmem %s344_s3, %s263_s14 }
   0xe   : > { %v166_v0 = vld [vmem:[%s161_s17] sm:$0xff] }
   0xf   : > { %169 = vadd.xlane.f32.xlu0 %v166_v0 }
  0x12   : > { %v279_v2 = vpop.eup %278 }
  0x13   : > { %v172_v3 = vmul.f32 128.0, %v279_v2  ;;  %vm176_vm0 = vweird.f32 %v279_v2 }
  0x15   : > { %v173_v4 = vsub.f32 1.0, %v172_v3 }
  0x17   : > { %v174_v5 = vmul.f32 %v279_v2, %v173_v4 }
  0x19   : > { %v175_v6 = vadd.f32 %v279_v2, %v174_v5 }
  0x1b   : > { %v177_v7 = vsel %vm176_vm0, %v279_v2, %v175_v6 }
  0x82   : > { %v170_v8 = vpop.xlane.xlu0 %169 }
  0x83   : > { %v178_v9 = vmul.f32 %v177_v7, %v170_v8 }
  0x85   : > { %v179_v10 = vsub.f32 %v166_v0, %v178_v9 }
  0x87   : > { %v180_v11 = vmul.f32 %v179_v10, %v179_v10 }
  0x89   : > { %181 = vadd.xlane.f32.xlu0 %v180_v11 }
  0xfc   : > { %v182_v12 = vpop.xlane.xlu0 %181 }
  0xfd   : > { %v183_v13 = vmul.f32 %v182_v12, %v177_v7 }
  0xff   : > { %v184_v14 = vadd.f32 1e-05, %v183_v13 }
 0x101   : > { %280 = vrsqrt.f32 %v184_v14  ;;  %vm191_vm2 = vweird.f32 %v184_v14 }
 0x107   : > { %v281_v15 = vpop.eup %280 }
 0x108   : > { %v186_v16 = vmul.f32 %v281_v15, %v184_v14  ;;  %vm192_vm1 = vweird.f32 %v281_v15 }
 0x109   : > { %vm193_vm3 = vmor %vm191_vm2, %vm192_vm1 }
 0x10a   : > { %v187_v17 = vmul.f32 %v281_v15, %v186_v16 }
 0x10c   : > { %v188_v18 = vmul.f32 0.5, %v187_v17 }
 0x10e   : > { %v189_v19 = vsub.f32 1.5, %v188_v18 }
 0x110   : > { %v190_v20 = vmul.f32 %v281_v15, %v189_v19 }
 0x112   : > { %v194_v22 = vsel %vm193_vm3, %v281_v15, %v190_v20 }
 0x113   : > { %v195_v24 = vmul.f32 %v194_v22, %v179_v10 }
 0x115   : > { %v199_v25 = vmul.f32 %v276_v21, %v195_v24 }
 0x117   : > { %v203_v26 = vadd.f32 %v277_v23, %v199_v25 }
 0x119   : > { %204 = vst [vmem:[%s165_s24] sm:$0xff] %v203_v26 }
 0x11a PF: > { %s13_s12 = sadd.s32 1, %s288_s12  }
 0x11b   : > { %p10_p4 = scmp.ge.s32.totalorder %s13_s12, 4  }
 0x11d   :  { %12 = sbr.rel (!%p10_p4) target bundleno = 1 (0x1), region = 62 }

// kernel: transformer_model_forward.7
= control target key start
LH: loop header
LB: loop body
LE: loop exit
PB: predicated region body
PF: predicated region fallthrough
CT: control target
= control target key end

     0   :  { %s2317_s0 = inlined_call_operand.vmem [shape: f32[2,8,128], index: 0, kind: input, shape index: {}]   ;;  %s2318_s1 = inlined_call_operand.hbm [shape: bf16[128,384], index: 1, kind: input, shape index: {}]   ;;  %s2319_s2 = inlined_call_operand.vmem [shape: f32[1,384], index: 2, kind: input, shape index: {}]   ;;  %s2320_s3 = inlined_call_operand.hbm [shape: bf16[128,128], index: 3, kind: input, shape index: {}]   ;;  %s2321_s4 = inlined_call_operand.vmem [shape: f32[1,128], index: 4, kind: input, shape index: {}]   ;;  %s2322_s5 = inlined_call_operand.vmem [shape: f32[1,128], index: 5, kind: input, shape index: {}]   ;;  %s2323_s6 = inlined_call_operand.vmem [shape: f32[1,128], index: 6, kind: input, shape index: {}]   ;;  %s2324_s7 = inlined_call_operand.hbm [shape: bf16[128,256], index: 7, kind: input, shape index: {}]   ;;  %s2325_s8 = inlined_call_operand.vmem [shape: f32[1,256], index: 8, kind: input, shape index: {}]   ;;  %s2326_s9 = inlined_call_operand.hbm [shape: bf16[256,128], index: 9, kind: input, shape index: {}]   ;;  %s2327_s10 = inlined_call_operand.vmem [shape: f32[1,128], index: 10, kind: input, shape index: {}]   ;;  %s2328_s11 = inlined_call_operand.vmem [shape: f32[1,128], index: 11, kind: input, shape index: {}]   ;;  %s2329_s12 = inlined_call_operand.vmem [shape: f32[1,128], index: 12, kind: input, shape index: {}]   ;;  %s2330_s13 = inlined_call_operand.vmem [shape: f32[2,8,128], index: 13, kind: output, shape index: {}]  }
   0x1   :  { %2332 = sst [smem:[#allocation13_spill]] %s2318_s1 }
   0x2   :  { %2333 = sst [smem:[#allocation14_spill]] %s2320_s3 }
   0x3   :  { %2334 = sst [smem:[#allocation15_spill]] %s2330_s13 }
   0x4   :  { %18 = vsyncpa [#allocation3], 0 }
   0x5   :  { %19 = vsyncpa [#allocation5], 0 }
   0x6   :  { %20 = vsyncpa [#allocation8], 0  ;;  %s2154_s25 = smov 0  }
   0x7 LB: > { %2335 = sst [smem:[#allocation12_spill]] %s2068_s25  ;;  %s2163_s29 = sadd.s32 4294967295, %s2068_s25   ;;  %s2068_s25 = sphi %s2154_s25, %s26_s25  }
   0x8   : > { %s2336_s3 = sld [smem:[#allocation14_spill]]  ;;  %p1500_p0 = scmp.ge.s32.totalorder %s2068_s25, 1 }
   0x9   : > { %p335_p1 = scmp.lt.s32.totalorder %s2068_s25, 3  ;;  %p1872_p2 = scmp.eq.s32.totalorder %s2163_s29, 0 }
   0xa   : > { %s2070_s14 = smov [#allocation4]   ;;  %s2338_s1 = sld [smem:[#allocation13_spill]] }
   0xb   : > { %p2168_p3 = pnand %p1500_p0, %p335_p1  ;;  %s365_s15 = sshll.u32 %s2070_s14, 4  ;;  %s366_s15 = int_to_ptr.vmem [resolvable:$true] %s365_s15 }
   0xc   : > { %s2071_s20 = smov [#allocation2]   ;;  %s2072_s22 = smov 64  }
   0xd   : > { %p1859_p4 = pneg %p2168_p3  ;;  %s348_s21 = sshll.u32 %s2071_s20, 4  ;;  %s349_s21 = int_to_ptr.vmem [resolvable:$true] %s348_s21 }
   0xe   : > { %s363_s28 = sshll.u32 %s2336_s3, 4  ;;  %s2073_s23 = smov 4   ;;  %s364_s28 = int_to_ptr.hbm [resolvable:$true] %s363_s28 }
   0xf   : > { %p2179_p5 = pnand %p1872_p2, %p1859_p4  ;;  %s386_s27 = sshll.u32 %s2324_s7, 4  ;;  %s387_s27 = int_to_ptr.hbm [resolvable:$true] %s386_s27 }
  0x10   : > { %s346_s18 = sshll.u32 %s2338_s1, 4  ;;  %s2074_s14 = smov 192   ;;  %s347_s18 = int_to_ptr.hbm [resolvable:$true] %s346_s18 }
  0x11   : > { %1865 = dma.hbm_to_vmem [thread:$0]  (!%p2179_p5), %s364_s28, 1024, %s366_s15, [#allocation5], %s2072_s22, %s2072_s22, %s2073_s23  }
  0x12   : > { %s2075_s16 = smov 12   ;;  %s2076_s17 = smov [#allocation6]  }
  0x13   : > { %1862 = dma.hbm_to_vmem [thread:$0]  (!%p2179_p5), %s347_s18, 3072, %s349_s21, [#allocation3], %s2074_s14, %s2074_s14, %s2075_s16  }
  0x14   : > { %s388_s1 = sshll.u32 %s2076_s17, 4  ;;  %s2077_s3 = smov 128   ;;  %s389_s1 = int_to_ptr.vmem [resolvable:$true] %s388_s1 }
  0x15   : > { %s2078_s20 = smov 8   ;;  %s403_s28 = sshll.u32 %s2326_s9, 4  ;;  %s404_s28 = int_to_ptr.hbm [resolvable:$true] %s403_s28 }
  0x16   : > { %1868 = dma.hbm_to_vmem [thread:$0]  (!%p2179_p5), %s387_s27, 2048, %s389_s1, [#allocation5], %s2077_s3, %s2077_s3, %s2078_s20  }
  0x17   : > { %s2079_s15 = smov [#allocation7]   ;;  %437 = sbr.rel (%p2168_p3) target bundleno = 2215 (0x8a7), region = 72 }
  0x18   : > { %s405_s24 = sshll.u32 %s2079_s15, 4  ;;  %s406_s24 = int_to_ptr.vmem [resolvable:$true] %s405_s24 }
  0x19   : > { %1871 = dma.hbm_to_vmem [thread:$0]  (!%p2179_p5), %s404_s28, 2048, %s406_s24, [#allocation8], %s2072_s22, %s2072_s22, %s2073_s23  }
  0x1c   : > { %2055 = dma.done.wait (%p1872_p2), [#allocation3], 3072  }
  0x1d   : > { %2057 = vsyncadd (%p1872_p2), [#allocation3], 4294964224 }
  0x1e   : > { %2059 = dma.done.wait (%p1872_p2), [#allocation5], 3072  }
  0x1f   : > { %2061 = vsyncadd (%p1872_p2), [#allocation5], 4294964224 }
  0x20   : > { %2063 = dma.done.wait (%p1872_p2), [#allocation8], 2048  }
  0x21   : > { %2065 = vsyncadd (%p1872_p2), [#allocation8], 4294965248  ;;  %v1599_v0 = vld [vmem:[#allocation2 + $0xa8] sm:$0xf]  ;;  %v1801_v1 = vld [vmem:[#allocation2 + $0xb0] sm:$0xf0] }
  0x22   : > { %v1800_v2 = vld [vmem:[#allocation2 + $0xac] sm:$0xf]  ;;  %v1600_v3 = vor.u32 %v1801_v1, %v1599_v0  ;;  %v1601_v4 = vld [vmem:[#allocation2 + $0xb4] sm:$0xf0]  ;;  %v1587_v5 = vld [vmem:[#allocation2 + $0x90] sm:$0xf] }
  0x23   : > { %v1798_v6 = vld [vmem:[#allocation2 + $0x98] sm:$0xf0]  ;;  %v1604_v7 = vor.u32 %v1800_v2, %v1601_v4  ;;  %v1797_v8 = vld [vmem:[#allocation2 + $0x94] sm:$0xf]  ;;  %v1589_v9 = vld [vmem:[#allocation2 + $0x9c] sm:$0xf0] }
  0x24   : > { %674 = vmatpush.bf16.msra.mxu0 %v1600_v3  ;;  %v1588_v10 = vor.u32 %v1798_v6, %v1587_v5  ;;  %v1592_v11 = vor.u32 %v1797_v8, %v1589_v9  ;;  %v1575_v12 = vld [vmem:[#allocation2 + $0x78] sm:$0xf]  ;;  %v1795_v13 = vld [vmem:[#allocation2 + $0x80] sm:$0xf0]  ;;  %v1794_v14 = vld [vmem:[#allocation2 + $0x7c] sm:$0xf] }
  0x25   : > { %687 = vmatpush.bf16.msra.mxu1 %v1604_v7  ;;  %v1577_v15 = vld [vmem:[#allocation2 + $0x84] sm:$0xf0]  ;;  %v1576_v16 = vor.u32 %v1795_v13, %v1575_v12  ;;  %v1563_v18 = vld [vmem:[#allocation2 + $0x60] sm:$0xf]  ;;  %v1792_v19 = vld [vmem:[#allocation2 + $0x68] sm:$0xf0] }
  0x26   : > { %v1580_v17 = vor.u32 %v1794_v14, %v1577_v15  ;;  %v1791_v20 = vld [vmem:[#allocation2 + $0x64] sm:$0xf]  ;;  %v1565_v21 = vld [vmem:[#allocation2 + $0x6c] sm:$0xf0]  ;;  %p495_p6 = scmp.lt.s32.totalorder %s2163_s29, 1  ;;  %v1564_v22 = vor.u32 %v1792_v19, %v1563_v18  ;;  %vm716_vm0 = vcmask 261120  }
  0x27   : > { %v1607_v23 = vld [vmem:[#allocation2 + $0xb0] sm:$0xf]  ;;  %v1802_v24 = vld [vmem:[#allocation2 + $0xb8] sm:$0xf0]  ;;  %v1595_v25 = vld [vmem:[#allocation2 + $0x98] sm:$0xf]  ;;  %v1568_v26 = vor.u32 %v1791_v20, %v1565_v21 }
  0x28   : > { %675 = vmatpush.bf16.msra.mxu0 %v1588_v10  ;;  %v1551_v27 = vld [vmem:[#allocation2 + $0x48] sm:$0xf]  ;;  %v1789_v28 = vld [vmem:[#allocation2 + $0x50] sm:$0xf0]  ;;  %v1608_v29 = vor.u32 %v1802_v24, %v1607_v23  ;;  %v1799_v30 = vld [vmem:[#allocation2 + $0xa0] sm:$0xf0] }
  0x29   : > { %688 = vmatpush.bf16.msra.mxu1 %v1592_v11  ;;  %v1788_v31 = vld [vmem:[#allocation2 + $0x4c] sm:$0xf]  ;;  %v1553_v32 = vld [vmem:[#allocation2 + $0x54] sm:$0xf0]  ;;  %s2343_s29 = smov (!%p495_p6, %s2163_s29), 1  ;;  %v1596_v33 = vor.u32 %v1799_v30, %v1595_v25  ;;  %v1552_v34 = vor.u32 %v1789_v28, %v1551_v27  ;;  %s2080_s19 = smov 64  }
  0x2a   : > { %700 = vmatpush.bf16.msra.mxu2 %v1608_v29  ;;  %v1539_v35 = vld [vmem:[#allocation2 + $0x30] sm:$0xf]  ;;  %v1583_v36 = vld [vmem:[#allocation2 + $0x80] sm:$0xf]  ;;  %v1796_v37 = vld [vmem:[#allocation2 + $0x88] sm:$0xf0]  ;;  %v1556_v38 = vor.u32 %v1788_v31, %v1553_v32 }
  0x2b   : > { %v1786_v39 = vld [vmem:[#allocation2 + $0x38] sm:$0xf0]  ;;  %v1785_v40 = vld [vmem:[#allocation2 + $0x34] sm:$0xf]  ;;  %v1541_v41 = vld [vmem:[#allocation2 + $0x3c] sm:$0xf0]  ;;  %v1584_v42 = vor.u32 %v1796_v37, %v1583_v36 }
  0x2c   : > { %676 = vmatpush.bf16.msra.mxu0 %v1576_v16  ;;  %v1540_v43 = vor.u32 %v1786_v39, %v1539_v35  ;;  %v1571_v44 = vld [vmem:[#allocation2 + $0x68] sm:$0xf]  ;;  %v1793_v45 = vld [vmem:[#allocation2 + $0x70] sm:$0xf0]  ;;  %v1544_v46 = vor.u32 %v1785_v40, %v1541_v41  ;;  %v1527_v47 = vld [vmem:[#allocation2 + $0x18] sm:$0xf] }
  0x2d   : > { %689 = vmatpush.bf16.msra.mxu1 %v1580_v17  ;;  %v1783_v48 = vld [vmem:[#allocation2 + $0x20] sm:$0xf0]  ;;  %v1782_v49 = vld [vmem:[#allocation2 + $0x1c] sm:$0xf]  ;;  %v1529_v50 = vld [vmem:[#allocation2 + $0x24] sm:$0xf0]  ;;  %v1572_v51 = vor.u32 %v1793_v45, %v1571_v44 }
  0x2e   : > { %701 = vmatpush.bf16.msra.mxu2 %v1596_v33  ;;  %s1511_s1 = sshll.u32 %s2343_s29, 3  ;;  %v1528_v52 = vor.u32 %v1783_v48, %v1527_v47  ;;  %v1559_v53 = vld [vmem:[#allocation2 + $0x50] sm:$0xf]  ;;  %v1790_v54 = vld [vmem:[#allocation2 + $0x58] sm:$0xf0]  ;;  %v1532_v55 = vor.u32 %v1782_v49, %v1529_v50  ;;  %s2081_s21 = smov 96  }
  0x2f   : > { %v1515_v56 = vld [vmem:[#allocation2] sm:$0xf]  ;;  %v1780_v57 = vld [vmem:[#allocation2 + $0x8] sm:$0xf0]  ;;  %s498_s25 = scalar_lea.vmem %s2317_s0, %s1511_s1  ;;  %v1779_v58 = vld [vmem:[#allocation2 + $0x4] sm:$0xf]  ;;  %v1560_v60 = vor.u32 %v1790_v54, %v1559_v53 }
  0x30   : > { %677 = vmatpush.bf16.msra.mxu0 %v1564_v22  ;;  %v1517_v59 = vld [vmem:[#allocation2 + $0xc] sm:$0xf0]  ;;  %v1516_v61 = vor.u32 %v1780_v57, %v1515_v56  ;;  %v2223_v62 = vld [vmem:[%s498_s25] sm:$0xff]  ;;  %v1547_v63 = vld [vmem:[#allocation2 + $0x38] sm:$0xf]  ;;  %s2082_s22 = smov 32  }
  0x31   : > { %690 = vmatpush.bf16.msra.mxu1 %v1568_v26  ;;  %v1787_v0 = vld [vmem:[#allocation2 + $0x40] sm:$0xf0]  ;;  %v1520_v1 = vor.u32 %v1779_v58, %v1517_v59  ;;  %v505_v2 = vpack.c.bf16 %v2223_v62, %v2223_v62  ;;  %v1535_v4 = vld [vmem:[#allocation2 + $0x20] sm:$0xf]  ;;  %v1784_v5 = vld [vmem:[#allocation2 + $0x28] sm:$0xf0] }
  0x32   : > { %702 = vmatpush.bf16.msra.mxu2 %v1584_v42  ;;  %v1548_v3 = vor.u32 %v1787_v0, %v1547_v63  ;;  %v1536_v6 = vor.u32 %v1784_v5, %v1535_v4  ;;  %v1523_v7 = vld [vmem:[#allocation2 + $0x8] sm:$0xf]  ;;  %v1781_v8 = vld [vmem:[#allocation2 + $0x10] sm:$0xf0]  ;;  %v538_v10 = vld [vmem:[%s2319_s2] sm:$0x7] }
  0x33   : > { %v1524_v9 = vor.u32 %v1781_v8, %v1523_v7  ;;  %v541_v11 = vperm.slane %v538_v10, 1  ;;  %v540_v14 = vperm.slane %v538_v10, 0  ;;  %v542_v23 = vperm.slane %v538_v10, 2 }
  0x34   : > { %678 = vmatpush.bf16.msra.mxu0 %v1552_v34  ;;  %vm753_vm1 = vcmask 1043456   ;;  %vm737_vm2 = vcmask 64512   ;;  %vm957_vm3 = vcmask 523264   ;;  %vm959_vm4 = vcmask 785408  }
  0x35   : > { %691 = vmatpush.bf16.msra.mxu1 %v1556_v38 }
  0x36   : > { %703 = vmatpush.bf16.msra.mxu2 %v1572_v51 }
  0x38   : > { %679 = vmatpush.bf16.msra.mxu0 %v1540_v43 }
  0x39   : > { %692 = vmatpush.bf16.msra.mxu1 %v1544_v46 }
  0x3a   : > { %704 = vmatpush.bf16.msra.mxu2 %v1560_v60 }
  0x3c   : > { %680 = vmatpush.bf16.msra.mxu0 %v1528_v52 }
  0x3d   : > { %693 = vmatpush.bf16.msra.mxu1 %v1532_v55 }
  0x3e   : > { %705 = vmatpush.bf16.msra.mxu2 %v1548_v3 }
  0x40   : > { %681 = vmatpush.bf16.msra.mxu0 %v1516_v61 }
  0x41   : > { %694 = vmatpush.bf16.msra.mxu1 %v1520_v1 }
  0x42   : > { %706 = vmatpush.bf16.msra.mxu2 %v1536_v6 }
  0x43   : > { %682 = vmatmul.bf16.vlgmr.msra.gmra.mxu0 %v505_v2 }
  0x44   : > { %695 = vmatmul.bf16.vlgmr.msra.gmra.mxu1 %v505_v2 }
  0x46   : > { %707 = vmatpush.bf16.msra.mxu2 %v1524_v9 }
  0x49   : > { %708 = vmatmul.bf16.vlgmr.msra.gmra.mxu2 %v505_v2 }
  0xc0   : > { %v683_v12 = vpop.f32.mrf.mxu0 }
  0xc1   : > { %v696_v13 = vpop.f32.mrf.mxu1  ;;  %v684_v17 = vadd.f32 %v683_v12, %v540_v14 }
  0xc2   : > { %v697_v15 = vadd.f32 %v696_v13, %v541_v11 }
  0xc3   : > { %v713_v21 = vpack.c.bf16 %v684_v17, %v684_v17 }
  0xc4   : > { %v714_v16 = vpack.c.bf16 %v697_v15, %v697_v15 }
  0xc6   : > { %832 = vrot.lane.b32.xlu2 %v714_v16, %s2080_s19  ;;  %774 = vrot.lane.b32.xlu1 %v714_v16, %s2081_s21  ;;  %v721_v18 = vsel %vm716_vm0, %v714_v16, 0 }
  0xc7   : > { %730 = vmatpush.bf16.xpose.msra.mxu3 %v721_v18 }
  0xc8   : > { %v685_v19 = vpop.f32.mrf.mxu0 }
  0xc9   : > { %v698_v20 = vpop.f32.mrf.mxu1 }
  0xcc   : > { %v709_v22 = vpop.f32.mrf.mxu2 }
  0xcd   : > { %v710_v24 = vadd.f32 %v709_v22, %v542_v23 }
  0xce   : > { %889 = vrot.lane.b32.xlu2 %v714_v16, %s2082_s22  ;;  %771 = vrot.lane.b32.xlu1 %v713_v21, %s2081_s21 }
  0xcf   : > { %1609 = vmatmul.msk.bf16.vlgmr.msra.gmra.mxu3 %vm716_vm0, %v713_v21  ;;  %v2237_v26 = vpack.c.bf16 %v710_v24, %v710_v24 }
  0xd1   : > { %v755_v27 = vsel %vm753_vm1, %v2237_v26, 0 }
  0xd2   : > { %764 = vmatpush.bf16.msrb.mxu3 %v755_v27 }
  0xd4   : > { %v711_v25 = vpop.f32.mrf.mxu2 }
  0xd6   : > { %887 = vrot.lane.b32.xlu1 %v713_v21, %s2082_s22 }
 0x120   : > { %v833_v28 = vpop.permute.xlu2 %832 }
 0x121   : > { %v838_v29 = vsel %vm716_vm0, %v833_v28, 0 }
 0x122   : > { %847 = vmatpush.bf16.xpose.msrb.mxu2 %v838_v29 }
 0x128   : > { %v890_v44 = vpop.permute.xlu2 %889 }
 0x129   : > { %v895_v46 = vsel %vm716_vm0, %v890_v44, 0  ;;  %v1806_v44 = vld [vmem:[#allocation4 + $0x18] sm:$0xff] }
 0x138   : > { %v775_v30 = vpop.permute.xlu1 %774 }
 0x139   : > { %v780_v31 = vsel %vm716_vm0, %v775_v30, 0 }
 0x13a   : > { %789 = vmatpush.bf16.xpose.msra.mxu3 %v780_v31 }
 0x140   : > { %v772_v48 = vpop.permute.xlu1 %771 }
 0x148   : > { %v888_v49 = vpop.permute.xlu1 %887 }
 0x152   : > { %v732_v32 = vpop.f32.mrf.mxu3 }
 0x153   : > { %v736_v33 = vmul.f32 0.17677669, %v732_v32 }
 0x155   : > { %v738_v34 = vsel %vm737_vm2, %v736_v33, -inf }
 0x156   : > { %739 = vmax.xlane.f32.xlu0 %v738_v34 }
 0x15a   : > { %v734_v35 = vpop.f32.mrf.mxu3 }
 0x1c9   : > { %v740_v36 = vpop.xlane.xlu0 %739 }
 0x1ca   : > { %v741_v37 = vsub.f32 %v736_v33, %v740_v36 }
 0x1cc   : > { %v742_v38 = vmul.f32 1.442695, %v741_v37 }
 0x1ce   : > { %1908 = vpow2.f32 %v742_v38 }
 0x1d4   : > { %v1909_v39 = vpop.eup %1908 }
 0x1d5   : > { %v744_v40 = vsel %vm737_vm2, %v1909_v39, 0.0 }
 0x1d6   : > { %745 = vadd.xlane.f32.xlu0 %v744_v40  ;;  %v1810_v40 = vld [vmem:[#allocation4 + $0x38] sm:$0xff] }
 0x1d7   : > { %1030 = vmatpush.bf16.msrb.mxu1 %v1810_v40 }
 0x1ea   : > { %830 = vrot.lane.b32.xlu0 %v713_v21, %s2080_s19 }
 0x249   : > { %v746_v41 = vpop.xlane.xlu0 %745 }
 0x24a   : > { %1910 = vrcp.f32 %v746_v41  ;;  %v1809_v41 = vld [vmem:[#allocation4 + $0x30] sm:$0xff] }
 0x24b   : > { %1031 = vmatpush.bf16.msrb.mxu1 %v1809_v41  ;;  %v1669_v41 = vld [vmem:[#allocation6 + $0x28] sm:$0xf0] }
 0x250   : > { %v1911_v42 = vpop.eup %1910 }
 0x251   : > { %v748_v43 = vmul.f32 %v1911_v42, %v1909_v39  ;;  %v1808_v42 = vld [vmem:[#allocation4 + $0x28] sm:$0xff] }
 0x252   : > { %1032 = vmatpush.bf16.msrb.mxu1 %v1808_v42 }
 0x253   : > { %v749_v45 = vpack.c.bf16 %v748_v43, %v748_v43  ;;  %v1807_v43 = vld [vmem:[#allocation4 + $0x20] sm:$0xff] }
 0x255   : > { %1610 = vmatmul.msk.bf16.vlgmr.msrb.gmra.mxu3 %vm737_vm2, %v749_v45  ;;  %v1805_v45 = vld [vmem:[#allocation4 + $0x10] sm:$0xff] }
 0x256   : > { %904 = vmatpush.bf16.xpose.msrb.mxu3 %v895_v46  ;;  %1033 = vmatpush.bf16.msrb.mxu1 %v1807_v43  ;;  %v1804_v46 = vld [vmem:[#allocation4 + $0x8] sm:$0xff]  ;;  %v1659_v43 = vld [vmem:[#allocation6 + $0x10] sm:$0xf] }
 0x25a   : > { %1034 = vmatpush.bf16.msrb.mxu1 %v1806_v44  ;;  %v1814_v44 = vld [vmem:[#allocation6 + $0x14] sm:$0xf0] }
 0x25c   : > { %v831_v47 = vpop.permute.xlu0 %830 }
 0x25d   : > { %1613 = vmatmul.msk.bf16.vlgmr.msrb.gmra.mxu2 %vm716_vm0, %v831_v47  ;;  %v1803_v47 = vld [vmem:[#allocation4] sm:$0xff] }
 0x25e   : > { %1035 = vmatpush.bf16.msrb.mxu1 %v1805_v45  ;;  %v1813_v45 = vld [vmem:[#allocation6 + $0x14] sm:$0xf] }
 0x262   : > { %1036 = vmatpush.bf16.msrb.mxu1 %v1804_v46  ;;  %v1660_v46 = vor.u32 %v1814_v44, %v1659_v43 }
 0x265   : > { %1611 = vmatmul.msk.bf16.vlgmr.msra.gmra.mxu3 %vm716_vm0, %v772_v48 }
 0x266   : > { %1037 = vmatpush.bf16.msrb.mxu1 %v1803_v47  ;;  %v1661_v47 = vld [vmem:[#allocation6 + $0x18] sm:$0xf0] }
 0x275   : > { %1615 = vmatmul.msk.bf16.vlgmr.msrb.gmra.mxu3 %vm716_vm0, %v888_v49 }
 0x2d8   : > { %v2251_v50 = vpop.f32.mrf.mxu3 }
 0x2e0   : > { %v768_v51 = vpop.f32.mrf.mxu3  ;;  %v849_v52 = vpop.f32.mrf.mxu2 }
 0x2e1   : > { %v853_v53 = vmul.f32 0.17677669, %v849_v52 }
 0x2e3   : > { %v854_v54 = vsel %vm737_vm2, %v853_v53, -inf }
 0x2e4   : > { %855 = vmax.xlane.f32.xlu1 %v854_v54 }
 0x2e8   : > { %v791_v55 = vpop.f32.mrf.mxu3  ;;  %v851_v56 = vpop.f32.mrf.mxu2 }
 0x2e9   : > { %v795_v57 = vmul.f32 0.17677669, %v791_v55  ;;  %v1902_v56 = vld [vmem:[%s2321_s4] ss:$0 sm:$0xff] }
 0x2eb   : > { %v796_v58 = vsel %vm737_vm2, %v795_v57, -inf }
 0x2ec   : > { %797 = vmax.xlane.f32.xlu2 %v796_v58 }
 0x2f0   : > { %v793_v59 = vpop.f32.mrf.mxu3 }
 0x2f8   : > { %v906_v60 = vpop.f32.mrf.mxu3 }
 0x2f9   : > { %v910_v61 = vmul.f32 0.17677669, %v906_v60 }
 0x2fb   : > { %v911_v63 = vsel %vm737_vm2, %v910_v61, -inf }
 0x2fc   : > { %912 = vmax.xlane.f32.xlu0 %v911_v63  ;;  %v1707_v63 = vld [vmem:[#allocation6 + $0x70] sm:$0xf] }
 0x300   : > { %v908_v0 = vpop.f32.mrf.mxu3 }
 0x301   : > { %v1826_v0 = vld [vmem:[#allocation6 + $0x74] sm:$0xf0] }
 0x310   : > { %866 = vrot.lane.b32.xlu0 %v2237_v26, %s2080_s19 }
 0x357   : > { %v856_v1 = vpop.xlane.xlu1 %855 }
 0x358   : > { %v857_v2 = vsub.f32 %v853_v53, %v856_v1  ;;  %v1708_v1 = vor.u32 %v1826_v0, %v1707_v63  ;;  %v1832_v0 = vld [vmem:[#allocation7 + $0x28] sm:$0xff] }
 0x35a   : > { %v858_v3 = vmul.f32 1.442695, %v857_v2  ;;  %v1709_v2 = vld [vmem:[#allocation6 + $0x78] sm:$0xf0] }
 0x35c   : > { %1912 = vpow2.f32 %v858_v3 }
 0x35f   : > { %v798_v4 = vpop.xlane.xlu2 %797 }
 0x360   : > { %v799_v5 = vsub.f32 %v795_v57, %v798_v4 }
 0x362   : > { %v1913_v6 = vpop.eup %1912  ;;  %v800_v7 = vmul.f32 1.442695, %v799_v5 }
 0x363   : > { %v860_v8 = vsel %vm737_vm2, %v1913_v6, 0.0 }
 0x364   : > { %1914 = vpow2.f32 %v800_v7  ;;  %861 = vadd.xlane.f32.xlu1 %v860_v8 }
 0x36a   : > { %v1915_v9 = vpop.eup %1914 }
 0x36b   : > { %v802_v10 = vsel %vm737_vm2, %v1915_v9, 0.0 }
 0x36c   : > { %803 = vadd.xlane.f32.xlu2 %v802_v10 }
 0x36f   : > { %v913_v11 = vpop.xlane.xlu0 %912 }
 0x370   : > { %v914_v12 = vsub.f32 %v910_v61, %v913_v11  ;;  %v2083_v61 = vmov 128.0  }
 0x372   : > { %v915_v13 = vmul.f32 1.442695, %v914_v12 }
 0x374   : > { %1916 = vpow2.f32 %v915_v13  ;;  %v1699_v13 = vld [vmem:[#allocation6 + $0x60] sm:$0xf] }
 0x37a   : > { %v1917_v14 = vpop.eup %1916 }
 0x37b   : > { %v917_v15 = vsel %vm737_vm2, %v1917_v14, 0.0 }
 0x37c   : > { %918 = vadd.xlane.f32.xlu1 %v917_v15  ;;  %v1823_v15 = vld [vmem:[#allocation6 + $0x64] sm:$0xf] }
 0x382   : > { %v867_v16 = vpop.permute.xlu0 %866 }
 0x383   : > { %v872_v17 = vsel %vm753_vm1, %v867_v16, 0 }
 0x384   : > { %809 = vrot.lane.b32.xlu2 %v2237_v26, %s2081_s21  ;;  %881 = vmatpush.bf16.msra.mxu2 %v872_v17  ;;  %v1701_v17 = vld [vmem:[#allocation6 + $0x68] sm:$0xf0] }
 0x388   : > { %1184 = vmatpush.bf16.msrb.mxu2 %v1708_v1  ;;  %v1831_v1 = vld [vmem:[#allocation7 + $0x20] sm:$0xff] }
 0x395   : > { %923 = vrot.lane.b32.xlu1 %v2237_v26, %s2082_s22 }
 0x3d7   : > { %v862_v18 = vpop.xlane.xlu1 %861 }
 0x3d8   : > { %1918 = vrcp.f32 %v862_v18  ;;  %v1704_v18 = vor.u32 %v1823_v15, %v1701_v17  ;;  %v1904_v17 = vld [vmem:[%s2323_s6] ss:$0 sm:$0xff] }
 0x3de   : > { %v1919_v19 = vpop.eup %1918 }
 0x3df   : > { %v864_v20 = vmul.f32 %v1919_v19, %v1913_v6  ;;  %v804_v21 = vpop.xlane.xlu2 %803  ;;  %v1691_v19 = vld [vmem:[#allocation6 + $0x50] sm:$0xf] }
 0x3e0   : > { %1920 = vrcp.f32 %v804_v21  ;;  %v1821_v21 = vld [vmem:[#allocation6 + $0x54] sm:$0xf] }
 0x3e1   : > { %v865_v22 = vpack.c.bf16 %v864_v20, %v864_v20  ;;  %v1822_v20 = vld [vmem:[#allocation6 + $0x54] sm:$0xf0] }
 0x3e3   : > { %1614 = vmatmul.msk.bf16.vlgmr.msra.gmra.mxu2 %vm737_vm2, %v865_v22  ;;  %v1692_v22 = vor.u32 %v1822_v20, %v1691_v19 }
 0x3e6   : > { %v1921_v23 = vpop.eup %1920 }
 0x3e7   : > { %v806_v24 = vmul.f32 %v1921_v23, %v1915_v9  ;;  %v810_v25 = vpop.permute.xlu2 %809  ;;  %v1693_v23 = vld [vmem:[#allocation6 + $0x58] sm:$0xf0] }
 0x3e8   : > { %v815_v27 = vsel %vm753_vm1, %v810_v25, 0  ;;  %v1683_v25 = vld [vmem:[#allocation6 + $0x40] sm:$0xf] }
 0x3e9   : > { %824 = vmatpush.bf16.msrb.mxu0 %v815_v27  ;;  %v807_v28 = vpack.c.bf16 %v806_v24, %v806_v24  ;;  %v1696_v24 = vor.u32 %v1821_v21, %v1693_v23  ;;  %v1820_v27 = vld [vmem:[#allocation6 + $0x44] sm:$0xf0]  ;;  %v1827_v23 = vld [vmem:[#allocation7] sm:$0xff] }
 0x3ea   : > { %v1828_v21 = vld [vmem:[#allocation7 + $0x8] sm:$0xff] }
 0x3ec   : > { %1612 = vmatmul.msk.bf16.vlgmr.msrb.gmra.mxu0 %vm737_vm2, %v807_v28  ;;  %v1819_v28 = vld [vmem:[#allocation6 + $0x44] sm:$0xf] }
 0x3ef   : > { %v919_v29 = vpop.xlane.xlu1 %918 }
 0x3f0   : > { %1922 = vrcp.f32 %v919_v29  ;;  %v1684_v29 = vor.u32 %v1820_v27, %v1683_v25 }
 0x3f1   : > { %1924 = vrcp.f32 %v2083_v61  ;;  %v1841_v61 = vld [vmem:[#allocation7 + $0x70] sm:$0xff] }
 0x3f6   : > { %v1923_v26 = vpop.eup %1922 }
 0x3f7   : > { %v921_v30 = vmul.f32 %v1923_v26, %v1917_v14  ;;  %v1925_v4 = vpop.eup %1924  ;;  %v1824_v14 = vld [vmem:[#allocation6 + $0x64] sm:$0xf0]  ;;  %v1685_v26 = vld [vmem:[#allocation6 + $0x48] sm:$0xf0] }
 0x3f8   : > { %v1049_v5 = vmul.f32 128.0, %v1925_v4  ;;  %vm1053_vm5 = vweird.f32 %v1925_v4  ;;  %v1700_v16 = vor.u32 %v1824_v14, %v1699_v13  ;;  %v1903_v14 = vld [vmem:[%s2322_s5] ss:$0 sm:$0xff] }
 0x3f9   : > { %v922_v33 = vpack.c.bf16 %v921_v30, %v921_v30  ;;  %v1688_v30 = vor.u32 %v1819_v28, %v1685_v26 }
 0x3fa   : > { %v1050_v6 = vsub.f32 1.0, %v1049_v5  ;;  %1185 = vmatpush.bf16.msrb.mxu2 %v1700_v16  ;;  %v1830_v5 = vld [vmem:[#allocation7 + $0x18] sm:$0xff] }
 0x3fc   : > { %v1051_v7 = vmul.f32 %v1925_v4, %v1050_v6  ;;  %v1838_v6 = vld [vmem:[#allocation7 + $0x58] sm:$0xff] }
 0x3fe   : > { %v1052_v8 = vadd.f32 %v1925_v4, %v1051_v7  ;;  %1186 = vmatpush.bf16.msrb.mxu2 %v1692_v22  ;;  %v1836_v22 = vld [vmem:[#allocation7 + $0x48] sm:$0xff] }
 0x400   : > { %v2280_v9 = vsel %vm1053_vm5, %v1925_v4, %v1052_v8 }
 0x402   : > { %1187 = vmatpush.bf16.msrb.mxu2 %v1684_v29 }
 0x407   : > { %v924_v31 = vpop.permute.xlu1 %923 }
 0x408   : > { %v929_v32 = vsel %vm753_vm1, %v924_v31, 0  ;;  %v1675_v31 = vld [vmem:[#allocation6 + $0x30] sm:$0xf] }
 0x409   : > { %938 = vmatpush.bf16.msra.mxu0 %v929_v32  ;;  %v1818_v32 = vld [vmem:[#allocation6 + $0x34] sm:$0xf0] }
 0x40c   : > { %1616 = vmatmul.msk.bf16.vlgmr.msra.gmra.mxu0 %vm737_vm2, %v922_v33  ;;  %v1817_v33 = vld [vmem:[#allocation6 + $0x34] sm:$0xf] }
 0x466   : > { %v883_v34 = vpop.f32.mrf.mxu2 }
 0x469   : > { %v826_v35 = vpop.f32.mrf.mxu0 }
 0x46a   : > { %945 = vrot.lane.b32.xlu2 %v826_v35, %s2082_s22  ;;  %v1677_v35 = vld [vmem:[#allocation6 + $0x38] sm:$0xf0] }
 0x46e   : > { %v885_v36 = vpop.f32.mrf.mxu2 }
 0x46f   : > { %v1680_v36 = vor.u32 %v1817_v33, %v1677_v35 }
 0x471   : > { %v828_v37 = vpop.f32.mrf.mxu0 }
 0x472   : > { %949 = vrot.lane.b32.xlu2 %v883_v34, %s2080_s19  ;;  %v1676_v34 = vor.u32 %v1818_v32, %v1675_v31  ;;  %v1667_v37 = vld [vmem:[#allocation6 + $0x20] sm:$0xf] }
 0x474   : > { %1188 = vmatpush.bf16.msrb.mxu2 %v1676_v34 }
 0x489   : > { %v940_v38 = vpop.f32.mrf.mxu0 }
 0x48a   : > { %953 = vrot.lane.b32.xlu0 %v940_v38, %s2081_s21  ;;  %v1816_v38 = vld [vmem:[#allocation6 + $0x24] sm:$0xf0]  ;;  %s2340_s21 = sld [smem:[#allocation15_spill]] }
 0x48b   : > { %v1668_v40 = vor.u32 %v1816_v38, %v1667_v37  ;;  %v1905_v37 = vld [vmem:[%s2327_s10] ss:$0 sm:$0xff] }
 0x48d   : > { %1189 = vmatpush.bf16.msrb.mxu2 %v1668_v40 }
 0x490   : > { %s502_s22 = scalar_lea.vmem %s2340_s21, %s1511_s1 }
 0x491   : > { %v942_v39 = vpop.f32.mrf.mxu0  ;;  %1190 = vmatpush.bf16.msrb.mxu2 %v1660_v46 }
 0x492   : > { %v1815_v39 = vld [vmem:[#allocation6 + $0x24] sm:$0xf] }
 0x493   : > { %v1672_v42 = vor.u32 %v1815_v39, %v1669_v41 }
 0x4c4   : > { %v946_v48 = vpop.permute.xlu2 %945 }
 0x4c5   : > { %v956_v51 = vsel %vm716_vm0, %v2251_v50, %v946_v48  ;;  %v1825_v50 = vld [vmem:[#allocation6 + $0x74] sm:$0xf]  ;;  %v1651_v48 = vld [vmem:[#allocation6] sm:$0xf] }
 0x4c6   : > { %v1712_v3 = vor.u32 %v1825_v50, %v1709_v2  ;;  %v1840_v50 = vld [vmem:[#allocation7 + $0x68] sm:$0xff]  ;;  %v1839_v2 = vld [vmem:[#allocation7 + $0x60] sm:$0xff] }
 0x4c8   : > { %1197 = vmatpush.bf16.msra.mxu3 %v1712_v3 }
 0x4cc   : > { %v950_v49 = vpop.permute.xlu2 %949  ;;  %1198 = vmatpush.bf16.msra.mxu3 %v1704_v18 }
 0x4cd   : > { %v958_v52 = vsel %vm957_vm3, %v956_v51, %v950_v49  ;;  %v1812_v49 = vld [vmem:[#allocation6 + $0x4] sm:$0xf0]  ;;  %v1664_v51 = vor.u32 %v1813_v45, %v1661_v47 }
 0x4d0   : > { %1199 = vmatpush.bf16.msra.mxu3 %v1696_v24  ;;  %v1835_v24 = vld [vmem:[#allocation7 + $0x40] sm:$0xff] }
 0x4d4   : > { %1200 = vmatpush.bf16.msra.mxu3 %v1688_v30 }
 0x4d8   : > { %1201 = vmatpush.bf16.msra.mxu3 %v1680_v36 }
 0x4dc   : > { %1202 = vmatpush.bf16.msra.mxu3 %v1672_v42 }
 0x4e0   : > { %1203 = vmatpush.bf16.msra.mxu3 %v1664_v51 }
 0x4fc   : > { %v954_v53 = vpop.permute.xlu0 %953 }
 0x4fd   : > { %v960_v54 = vsel %vm959_vm4, %v958_v52, %v954_v53  ;;  %v1811_v52 = vld [vmem:[#allocation6 + $0x4] sm:$0xf]  ;;  %v1653_v53 = vld [vmem:[#allocation6 + $0x8] sm:$0xf0] }
 0x4fe   : > { %v961_v55 = vpack.c.bf16 %v960_v54, %v960_v54  ;;  %v1652_v54 = vor.u32 %v1812_v49, %v1651_v48 }
 0x500   : > { %1038 = vmatmul.bf16.vlgmr.msrb.gmra.mxu1 %v961_v55  ;;  %v1656_v55 = vor.u32 %v1811_v52, %v1653_v53  ;;  %1191 = vmatpush.bf16.msrb.mxu2 %v1652_v54 }
 0x502   : > { %1204 = vmatpush.bf16.msra.mxu3 %v1656_v55 }
 0x57d   : > { %v1039_v57 = vpop.f32.mrf.mxu1 }
 0x57e   : > { %v1040_v58 = vadd.f32 %v1902_v56, %v1039_v57  ;;  %v1834_v56 = vld [vmem:[#allocation7 + $0x38] sm:$0xff] }
 0x57f   : > { %v1842_v57 = vld [vmem:[#allocation7 + $0x78] sm:$0xff]  ;;  %1346 = vmatpush.bf16.msrb.mxu0 %v1834_v56 }
 0x580   : > { %v1043_v59 = vadd.f32 %v1040_v58, %v2223_v62  ;;  %1359 = vmatpush.bf16.msra.mxu1 %v1842_v57 }
 0x582   : > { %1046 = vadd.xlane.f32.xlu2 %v1043_v59 }
 0x584   : > { %1360 = vmatpush.bf16.msra.mxu1 %v1841_v61 }
 0x585   : > { %v1041_v60 = vpop.f32.mrf.mxu1 }
 0x586   : > { %v1833_v60 = vld [vmem:[#allocation7 + $0x30] sm:$0xff] }
 0x587   : > { %1347 = vmatpush.bf16.msrb.mxu0 %v1833_v60 }
 0x588   : > { %1361 = vmatpush.bf16.msra.mxu1 %v1840_v50 }
 0x58b   : > { %1348 = vmatpush.bf16.msrb.mxu0 %v1832_v0 }
 0x58c   : > { %1362 = vmatpush.bf16.msra.mxu1 %v1839_v2 }
 0x58f   : > { %1349 = vmatpush.bf16.msrb.mxu0 %v1831_v1 }
 0x590   : > { %1363 = vmatpush.bf16.msra.mxu1 %v1838_v6 }
 0x593   : > { %1350 = vmatpush.bf16.msrb.mxu0 %v1830_v5 }
 0x5f5   : > { %v1047_v62 = vpop.xlane.xlu2 %1046 }
 0x5f6   : > { %v1055_v10 = vmul.f32 %v2280_v9, %v1047_v62  ;;  %v1829_v62 = vld [vmem:[#allocation7 + $0x10] sm:$0xff] }
 0x5f7   : > { %1351 = vmatpush.bf16.msrb.mxu0 %v1829_v62 }
 0x5f8   : > { %v2283_v11 = vsub.f32 %v1043_v59, %v1055_v10  ;;  %v1837_v10 = vld [vmem:[#allocation7 + $0x50] sm:$0xff] }
 0x5f9   : > { %1364 = vmatpush.bf16.msra.mxu1 %v1837_v10 }
 0x5fa   : > { %v1057_v12 = vmul.f32 %v2283_v11, %v2283_v11 }
 0x5fb   : > { %1352 = vmatpush.bf16.msrb.mxu0 %v1828_v21 }
 0x5fc   : > { %1058 = vadd.xlane.f32.xlu0 %v1057_v12 }
 0x5fd   : > { %1365 = vmatpush.bf16.msra.mxu1 %v1836_v22 }
 0x5ff   : > { %1353 = vmatpush.bf16.msrb.mxu0 %v1827_v23 }
 0x601   : > { %1366 = vmatpush.bf16.msra.mxu1 %v1835_v24 }
 0x66f   : > { %v1059_v58 = vpop.xlane.xlu0 %1058 }
 0x670   : > { %v1060_v59 = vmul.f32 %v1059_v58, %v2280_v9 }
 0x672   : > { %v1061_v63 = vadd.f32 1e-05, %v1060_v59  ;;  %v1906_v59 = vld [vmem:[%s2328_s11] ss:$0 sm:$0xff] }
 0x674   : > { %1926 = vrsqrt.f32 %v1061_v63  ;;  %vm1068_vm7 = vweird.f32 %v1061_v63 }
 0x67a   : > { %v1927_v3 = vpop.eup %1926 }
 0x67b   : > { %v1063_v4 = vmul.f32 %v1927_v3, %v1061_v63  ;;  %vm1069_vm6 = vweird.f32 %v1927_v3 }
 0x67c   : > { %vm1070_vm8 = vmor %vm1068_vm7, %vm1069_vm6 }
 0x67d   : > { %v1064_v7 = vmul.f32 %v1927_v3, %v1063_v4 }
 0x67f   : > { %v1065_v8 = vmul.f32 0.5, %v1064_v7 }
 0x681   : > { %v1066_v12 = vsub.f32 1.5, %v1065_v8 }
 0x683   : > { %v1067_v13 = vmul.f32 %v1927_v3, %v1066_v12 }
 0x685   : > { %v1071_v15 = vsel %vm1070_vm8, %v1927_v3, %v1067_v13 }
 0x686   : > { %v1072_v16 = vmul.f32 %v1071_v15, %v2283_v11  ;;  %v1098_v11 = vld [vmem:[%s2325_s8] sm:$0x3] }
 0x687   : > { %v1100_v25 = vperm.slane %v1098_v11, 0  ;;  %v1101_v27 = vperm.slane %v1098_v11, 1 }
 0x688   : > { %v1076_v18 = vmul.f32 %v1903_v14, %v1072_v16 }
 0x68a   : > { %v1080_v19 = vadd.f32 %v1904_v17, %v1076_v18 }
 0x68c   : > { %v1081_v20 = vpack.c.bf16 %v1080_v19, %v1080_v19 }
 0x68e   : > { %1192 = vmatmul.bf16.vlgmr.msrb.gmra.mxu2 %v1081_v20  ;;  %1205 = vmatmul.bf16.vlgmr.msra.gmra.mxu3 %v1081_v20 }
 0x711   : > { %v1193_v28 = vpop.f32.mrf.mxu2  ;;  %v1206_v29 = vpop.f32.mrf.mxu3 }
 0x712   : > { %v1194_v26 = vadd.f32 %v1193_v28, %v1100_v25  ;;  %v1207_v30 = vadd.f32 %v1206_v29, %v1101_v27 }
 0x714   : > { %v1210_v31 = vmax.f32 %v1194_v26, 0.0  ;;  %v1211_v32 = vmax.f32 %v1207_v30, 0.0 }
 0x716   : > { %v1212_v33 = vpack.c.bf16 %v1210_v31, %v1210_v31  ;;  %v1213_v34 = vpack.c.bf16 %v1211_v32, %v1211_v32 }
 0x718   : > { %1354 = vmatmul.bf16.vlgmr.msrb.gmra.mxu0 %v1212_v33  ;;  %1367 = vmatmul.bf16.vlgmr.msra.gmra.mxu1 %v1213_v34 }
 0x719   : > { %v1195_v35 = vpop.f32.mrf.mxu2  ;;  %v1208_v36 = vpop.f32.mrf.mxu3 }
 0x795   : > { %v1355_v38 = vpop.f32.mrf.mxu0  ;;  %v1368_v39 = vpop.f32.mrf.mxu1 }
 0x796   : > { %v1356_v40 = vadd.f32 %v1905_v37, %v1355_v38 }
 0x798   : > { %v1369_v41 = vadd.f32 %v1368_v39, %v1356_v40 }
 0x79a   : > { %v1372_v42 = vadd.f32 %v1369_v41, %v1080_v19 }
 0x79c   : > { %1375 = vadd.xlane.f32.xlu1 %v1372_v42 }
 0x79d   : > { %v1357_v43 = vpop.f32.mrf.mxu0  ;;  %v1370_v44 = vpop.f32.mrf.mxu1 }
 0x80f   : > { %v1376_v45 = vpop.xlane.xlu1 %1375 }
 0x810   : > { %v1377_v46 = vmul.f32 %v1376_v45, %v2280_v9 }
 0x812   : > { %v1378_v47 = vsub.f32 %v1372_v42, %v1377_v46 }
 0x814   : > { %v1379_v48 = vmul.f32 %v1378_v47, %v1378_v47 }
 0x816   : > { %1380 = vadd.xlane.f32.xlu2 %v1379_v48 }
 0x889   : > { %v1381_v49 = vpop.xlane.xlu2 %1380 }
 0x88a   : > { %v1382_v51 = vmul.f32 %v1381_v49, %v2280_v9  ;;  %v1907_v9 = vld [vmem:[%s2329_s12] ss:$0 sm:$0xff] }
 0x88c   : > { %v1383_v52 = vadd.f32 1e-05, %v1382_v51 }
 0x88e   : > { %1928 = vrsqrt.f32 %v1383_v52  ;;  %vm1390_vm10 = vweird.f32 %v1383_v52 }
 0x894   : > { %v1929_v53 = vpop.eup %1928 }
 0x895   : > { %v1385_v54 = vmul.f32 %v1929_v53, %v1383_v52  ;;  %vm1391_vm9 = vweird.f32 %v1929_v53 }
 0x896   : > { %vm1392_vm11 = vmor %vm1390_vm10, %vm1391_vm9 }
 0x897   : > { %v1386_v55 = vmul.f32 %v1929_v53, %v1385_v54 }
 0x899   : > { %v1387_v56 = vmul.f32 0.5, %v1386_v55 }
 0x89b   : > { %v1388_v57 = vsub.f32 1.5, %v1387_v56 }
 0x89d   : > { %v1389_v58 = vmul.f32 %v1929_v53, %v1388_v57 }
 0x89f   : > { %v1393_v60 = vsel %vm1392_vm11, %v1929_v53, %v1389_v58 }
 0x8a0   : > { %v1394_v61 = vmul.f32 %v1393_v60, %v1378_v47 }
 0x8a2   : > { %v1398_v63 = vmul.f32 %v1906_v59, %v1394_v61 }
 0x8a4   : > { %v1402_v0 = vadd.f32 %v1907_v9, %v1398_v63 }
 0x8a6   : > { %1403 = vst [vmem:[%s502_s22] sm:$0xff] %v1402_v0 }
 0x8a7 PF: > { %s2341_s23 = sld [smem:[#allocation12_spill]] }
 0x8ad   : > { %s26_s25 = sadd.s32 1, %s2341_s23  }
 0x8ae   : > { %p23_p7 = scmp.ge.s32.totalorder %s26_s25, 4  }
 0x8b0   :  { %25 = sbr.rel (!%p23_p7) target bundleno = 7 (0x7), region = 119 }
 0x8b5   :  { %1423 = vsyncpa [#allocation3], 1 }
 0x8b6   :  { %1425 = vsyncpa [#allocation3 + $0x1], 1 }
 0x8b7   :  { %1426 = vsyncpa [#allocation5], 1 }
 0x8b8   :  { %1427 = vsyncpa [#allocation8], 1 }

// kernel: transformer_model_forward.6
= control target key start
LH: loop header
LB: loop body
LE: loop exit
PB: predicated region body
PF: predicated region fallthrough
CT: control target
= control target key end

     0   :  { %s2374_s0 = inlined_call_operand.vmem [shape: f32[2,8,128], index: 0, kind: input, shape index: {}]   ;;  %s2375_s1 = inlined_call_operand.vmem [shape: bf16[128,384], index: 1, kind: input, shape index: {}]   ;;  %s2376_s2 = inlined_call_operand.vmem [shape: f32[1,384], index: 2, kind: input, shape index: {}]   ;;  %s2377_s3 = inlined_call_operand.hbm [shape: bf16[128,128], index: 3, kind: input, shape index: {}]   ;;  %s2378_s4 = inlined_call_operand.vmem [shape: f32[1,128], index: 4, kind: input, shape index: {}]   ;;  %s2379_s5 = inlined_call_operand.vmem [shape: f32[1,128], index: 5, kind: input, shape index: {}]   ;;  %s2380_s6 = inlined_call_operand.vmem [shape: f32[1,128], index: 6, kind: input, shape index: {}]   ;;  %s2381_s7 = inlined_call_operand.hbm [shape: bf16[128,256], index: 7, kind: input, shape index: {}]   ;;  %s2382_s8 = inlined_call_operand.vmem [shape: f32[1,256], index: 8, kind: input, shape index: {}]   ;;  %s2383_s9 = inlined_call_operand.hbm [shape: bf16[256,128], index: 9, kind: input, shape index: {}]   ;;  %s2384_s10 = inlined_call_operand.vmem [shape: f32[1,128], index: 10, kind: input, shape index: {}]   ;;  %s2385_s11 = inlined_call_operand.vmem [shape: f32[1,128], index: 11, kind: input, shape index: {}]   ;;  %s2386_s12 = inlined_call_operand.vmem [shape: f32[1,128], index: 12, kind: input, shape index: {}]   ;;  %s2387_s13 = inlined_call_operand.vmem [shape: f32[2,8,128], index: 13, kind: output, shape index: {}]  }
   0x1   :  { %2388 = sst [smem:[#allocation9_spill]] %s2377_s3 }
   0x2   :  { %18 = vsyncpa [#allocation3], 0 }
   0x3   :  { %19 = vsyncpa [#allocation5], 0  ;;  %s2076_s25 = smov 0  }
   0x4 LB: > { %s374_s28 = sshll.u32 %s2381_s7, 4  ;;  %s2085_s29 = sadd.s32 4294967295, %s1993_s25   ;;  %s1993_s25 = sphi %s2076_s25, %s25_s25   ;;  %s375_s28 = int_to_ptr.hbm [resolvable:$true] %s374_s28 }
   0x5   : > { %p1473_p0 = scmp.ge.s32.totalorder %s1993_s25, 1  ;;  %p334_p1 = scmp.lt.s32.totalorder %s1993_s25, 3 }
   0x6   : > { %p1836_p2 = scmp.eq.s32.totalorder %s2085_s29, 0  ;;  %s1995_s14 = smov [#allocation4]  }
   0x7   : > { %p2090_p3 = pnand %p1473_p0, %p334_p1  ;;  %s376_s15 = sshll.u32 %s1995_s14, 4  ;;  %s377_s15 = int_to_ptr.vmem [resolvable:$true] %s376_s15 }
   0x8   : > { %s2390_s3 = sld [smem:[#allocation9_spill]]  ;;  %s1996_s20 = smov [#allocation2]  }
   0x9   : > { %p1826_p4 = pneg %p2090_p3  ;;  %s353_s21 = sshll.u32 %s1996_s20, 4  ;;  %s354_s21 = int_to_ptr.vmem [resolvable:$true] %s353_s21 }
   0xa   : > { %s1997_s22 = smov 128   ;;  %s1998_s23 = smov 8  }
   0xb   : > { %p2101_p5 = pnand %p1836_p2, %p1826_p4  ;;  %s391_s27 = sshll.u32 %s2383_s9, 4  ;;  %s392_s27 = int_to_ptr.hbm [resolvable:$true] %s391_s27 }
   0xc   : > { %s1999_s14 = smov 64   ;;  %s2000_s16 = smov 4  }
   0xd   : > { %1832 = dma.hbm_to_vmem [thread:$0]  (!%p2101_p5), %s375_s28, 2048, %s377_s15, [#allocation5], %s1997_s22, %s1997_s22, %s1998_s23  }
   0xe   : > { %s351_s18 = sshll.u32 %s2390_s3, 4  ;;  %s2001_s17 = smov [#allocation6]   ;;  %s352_s18 = int_to_ptr.hbm [resolvable:$true] %s351_s18 }
   0xf   : > { %1829 = dma.hbm_to_vmem [thread:$0]  (!%p2101_p5), %s352_s18, 1024, %s354_s21, [#allocation3], %s1999_s14, %s1999_s14, %s2000_s16  }
  0x10   : > { %s393_s3 = sshll.u32 %s2001_s17, 4  ;;  %425 = sbr.rel (%p2090_p3) target bundleno = 2206 (0x89e), region = 72  ;;  %s394_s3 = int_to_ptr.vmem [resolvable:$true] %s393_s3 }
  0x11   : > { %1835 = dma.hbm_to_vmem [thread:$0]  (!%p2101_p5), %s392_s27, 2048, %s394_s3, [#allocation5], %s1999_s14, %s1999_s14, %s2000_s16  }
  0x15   : > { %1984 = dma.done.wait (%p1836_p2), [#allocation3], 1024  }
  0x16   : > { %1986 = vsyncadd (%p1836_p2), [#allocation3], 4294966272 }
  0x17   : > { %1988 = dma.done.wait (%p1836_p2), [#allocation5], 4096  }
  0x18   : > { %1990 = vsyncadd (%p1836_p2), [#allocation5], 4294963200  ;;  %v1570_v0 = vld [vmem:[%s2375_s1 + $0xa8] sm:$0xf]  ;;  %v1772_v1 = vld [vmem:[%s2375_s1 + $0xb0] sm:$0xf0] }
  0x19   : > { %v1771_v2 = vld [vmem:[%s2375_s1 + $0xac] sm:$0xf]  ;;  %v1571_v3 = vor.u32 %v1772_v1, %v1570_v0  ;;  %v1572_v4 = vld [vmem:[%s2375_s1 + $0xb4] sm:$0xf0]  ;;  %v1558_v5 = vld [vmem:[%s2375_s1 + $0x90] sm:$0xf] }
  0x1a   : > { %v1769_v6 = vld [vmem:[%s2375_s1 + $0x98] sm:$0xf0]  ;;  %v1575_v7 = vor.u32 %v1771_v2, %v1572_v4  ;;  %v1768_v8 = vld [vmem:[%s2375_s1 + $0x94] sm:$0xf]  ;;  %v1560_v9 = vld [vmem:[%s2375_s1 + $0x9c] sm:$0xf0] }
  0x1b   : > { %657 = vmatpush.bf16.msra.mxu0 %v1571_v3  ;;  %v1559_v10 = vor.u32 %v1769_v6, %v1558_v5  ;;  %v1563_v11 = vor.u32 %v1768_v8, %v1560_v9  ;;  %v1546_v12 = vld [vmem:[%s2375_s1 + $0x78] sm:$0xf]  ;;  %v1766_v13 = vld [vmem:[%s2375_s1 + $0x80] sm:$0xf0]  ;;  %v1765_v14 = vld [vmem:[%s2375_s1 + $0x7c] sm:$0xf] }
  0x1c   : > { %670 = vmatpush.bf16.msra.mxu1 %v1575_v7  ;;  %v1548_v15 = vld [vmem:[%s2375_s1 + $0x84] sm:$0xf0]  ;;  %v1547_v16 = vor.u32 %v1766_v13, %v1546_v12  ;;  %v1534_v18 = vld [vmem:[%s2375_s1 + $0x60] sm:$0xf]  ;;  %v1763_v19 = vld [vmem:[%s2375_s1 + $0x68] sm:$0xf0] }
  0x1d   : > { %v1551_v17 = vor.u32 %v1765_v14, %v1548_v15  ;;  %v1762_v20 = vld [vmem:[%s2375_s1 + $0x64] sm:$0xf]  ;;  %v1536_v21 = vld [vmem:[%s2375_s1 + $0x6c] sm:$0xf0]  ;;  %p478_p6 = scmp.lt.s32.totalorder %s2085_s29, 1  ;;  %v1535_v22 = vor.u32 %v1763_v19, %v1534_v18  ;;  %vm699_vm0 = vcmask 261120  }
  0x1e   : > { %v1578_v23 = vld [vmem:[%s2375_s1 + $0xb0] sm:$0xf]  ;;  %v1773_v24 = vld [vmem:[%s2375_s1 + $0xb8] sm:$0xf0]  ;;  %v1566_v25 = vld [vmem:[%s2375_s1 + $0x98] sm:$0xf]  ;;  %v1539_v26 = vor.u32 %v1762_v20, %v1536_v21 }
  0x1f   : > { %658 = vmatpush.bf16.msra.mxu0 %v1559_v10  ;;  %v1522_v27 = vld [vmem:[%s2375_s1 + $0x48] sm:$0xf]  ;;  %v1760_v28 = vld [vmem:[%s2375_s1 + $0x50] sm:$0xf0]  ;;  %v1579_v29 = vor.u32 %v1773_v24, %v1578_v23  ;;  %v1770_v30 = vld [vmem:[%s2375_s1 + $0xa0] sm:$0xf0] }
  0x20   : > { %671 = vmatpush.bf16.msra.mxu1 %v1563_v11  ;;  %v1759_v31 = vld [vmem:[%s2375_s1 + $0x4c] sm:$0xf]  ;;  %v1524_v32 = vld [vmem:[%s2375_s1 + $0x54] sm:$0xf0]  ;;  %s2393_s29 = smov (!%p478_p6, %s2085_s29), 1  ;;  %v1567_v33 = vor.u32 %v1770_v30, %v1566_v25  ;;  %v1523_v34 = vor.u32 %v1760_v28, %v1522_v27  ;;  %s2002_s21 = smov 64  }
  0x21   : > { %683 = vmatpush.bf16.msra.mxu2 %v1579_v29  ;;  %v1510_v35 = vld [vmem:[%s2375_s1 + $0x30] sm:$0xf]  ;;  %v1554_v36 = vld [vmem:[%s2375_s1 + $0x80] sm:$0xf]  ;;  %v1767_v37 = vld [vmem:[%s2375_s1 + $0x88] sm:$0xf0]  ;;  %v1527_v38 = vor.u32 %v1759_v31, %v1524_v32 }
  0x22   : > { %v1757_v39 = vld [vmem:[%s2375_s1 + $0x38] sm:$0xf0]  ;;  %v1756_v40 = vld [vmem:[%s2375_s1 + $0x34] sm:$0xf]  ;;  %v1512_v41 = vld [vmem:[%s2375_s1 + $0x3c] sm:$0xf0]  ;;  %v1555_v42 = vor.u32 %v1767_v37, %v1554_v36 }
  0x23   : > { %659 = vmatpush.bf16.msra.mxu0 %v1547_v16  ;;  %v1511_v43 = vor.u32 %v1757_v39, %v1510_v35  ;;  %v1542_v44 = vld [vmem:[%s2375_s1 + $0x68] sm:$0xf]  ;;  %v1764_v45 = vld [vmem:[%s2375_s1 + $0x70] sm:$0xf0]  ;;  %v1515_v46 = vor.u32 %v1756_v40, %v1512_v41  ;;  %v1498_v47 = vld [vmem:[%s2375_s1 + $0x18] sm:$0xf] }
  0x24   : > { %672 = vmatpush.bf16.msra.mxu1 %v1551_v17  ;;  %v1754_v48 = vld [vmem:[%s2375_s1 + $0x20] sm:$0xf0]  ;;  %v1753_v49 = vld [vmem:[%s2375_s1 + $0x1c] sm:$0xf]  ;;  %v1500_v50 = vld [vmem:[%s2375_s1 + $0x24] sm:$0xf0]  ;;  %v1543_v51 = vor.u32 %v1764_v45, %v1542_v44 }
  0x25   : > { %684 = vmatpush.bf16.msra.mxu2 %v1567_v33  ;;  %s1482_s22 = sshll.u32 %s2393_s29, 3  ;;  %v1499_v52 = vor.u32 %v1754_v48, %v1498_v47  ;;  %v1530_v53 = vld [vmem:[%s2375_s1 + $0x50] sm:$0xf]  ;;  %v1761_v54 = vld [vmem:[%s2375_s1 + $0x58] sm:$0xf0]  ;;  %v1503_v55 = vor.u32 %v1753_v49, %v1500_v50  ;;  %s2003_s23 = smov 96  }
  0x26   : > { %v1486_v56 = vld [vmem:[%s2375_s1] sm:$0xf]  ;;  %v1751_v57 = vld [vmem:[%s2375_s1 + $0x8] sm:$0xf0]  ;;  %s481_s18 = scalar_lea.vmem %s2374_s0, %s1482_s22  ;;  %v1750_v58 = vld [vmem:[%s2375_s1 + $0x4] sm:$0xf]  ;;  %v1531_v60 = vor.u32 %v1761_v54, %v1530_v53  ;;  %s485_s27 = scalar_lea.vmem %s2387_s13, %s1482_s22 }
  0x27   : > { %660 = vmatpush.bf16.msra.mxu0 %v1535_v22  ;;  %v1488_v59 = vld [vmem:[%s2375_s1 + $0xc] sm:$0xf0]  ;;  %v1487_v61 = vor.u32 %v1751_v57, %v1486_v56  ;;  %v2262_v62 = vld [vmem:[%s481_s18] sm:$0xff]  ;;  %v1518_v63 = vld [vmem:[%s2375_s1 + $0x38] sm:$0xf]  ;;  %s2004_s24 = smov 32  }
  0x28   : > { %673 = vmatpush.bf16.msra.mxu1 %v1539_v26  ;;  %v1758_v0 = vld [vmem:[%s2375_s1 + $0x40] sm:$0xf0]  ;;  %v1491_v1 = vor.u32 %v1750_v58, %v1488_v59  ;;  %v488_v2 = vpack.c.bf16 %v2262_v62, %v2262_v62  ;;  %v1506_v4 = vld [vmem:[%s2375_s1 + $0x20] sm:$0xf]  ;;  %v1755_v5 = vld [vmem:[%s2375_s1 + $0x28] sm:$0xf0] }
  0x29   : > { %685 = vmatpush.bf16.msra.mxu2 %v1555_v42  ;;  %v1519_v3 = vor.u32 %v1758_v0, %v1518_v63  ;;  %v1507_v6 = vor.u32 %v1755_v5, %v1506_v4  ;;  %v1494_v7 = vld [vmem:[%s2375_s1 + $0x8] sm:$0xf]  ;;  %v1752_v8 = vld [vmem:[%s2375_s1 + $0x10] sm:$0xf0]  ;;  %v521_v10 = vld [vmem:[%s2376_s2] sm:$0x7] }
  0x2a   : > { %v1495_v9 = vor.u32 %v1752_v8, %v1494_v7  ;;  %v524_v11 = vperm.slane %v521_v10, 1  ;;  %v523_v14 = vperm.slane %v521_v10, 0  ;;  %v525_v23 = vperm.slane %v521_v10, 2 }
  0x2b   : > { %661 = vmatpush.bf16.msra.mxu0 %v1523_v34  ;;  %vm736_vm1 = vcmask 1043456   ;;  %vm720_vm2 = vcmask 64512   ;;  %vm940_vm3 = vcmask 523264   ;;  %vm942_vm4 = vcmask 785408  }
  0x2c   : > { %674 = vmatpush.bf16.msra.mxu1 %v1527_v38 }
  0x2d   : > { %686 = vmatpush.bf16.msra.mxu2 %v1543_v51 }
  0x2f   : > { %662 = vmatpush.bf16.msra.mxu0 %v1511_v43 }
  0x30   : > { %675 = vmatpush.bf16.msra.mxu1 %v1515_v46 }
  0x31   : > { %687 = vmatpush.bf16.msra.mxu2 %v1531_v60 }
  0x33   : > { %663 = vmatpush.bf16.msra.mxu0 %v1499_v52 }
  0x34   : > { %676 = vmatpush.bf16.msra.mxu1 %v1503_v55 }
  0x35   : > { %688 = vmatpush.bf16.msra.mxu2 %v1519_v3 }
  0x37   : > { %664 = vmatpush.bf16.msra.mxu0 %v1487_v61 }
  0x38   : > { %677 = vmatpush.bf16.msra.mxu1 %v1491_v1 }
  0x39   : > { %689 = vmatpush.bf16.msra.mxu2 %v1507_v6 }
  0x3a   : > { %665 = vmatmul.bf16.vlgmr.msra.gmra.mxu0 %v488_v2 }
  0x3b   : > { %678 = vmatmul.bf16.vlgmr.msra.gmra.mxu1 %v488_v2 }
  0x3d   : > { %690 = vmatpush.bf16.msra.mxu2 %v1495_v9 }
  0x40   : > { %691 = vmatmul.bf16.vlgmr.msra.gmra.mxu2 %v488_v2 }
  0xb7   : > { %v666_v12 = vpop.f32.mrf.mxu0 }
  0xb8   : > { %v679_v13 = vpop.f32.mrf.mxu1  ;;  %v667_v17 = vadd.f32 %v666_v12, %v523_v14 }
  0xb9   : > { %v680_v15 = vadd.f32 %v679_v13, %v524_v11 }
  0xba   : > { %v696_v21 = vpack.c.bf16 %v667_v17, %v667_v17 }
  0xbb   : > { %v697_v16 = vpack.c.bf16 %v680_v15, %v680_v15 }
  0xbd   : > { %815 = vrot.lane.b32.xlu2 %v697_v16, %s2002_s21  ;;  %757 = vrot.lane.b32.xlu1 %v697_v16, %s2003_s23  ;;  %v704_v18 = vsel %vm699_vm0, %v697_v16, 0 }
  0xbe   : > { %713 = vmatpush.bf16.xpose.msra.mxu3 %v704_v18 }
  0xbf   : > { %v668_v19 = vpop.f32.mrf.mxu0 }
  0xc0   : > { %v681_v20 = vpop.f32.mrf.mxu1 }
  0xc3   : > { %v692_v22 = vpop.f32.mrf.mxu2 }
  0xc4   : > { %v693_v24 = vadd.f32 %v692_v22, %v525_v23 }
  0xc5   : > { %872 = vrot.lane.b32.xlu2 %v697_v16, %s2004_s24  ;;  %754 = vrot.lane.b32.xlu1 %v696_v21, %s2003_s23 }
  0xc6   : > { %1580 = vmatmul.msk.bf16.vlgmr.msra.gmra.mxu3 %vm699_vm0, %v696_v21  ;;  %v2294_v26 = vpack.c.bf16 %v693_v24, %v693_v24 }
  0xc8   : > { %v738_v27 = vsel %vm736_vm1, %v2294_v26, 0 }
  0xc9   : > { %747 = vmatpush.bf16.msrb.mxu3 %v738_v27 }
  0xcb   : > { %v694_v25 = vpop.f32.mrf.mxu2 }
  0xcd   : > { %870 = vrot.lane.b32.xlu1 %v696_v21, %s2004_s24 }
 0x117   : > { %v816_v28 = vpop.permute.xlu2 %815 }
 0x118   : > { %v821_v29 = vsel %vm699_vm0, %v816_v28, 0 }
 0x119   : > { %830 = vmatpush.bf16.xpose.msrb.mxu2 %v821_v29 }
 0x11f   : > { %v873_v44 = vpop.permute.xlu2 %872 }
 0x120   : > { %v878_v46 = vsel %vm699_vm0, %v873_v44, 0  ;;  %v1777_v44 = vld [vmem:[#allocation2 + $0x18] sm:$0xff] }
 0x12f   : > { %v758_v30 = vpop.permute.xlu1 %757 }
 0x130   : > { %v763_v31 = vsel %vm699_vm0, %v758_v30, 0 }
 0x131   : > { %772 = vmatpush.bf16.xpose.msra.mxu3 %v763_v31 }
 0x137   : > { %v755_v48 = vpop.permute.xlu1 %754 }
 0x13f   : > { %v871_v49 = vpop.permute.xlu1 %870 }
 0x149   : > { %v715_v32 = vpop.f32.mrf.mxu3 }
 0x14a   : > { %v719_v33 = vmul.f32 0.17677669, %v715_v32 }
 0x14c   : > { %v721_v34 = vsel %vm720_vm2, %v719_v33, -inf }
 0x14d   : > { %722 = vmax.xlane.f32.xlu0 %v721_v34 }
 0x151   : > { %v717_v35 = vpop.f32.mrf.mxu3 }
 0x1c0   : > { %v723_v36 = vpop.xlane.xlu0 %722 }
 0x1c1   : > { %v724_v37 = vsub.f32 %v719_v33, %v723_v36 }
 0x1c3   : > { %v725_v38 = vmul.f32 1.442695, %v724_v37 }
 0x1c5   : > { %1867 = vpow2.f32 %v725_v38 }
 0x1cb   : > { %v1868_v39 = vpop.eup %1867 }
 0x1cc   : > { %v727_v40 = vsel %vm720_vm2, %v1868_v39, 0.0 }
 0x1cd   : > { %728 = vadd.xlane.f32.xlu0 %v727_v40  ;;  %v1781_v40 = vld [vmem:[#allocation2 + $0x38] sm:$0xff] }
 0x1ce   : > { %1013 = vmatpush.bf16.msrb.mxu1 %v1781_v40 }
 0x1e1   : > { %813 = vrot.lane.b32.xlu0 %v696_v21, %s2002_s21 }
 0x240   : > { %v729_v41 = vpop.xlane.xlu0 %728 }
 0x241   : > { %1869 = vrcp.f32 %v729_v41  ;;  %v1780_v41 = vld [vmem:[#allocation2 + $0x30] sm:$0xff] }
 0x242   : > { %1014 = vmatpush.bf16.msrb.mxu1 %v1780_v41  ;;  %v1640_v41 = vld [vmem:[#allocation4 + $0x28] sm:$0xf0] }
 0x247   : > { %v1870_v42 = vpop.eup %1869 }
 0x248   : > { %v731_v43 = vmul.f32 %v1870_v42, %v1868_v39  ;;  %v1779_v42 = vld [vmem:[#allocation2 + $0x28] sm:$0xff] }
 0x249   : > { %1015 = vmatpush.bf16.msrb.mxu1 %v1779_v42 }
 0x24a   : > { %v732_v45 = vpack.c.bf16 %v731_v43, %v731_v43  ;;  %v1778_v43 = vld [vmem:[#allocation2 + $0x20] sm:$0xff] }
 0x24c   : > { %1581 = vmatmul.msk.bf16.vlgmr.msrb.gmra.mxu3 %vm720_vm2, %v732_v45  ;;  %v1776_v45 = vld [vmem:[#allocation2 + $0x10] sm:$0xff] }
 0x24d   : > { %887 = vmatpush.bf16.xpose.msrb.mxu3 %v878_v46  ;;  %1016 = vmatpush.bf16.msrb.mxu1 %v1778_v43  ;;  %v1775_v46 = vld [vmem:[#allocation2 + $0x8] sm:$0xff]  ;;  %v1630_v43 = vld [vmem:[#allocation4 + $0x10] sm:$0xf] }
 0x251   : > { %1017 = vmatpush.bf16.msrb.mxu1 %v1777_v44  ;;  %v1785_v44 = vld [vmem:[#allocation4 + $0x14] sm:$0xf0] }
 0x253   : > { %v814_v47 = vpop.permute.xlu0 %813 }
 0x254   : > { %1584 = vmatmul.msk.bf16.vlgmr.msrb.gmra.mxu2 %vm699_vm0, %v814_v47  ;;  %v1774_v47 = vld [vmem:[#allocation2] sm:$0xff] }
 0x255   : > { %1018 = vmatpush.bf16.msrb.mxu1 %v1776_v45  ;;  %v1784_v45 = vld [vmem:[#allocation4 + $0x14] sm:$0xf] }
 0x259   : > { %1019 = vmatpush.bf16.msrb.mxu1 %v1775_v46  ;;  %v1631_v46 = vor.u32 %v1785_v44, %v1630_v43 }
 0x25c   : > { %1582 = vmatmul.msk.bf16.vlgmr.msra.gmra.mxu3 %vm699_vm0, %v755_v48 }
 0x25d   : > { %1020 = vmatpush.bf16.msrb.mxu1 %v1774_v47  ;;  %v1632_v47 = vld [vmem:[#allocation4 + $0x18] sm:$0xf0] }
 0x26c   : > { %1586 = vmatmul.msk.bf16.vlgmr.msrb.gmra.mxu3 %vm699_vm0, %v871_v49 }
 0x2cf   : > { %v2308_v50 = vpop.f32.mrf.mxu3 }
 0x2d7   : > { %v751_v51 = vpop.f32.mrf.mxu3  ;;  %v832_v52 = vpop.f32.mrf.mxu2 }
 0x2d8   : > { %v836_v53 = vmul.f32 0.17677669, %v832_v52 }
 0x2da   : > { %v837_v54 = vsel %vm720_vm2, %v836_v53, -inf }
 0x2db   : > { %838 = vmax.xlane.f32.xlu1 %v837_v54 }
 0x2df   : > { %v774_v55 = vpop.f32.mrf.mxu3  ;;  %v834_v56 = vpop.f32.mrf.mxu2 }
 0x2e0   : > { %v778_v57 = vmul.f32 0.17677669, %v774_v55  ;;  %v1861_v56 = vld [vmem:[%s2378_s4] ss:$0 sm:$0xff] }
 0x2e2   : > { %v779_v58 = vsel %vm720_vm2, %v778_v57, -inf }
 0x2e3   : > { %780 = vmax.xlane.f32.xlu2 %v779_v58 }
 0x2e7   : > { %v776_v59 = vpop.f32.mrf.mxu3 }
 0x2ef   : > { %v889_v60 = vpop.f32.mrf.mxu3 }
 0x2f0   : > { %v893_v61 = vmul.f32 0.17677669, %v889_v60 }
 0x2f2   : > { %v894_v63 = vsel %vm720_vm2, %v893_v61, -inf }
 0x2f3   : > { %895 = vmax.xlane.f32.xlu0 %v894_v63  ;;  %v1678_v63 = vld [vmem:[#allocation4 + $0x70] sm:$0xf] }
 0x2f7   : > { %v891_v0 = vpop.f32.mrf.mxu3 }
 0x2f8   : > { %v1797_v0 = vld [vmem:[#allocation4 + $0x74] sm:$0xf0] }
 0x307   : > { %849 = vrot.lane.b32.xlu0 %v2294_v26, %s2002_s21 }
 0x34e   : > { %v839_v1 = vpop.xlane.xlu1 %838 }
 0x34f   : > { %v840_v2 = vsub.f32 %v836_v53, %v839_v1  ;;  %v1679_v1 = vor.u32 %v1797_v0, %v1678_v63  ;;  %v1803_v0 = vld [vmem:[#allocation6 + $0x28] sm:$0xff] }
 0x351   : > { %v841_v3 = vmul.f32 1.442695, %v840_v2  ;;  %v1680_v2 = vld [vmem:[#allocation4 + $0x78] sm:$0xf0] }
 0x353   : > { %1871 = vpow2.f32 %v841_v3 }
 0x356   : > { %v781_v4 = vpop.xlane.xlu2 %780 }
 0x357   : > { %v782_v5 = vsub.f32 %v778_v57, %v781_v4 }
 0x359   : > { %v1872_v6 = vpop.eup %1871  ;;  %v783_v7 = vmul.f32 1.442695, %v782_v5 }
 0x35a   : > { %v843_v8 = vsel %vm720_vm2, %v1872_v6, 0.0 }
 0x35b   : > { %1873 = vpow2.f32 %v783_v7  ;;  %844 = vadd.xlane.f32.xlu1 %v843_v8 }
 0x361   : > { %v1874_v9 = vpop.eup %1873 }
 0x362   : > { %v785_v10 = vsel %vm720_vm2, %v1874_v9, 0.0 }
 0x363   : > { %786 = vadd.xlane.f32.xlu2 %v785_v10 }
 0x366   : > { %v896_v11 = vpop.xlane.xlu0 %895 }
 0x367   : > { %v897_v12 = vsub.f32 %v893_v61, %v896_v11  ;;  %v2005_v61 = vmov 128.0  }
 0x369   : > { %v898_v13 = vmul.f32 1.442695, %v897_v12 }
 0x36b   : > { %1875 = vpow2.f32 %v898_v13  ;;  %v1670_v13 = vld [vmem:[#allocation4 + $0x60] sm:$0xf] }
 0x371   : > { %v1876_v14 = vpop.eup %1875 }
 0x372   : > { %v900_v15 = vsel %vm720_vm2, %v1876_v14, 0.0 }
 0x373   : > { %901 = vadd.xlane.f32.xlu1 %v900_v15  ;;  %v1794_v15 = vld [vmem:[#allocation4 + $0x64] sm:$0xf] }
 0x379   : > { %v850_v16 = vpop.permute.xlu0 %849 }
 0x37a   : > { %v855_v17 = vsel %vm736_vm1, %v850_v16, 0 }
 0x37b   : > { %792 = vrot.lane.b32.xlu2 %v2294_v26, %s2003_s23  ;;  %864 = vmatpush.bf16.msra.mxu2 %v855_v17  ;;  %v1672_v17 = vld [vmem:[#allocation4 + $0x68] sm:$0xf0] }
 0x37f   : > { %1167 = vmatpush.bf16.msrb.mxu2 %v1679_v1  ;;  %v1802_v1 = vld [vmem:[#allocation6 + $0x20] sm:$0xff] }
 0x38c   : > { %906 = vrot.lane.b32.xlu1 %v2294_v26, %s2004_s24 }
 0x3ce   : > { %v845_v18 = vpop.xlane.xlu1 %844 }
 0x3cf   : > { %1877 = vrcp.f32 %v845_v18  ;;  %v1675_v18 = vor.u32 %v1794_v15, %v1672_v17  ;;  %v1863_v17 = vld [vmem:[%s2380_s6] ss:$0 sm:$0xff] }
 0x3d5   : > { %v1878_v19 = vpop.eup %1877 }
 0x3d6   : > { %v847_v20 = vmul.f32 %v1878_v19, %v1872_v6  ;;  %v787_v21 = vpop.xlane.xlu2 %786  ;;  %v1662_v19 = vld [vmem:[#allocation4 + $0x50] sm:$0xf] }
 0x3d7   : > { %1879 = vrcp.f32 %v787_v21  ;;  %v1792_v21 = vld [vmem:[#allocation4 + $0x54] sm:$0xf] }
 0x3d8   : > { %v848_v22 = vpack.c.bf16 %v847_v20, %v847_v20  ;;  %v1793_v20 = vld [vmem:[#allocation4 + $0x54] sm:$0xf0] }
 0x3da   : > { %1585 = vmatmul.msk.bf16.vlgmr.msra.gmra.mxu2 %vm720_vm2, %v848_v22  ;;  %v1663_v22 = vor.u32 %v1793_v20, %v1662_v19 }
 0x3dd   : > { %v1880_v23 = vpop.eup %1879 }
 0x3de   : > { %v789_v24 = vmul.f32 %v1880_v23, %v1874_v9  ;;  %v793_v25 = vpop.permute.xlu2 %792  ;;  %v1664_v23 = vld [vmem:[#allocation4 + $0x58] sm:$0xf0] }
 0x3df   : > { %v798_v27 = vsel %vm736_vm1, %v793_v25, 0  ;;  %v1654_v25 = vld [vmem:[#allocation4 + $0x40] sm:$0xf] }
 0x3e0   : > { %807 = vmatpush.bf16.msrb.mxu0 %v798_v27  ;;  %v790_v28 = vpack.c.bf16 %v789_v24, %v789_v24  ;;  %v1667_v24 = vor.u32 %v1792_v21, %v1664_v23  ;;  %v1791_v27 = vld [vmem:[#allocation4 + $0x44] sm:$0xf0]  ;;  %v1798_v23 = vld [vmem:[#allocation6] sm:$0xff] }
 0x3e1   : > { %v1799_v21 = vld [vmem:[#allocation6 + $0x8] sm:$0xff] }
 0x3e3   : > { %1583 = vmatmul.msk.bf16.vlgmr.msrb.gmra.mxu0 %vm720_vm2, %v790_v28  ;;  %v1790_v28 = vld [vmem:[#allocation4 + $0x44] sm:$0xf] }
 0x3e6   : > { %v902_v29 = vpop.xlane.xlu1 %901 }
 0x3e7   : > { %1881 = vrcp.f32 %v902_v29  ;;  %v1655_v29 = vor.u32 %v1791_v27, %v1654_v25 }
 0x3e8   : > { %1883 = vrcp.f32 %v2005_v61  ;;  %v1812_v61 = vld [vmem:[#allocation6 + $0x70] sm:$0xff] }
 0x3ed   : > { %v1882_v26 = vpop.eup %1881 }
 0x3ee   : > { %v904_v30 = vmul.f32 %v1882_v26, %v1876_v14  ;;  %v1884_v4 = vpop.eup %1883  ;;  %v1795_v14 = vld [vmem:[#allocation4 + $0x64] sm:$0xf0]  ;;  %v1656_v26 = vld [vmem:[#allocation4 + $0x48] sm:$0xf0] }
 0x3ef   : > { %v1032_v5 = vmul.f32 128.0, %v1884_v4  ;;  %vm1036_vm5 = vweird.f32 %v1884_v4  ;;  %v1671_v16 = vor.u32 %v1795_v14, %v1670_v13  ;;  %v1862_v14 = vld [vmem:[%s2379_s5] ss:$0 sm:$0xff] }
 0x3f0   : > { %v905_v33 = vpack.c.bf16 %v904_v30, %v904_v30  ;;  %v1659_v30 = vor.u32 %v1790_v28, %v1656_v26 }
 0x3f1   : > { %v1033_v6 = vsub.f32 1.0, %v1032_v5  ;;  %1168 = vmatpush.bf16.msrb.mxu2 %v1671_v16  ;;  %v1801_v5 = vld [vmem:[#allocation6 + $0x18] sm:$0xff] }
 0x3f3   : > { %v1034_v7 = vmul.f32 %v1884_v4, %v1033_v6  ;;  %v1809_v6 = vld [vmem:[#allocation6 + $0x58] sm:$0xff] }
 0x3f5   : > { %v1035_v8 = vadd.f32 %v1884_v4, %v1034_v7  ;;  %1169 = vmatpush.bf16.msrb.mxu2 %v1663_v22  ;;  %v1807_v22 = vld [vmem:[#allocation6 + $0x48] sm:$0xff] }
 0x3f7   : > { %v2337_v9 = vsel %vm1036_vm5, %v1884_v4, %v1035_v8 }
 0x3f9   : > { %1170 = vmatpush.bf16.msrb.mxu2 %v1655_v29 }
 0x3fe   : > { %v907_v31 = vpop.permute.xlu1 %906 }
 0x3ff   : > { %v912_v32 = vsel %vm736_vm1, %v907_v31, 0  ;;  %v1646_v31 = vld [vmem:[#allocation4 + $0x30] sm:$0xf] }
 0x400   : > { %921 = vmatpush.bf16.msra.mxu0 %v912_v32  ;;  %v1789_v32 = vld [vmem:[#allocation4 + $0x34] sm:$0xf0] }
 0x403   : > { %1587 = vmatmul.msk.bf16.vlgmr.msra.gmra.mxu0 %vm720_vm2, %v905_v33  ;;  %v1788_v33 = vld [vmem:[#allocation4 + $0x34] sm:$0xf] }
 0x45d   : > { %v866_v34 = vpop.f32.mrf.mxu2 }
 0x460   : > { %v809_v35 = vpop.f32.mrf.mxu0 }
 0x461   : > { %928 = vrot.lane.b32.xlu2 %v809_v35, %s2004_s24  ;;  %v1648_v35 = vld [vmem:[#allocation4 + $0x38] sm:$0xf0] }
 0x465   : > { %v868_v36 = vpop.f32.mrf.mxu2 }
 0x466   : > { %v1651_v36 = vor.u32 %v1788_v33, %v1648_v35 }
 0x468   : > { %v811_v37 = vpop.f32.mrf.mxu0 }
 0x469   : > { %932 = vrot.lane.b32.xlu2 %v866_v34, %s2002_s21  ;;  %v1647_v34 = vor.u32 %v1789_v32, %v1646_v31  ;;  %v1638_v37 = vld [vmem:[#allocation4 + $0x20] sm:$0xf] }
 0x46b   : > { %1171 = vmatpush.bf16.msrb.mxu2 %v1647_v34 }
 0x480   : > { %v923_v38 = vpop.f32.mrf.mxu0 }
 0x481   : > { %936 = vrot.lane.b32.xlu0 %v923_v38, %s2003_s23  ;;  %v1787_v38 = vld [vmem:[#allocation4 + $0x24] sm:$0xf0] }
 0x482   : > { %v1639_v40 = vor.u32 %v1787_v38, %v1638_v37  ;;  %v1864_v37 = vld [vmem:[%s2384_s10] ss:$0 sm:$0xff] }
 0x484   : > { %1172 = vmatpush.bf16.msrb.mxu2 %v1639_v40 }
 0x488   : > { %v925_v39 = vpop.f32.mrf.mxu0  ;;  %1173 = vmatpush.bf16.msrb.mxu2 %v1631_v46 }
 0x489   : > { %v1786_v39 = vld [vmem:[#allocation4 + $0x24] sm:$0xf] }
 0x48a   : > { %v1643_v42 = vor.u32 %v1786_v39, %v1640_v41 }
 0x4bb   : > { %v929_v48 = vpop.permute.xlu2 %928 }
 0x4bc   : > { %v939_v51 = vsel %vm699_vm0, %v2308_v50, %v929_v48  ;;  %v1796_v50 = vld [vmem:[#allocation4 + $0x74] sm:$0xf]  ;;  %v1622_v48 = vld [vmem:[#allocation4] sm:$0xf] }
 0x4bd   : > { %v1683_v3 = vor.u32 %v1796_v50, %v1680_v2  ;;  %v1811_v50 = vld [vmem:[#allocation6 + $0x68] sm:$0xff]  ;;  %v1810_v2 = vld [vmem:[#allocation6 + $0x60] sm:$0xff] }
 0x4bf   : > { %1180 = vmatpush.bf16.msra.mxu3 %v1683_v3 }
 0x4c3   : > { %v933_v49 = vpop.permute.xlu2 %932  ;;  %1181 = vmatpush.bf16.msra.mxu3 %v1675_v18 }
 0x4c4   : > { %v941_v52 = vsel %vm940_vm3, %v939_v51, %v933_v49  ;;  %v1783_v49 = vld [vmem:[#allocation4 + $0x4] sm:$0xf0]  ;;  %v1635_v51 = vor.u32 %v1784_v45, %v1632_v47 }
 0x4c7   : > { %1182 = vmatpush.bf16.msra.mxu3 %v1667_v24  ;;  %v1806_v24 = vld [vmem:[#allocation6 + $0x40] sm:$0xff] }
 0x4cb   : > { %1183 = vmatpush.bf16.msra.mxu3 %v1659_v30 }
 0x4cf   : > { %1184 = vmatpush.bf16.msra.mxu3 %v1651_v36 }
 0x4d3   : > { %1185 = vmatpush.bf16.msra.mxu3 %v1643_v42 }
 0x4d7   : > { %1186 = vmatpush.bf16.msra.mxu3 %v1635_v51 }
 0x4f3   : > { %v937_v53 = vpop.permute.xlu0 %936 }
 0x4f4   : > { %v943_v54 = vsel %vm942_vm4, %v941_v52, %v937_v53  ;;  %v1782_v52 = vld [vmem:[#allocation4 + $0x4] sm:$0xf]  ;;  %v1624_v53 = vld [vmem:[#allocation4 + $0x8] sm:$0xf0] }
 0x4f5   : > { %v944_v55 = vpack.c.bf16 %v943_v54, %v943_v54  ;;  %v1623_v54 = vor.u32 %v1783_v49, %v1622_v48 }
 0x4f7   : > { %1021 = vmatmul.bf16.vlgmr.msrb.gmra.mxu1 %v944_v55  ;;  %v1627_v55 = vor.u32 %v1782_v52, %v1624_v53  ;;  %1174 = vmatpush.bf16.msrb.mxu2 %v1623_v54 }
 0x4f9   : > { %1187 = vmatpush.bf16.msra.mxu3 %v1627_v55 }
 0x574   : > { %v1022_v57 = vpop.f32.mrf.mxu1 }
 0x575   : > { %v1023_v58 = vadd.f32 %v1861_v56, %v1022_v57  ;;  %v1805_v56 = vld [vmem:[#allocation6 + $0x38] sm:$0xff] }
 0x576   : > { %v1813_v57 = vld [vmem:[#allocation6 + $0x78] sm:$0xff]  ;;  %1329 = vmatpush.bf16.msrb.mxu0 %v1805_v56 }
 0x577   : > { %v1026_v59 = vadd.f32 %v1023_v58, %v2262_v62  ;;  %1342 = vmatpush.bf16.msra.mxu1 %v1813_v57 }
 0x579   : > { %1029 = vadd.xlane.f32.xlu2 %v1026_v59 }
 0x57b   : > { %1343 = vmatpush.bf16.msra.mxu1 %v1812_v61 }
 0x57c   : > { %v1024_v60 = vpop.f32.mrf.mxu1 }
 0x57d   : > { %v1804_v60 = vld [vmem:[#allocation6 + $0x30] sm:$0xff] }
 0x57e   : > { %1330 = vmatpush.bf16.msrb.mxu0 %v1804_v60 }
 0x57f   : > { %1344 = vmatpush.bf16.msra.mxu1 %v1811_v50 }
 0x582   : > { %1331 = vmatpush.bf16.msrb.mxu0 %v1803_v0 }
 0x583   : > { %1345 = vmatpush.bf16.msra.mxu1 %v1810_v2 }
 0x586   : > { %1332 = vmatpush.bf16.msrb.mxu0 %v1802_v1 }
 0x587   : > { %1346 = vmatpush.bf16.msra.mxu1 %v1809_v6 }
 0x58a   : > { %1333 = vmatpush.bf16.msrb.mxu0 %v1801_v5 }
 0x5ec   : > { %v1030_v62 = vpop.xlane.xlu2 %1029 }
 0x5ed   : > { %v1038_v10 = vmul.f32 %v2337_v9, %v1030_v62  ;;  %v1800_v62 = vld [vmem:[#allocation6 + $0x10] sm:$0xff] }
 0x5ee   : > { %1334 = vmatpush.bf16.msrb.mxu0 %v1800_v62 }
 0x5ef   : > { %v2340_v11 = vsub.f32 %v1026_v59, %v1038_v10  ;;  %v1808_v10 = vld [vmem:[#allocation6 + $0x50] sm:$0xff] }
 0x5f0   : > { %1347 = vmatpush.bf16.msra.mxu1 %v1808_v10 }
 0x5f1   : > { %v1040_v12 = vmul.f32 %v2340_v11, %v2340_v11 }
 0x5f2   : > { %1335 = vmatpush.bf16.msrb.mxu0 %v1799_v21 }
 0x5f3   : > { %1041 = vadd.xlane.f32.xlu0 %v1040_v12 }
 0x5f4   : > { %1348 = vmatpush.bf16.msra.mxu1 %v1807_v22 }
 0x5f6   : > { %1336 = vmatpush.bf16.msrb.mxu0 %v1798_v23 }
 0x5f8   : > { %1349 = vmatpush.bf16.msra.mxu1 %v1806_v24 }
 0x666   : > { %v1042_v58 = vpop.xlane.xlu0 %1041 }
 0x667   : > { %v1043_v59 = vmul.f32 %v1042_v58, %v2337_v9 }
 0x669   : > { %v1044_v63 = vadd.f32 1e-05, %v1043_v59  ;;  %v1865_v59 = vld [vmem:[%s2385_s11] ss:$0 sm:$0xff] }
 0x66b   : > { %1885 = vrsqrt.f32 %v1044_v63  ;;  %vm1051_vm7 = vweird.f32 %v1044_v63 }
 0x671   : > { %v1886_v3 = vpop.eup %1885 }
 0x672   : > { %v1046_v4 = vmul.f32 %v1886_v3, %v1044_v63  ;;  %vm1052_vm6 = vweird.f32 %v1886_v3 }
 0x673   : > { %vm1053_vm8 = vmor %vm1051_vm7, %vm1052_vm6 }
 0x674   : > { %v1047_v7 = vmul.f32 %v1886_v3, %v1046_v4 }
 0x676   : > { %v1048_v8 = vmul.f32 0.5, %v1047_v7 }
 0x678   : > { %v1049_v12 = vsub.f32 1.5, %v1048_v8 }
 0x67a   : > { %v1050_v13 = vmul.f32 %v1886_v3, %v1049_v12 }
 0x67c   : > { %v1054_v15 = vsel %vm1053_vm8, %v1886_v3, %v1050_v13 }
 0x67d   : > { %v1055_v16 = vmul.f32 %v1054_v15, %v2340_v11  ;;  %v1081_v11 = vld [vmem:[%s2382_s8] sm:$0x3] }
 0x67e   : > { %v1083_v25 = vperm.slane %v1081_v11, 0  ;;  %v1084_v27 = vperm.slane %v1081_v11, 1 }
 0x67f   : > { %v1059_v18 = vmul.f32 %v1862_v14, %v1055_v16 }
 0x681   : > { %v1063_v19 = vadd.f32 %v1863_v17, %v1059_v18 }
 0x683   : > { %v1064_v20 = vpack.c.bf16 %v1063_v19, %v1063_v19 }
 0x685   : > { %1175 = vmatmul.bf16.vlgmr.msrb.gmra.mxu2 %v1064_v20  ;;  %1188 = vmatmul.bf16.vlgmr.msra.gmra.mxu3 %v1064_v20 }
 0x708   : > { %v1176_v28 = vpop.f32.mrf.mxu2  ;;  %v1189_v29 = vpop.f32.mrf.mxu3 }
 0x709   : > { %v1177_v26 = vadd.f32 %v1176_v28, %v1083_v25  ;;  %v1190_v30 = vadd.f32 %v1189_v29, %v1084_v27 }
 0x70b   : > { %v1193_v31 = vmax.f32 %v1177_v26, 0.0  ;;  %v1194_v32 = vmax.f32 %v1190_v30, 0.0 }
 0x70d   : > { %v1195_v33 = vpack.c.bf16 %v1193_v31, %v1193_v31  ;;  %v1196_v34 = vpack.c.bf16 %v1194_v32, %v1194_v32 }
 0x70f   : > { %1337 = vmatmul.bf16.vlgmr.msrb.gmra.mxu0 %v1195_v33  ;;  %1350 = vmatmul.bf16.vlgmr.msra.gmra.mxu1 %v1196_v34 }
 0x710   : > { %v1178_v35 = vpop.f32.mrf.mxu2  ;;  %v1191_v36 = vpop.f32.mrf.mxu3 }
 0x78c   : > { %v1338_v38 = vpop.f32.mrf.mxu0  ;;  %v1351_v39 = vpop.f32.mrf.mxu1 }
 0x78d   : > { %v1339_v40 = vadd.f32 %v1864_v37, %v1338_v38 }
 0x78f   : > { %v1352_v41 = vadd.f32 %v1351_v39, %v1339_v40 }
 0x791   : > { %v1355_v42 = vadd.f32 %v1352_v41, %v1063_v19 }
 0x793   : > { %1358 = vadd.xlane.f32.xlu1 %v1355_v42 }
 0x794   : > { %v1340_v43 = vpop.f32.mrf.mxu0  ;;  %v1353_v44 = vpop.f32.mrf.mxu1 }
 0x806   : > { %v1359_v45 = vpop.xlane.xlu1 %1358 }
 0x807   : > { %v1360_v46 = vmul.f32 %v1359_v45, %v2337_v9 }
 0x809   : > { %v1361_v47 = vsub.f32 %v1355_v42, %v1360_v46 }
 0x80b   : > { %v1362_v48 = vmul.f32 %v1361_v47, %v1361_v47 }
 0x80d   : > { %1363 = vadd.xlane.f32.xlu2 %v1362_v48 }
 0x880   : > { %v1364_v49 = vpop.xlane.xlu2 %1363 }
 0x881   : > { %v1365_v51 = vmul.f32 %v1364_v49, %v2337_v9  ;;  %v1866_v9 = vld [vmem:[%s2386_s12] ss:$0 sm:$0xff] }
 0x883   : > { %v1366_v52 = vadd.f32 1e-05, %v1365_v51 }
 0x885   : > { %1887 = vrsqrt.f32 %v1366_v52  ;;  %vm1373_vm10 = vweird.f32 %v1366_v52 }
 0x88b   : > { %v1888_v53 = vpop.eup %1887 }
 0x88c   : > { %v1368_v54 = vmul.f32 %v1888_v53, %v1366_v52  ;;  %vm1374_vm9 = vweird.f32 %v1888_v53 }
 0x88d   : > { %vm1375_vm11 = vmor %vm1373_vm10, %vm1374_vm9 }
 0x88e   : > { %v1369_v55 = vmul.f32 %v1888_v53, %v1368_v54 }
 0x890   : > { %v1370_v56 = vmul.f32 0.5, %v1369_v55 }
 0x892   : > { %v1371_v57 = vsub.f32 1.5, %v1370_v56 }
 0x894   : > { %v1372_v58 = vmul.f32 %v1888_v53, %v1371_v57 }
 0x896   : > { %v1376_v60 = vsel %vm1375_vm11, %v1888_v53, %v1372_v58 }
 0x897   : > { %v1377_v61 = vmul.f32 %v1376_v60, %v1361_v47 }
 0x899   : > { %v1381_v63 = vmul.f32 %v1865_v59, %v1377_v61 }
 0x89b   : > { %v1385_v0 = vadd.f32 %v1866_v9, %v1381_v63 }
 0x89d   : > { %1386 = vst [vmem:[%s485_s27] sm:$0xff] %v1385_v0 }
 0x89e PF: > { %s25_s25 = sadd.s32 1, %s1993_s25  }
 0x89f   : > { %p22_p7 = scmp.ge.s32.totalorder %s25_s25, 4  }
 0x8a1   :  { %24 = sbr.rel (!%p22_p7) target bundleno = 4 (0x4), region = 115 }
 0x8a6   :  { %1406 = vsyncpa [#allocation3], 1 }
 0x8a7   :  { %1408 = vsyncpa [#allocation3 + $0x1], 1 }
 0x8a8   :  { %1409 = vsyncpa [#allocation5], 1 }

// kernel: transformer_model_forward.9
= control target key start
LH: loop header
LB: loop body
LE: loop exit
PB: predicated region body
PF: predicated region fallthrough
CT: control target
= control target key end

     0   :  { %s4432_s0 = inlined_call_operand.vmem [shape: f32[2,8,128], index: 0, kind: input, shape index: {}]   ;;  %s4433_s1 = inlined_call_operand.vmem [shape: f32[2,8,128], index: 1, kind: input, shape index: {}]   ;;  %s4434_s2 = inlined_call_operand.vmem [shape: bf16[128,384], index: 2, kind: input, shape index: {}]   ;;  %s4435_s3 = inlined_call_operand.vmem [shape: f32[1,384], index: 3, kind: input, shape index: {}]   ;;  %s4436_s4 = inlined_call_operand.hbm [shape: bf16[128,128], index: 4, kind: input, shape index: {}]   ;;  %s4437_s5 = inlined_call_operand.hbm [shape: f32[1,128], index: 5, kind: input, shape index: {}]   ;;  %s4438_s6 = inlined_call_operand.hbm [shape: f32[1,128], index: 6, kind: input, shape index: {}]   ;;  %s4439_s7 = inlined_call_operand.hbm [shape: f32[1,128], index: 7, kind: input, shape index: {}]   ;;  %s4440_s8 = inlined_call_operand.hbm [shape: bf16[128,384], index: 8, kind: input, shape index: {}]   ;;  %s4441_s9 = inlined_call_operand.hbm [shape: f32[1,384], index: 9, kind: input, shape index: {}]   ;;  %s4442_s10 = inlined_call_operand.hbm [shape: bf16[128,128], index: 10, kind: input, shape index: {}]   ;;  %s4443_s11 = inlined_call_operand.hbm [shape: f32[1,128], index: 11, kind: input, shape index: {}]   ;;  %s4444_s12 = inlined_call_operand.hbm [shape: f32[1,128], index: 12, kind: input, shape index: {}]   ;;  %s4445_s13 = inlined_call_operand.hbm [shape: f32[1,128], index: 13, kind: input, shape index: {}]   ;;  %s4446_s14 = inlined_call_operand.hbm [shape: bf16[128,256], index: 14, kind: input, shape index: {}]   ;;  %s4447_s15 = inlined_call_operand.hbm [shape: f32[1,256], index: 15, kind: input, shape index: {}]   ;;  %s4448_s16 = inlined_call_operand.hbm [shape: bf16[256,128], index: 16, kind: input, shape index: {}]   ;;  %s4449_s17 = inlined_call_operand.hbm [shape: f32[1,128], index: 17, kind: input, shape index: {}]   ;;  %s4450_s18 = inlined_call_operand.hbm [shape: f32[1,128], index: 18, kind: input, shape index: {}]   ;;  %s4451_s19 = inlined_call_operand.hbm [shape: f32[1,128], index: 19, kind: input, shape index: {}]   ;;  %s4452_s20 = inlined_call_operand.vmem [shape: f32[2,8,128], index: 20, kind: output, shape index: {}]  }
   0x1   :  { %4457 = sst [smem:[#allocation36_spill]] %s4432_s0 }
   0x2   :  { %4458 = sst [smem:[#allocation37_spill]] %s4433_s1 }
   0x3   :  { %4459 = sst [smem:[#allocation38_spill]] %s4434_s2 }
   0x4   :  { %4460 = sst [smem:[#allocation39_spill]] %s4435_s3 }
   0x5   :  { %4461 = sst [smem:[#allocation40_spill]] %s4436_s4 }
   0x6   :  { %4462 = sst [smem:[#allocation41_spill]] %s4437_s5 }
   0x7   :  { %4463 = sst [smem:[#allocation42_spill]] %s4439_s7 }
   0x8   :  { %4464 = sst [smem:[#allocation43_spill]] %s4441_s9 }
   0x9   :  { %4465 = sst [smem:[#allocation44_spill]] %s4443_s11 }
   0xa   :  { %25 = vsyncpa [#allocation3], 0 }
   0xb   :  { %26 = vsyncpa [#allocation5], 0 }
   0xc   :  { %27 = vsyncpa [#allocation8], 0 }
   0xd   :  { %28 = vsyncpa [#allocation11], 0 }
   0xe   :  { %29 = vsyncpa [#allocation14], 0 }
   0xf   :  { %30 = vsyncpa [#allocation17], 0 }
  0x10   :  { %31 = vsyncpa [#allocation20], 0 }
  0x11   :  { %32 = vsyncpa [#allocation23], 0 }
  0x12   :  { %33 = vsyncpa [#allocation26], 0  ;;  %s3996_s1 = smov 0  }
  0x13 LB: > { %s4466_s5 = sld [smem:[#allocation41_spill]]  ;;  %s4005_s2 = sadd.s32 4294967295, %s3863_s1   ;;  %s3863_s1 = sphi %s3996_s1, %s39_s1  }
  0x14   : > { %p2576_p0 = scmp.ge.s32.totalorder %s3863_s1, 1  ;;  %p500_p1 = scmp.lt.s32.totalorder %s3863_s1, 3 }
  0x15   : > { %p3225_p2 = scmp.eq.s32.totalorder %s4005_s2, 0  ;;  %s3865_s3 = smov [#allocation4]  }
  0x16   : > { %p4010_p3 = pnand %p2576_p0, %p500_p1  ;;  %s534_s26 = sshll.u32 %s3865_s3, 4  ;;  %s535_s26 = int_to_ptr.vmem [resolvable:$true] %s534_s26 }
  0x17   : > { %s4468_s7 = sld [smem:[#allocation42_spill]]  ;;  %s3866_s22 = smov [#allocation7]  }
  0x18   : > { %p3176_p4 = pneg %p4010_p3  ;;  %s4469_s9 = sld [smem:[#allocation43_spill]] }
  0x19   : > { %s532_s24 = sshll.u32 %s4466_s5, 4  ;;  %s558_s23 = sshll.u32 %s3866_s22, 4  ;;  %s533_s24 = int_to_ptr.hbm [resolvable:$true] %s532_s24  ;;  %s559_s23 = int_to_ptr.vmem [resolvable:$true] %s558_s23 }
  0x1a   : > { %p4024_p5 = pnand %p3225_p2, %p3176_p4  ;;  %s3867_s3 = smov [#allocation10]  }
  0x1b   : > { %s584_s27 = sshll.u32 %s3867_s3, 4  ;;  %s4471_s11 = sld [smem:[#allocation44_spill]]  ;;  %s585_s27 = int_to_ptr.vmem [resolvable:$true] %s584_s27 }
  0x1c   : > { %3182 = dma.hbm_to_vmem [thread:$0]  (!%p4024_p5), %s533_s24, 16, %s535_s26, [#allocation5]  }
  0x1d   : > { %s556_s4 = sshll.u32 %s4468_s7, 4  ;;  %s632_s7 = sshll.u32 %s4445_s13, 4  ;;  %s557_s4 = int_to_ptr.hbm [resolvable:$true] %s556_s4  ;;  %s633_s7 = int_to_ptr.hbm [resolvable:$true] %s632_s7 }
  0x1e   : > { %s582_s0 = sshll.u32 %s4469_s9, 4  ;;  %s3868_s9 = smov [#allocation13]   ;;  %s583_s0 = int_to_ptr.hbm [resolvable:$true] %s582_s0 }
  0x1f   : > { %3188 = dma.hbm_to_vmem [thread:$0]  (!%p4024_p5), %s557_s4, 16, %s559_s23, [#allocation8]  }
  0x20   : > { %3194 = dma.hbm_to_vmem [thread:$0]  (!%p4024_p5), %s583_s0, 48, %s585_s27, [#allocation11]  }
  0x21   : > { %s608_s30 = sshll.u32 %s4471_s11, 4  ;;  %s610_s24 = sshll.u32 %s3868_s9, 4  ;;  %s609_s30 = int_to_ptr.hbm [resolvable:$true] %s608_s30  ;;  %s611_s24 = int_to_ptr.vmem [resolvable:$true] %s610_s24 }
  0x22   : > { %3200 = dma.hbm_to_vmem [thread:$0]  (!%p4024_p5), %s609_s30, 16, %s611_s24, [#allocation14]  }
  0x23   : > { %s3869_s26 = smov [#allocation16]   ;;  %s658_s28 = sshll.u32 %s4447_s15, 4  ;;  %s659_s28 = int_to_ptr.hbm [resolvable:$true] %s658_s28 }
  0x24   : > { %s634_s4 = sshll.u32 %s3869_s26, 4  ;;  %s684_s27 = sshll.u32 %s4449_s17, 4  ;;  %s635_s4 = int_to_ptr.vmem [resolvable:$true] %s634_s4  ;;  %s685_s27 = int_to_ptr.hbm [resolvable:$true] %s684_s27 }
  0x25   : > { %3206 = dma.hbm_to_vmem [thread:$0]  (!%p4024_p5), %s633_s7, 16, %s635_s4, [#allocation17]  }
  0x26   : > { %s3870_s9 = smov [#allocation19]   ;;  %s3871_s30 = smov [#allocation22]  }
  0x27   : > { %s660_s29 = sshll.u32 %s3870_s9, 4  ;;  %s686_s22 = sshll.u32 %s3871_s30, 4  ;;  %s661_s29 = int_to_ptr.vmem [resolvable:$true] %s660_s29  ;;  %s687_s22 = int_to_ptr.vmem [resolvable:$true] %s686_s22 }
  0x28   : > { %3212 = dma.hbm_to_vmem [thread:$0]  (!%p4024_p5), %s659_s28, 32, %s661_s29, [#allocation20]  }
  0x29   : > { %s4472_s23 = sld [smem:[#allocation40_spill]]  ;;  %s3872_s7 = smov [#allocation2]  }
  0x2a   : > { %3218 = dma.hbm_to_vmem [thread:$0]  (!%p4024_p5), %s685_s27, 16, %s687_s22, [#allocation23]  }
  0x2b   : > { %s519_s4 = sshll.u32 %s3872_s7, 4  ;;  %s544_s9 = sshll.u32 %s4438_s6, 4  ;;  %s520_s4 = int_to_ptr.vmem [resolvable:$true] %s519_s4  ;;  %s545_s9 = int_to_ptr.hbm [resolvable:$true] %s544_s9 }
  0x2c   : > { %s4454_s11 = smov 64   ;;  %s4456_s28 = smov 4  }
  0x2d   : > { %s3875_s29 = smov [#allocation6]   ;;  %s567_s22 = sshll.u32 %s4440_s8, 4  ;;  %s568_s22 = int_to_ptr.hbm [resolvable:$true] %s567_s22 }
  0x2e   : > { %s546_s30 = sshll.u32 %s3875_s29, 4  ;;  %s3876_s26 = smov [#allocation9]   ;;  %s547_s30 = int_to_ptr.vmem [resolvable:$true] %s546_s30 }
  0x2f   : > { %s517_s3 = sshll.u32 %s4472_s23, 4  ;;  %s569_s23 = sshll.u32 %s3876_s26, 4  ;;  %s518_s3 = int_to_ptr.hbm [resolvable:$true] %s517_s3  ;;  %s570_s23 = int_to_ptr.vmem [resolvable:$true] %s569_s23 }
  0x30   : > { %3179 = dma.hbm_to_vmem [thread:$0]  (!%p4024_p5), %s518_s3, 1024, %s520_s4, [#allocation3], %s4454_s11, %s4454_s11, %s4456_s28  }
  0x31   : > { %3185 = dma.hbm_to_vmem [thread:$0]  (!%p4024_p5), %s545_s9, 16, %s547_s30, [#allocation5]  }
  0x32   : > { %s593_s0 = sshll.u32 %s4442_s10, 4  ;;  %s3877_s3 = smov 192   ;;  %s594_s0 = int_to_ptr.hbm [resolvable:$true] %s593_s0 }
  0x33   : > { %s3878_s4 = smov 12   ;;  %s3879_s29 = smov [#allocation12]  }
  0x34   : > { %3191 = dma.hbm_to_vmem [thread:$0]  (!%p4024_p5), %s568_s22, 3072, %s570_s23, [#allocation8], %s3877_s3, %s3877_s3, %s3878_s4  }
  0x35   : > { %s595_s24 = sshll.u32 %s3879_s29, 4  ;;  %s620_s9 = sshll.u32 %s4444_s12, 4  ;;  %s596_s24 = int_to_ptr.vmem [resolvable:$true] %s595_s24  ;;  %s621_s9 = int_to_ptr.hbm [resolvable:$true] %s620_s9 }
  0x36   : > { %s4473_s30 = smov 64   ;;  %s643_s5 = sshll.u32 %s4446_s14, 4  ;;  %s644_s5 = int_to_ptr.hbm [resolvable:$true] %s643_s5 }
  0x37   : > { %3197 = dma.hbm_to_vmem [thread:$0]  (!%p4024_p5), %s594_s0, 1024, %s596_s24, [#allocation11], %s4473_s30, %s4473_s30, %s4456_s28  }
  0x38   : > { %s3880_s22 = smov [#allocation15]   ;;  %s3881_s11 = smov [#allocation18]  }
  0x39   : > { %s622_s23 = sshll.u32 %s3880_s22, 4  ;;  %s645_s3 = sshll.u32 %s3881_s11, 4  ;;  %s623_s23 = int_to_ptr.vmem [resolvable:$true] %s622_s23  ;;  %s646_s3 = int_to_ptr.vmem [resolvable:$true] %s645_s3 }
  0x3a   : > { %3203 = dma.hbm_to_vmem [thread:$0]  (!%p4024_p5), %s621_s9, 16, %s623_s23, [#allocation14]  }
  0x3b   : > { %s3882_s4 = smov 128   ;;  %s3883_s29 = smov 8  }
  0x3c   : > { %3209 = dma.hbm_to_vmem [thread:$0]  (!%p4024_p5), %s644_s5, 2048, %s646_s3, [#allocation17], %s3882_s4, %s3882_s4, %s3883_s29  }
  0x3d   : > { %s669_s27 = sshll.u32 %s4448_s16, 4  ;;  %s3884_s26 = smov [#allocation21]   ;;  %s670_s27 = int_to_ptr.hbm [resolvable:$true] %s669_s27 }
  0x3e   : > { %s671_s7 = sshll.u32 %s3884_s26, 4  ;;  %s696_s9 = sshll.u32 %s4450_s18, 4  ;;  %s672_s7 = int_to_ptr.vmem [resolvable:$true] %s671_s7  ;;  %s697_s9 = int_to_ptr.hbm [resolvable:$true] %s696_s9 }
  0x3f   : > { %s4474_s23 = smov 4   ;;  %s3885_s5 = smov [#allocation24]  }
  0x40   : > { %3215 = dma.hbm_to_vmem [thread:$0]  (!%p4024_p5), %s670_s27, 2048, %s672_s7, [#allocation20], %s4473_s30, %s4473_s30, %s4474_s23  }
  0x41   : > { %s698_s11 = sshll.u32 %s3885_s5, 4  ;;  %s708_s29 = sshll.u32 %s4451_s19, 4  ;;  %s699_s11 = int_to_ptr.vmem [resolvable:$true] %s698_s11  ;;  %s709_s29 = int_to_ptr.hbm [resolvable:$true] %s708_s29 }
  0x42   : > { %3221 = dma.hbm_to_vmem [thread:$0]  (!%p4024_p5), %s697_s9, 16, %s699_s11, [#allocation23]  }
  0x43   : > { %s3886_s0 = smov [#allocation25]   ;;  %737 = sbr.rel (%p4010_p3) target bundleno = 3603 (0xe13), region = 100 }
  0x44   : > { %s710_s24 = sshll.u32 %s3886_s0, 4  ;;  %s711_s24 = int_to_ptr.vmem [resolvable:$true] %s710_s24 }
  0x45   : > { %3224 = dma.hbm_to_vmem [thread:$0]  (!%p4024_p5), %s709_s29, 16, %s711_s24, [#allocation26]  }
  0x48   : > { %3826 = dma.done.wait (%p3225_p2), [#allocation3], 1024  }
  0x49   : > { %3828 = vsyncadd (%p3225_p2), [#allocation3], 4294966272 }
  0x4a   : > { %3830 = dma.done.wait (%p3225_p2), [#allocation5], 32  }
  0x4b   : > { %3832 = vsyncadd (%p3225_p2), [#allocation5], 4294967264 }
  0x4c   : > { %3834 = dma.done.wait (%p3225_p2), [#allocation8], 3088  }
  0x4d   : > { %3836 = vsyncadd (%p3225_p2), [#allocation8], 4294964208 }
  0x4e   : > { %3838 = dma.done.wait (%p3225_p2), [#allocation11], 1072  }
  0x4f   : > { %3840 = vsyncadd (%p3225_p2), [#allocation11], 4294966224 }
  0x50   : > { %3842 = dma.done.wait (%p3225_p2), [#allocation14], 32  }
  0x51   : > { %3844 = vsyncadd (%p3225_p2), [#allocation14], 4294967264 }
  0x52   : > { %3846 = dma.done.wait (%p3225_p2), [#allocation17], 2064  }
  0x53   : > { %3848 = vsyncadd (%p3225_p2), [#allocation17], 4294965232 }
  0x54   : > { %3850 = dma.done.wait (%p3225_p2), [#allocation20], 2080  }
  0x55   : > { %3852 = vsyncadd (%p3225_p2), [#allocation20], 4294965216 }
  0x56   : > { %3854 = dma.done.wait (%p3225_p2), [#allocation23], 32  }
  0x57   : > { %3856 = vsyncadd (%p3225_p2), [#allocation23], 4294967264 }
  0x58   : > { %3858 = dma.done.wait (%p3225_p2), [#allocation26], 16  }
  0x59   : > { %3860 = vsyncadd (%p3225_p2), [#allocation26], 4294967280  ;;  %s4475_s28 = sld [smem:[#allocation38_spill]]  ;;  %p873_p6 = scmp.lt.s32.totalorder %s4005_s2, 1  ;;  %vm1099_vm0 = vcmask 261120   ;;  %vm1136_vm1 = vcmask 1043456  }
  0x5a   : > { %s4476_s30 = sld [smem:[#allocation36_spill]]  ;;  %s3887_s9 = smov 64   ;;  %vm1120_vm2 = vcmask 64512   ;;  %vm1340_vm3 = vcmask 523264   ;;  %vm1342_vm4 = vcmask 785408  }
  0x5b   : > { %s4480_s2 = smov (!%p873_p6, %s4005_s2), 1  ;;  %s4477_s22 = sld [smem:[#allocation39_spill]] }
  0x5c   : > { %s4258_s23 = sshll.u32 %s4480_s2, 3  ;;  %s3888_s5 = smov 96  }
  0x5d   : > { %s3889_s11 = smov 32   ;;  %s4478_s29 = sld [smem:[#allocation37_spill]] }
  0x5e   : > { %s884_s25 = scalar_lea.vmem %s4452_s20, %s4258_s23 }
  0x5f   : > { %v2700_v0 = vld [vmem:[%s4475_s28 + $0xa8] sm:$0xf]  ;;  %v3038_v1 = vld [vmem:[%s4475_s28 + $0xb0] sm:$0xf0]  ;;  %v3037_v2 = vld [vmem:[%s4475_s28 + $0xac] sm:$0xf] }
  0x60   : > { %v2701_v3 = vor.u32 %v3038_v1, %v2700_v0  ;;  %v2702_v4 = vld [vmem:[%s4475_s28 + $0xb4] sm:$0xf0]  ;;  %v2688_v5 = vld [vmem:[%s4475_s28 + $0x90] sm:$0xf]  ;;  %v3035_v6 = vld [vmem:[%s4475_s28 + $0x98] sm:$0xf0]  ;;  %s876_s27 = scalar_lea.vmem %s4476_s30, %s4258_s23 }
  0x61   : > { %v2705_v7 = vor.u32 %v3037_v2, %v2702_v4  ;;  %v3034_v8 = vld [vmem:[%s4475_s28 + $0x94] sm:$0xf]  ;;  %v2690_v9 = vld [vmem:[%s4475_s28 + $0x9c] sm:$0xf0]  ;;  %v2689_v10 = vor.u32 %v3035_v6, %v2688_v5  ;;  %v2676_v12 = vld [vmem:[%s4475_s28 + $0x78] sm:$0xf] }
  0x62   : > { %1057 = vmatpush.bf16.msra.mxu0 %v2701_v3  ;;  %v2693_v11 = vor.u32 %v3034_v8, %v2690_v9  ;;  %v3032_v13 = vld [vmem:[%s4475_s28 + $0x80] sm:$0xf0]  ;;  %v3031_v14 = vld [vmem:[%s4475_s28 + $0x7c] sm:$0xf]  ;;  %v2678_v15 = vld [vmem:[%s4475_s28 + $0x84] sm:$0xf0] }
  0x63   : > { %1070 = vmatpush.bf16.msra.mxu1 %v2705_v7  ;;  %v2677_v16 = vor.u32 %v3032_v13, %v2676_v12  ;;  %v2681_v17 = vor.u32 %v3031_v14, %v2678_v15  ;;  %v2664_v18 = vld [vmem:[%s4475_s28 + $0x60] sm:$0xf]  ;;  %v3029_v19 = vld [vmem:[%s4475_s28 + $0x68] sm:$0xf0]  ;;  %v3028_v20 = vld [vmem:[%s4475_s28 + $0x64] sm:$0xf]  ;;  %s880_s0 = scalar_lea.vmem %s4478_s29, %s4258_s23 }
  0x64   : > { %v2666_v21 = vld [vmem:[%s4475_s28 + $0x6c] sm:$0xf0]  ;;  %v2665_v22 = vor.u32 %v3029_v19, %v2664_v18  ;;  %v3039_v24 = vld [vmem:[%s4475_s28 + $0xb8] sm:$0xf0]  ;;  %v2696_v25 = vld [vmem:[%s4475_s28 + $0x98] sm:$0xf] }
  0x65   : > { %v2708_v23 = vld [vmem:[%s4475_s28 + $0xb0] sm:$0xf]  ;;  %v2669_v26 = vor.u32 %v3028_v20, %v2666_v21  ;;  %v2652_v27 = vld [vmem:[%s4475_s28 + $0x48] sm:$0xf]  ;;  %v3026_v28 = vld [vmem:[%s4475_s28 + $0x50] sm:$0xf0] }
  0x66   : > { %1058 = vmatpush.bf16.msra.mxu0 %v2689_v10  ;;  %v2709_v29 = vor.u32 %v3039_v24, %v2708_v23  ;;  %v3036_v30 = vld [vmem:[%s4475_s28 + $0xa0] sm:$0xf0]  ;;  %v3025_v31 = vld [vmem:[%s4475_s28 + $0x4c] sm:$0xf]  ;;  %v2654_v32 = vld [vmem:[%s4475_s28 + $0x54] sm:$0xf0]  ;;  %v2653_v35 = vor.u32 %v3026_v28, %v2652_v27 }
  0x67   : > { %1071 = vmatpush.bf16.msra.mxu1 %v2693_v11  ;;  %v2640_v33 = vld [vmem:[%s4475_s28 + $0x30] sm:$0xf]  ;;  %v2697_v34 = vor.u32 %v3036_v30, %v2696_v25  ;;  %v3023_v36 = vld [vmem:[%s4475_s28 + $0x38] sm:$0xf0]  ;;  %v2684_v37 = vld [vmem:[%s4475_s28 + $0x80] sm:$0xf]  ;;  %v2657_v39 = vor.u32 %v3025_v31, %v2654_v32 }
  0x68   : > { %1083 = vmatpush.bf16.msra.mxu2 %v2709_v29  ;;  %v3033_v38 = vld [vmem:[%s4475_s28 + $0x88] sm:$0xf0]  ;;  %v3022_v40 = vld [vmem:[%s4475_s28 + $0x34] sm:$0xf]  ;;  %v2642_v41 = vld [vmem:[%s4475_s28 + $0x3c] sm:$0xf0]  ;;  %v2641_v45 = vor.u32 %v3023_v36, %v2640_v33 }
  0x69   : > { %v2672_v42 = vld [vmem:[%s4475_s28 + $0x68] sm:$0xf]  ;;  %v3030_v43 = vld [vmem:[%s4475_s28 + $0x70] sm:$0xf0]  ;;  %v2685_v44 = vor.u32 %v3033_v38, %v2684_v37  ;;  %v2645_v46 = vor.u32 %v3022_v40, %v2642_v41  ;;  %v2628_v47 = vld [vmem:[%s4475_s28 + $0x18] sm:$0xf] }
  0x6a   : > { %1059 = vmatpush.bf16.msra.mxu0 %v2677_v16  ;;  %v3020_v48 = vld [vmem:[%s4475_s28 + $0x20] sm:$0xf0]  ;;  %v3019_v49 = vld [vmem:[%s4475_s28 + $0x1c] sm:$0xf]  ;;  %v2630_v50 = vld [vmem:[%s4475_s28 + $0x24] sm:$0xf0]  ;;  %v2673_v51 = vor.u32 %v3030_v43, %v2672_v42 }
  0x6b   : > { %1072 = vmatpush.bf16.msra.mxu1 %v2681_v17  ;;  %v2629_v52 = vor.u32 %v3020_v48, %v2628_v47  ;;  %v2660_v53 = vld [vmem:[%s4475_s28 + $0x50] sm:$0xf]  ;;  %v3027_v54 = vld [vmem:[%s4475_s28 + $0x58] sm:$0xf0]  ;;  %v2633_v55 = vor.u32 %v3019_v49, %v2630_v50  ;;  %v2616_v56 = vld [vmem:[%s4475_s28] sm:$0xf] }
  0x6c   : > { %1084 = vmatpush.bf16.msra.mxu2 %v2697_v34  ;;  %v3017_v57 = vld [vmem:[%s4475_s28 + $0x8] sm:$0xf0]  ;;  %v3016_v58 = vld [vmem:[%s4475_s28 + $0x4] sm:$0xf]  ;;  %v2618_v59 = vld [vmem:[%s4475_s28 + $0xc] sm:$0xf0]  ;;  %v2661_v60 = vor.u32 %v3027_v54, %v2660_v53 }
  0x6d   : > { %v2617_v61 = vor.u32 %v3017_v57, %v2616_v56  ;;  %v4282_v62 = vld [vmem:[%s876_s27] sm:$0xff]  ;;  %v2648_v63 = vld [vmem:[%s4475_s28 + $0x38] sm:$0xf]  ;;  %v2621_v1 = vor.u32 %v3016_v58, %v2618_v59  ;;  %v3021_v5 = vld [vmem:[%s4475_s28 + $0x28] sm:$0xf0] }
  0x6e   : > { %1060 = vmatpush.bf16.msra.mxu0 %v2665_v22  ;;  %v3024_v0 = vld [vmem:[%s4475_s28 + $0x40] sm:$0xf0]  ;;  %v888_v2 = vpack.c.bf16 %v4282_v62, %v4282_v62  ;;  %v2636_v4 = vld [vmem:[%s4475_s28 + $0x20] sm:$0xf]  ;;  %v2624_v7 = vld [vmem:[%s4475_s28 + $0x8] sm:$0xf] }
  0x6f   : > { %1073 = vmatpush.bf16.msra.mxu1 %v2669_v26  ;;  %v2649_v3 = vor.u32 %v3024_v0, %v2648_v63  ;;  %v2637_v6 = vor.u32 %v3021_v5, %v2636_v4  ;;  %v3018_v8 = vld [vmem:[%s4475_s28 + $0x10] sm:$0xf0]  ;;  %v921_v10 = vld [vmem:[%s4477_s22] sm:$0x7] }
  0x70   : > { %1085 = vmatpush.bf16.msra.mxu2 %v2685_v44  ;;  %v2625_v9 = vor.u32 %v3018_v8, %v2624_v7  ;;  %v924_v11 = vperm.slane %v921_v10, 1  ;;  %v923_v14 = vperm.slane %v921_v10, 0  ;;  %v925_v23 = vperm.slane %v921_v10, 2 }
  0x72   : > { %1061 = vmatpush.bf16.msra.mxu0 %v2653_v35 }
  0x73   : > { %1074 = vmatpush.bf16.msra.mxu1 %v2657_v39 }
  0x74   : > { %1086 = vmatpush.bf16.msra.mxu2 %v2673_v51 }
  0x76   : > { %1062 = vmatpush.bf16.msra.mxu0 %v2641_v45 }
  0x77   : > { %1075 = vmatpush.bf16.msra.mxu1 %v2645_v46 }
  0x78   : > { %1087 = vmatpush.bf16.msra.mxu2 %v2661_v60 }
  0x7a   : > { %1063 = vmatpush.bf16.msra.mxu0 %v2629_v52 }
  0x7b   : > { %1076 = vmatpush.bf16.msra.mxu1 %v2633_v55 }
  0x7c   : > { %1088 = vmatpush.bf16.msra.mxu2 %v2649_v3 }
  0x7e   : > { %1064 = vmatpush.bf16.msra.mxu0 %v2617_v61 }
  0x7f   : > { %1077 = vmatpush.bf16.msra.mxu1 %v2621_v1 }
  0x80   : > { %1089 = vmatpush.bf16.msra.mxu2 %v2637_v6 }
  0x81   : > { %1065 = vmatmul.bf16.vlgmr.msra.gmra.mxu0 %v888_v2 }
  0x82   : > { %1078 = vmatmul.bf16.vlgmr.msra.gmra.mxu1 %v888_v2 }
  0x84   : > { %1090 = vmatpush.bf16.msra.mxu2 %v2625_v9 }
  0x87   : > { %1091 = vmatmul.bf16.vlgmr.msra.gmra.mxu2 %v888_v2 }
  0xfe   : > { %v1066_v12 = vpop.f32.mrf.mxu0 }
  0xff   : > { %v1079_v13 = vpop.f32.mrf.mxu1  ;;  %v1067_v17 = vadd.f32 %v1066_v12, %v923_v14 }
 0x100   : > { %v1080_v15 = vadd.f32 %v1079_v13, %v924_v11 }
 0x101   : > { %v1096_v21 = vpack.c.bf16 %v1067_v17, %v1067_v17 }
 0x102   : > { %v1097_v16 = vpack.c.bf16 %v1080_v15, %v1080_v15 }
 0x104   : > { %1215 = vrot.lane.b32.xlu2 %v1097_v16, %s3887_s9  ;;  %1157 = vrot.lane.b32.xlu1 %v1097_v16, %s3888_s5  ;;  %v1104_v18 = vsel %vm1099_vm0, %v1097_v16, 0 }
 0x105   : > { %1113 = vmatpush.bf16.xpose.msra.mxu3 %v1104_v18 }
 0x106   : > { %v1068_v19 = vpop.f32.mrf.mxu0 }
 0x107   : > { %v1081_v20 = vpop.f32.mrf.mxu1 }
 0x10a   : > { %v1092_v22 = vpop.f32.mrf.mxu2 }
 0x10b   : > { %v1093_v24 = vadd.f32 %v1092_v22, %v925_v23 }
 0x10c   : > { %1272 = vrot.lane.b32.xlu2 %v1097_v16, %s3889_s11  ;;  %1154 = vrot.lane.b32.xlu1 %v1096_v21, %s3888_s5 }
 0x10d   : > { %2710 = vmatmul.msk.bf16.vlgmr.msra.gmra.mxu3 %vm1099_vm0, %v1096_v21  ;;  %v4314_v26 = vpack.c.bf16 %v1093_v24, %v1093_v24 }
 0x10f   : > { %v1138_v27 = vsel %vm1136_vm1, %v4314_v26, 0 }
 0x110   : > { %1147 = vmatpush.bf16.msrb.mxu3 %v1138_v27 }
 0x112   : > { %v1094_v25 = vpop.f32.mrf.mxu2 }
 0x114   : > { %1270 = vrot.lane.b32.xlu1 %v1096_v21, %s3889_s11 }
 0x15e   : > { %v1216_v28 = vpop.permute.xlu2 %1215 }
 0x15f   : > { %v1221_v29 = vsel %vm1099_vm0, %v1216_v28, 0 }
 0x160   : > { %1230 = vmatpush.bf16.xpose.msrb.mxu2 %v1221_v29 }
 0x166   : > { %v1273_v44 = vpop.permute.xlu2 %1272 }
 0x167   : > { %v1278_v46 = vsel %vm1099_vm0, %v1273_v44, 0  ;;  %v3043_v44 = vld [vmem:[#allocation2 + $0x18] sm:$0xff] }
 0x176   : > { %v1158_v30 = vpop.permute.xlu1 %1157 }
 0x177   : > { %v1163_v31 = vsel %vm1099_vm0, %v1158_v30, 0 }
 0x178   : > { %1172 = vmatpush.bf16.xpose.msra.mxu3 %v1163_v31 }
 0x17e   : > { %v1155_v48 = vpop.permute.xlu1 %1154 }
 0x186   : > { %v1271_v49 = vpop.permute.xlu1 %1270 }
 0x190   : > { %v1115_v32 = vpop.f32.mrf.mxu3 }
 0x191   : > { %v1119_v33 = vmul.f32 0.17677669, %v1115_v32 }
 0x193   : > { %v1121_v34 = vsel %vm1120_vm2, %v1119_v33, -inf }
 0x194   : > { %1122 = vmax.xlane.f32.xlu0 %v1121_v34 }
 0x198   : > { %v1117_v35 = vpop.f32.mrf.mxu3 }
 0x207   : > { %v1123_v36 = vpop.xlane.xlu0 %1122 }
 0x208   : > { %v1124_v37 = vsub.f32 %v1119_v33, %v1123_v36 }
 0x20a   : > { %v1125_v38 = vmul.f32 1.442695, %v1124_v37 }
 0x20c   : > { %3301 = vpow2.f32 %v1125_v38 }
 0x212   : > { %v3302_v39 = vpop.eup %3301 }
 0x213   : > { %v1127_v40 = vsel %vm1120_vm2, %v3302_v39, 0.0 }
 0x214   : > { %1128 = vadd.xlane.f32.xlu0 %v1127_v40  ;;  %v3047_v40 = vld [vmem:[#allocation2 + $0x38] sm:$0xff] }
 0x215   : > { %1413 = vmatpush.bf16.msrb.mxu1 %v3047_v40  ;;  %v3053_v40 = vld [vmem:[#allocation9 + $0x80] sm:$0xf0] }
 0x228   : > { %1213 = vrot.lane.b32.xlu0 %v1096_v21, %s3887_s9 }
 0x287   : > { %v1129_v41 = vpop.xlane.xlu0 %1128 }
 0x288   : > { %3303 = vrcp.f32 %v1129_v41  ;;  %v3046_v41 = vld [vmem:[#allocation2 + $0x30] sm:$0xff] }
 0x289   : > { %1414 = vmatpush.bf16.msrb.mxu1 %v3046_v41 }
 0x28e   : > { %v3304_v42 = vpop.eup %3303 }
 0x28f   : > { %v1131_v43 = vmul.f32 %v3304_v42, %v3302_v39  ;;  %v3045_v42 = vld [vmem:[#allocation2 + $0x28] sm:$0xff] }
 0x290   : > { %1415 = vmatpush.bf16.msrb.mxu1 %v3045_v42  ;;  %v2768_v42 = vld [vmem:[#allocation9 + $0x60] sm:$0xf] }
 0x291   : > { %v1132_v45 = vpack.c.bf16 %v1131_v43, %v1131_v43  ;;  %v3044_v43 = vld [vmem:[#allocation2 + $0x20] sm:$0xff] }
 0x293   : > { %2711 = vmatmul.msk.bf16.vlgmr.msrb.gmra.mxu3 %vm1120_vm2, %v1132_v45  ;;  %v3042_v45 = vld [vmem:[#allocation2 + $0x10] sm:$0xff] }
 0x294   : > { %1287 = vmatpush.bf16.xpose.msrb.mxu3 %v1278_v46  ;;  %1416 = vmatpush.bf16.msrb.mxu1 %v3044_v43  ;;  %v3041_v46 = vld [vmem:[#allocation2 + $0x8] sm:$0xff]  ;;  %v3052_v43 = vld [vmem:[#allocation9 + $0x68] sm:$0xf0] }
 0x298   : > { %1417 = vmatpush.bf16.msrb.mxu1 %v3043_v44  ;;  %v2769_v44 = vor.u32 %v3052_v43, %v2768_v42  ;;  %v3060_v43 = vld [vmem:[#allocation9 + $0x38] sm:$0xf] }
 0x29a   : > { %v1214_v47 = vpop.permute.xlu0 %1213 }
 0x29b   : > { %2714 = vmatmul.msk.bf16.vlgmr.msrb.gmra.mxu2 %vm1099_vm0, %v1214_v47  ;;  %v3040_v47 = vld [vmem:[#allocation2] sm:$0xff] }
 0x29c   : > { %1418 = vmatpush.bf16.msrb.mxu1 %v3042_v45  ;;  %v2764_v45 = vld [vmem:[#allocation9 + $0x48] sm:$0xf] }
 0x2a0   : > { %1419 = vmatpush.bf16.msrb.mxu1 %v3041_v46  ;;  %v3051_v46 = vld [vmem:[#allocation9 + $0x50] sm:$0xf0] }
 0x2a3   : > { %2712 = vmatmul.msk.bf16.vlgmr.msra.gmra.mxu3 %vm1099_vm0, %v1155_v48 }
 0x2a4   : > { %1420 = vmatpush.bf16.msrb.mxu1 %v3040_v47  ;;  %v2765_v47 = vor.u32 %v3051_v46, %v2764_v45 }
 0x2b3   : > { %2716 = vmatmul.msk.bf16.vlgmr.msrb.gmra.mxu3 %vm1099_vm0, %v1271_v49 }
 0x316   : > { %v4328_v50 = vpop.f32.mrf.mxu3 }
 0x31e   : > { %v1151_v51 = vpop.f32.mrf.mxu3  ;;  %v1232_v52 = vpop.f32.mrf.mxu2 }
 0x31f   : > { %v1236_v53 = vmul.f32 0.17677669, %v1232_v52 }
 0x321   : > { %v1237_v54 = vsel %vm1120_vm2, %v1236_v53, -inf }
 0x322   : > { %1238 = vmax.xlane.f32.xlu1 %v1237_v54 }
 0x326   : > { %v1174_v55 = vpop.f32.mrf.mxu3  ;;  %v1234_v56 = vpop.f32.mrf.mxu2 }
 0x327   : > { %v1178_v57 = vmul.f32 0.17677669, %v1174_v55  ;;  %v3291_v56 = vld [vmem:[#allocation4] ss:$0 sm:$0xff] }
 0x329   : > { %v1179_v58 = vsel %vm1120_vm2, %v1178_v57, -inf }
 0x32a   : > { %1180 = vmax.xlane.f32.xlu2 %v1179_v58 }
 0x32e   : > { %v1176_v59 = vpop.f32.mrf.mxu3 }
 0x336   : > { %v1289_v60 = vpop.f32.mrf.mxu3 }
 0x337   : > { %v1293_v61 = vmul.f32 0.17677669, %v1289_v60 }
 0x339   : > { %v1294_v63 = vsel %vm1120_vm2, %v1293_v61, -inf }
 0x33a   : > { %1295 = vmax.xlane.f32.xlu0 %v1294_v63  ;;  %v2840_v63 = vld [vmem:[#allocation9 + $0xac] sm:$0xf] }
 0x33e   : > { %v1291_v0 = vpop.f32.mrf.mxu3 }
 0x33f   : > { %v3071_v0 = vld [vmem:[#allocation9 + $0xb4] sm:$0xf0] }
 0x34e   : > { %1249 = vrot.lane.b32.xlu0 %v4314_v26, %s3887_s9 }
 0x395   : > { %v1239_v1 = vpop.xlane.xlu1 %1238 }
 0x396   : > { %v1240_v2 = vsub.f32 %v1236_v53, %v1239_v1  ;;  %v2832_v1 = vld [vmem:[#allocation9 + $0x94] sm:$0xf] }
 0x398   : > { %v1241_v3 = vmul.f32 1.442695, %v1240_v2  ;;  %v3069_v2 = vld [vmem:[#allocation9 + $0x9c] sm:$0xf0] }
 0x39a   : > { %3305 = vpow2.f32 %v1241_v3  ;;  %v2833_v3 = vor.u32 %v3069_v2, %v2832_v1 }
 0x39d   : > { %v1181_v4 = vpop.xlane.xlu2 %1180 }
 0x39e   : > { %v1182_v5 = vsub.f32 %v1178_v57, %v1181_v4  ;;  %v2824_v4 = vld [vmem:[#allocation9 + $0x7c] sm:$0xf] }
 0x3a0   : > { %v3306_v6 = vpop.eup %3305  ;;  %v1183_v7 = vmul.f32 1.442695, %v1182_v5 }
 0x3a1   : > { %v1243_v8 = vsel %vm1120_vm2, %v3306_v6, 0.0 }
 0x3a2   : > { %3307 = vpow2.f32 %v1183_v7  ;;  %1244 = vadd.xlane.f32.xlu1 %v1243_v8  ;;  %v2780_v7 = vld [vmem:[#allocation9 + $0xa8] sm:$0xf]  ;;  %v3055_v8 = vld [vmem:[#allocation9 + $0xb0] sm:$0xf0] }
 0x3a8   : > { %v3308_v9 = vpop.eup %3307 }
 0x3a9   : > { %v1185_v10 = vsel %vm1120_vm2, %v3308_v9, 0.0 }
 0x3aa   : > { %1186 = vadd.xlane.f32.xlu2 %v1185_v10 }
 0x3ad   : > { %v1296_v11 = vpop.xlane.xlu0 %1295 }
 0x3ae   : > { %v1297_v12 = vsub.f32 %v1293_v61, %v1296_v11  ;;  %v3890_v61 = vmov 128.0   ;;  %v2816_v11 = vld [vmem:[#allocation9 + $0x64] sm:$0xf] }
 0x3b0   : > { %v1298_v13 = vmul.f32 1.442695, %v1297_v12  ;;  %v3065_v12 = vld [vmem:[#allocation9 + $0x6c] sm:$0xf0] }
 0x3b2   : > { %3309 = vpow2.f32 %v1298_v13 }
 0x3b8   : > { %v3310_v14 = vpop.eup %3309 }
 0x3b9   : > { %v1300_v15 = vsel %vm1120_vm2, %v3310_v14, 0.0 }
 0x3ba   : > { %1301 = vadd.xlane.f32.xlu1 %v1300_v15  ;;  %v2808_v15 = vld [vmem:[#allocation9 + $0x4c] sm:$0xf] }
 0x3c0   : > { %v1250_v16 = vpop.permute.xlu0 %1249 }
 0x3c1   : > { %v1255_v17 = vsel %vm1136_vm1, %v1250_v16, 0  ;;  %v3063_v16 = vld [vmem:[#allocation9 + $0x54] sm:$0xf0] }
 0x3c2   : > { %1192 = vrot.lane.b32.xlu2 %v4314_v26, %s3888_s5  ;;  %1264 = vmatpush.bf16.msra.mxu2 %v1255_v17 }
 0x3d3   : > { %1306 = vrot.lane.b32.xlu1 %v4314_v26, %s3889_s11 }
 0x415   : > { %v1245_v18 = vpop.xlane.xlu1 %1244 }
 0x416   : > { %3311 = vrcp.f32 %v1245_v18  ;;  %v2809_v18 = vor.u32 %v3063_v16, %v2808_v15  ;;  %v3294_v16 = vld [vmem:[#allocation10] ss:$0 sm:$0xff] }
 0x41c   : > { %v3312_v19 = vpop.eup %3311 }
 0x41d   : > { %v1247_v20 = vmul.f32 %v3312_v19, %v3306_v6  ;;  %v1187_v21 = vpop.xlane.xlu2 %1186  ;;  %v3067_v6 = vld [vmem:[#allocation9 + $0x84] sm:$0xf0]  ;;  %v2800_v19 = vld [vmem:[#allocation9 + $0x34] sm:$0xf] }
 0x41e   : > { %3313 = vrcp.f32 %v1187_v21 }
 0x41f   : > { %v1248_v22 = vpack.c.bf16 %v1247_v20, %v1247_v20  ;;  %v3061_v20 = vld [vmem:[#allocation9 + $0x3c] sm:$0xf0] }
 0x421   : > { %2715 = vmatmul.msk.bf16.vlgmr.msra.gmra.mxu2 %vm1120_vm2, %v1248_v22  ;;  %v2801_v22 = vor.u32 %v3061_v20, %v2800_v19 }
 0x424   : > { %v3314_v23 = vpop.eup %3313 }
 0x425   : > { %v1189_v24 = vmul.f32 %v3314_v23, %v3308_v9  ;;  %v1193_v25 = vpop.permute.xlu2 %1192  ;;  %v2781_v9 = vor.u32 %v3055_v8, %v2780_v7  ;;  %v2792_v23 = vld [vmem:[#allocation9 + $0x1c] sm:$0xf] }
 0x426   : > { %v1198_v27 = vsel %vm1136_vm1, %v1193_v25, 0 }
 0x427   : > { %1207 = vmatpush.bf16.msrb.mxu0 %v1198_v27  ;;  %v1190_v28 = vpack.c.bf16 %v1189_v24, %v1189_v24  ;;  %1533 = vmatpush.bf16.msrb.mxu2 %v2781_v9  ;;  %v3059_v24 = vld [vmem:[#allocation9 + $0x24] sm:$0xf0] }
 0x428   : > { %v2793_v27 = vor.u32 %v3059_v24, %v2792_v23 }
 0x42a   : > { %2713 = vmatmul.msk.bf16.vlgmr.msrb.gmra.mxu0 %vm1120_vm2, %v1190_v28 }
 0x42d   : > { %v1302_v29 = vpop.xlane.xlu1 %1301 }
 0x42e   : > { %3315 = vrcp.f32 %v1302_v29 }
 0x42f   : > { %3317 = vrcp.f32 %v3890_v61 }
 0x434   : > { %v3316_v26 = vpop.eup %3315 }
 0x435   : > { %v1304_v30 = vmul.f32 %v3316_v26, %v3310_v14  ;;  %v3318_v5 = vpop.eup %3317  ;;  %v2817_v14 = vor.u32 %v3065_v12, %v2816_v11 }
 0x436   : > { %v1432_v10 = vmul.f32 128.0, %v3318_v5  ;;  %vm1436_vm5 = vweird.f32 %v3318_v5 }
 0x437   : > { %v1305_v33 = vpack.c.bf16 %v1304_v30, %v1304_v30 }
 0x438   : > { %v1433_v13 = vsub.f32 1.0, %v1432_v10  ;;  %v4371_v10 = vld [vmem:[#allocation10 + $0x1] sm:$0x3] }
 0x43a   : > { %v1434_v17 = vmul.f32 %v3318_v5, %v1433_v13 }
 0x43c   : > { %v1435_v21 = vadd.f32 %v3318_v5, %v1434_v17 }
 0x43e   : > { %v4356_v25 = vsel %vm1436_vm5, %v3318_v5, %v1435_v21 }
 0x445   : > { %v1307_v31 = vpop.permute.xlu1 %1306 }
 0x446   : > { %v1312_v32 = vsel %vm1136_vm1, %v1307_v31, 0  ;;  %v2776_v31 = vld [vmem:[#allocation9 + $0x90] sm:$0xf] }
 0x447   : > { %1321 = vmatpush.bf16.msra.mxu0 %v1312_v32  ;;  %v3054_v32 = vld [vmem:[#allocation9 + $0x98] sm:$0xf0] }
 0x44a   : > { %2717 = vmatmul.msk.bf16.vlgmr.msra.gmra.mxu0 %vm1120_vm2, %v1305_v33  ;;  %v2784_v33 = vld [vmem:[#allocation9 + $0x4] sm:$0xf] }
 0x4a4   : > { %v1266_v34 = vpop.f32.mrf.mxu2 }
 0x4a7   : > { %v1209_v35 = vpop.f32.mrf.mxu0 }
 0x4a8   : > { %1328 = vrot.lane.b32.xlu2 %v1209_v35, %s3889_s11  ;;  %v3057_v35 = vld [vmem:[#allocation9 + $0xc] sm:$0xf0] }
 0x4ac   : > { %v1268_v36 = vpop.f32.mrf.mxu2 }
 0x4ad   : > { %v2785_v36 = vor.u32 %v3057_v35, %v2784_v33  ;;  %v2826_v33 = vld [vmem:[#allocation9 + $0x88] sm:$0xf0]  ;;  %v3064_v35 = vld [vmem:[#allocation9 + $0x68] sm:$0xf] }
 0x4af   : > { %v1211_v37 = vpop.f32.mrf.mxu0 }
 0x4b0   : > { %1332 = vrot.lane.b32.xlu2 %v1266_v34, %s3887_s9  ;;  %v2777_v34 = vor.u32 %v3054_v32, %v2776_v31  ;;  %v887_v37 = vld [vmem:[%s880_s0] sm:$0xff] }
 0x4b1   : > { %v3066_v32 = vld [vmem:[#allocation9 + $0x80] sm:$0xf] }
 0x4b2   : > { %1534 = vmatpush.bf16.msrb.mxu2 %v2777_v34  ;;  %v2829_v34 = vor.u32 %v3066_v32, %v2826_v33 }
 0x4c7   : > { %v1323_v38 = vpop.f32.mrf.mxu0 }
 0x4c8   : > { %1336 = vrot.lane.b32.xlu0 %v1323_v38, %s3888_s5  ;;  %v4363_v38 = vpack.c.bf16 %v887_v37, %v887_v37 }
 0x4cf   : > { %v1325_v39 = vpop.f32.mrf.mxu0 }
 0x4d0   : > { %v2772_v39 = vld [vmem:[#allocation9 + $0x78] sm:$0xf] }
 0x4d1   : > { %v2773_v41 = vor.u32 %v3053_v40, %v2772_v39  ;;  %v3062_v40 = vld [vmem:[#allocation9 + $0x50] sm:$0xf] }
 0x4d3   : > { %1535 = vmatpush.bf16.msrb.mxu2 %v2773_v41  ;;  %v2810_v41 = vld [vmem:[#allocation9 + $0x58] sm:$0xf0] }
 0x4d4   : > { %v2813_v42 = vor.u32 %v3062_v40, %v2810_v41 }
 0x4d7   : > { %1536 = vmatpush.bf16.msrb.mxu2 %v2769_v44  ;;  %v2802_v44 = vld [vmem:[#allocation9 + $0x40] sm:$0xf0] }
 0x4d8   : > { %v2805_v45 = vor.u32 %v3060_v43, %v2802_v44 }
 0x4db   : > { %1537 = vmatpush.bf16.msrb.mxu2 %v2765_v47  ;;  %v3058_v47 = vld [vmem:[#allocation9 + $0x20] sm:$0xf] }
 0x502   : > { %v1329_v48 = vpop.permute.xlu2 %1328 }
 0x503   : > { %v1339_v51 = vsel %vm1099_vm0, %v4328_v50, %v1329_v48  ;;  %v2841_v50 = vor.u32 %v3071_v0, %v2840_v63  ;;  %v2760_v48 = vld [vmem:[#allocation9 + $0x30] sm:$0xf] }
 0x505   : > { %1649 = vmatpush.bf16.msra.mxu3 %v2841_v50 }
 0x509   : > { %1650 = vmatpush.bf16.msra.mxu3 %v2833_v3  ;;  %v3292_v3 = vld [vmem:[#allocation6] ss:$0 sm:$0xff] }
 0x50a   : > { %v1333_v49 = vpop.permute.xlu2 %1332 }
 0x50b   : > { %v1341_v52 = vsel %vm1340_vm3, %v1339_v51, %v1333_v49  ;;  %v3050_v49 = vld [vmem:[#allocation9 + $0x38] sm:$0xf0] }
 0x50c   : > { %v2761_v51 = vor.u32 %v3050_v49, %v2760_v48  ;;  %v2794_v48 = vld [vmem:[#allocation9 + $0x28] sm:$0xf0] }
 0x50e   : > { %1538 = vmatpush.bf16.msrb.mxu2 %v2761_v51  ;;  %v2797_v51 = vor.u32 %v3058_v47, %v2794_v48 }
 0x53a   : > { %v1337_v53 = vpop.permute.xlu0 %1336 }
 0x53b   : > { %v1343_v54 = vsel %vm1342_vm4, %v1341_v52, %v1337_v53  ;;  %v2756_v52 = vld [vmem:[#allocation9 + $0x18] sm:$0xf]  ;;  %v3049_v53 = vld [vmem:[#allocation9 + $0x20] sm:$0xf0] }
 0x53c   : > { %v1344_v55 = vpack.c.bf16 %v1343_v54, %v1343_v54  ;;  %v2757_v54 = vor.u32 %v3049_v53, %v2756_v52  ;;  %v3056_v53 = vld [vmem:[#allocation9 + $0x8] sm:$0xf] }
 0x53e   : > { %1421 = vmatmul.bf16.vlgmr.msrb.gmra.mxu1 %v1344_v55  ;;  %v2752_v55 = vld [vmem:[#allocation9] sm:$0xf]  ;;  %1539 = vmatpush.bf16.msrb.mxu2 %v2757_v54  ;;  %v2786_v54 = vld [vmem:[#allocation9 + $0x10] sm:$0xf0] }
 0x5bb   : > { %v1422_v57 = vpop.f32.mrf.mxu1 }
 0x5bc   : > { %v1423_v58 = vadd.f32 %v3291_v56, %v1422_v57  ;;  %v3048_v56 = vld [vmem:[#allocation9 + $0x8] sm:$0xf0] }
 0x5bd   : > { %v2753_v57 = vor.u32 %v3048_v56, %v2752_v55 }
 0x5be   : > { %v1426_v59 = vadd.f32 %v1423_v58, %v4282_v62  ;;  %v2825_v62 = vor.u32 %v3067_v6, %v2824_v4  ;;  %v3293_v6 = vld [vmem:[#allocation7] ss:$0 sm:$0xff] }
 0x5bf   : > { %1540 = vmatpush.bf16.msrb.mxu2 %v2753_v57  ;;  %v2789_v57 = vor.u32 %v3056_v53, %v2786_v54 }
 0x5c0   : > { %1429 = vadd.xlane.f32.xlu2 %v1426_v59  ;;  %1651 = vmatpush.bf16.msra.mxu3 %v2825_v62  ;;  %v1565_v62 = vperm.slane %v4371_v10, 0 }
 0x5c3   : > { %v1424_v60 = vpop.f32.mrf.mxu1 }
 0x5c4   : > { %1652 = vmatpush.bf16.msra.mxu3 %v2817_v14 }
 0x5c8   : > { %1653 = vmatpush.bf16.msra.mxu3 %v2809_v18 }
 0x5cc   : > { %1654 = vmatpush.bf16.msra.mxu3 %v2801_v22 }
 0x5d0   : > { %1655 = vmatpush.bf16.msra.mxu3 %v2793_v27  ;;  %v3070_v27 = vld [vmem:[#allocation9 + $0xb0] sm:$0xf] }
 0x5d4   : > { %1656 = vmatpush.bf16.msra.mxu3 %v2785_v36  ;;  %v2818_v36 = vld [vmem:[#allocation9 + $0x70] sm:$0xf0] }
 0x5d5   : > { %v2821_v37 = vor.u32 %v3064_v35, %v2818_v36 }
 0x5d7   : > { %1657 = vmatmul.bf16.vlgmr.msra.gmra.mxu3 %v4363_v38 }
 0x633   : > { %v1430_v28 = vpop.xlane.xlu2 %1429 }
 0x634   : > { %v1438_v29 = vmul.f32 %v4356_v25, %v1430_v28  ;;  %v2842_v28 = vld [vmem:[#allocation9 + $0xb8] sm:$0xf0] }
 0x636   : > { %v1439_v26 = vsub.f32 %v1426_v59, %v1438_v29  ;;  %v3068_v29 = vld [vmem:[#allocation9 + $0x98] sm:$0xf] }
 0x638   : > { %v1440_v30 = vmul.f32 %v1439_v26, %v1439_v26 }
 0x63a   : > { %1441 = vadd.xlane.f32.xlu0 %v1440_v30  ;;  %v2834_v30 = vld [vmem:[#allocation9 + $0xa0] sm:$0xf0] }
 0x63b   : > { %v2837_v31 = vor.u32 %v3068_v29, %v2834_v30 }
 0x65a   : > { %v1658_v11 = vpop.f32.mrf.mxu3 }
 0x65b   : > { %v1659_v12 = vadd.f32 %v1658_v11, %v1565_v62 }
 0x65d   : > { %v1676_v13 = vpack.c.bf16 %v1659_v12, %v1659_v12 }
 0x65f   : > { %1733 = vrot.lane.b32.xlu1 %v1676_v13, %s3888_s5  ;;  %v1682_v14 = vsel %vm1099_vm0, %v1676_v13, 0 }
 0x660   : > { %1691 = vmatpush.bf16.xpose.msra.mxu1 %v1682_v14 }
 0x662   : > { %v1660_v15 = vpop.f32.mrf.mxu3 }
 0x667   : > { %1791 = vrot.lane.b32.xlu1 %v1676_v13, %s3887_s9 }
 0x6ad   : > { %v1442_v58 = vpop.xlane.xlu0 %1441 }
 0x6ae   : > { %v1443_v59 = vmul.f32 %v1442_v58, %v4356_v25 }
 0x6b0   : > { %v1444_v60 = vadd.f32 1e-05, %v1443_v59 }
 0x6b2   : > { %3319 = vrsqrt.f32 %v1444_v60  ;;  %vm1451_vm7 = vweird.f32 %v1444_v60 }
 0x6b8   : > { %v3320_v61 = vpop.eup %3319 }
 0x6b9   : > { %v1446_v63 = vmul.f32 %v3320_v61, %v1444_v60  ;;  %vm1452_vm6 = vweird.f32 %v3320_v61 }
 0x6ba   : > { %vm1453_vm8 = vmor %vm1451_vm7, %vm1452_vm6 }
 0x6bb   : > { %v1447_v0 = vmul.f32 %v3320_v61, %v1446_v63 }
 0x6bd   : > { %v1448_v1 = vmul.f32 0.5, %v1447_v0 }
 0x6bf   : > { %v1449_v50 = vsub.f32 1.5, %v1448_v1 }
 0x6c1   : > { %v1450_v2 = vmul.f32 %v3320_v61, %v1449_v50 }
 0x6c3   : > { %v1454_v4 = vsel %vm1453_vm8, %v3320_v61, %v1450_v2 }
 0x6c4   : > { %v1455_v5 = vmul.f32 %v1454_v4, %v1439_v26  ;;  %v2845_v26 = vor.u32 %v3070_v27, %v2842_v28 }
 0x6c6   : > { %v1459_v7 = vmul.f32 %v3292_v3, %v1455_v5  ;;  %1662 = vmatpush.bf16.msrb.mxu0 %v2845_v26 }
 0x6c8   : > { %v4367_v8 = vadd.f32 %v3293_v6, %v1459_v7 }
 0x6ca   : > { %v1464_v9 = vpack.c.bf16 %v4367_v8, %v4367_v8  ;;  %1663 = vmatpush.bf16.msrb.mxu0 %v2837_v31 }
 0x6cc   : > { %1541 = vmatmul.bf16.vlgmr.msrb.gmra.mxu2 %v1464_v9 }
 0x6ce   : > { %1664 = vmatpush.bf16.msrb.mxu0 %v2829_v34 }
 0x6d1   : > { %v1734_v21 = vpop.permute.xlu1 %1733 }
 0x6d2   : > { %v1739_v22 = vsel %vm1099_vm0, %v1734_v21, 0  ;;  %1665 = vmatpush.bf16.msrb.mxu0 %v2821_v37 }
 0x6d3   : > { %1748 = vmatpush.bf16.xpose.msrb.mxu3 %v1739_v22 }
 0x6d6   : > { %1666 = vmatpush.bf16.msrb.mxu0 %v2813_v42 }
 0x6d9   : > { %v1792_v23 = vpop.permute.xlu1 %1791 }
 0x6da   : > { %v1797_v24 = vsel %vm1099_vm0, %v1792_v23, 0  ;;  %1667 = vmatpush.bf16.msrb.mxu0 %v2805_v45 }
 0x6db   : > { %1806 = vmatpush.bf16.xpose.msrb.mxu1 %v1797_v24 }
 0x6de   : > { %1668 = vmatpush.bf16.msrb.mxu0 %v2797_v51 }
 0x6e2   : > { %1669 = vmatpush.bf16.msrb.mxu0 %v2789_v57 }
 0x6e5   : > { %1670 = vmatmul.bf16.vlgmr.msrb.gmra.mxu0 %v4363_v38 }
 0x74f   : > { %v1542_v17 = vpop.f32.mrf.mxu2 }
 0x750   : > { %v1543_v18 = vadd.f32 %v3294_v16, %v1542_v17  ;;  %v1566_v16 = vperm.slane %v4371_v10, 1 }
 0x752   : > { %v1675_v19 = vpack.c.bf16 %v1543_v18, %v1543_v18 }
 0x754   : > { %1846 = vrot.lane.b32.xlu2 %v1675_v19, %s3889_s11  ;;  %1730 = vrot.lane.b32.xlu1 %v1675_v19, %s3888_s5 }
 0x755   : > { %2846 = vmatmul.msk.bf16.vlgmr.msra.gmra.mxu1 %vm1099_vm0, %v1675_v19 }
 0x757   : > { %v1544_v20 = vpop.f32.mrf.mxu2 }
 0x75c   : > { %1848 = vrot.lane.b32.xlu1 %v1676_v13, %s3889_s11 }
 0x762   : > { %v1671_v7 = vpop.f32.mrf.mxu0 }
 0x763   : > { %v1672_v17 = vadd.f32 %v1671_v7, %v1566_v16  ;;  %v3075_v7 = vld [vmem:[#allocation12 + $0x18] sm:$0xff] }
 0x764   : > { %1789 = vrot.lane.b32.xlu1 %v1675_v19, %s3887_s9 }
 0x765   : > { %v1677_v18 = vpack.c.bf16 %v1672_v17, %v1672_v17 }
 0x767   : > { %v1714_v19 = vsel %vm1136_vm1, %v1677_v18, 0 }
 0x768   : > { %1723 = vmatpush.bf16.msra.mxu2 %v1714_v19 }
 0x76a   : > { %v1673_v12 = vpop.f32.mrf.mxu0 }
 0x7ae   : > { %v1847_v58 = vpop.permute.xlu2 %1846 }
 0x7c6   : > { %v1731_v39 = vpop.permute.xlu1 %1730 }
 0x7c7   : > { %2848 = vmatmul.msk.bf16.vlgmr.msrb.gmra.mxu3 %vm1099_vm0, %v1731_v39 }
 0x7ce   : > { %v1849_v46 = vpop.permute.xlu1 %1848 }
 0x7cf   : > { %v1854_v49 = vsel %vm1099_vm0, %v1849_v46, 0 }
 0x7d0   : > { %1863 = vmatpush.bf16.xpose.msra.mxu3 %v1854_v49 }
 0x7d2   : > { %v1693_v52 = vpop.f32.mrf.mxu1 }
 0x7d3   : > { %v1697_v55 = vmul.f32 0.17677669, %v1693_v52 }
 0x7d5   : > { %v1698_v56 = vsel %vm1120_vm2, %v1697_v55, -inf }
 0x7d6   : > { %1699 = vmax.xlane.f32.xlu1 %v1698_v56  ;;  %v1790_v59 = vpop.permute.xlu1 %1789 }
 0x7d7   : > { %2850 = vmatmul.msk.bf16.vlgmr.msrb.gmra.mxu1 %vm1099_vm0, %v1790_v59  ;;  %2852 = vmatmul.msk.bf16.vlgmr.msra.gmra.mxu3 %vm1099_vm0, %v1847_v58 }
 0x7da   : > { %v1695_v60 = vpop.f32.mrf.mxu1 }
 0x849   : > { %v1700_v61 = vpop.xlane.xlu1 %1699 }
 0x84a   : > { %v1701_v63 = vsub.f32 %v1697_v55, %v1700_v61  ;;  %v1750_v0 = vpop.f32.mrf.mxu3 }
 0x84b   : > { %v1754_v62 = vmul.f32 0.17677669, %v1750_v0 }
 0x84c   : > { %v1702_v1 = vmul.f32 1.442695, %v1701_v63 }
 0x84d   : > { %v1755_v38 = vsel %vm1120_vm2, %v1754_v62, -inf }
 0x84e   : > { %3321 = vpow2.f32 %v1702_v1 }
 0x852   : > { %v1752_v50 = vpop.f32.mrf.mxu3 }
 0x854   : > { %v3322_v2 = vpop.eup %3321  ;;  %v1808_v3 = vpop.f32.mrf.mxu1 }
 0x855   : > { %v1812_v4 = vmul.f32 0.17677669, %v1808_v3  ;;  %v1704_v5 = vsel %vm1120_vm2, %v3322_v2, 0.0  ;;  %v3079_v3 = vld [vmem:[#allocation12 + $0x38] sm:$0xff] }
 0x856   : > { %1705 = vadd.xlane.f32.xlu2 %v1704_v5  ;;  %1987 = vmatpush.bf16.msra.mxu1 %v3079_v3  ;;  %v3077_v5 = vld [vmem:[#allocation12 + $0x28] sm:$0xff] }
 0x857   : > { %v1813_v6 = vsel %vm1120_vm2, %v1812_v4, -inf }
 0x858   : > { %1814 = vmax.xlane.f32.xlu0 %v1813_v6  ;;  %v3076_v6 = vld [vmem:[#allocation12 + $0x20] sm:$0xff] }
 0x85a   : > { %v1865_v9 = vpop.f32.mrf.mxu3 }
 0x85b   : > { %v1869_v14 = vmul.f32 0.17677669, %v1865_v9  ;;  %v3074_v9 = vld [vmem:[#allocation12 + $0x10] sm:$0xff] }
 0x85c   : > { %v1810_v11 = vpop.f32.mrf.mxu1 }
 0x85d   : > { %v1870_v15 = vsel %vm1120_vm2, %v1869_v14, -inf  ;;  %v3072_v11 = vld [vmem:[#allocation12] sm:$0xff] }
 0x860   : > { %1756 = vmax.xlane.f32.xlu0 %v1755_v38 }
 0x862   : > { %v1867_v13 = vpop.f32.mrf.mxu3 }
 0x868   : > { %1871 = vmax.xlane.f32.xlu0 %v1870_v15 }
 0x87c   : > { %1768 = vrot.lane.b32.xlu0 %v1677_v18, %s3888_s5 }
 0x8c9   : > { %v1706_v20 = vpop.xlane.xlu2 %1705 }
 0x8ca   : > { %3323 = vrcp.f32 %v1706_v20 }
 0x8cb   : > { %v1815_v21 = vpop.xlane.xlu0 %1814 }
 0x8cc   : > { %v1816_v22 = vsub.f32 %v1812_v4, %v1815_v21  ;;  %v3078_v4 = vld [vmem:[#allocation12 + $0x30] sm:$0xff] }
 0x8cd   : > { %1988 = vmatpush.bf16.msra.mxu1 %v3078_v4  ;;  %v2898_v4 = vld [vmem:[#allocation18 + $0x18] sm:$0xf0] }
 0x8ce   : > { %v1817_v23 = vmul.f32 1.442695, %v1816_v22 }
 0x8d0   : > { %v3324_v24 = vpop.eup %3323  ;;  %3325 = vpow2.f32 %v1817_v23  ;;  %v2944_v23 = vld [vmem:[#allocation18 + $0x70] sm:$0xf] }
 0x8d1   : > { %v1708_v27 = vmul.f32 %v3324_v24, %v3322_v2  ;;  %1989 = vmatpush.bf16.msra.mxu1 %v3077_v5  ;;  %v3095_v24 = vld [vmem:[#allocation18 + $0x74] sm:$0xf0]  ;;  %v2888_v5 = vld [vmem:[#allocation18] sm:$0xf] }
 0x8d3   : > { %v1709_v28 = vpack.c.bf16 %v1708_v27, %v1708_v27  ;;  %v1757_v29 = vpop.xlane.xlu0 %1756  ;;  %v3094_v27 = vld [vmem:[#allocation18 + $0x74] sm:$0xf] }
 0x8d4   : > { %v1758_v26 = vsub.f32 %v1754_v62, %v1757_v29  ;;  %v3073_v62 = vld [vmem:[#allocation12 + $0x8] sm:$0xff]  ;;  %v2946_v29 = vld [vmem:[#allocation18 + $0x78] sm:$0xf0] }
 0x8d5   : > { %2847 = vmatmul.msk.bf16.vlgmr.msra.gmra.mxu2 %vm1120_vm2, %v1709_v28  ;;  %1990 = vmatpush.bf16.msra.mxu1 %v3076_v6  ;;  %v2945_v28 = vor.u32 %v3095_v24, %v2944_v23  ;;  %v3081_v6 = vld [vmem:[#allocation18 + $0x4] sm:$0xf0] }
 0x8d6   : > { %v3326_v10 = vpop.eup %3325  ;;  %v1759_v30 = vmul.f32 1.442695, %v1758_v26  ;;  %v2949_v26 = vor.u32 %v3094_v27, %v2946_v29  ;;  %v3099_v27 = vld [vmem:[#allocation21 + $0x18] sm:$0xff] }
 0x8d7   : > { %v1819_v31 = vsel %vm1120_vm2, %v3326_v10, 0.0 }
 0x8d8   : > { %3327 = vpow2.f32 %v1759_v30  ;;  %1820 = vadd.xlane.f32.xlu1 %v1819_v31  ;;  %2147 = vmatpush.bf16.msrb.mxu3 %v2949_v26 }
 0x8d9   : > { %1991 = vmatpush.bf16.msra.mxu1 %v3075_v7 }
 0x8db   : > { %v1872_v32 = vpop.xlane.xlu0 %1871 }
 0x8dc   : > { %v1873_v33 = vsub.f32 %v1869_v14, %v1872_v32 }
 0x8dd   : > { %1992 = vmatpush.bf16.msra.mxu1 %v3074_v9  ;;  %v3080_v9 = vld [vmem:[#allocation18 + $0x4] sm:$0xf] }
 0x8de   : > { %v3328_v34 = vpop.eup %3327  ;;  %v1874_v35 = vmul.f32 1.442695, %v1873_v33  ;;  %v3093_v33 = vld [vmem:[#allocation18 + $0x64] sm:$0xf0] }
 0x8df   : > { %v1761_v36 = vsel %vm1120_vm2, %v3328_v34, 0.0 }
 0x8e0   : > { %3329 = vpow2.f32 %v1874_v35  ;;  %1762 = vadd.xlane.f32.xlu0 %v1761_v36  ;;  %v2938_v36 = vld [vmem:[#allocation18 + $0x68] sm:$0xf0] }
 0x8e1   : > { %1993 = vmatpush.bf16.msra.mxu1 %v3073_v62  ;;  %v2890_v62 = vld [vmem:[#allocation18 + $0x8] sm:$0xf0] }
 0x8e5   : > { %1994 = vmatpush.bf16.msra.mxu1 %v3072_v11  ;;  %v2889_v11 = vor.u32 %v3081_v6, %v2888_v5 }
 0x8e6   : > { %v3330_v37 = vpop.eup %3329 }
 0x8e7   : > { %v1876_v39 = vsel %vm1120_vm2, %v3330_v37, 0.0 }
 0x8e8   : > { %1877 = vadd.xlane.f32.xlu1 %v1876_v39  ;;  %v2928_v39 = vld [vmem:[#allocation18 + $0x50] sm:$0xf] }
 0x8ee   : > { %v1769_v40 = vpop.permute.xlu0 %1768 }
 0x8ef   : > { %v1774_v41 = vsel %vm1136_vm1, %v1769_v40, 0  ;;  %v3091_v40 = vld [vmem:[#allocation18 + $0x54] sm:$0xf0] }
 0x8f0   : > { %1783 = vmatpush.bf16.msra.mxu0 %v1774_v41  ;;  %v3090_v41 = vld [vmem:[#allocation18 + $0x54] sm:$0xf] }
 0x8f4   : > { %1825 = vrot.lane.b32.xlu0 %v1677_v18, %s3887_s9 }
 0x901   : > { %1882 = vrot.lane.b32.xlu1 %v1677_v18, %s3889_s11  ;;  %v3295_v18 = vld [vmem:[#allocation13] ss:$0 sm:$0xff] }
 0x94b   : > { %v1821_v44 = vpop.xlane.xlu1 %1820 }
 0x953   : > { %v1763_v42 = vpop.xlane.xlu0 %1762 }
 0x954   : > { %3331 = vrcp.f32 %v1763_v42  ;;  %v2929_v42 = vor.u32 %v3091_v40, %v2928_v39 }
 0x955   : > { %3333 = vrcp.f32 %v1821_v44 }
 0x958   : > { %v1725_v43 = vpop.f32.mrf.mxu2 }
 0x95a   : > { %v3332_v45 = vpop.eup %3331 }
 0x95b   : > { %v1765_v46 = vmul.f32 %v3332_v45, %v3328_v34  ;;  %v3334_v49 = vpop.eup %3333  ;;  %v1878_v52 = vpop.xlane.xlu1 %1877  ;;  %v3092_v34 = vld [vmem:[#allocation18 + $0x64] sm:$0xf]  ;;  %v2920_v45 = vld [vmem:[#allocation18 + $0x40] sm:$0xf] }
 0x95c   : > { %v1823_v51 = vmul.f32 %v3334_v49, %v3326_v10  ;;  %3335 = vrcp.f32 %v1878_v52  ;;  %v2922_v49 = vld [vmem:[#allocation18 + $0x48] sm:$0xf0]  ;;  %v2912_v52 = vld [vmem:[#allocation18 + $0x30] sm:$0xf] }
 0x95d   : > { %v1766_v47 = vpack.c.bf16 %v1765_v46, %v1765_v46  ;;  %v3089_v46 = vld [vmem:[#allocation18 + $0x44] sm:$0xf0] }
 0x95e   : > { %v1824_v55 = vpack.c.bf16 %v1823_v51, %v1823_v51 }
 0x95f   : > { %2849 = vmatmul.msk.bf16.vlgmr.msra.gmra.mxu0 %vm1120_vm2, %v1766_v47  ;;  %v3088_v47 = vld [vmem:[#allocation18 + $0x44] sm:$0xf] }
 0x960   : > { %v1727_v48 = vpop.f32.mrf.mxu2  ;;  %v2925_v51 = vor.u32 %v3088_v47, %v2922_v49 }
 0x961   : > { %v2921_v48 = vor.u32 %v3089_v46, %v2920_v45  ;;  %v2048_v45 = vld [vmem:[#allocation19] sm:$0x3] }
 0x962   : > { %v3336_v56 = vpop.eup %3335  ;;  %v2050_v46 = vperm.slane %v2048_v45, 0  ;;  %v2051_v47 = vperm.slane %v2048_v45, 1 }
 0x963   : > { %v1880_v57 = vmul.f32 %v3336_v56, %v3330_v37  ;;  %v2941_v37 = vor.u32 %v3092_v34, %v2938_v36  ;;  %v2914_v56 = vld [vmem:[#allocation18 + $0x38] sm:$0xf0] }
 0x964   : > { %v3297_v36 = vld [vmem:[#allocation16] ss:$0 sm:$0xff] }
 0x965   : > { %v1881_v60 = vpack.c.bf16 %v1880_v57, %v1880_v57  ;;  %2148 = vmatpush.bf16.msrb.mxu3 %v2941_v37 }
 0x966   : > { %v1826_v53 = vpop.permute.xlu0 %1825 }
 0x967   : > { %v1831_v54 = vsel %vm1136_vm1, %v1826_v53, 0  ;;  %v3087_v53 = vld [vmem:[#allocation18 + $0x34] sm:$0xf0] }
 0x968   : > { %1840 = vmatpush.bf16.msrb.mxu2 %v1831_v54  ;;  %v3086_v54 = vld [vmem:[#allocation18 + $0x34] sm:$0xf] }
 0x969   : > { %v2917_v57 = vor.u32 %v3086_v54, %v2914_v56 }
 0x96b   : > { %2851 = vmatmul.msk.bf16.vlgmr.msrb.gmra.mxu2 %vm1120_vm2, %v1824_v55  ;;  %v2913_v55 = vor.u32 %v3087_v53, %v2912_v52 }
 0x96c   : > { %2134 = vmatpush.bf16.msra.mxu2 %v2945_v28  ;;  %v3107_v28 = vld [vmem:[#allocation21 + $0x58] sm:$0xff] }
 0x973   : > { %v1883_v58 = vpop.permute.xlu1 %1882 }
 0x974   : > { %v1888_v59 = vsel %vm1136_vm1, %v1883_v58, 0  ;;  %v2904_v58 = vld [vmem:[#allocation18 + $0x20] sm:$0xf] }
 0x975   : > { %1897 = vmatpush.bf16.msrb.mxu0 %v1888_v59  ;;  %v3085_v59 = vld [vmem:[#allocation18 + $0x24] sm:$0xf0] }
 0x978   : > { %2853 = vmatmul.msk.bf16.vlgmr.msrb.gmra.mxu0 %vm1120_vm2, %v1881_v60  ;;  %v3084_v60 = vld [vmem:[#allocation18 + $0x24] sm:$0xf] }
 0x9dc   : > { %v1785_v61 = vpop.f32.mrf.mxu0 }
 0x9dd   : > { %1904 = vrot.lane.b32.xlu0 %v1785_v61, %s3889_s11  ;;  %v2905_v61 = vor.u32 %v3085_v59, %v2904_v58  ;;  %v3298_v58 = vld [vmem:[#allocation22] ss:$0 sm:$0xff] }
 0x9e4   : > { %v1787_v63 = vpop.f32.mrf.mxu0 }
 0x9e5   : > { %v2906_v63 = vld [vmem:[#allocation18 + $0x28] sm:$0xf0] }
 0x9ee   : > { %v1842_v0 = vpop.f32.mrf.mxu2 }
 0x9ef   : > { %1908 = vrot.lane.b32.xlu2 %v1842_v0, %s3887_s9  ;;  %v2909_v0 = vor.u32 %v3084_v60, %v2906_v63 }
 0x9f5   : > { %v1899_v1 = vpop.f32.mrf.mxu0 }
 0x9f6   : > { %1912 = vrot.lane.b32.xlu0 %v1899_v1, %s3888_s5  ;;  %v1844_v50 = vpop.f32.mrf.mxu2  ;;  %v2896_v1 = vld [vmem:[#allocation18 + $0x10] sm:$0xf] }
 0x9f7   : > { %v3083_v50 = vld [vmem:[#allocation18 + $0x14] sm:$0xf0] }
 0x9f8   : > { %v2897_v3 = vor.u32 %v3083_v50, %v2896_v1 }
 0x9fd   : > { %v1901_v2 = vpop.f32.mrf.mxu0 }
 0x9fe   : > { %v3082_v2 = vld [vmem:[#allocation18 + $0x14] sm:$0xf] }
 0x9ff   : > { %v2901_v7 = vor.u32 %v3082_v2, %v2898_v4 }
 0xa49   : > { %v1909_v13 = vpop.permute.xlu2 %1908 }
 0xa4f   : > { %v1905_v38 = vpop.permute.xlu0 %1904 }
 0xa50   : > { %v1915_v12 = vsel %vm1099_vm0, %v1725_v43, %v1905_v38  ;;  %v2930_v43 = vld [vmem:[#allocation18 + $0x58] sm:$0xf0]  ;;  %v2893_v38 = vor.u32 %v3080_v9, %v2890_v62 }
 0xa51   : > { %v1916_v14 = vsel %vm1340_vm3, %v1915_v12, %v1909_v13  ;;  %v2933_v44 = vor.u32 %v3090_v41, %v2930_v43  ;;  %v3103_v12 = vld [vmem:[#allocation21 + $0x38] sm:$0xff]  ;;  %v3097_v41 = vld [vmem:[#allocation21 + $0x8] sm:$0xff]  ;;  %v3096_v43 = vld [vmem:[#allocation21] sm:$0xff] }
 0xa52   : > { %v3111_v13 = vld [vmem:[#allocation21 + $0x78] sm:$0xff]  ;;  %2296 = vmatpush.bf16.msra.mxu0 %v3103_v12 }
 0xa53   : > { %2149 = vmatpush.bf16.msrb.mxu3 %v2933_v44  ;;  %2309 = vmatpush.bf16.msrb.mxu1 %v3111_v13  ;;  %v3104_v44 = vld [vmem:[#allocation21 + $0x40] sm:$0xff] }
 0xa57   : > { %2150 = vmatpush.bf16.msrb.mxu3 %v2925_v51 }
 0xa5b   : > { %2151 = vmatpush.bf16.msrb.mxu3 %v2917_v57 }
 0xa5f   : > { %2152 = vmatpush.bf16.msrb.mxu3 %v2909_v0 }
 0xa63   : > { %2153 = vmatpush.bf16.msrb.mxu3 %v2901_v7 }
 0xa67   : > { %2154 = vmatpush.bf16.msrb.mxu3 %v2893_v38 }
 0xa68   : > { %v1913_v15 = vpop.permute.xlu0 %1912 }
 0xa69   : > { %v1917_v16 = vsel %vm1342_vm4, %v1916_v14, %v1913_v15 }
 0xa6a   : > { %v1918_v17 = vpack.c.bf16 %v1917_v16, %v1917_v16  ;;  %v3102_v16 = vld [vmem:[#allocation21 + $0x30] sm:$0xff] }
 0xa6b   : > { %2297 = vmatpush.bf16.msra.mxu0 %v3102_v16 }
 0xa6c   : > { %1995 = vmatmul.bf16.vlgmr.msra.gmra.mxu1 %v1918_v17  ;;  %v3110_v17 = vld [vmem:[#allocation21 + $0x70] sm:$0xff] }
 0xa6d   : > { %2310 = vmatpush.bf16.msrb.mxu1 %v3110_v17  ;;  %v3300_v17 = vld [vmem:[#allocation25] ss:$0 sm:$0xff] }
 0xae9   : > { %v1996_v19 = vpop.f32.mrf.mxu1 }
 0xaea   : > { %v1997_v20 = vadd.f32 %v3295_v18, %v1996_v19  ;;  %v3101_v19 = vld [vmem:[#allocation21 + $0x28] sm:$0xff] }
 0xaeb   : > { %2298 = vmatpush.bf16.msra.mxu0 %v3101_v19 }
 0xaec   : > { %v2000_v21 = vadd.f32 %v1997_v20, %v4367_v8  ;;  %v2936_v8 = vld [vmem:[#allocation18 + $0x60] sm:$0xf]  ;;  %v3109_v20 = vld [vmem:[#allocation21 + $0x68] sm:$0xff] }
 0xaed   : > { %v2937_v35 = vor.u32 %v3093_v33, %v2936_v8  ;;  %2311 = vmatpush.bf16.msrb.mxu1 %v3109_v20  ;;  %v3296_v33 = vld [vmem:[#allocation15] ss:$0 sm:$0xff] }
 0xaee   : > { %2003 = vadd.xlane.f32.xlu0 %v2000_v21 }
 0xaef   : > { %2135 = vmatpush.bf16.msra.mxu2 %v2937_v35 }
 0xaf1   : > { %v1998_v22 = vpop.f32.mrf.mxu1 }
 0xaf2   : > { %v3108_v22 = vld [vmem:[#allocation21 + $0x60] sm:$0xff] }
 0xaf3   : > { %2136 = vmatpush.bf16.msra.mxu2 %v2929_v42  ;;  %2312 = vmatpush.bf16.msrb.mxu1 %v3108_v22  ;;  %v3105_v42 = vld [vmem:[#allocation21 + $0x48] sm:$0xff] }
 0xaf7   : > { %2137 = vmatpush.bf16.msra.mxu2 %v2921_v48  ;;  %2313 = vmatpush.bf16.msrb.mxu1 %v3107_v28 }
 0xafb   : > { %2138 = vmatpush.bf16.msra.mxu2 %v2913_v55 }
 0xaff   : > { %2139 = vmatpush.bf16.msra.mxu2 %v2905_v61 }
 0xb03   : > { %2140 = vmatpush.bf16.msra.mxu2 %v2897_v3 }
 0xb07   : > { %2141 = vmatpush.bf16.msra.mxu2 %v2889_v11 }
 0xb61   : > { %v2004_v10 = vpop.xlane.xlu0 %2003 }
 0xb62   : > { %v2005_v30 = vmul.f32 %v2004_v10, %v4356_v25  ;;  %v3098_v10 = vld [vmem:[#allocation21 + $0x10] sm:$0xff] }
 0xb64   : > { %v4417_v31 = vsub.f32 %v2000_v21, %v2005_v30  ;;  %v3100_v21 = vld [vmem:[#allocation21 + $0x20] sm:$0xff]  ;;  %v3106_v30 = vld [vmem:[#allocation21 + $0x50] sm:$0xff] }
 0xb65   : > { %2299 = vmatpush.bf16.msra.mxu0 %v3100_v21  ;;  %2314 = vmatpush.bf16.msrb.mxu1 %v3106_v30 }
 0xb66   : > { %v2007_v32 = vmul.f32 %v4417_v31, %v4417_v31 }
 0xb68   : > { %2008 = vadd.xlane.f32.xlu1 %v2007_v32 }
 0xb69   : > { %2300 = vmatpush.bf16.msra.mxu0 %v3099_v27  ;;  %2315 = vmatpush.bf16.msrb.mxu1 %v3105_v42 }
 0xb6d   : > { %2301 = vmatpush.bf16.msra.mxu0 %v3098_v10  ;;  %2316 = vmatpush.bf16.msrb.mxu1 %v3104_v44 }
 0xb71   : > { %2302 = vmatpush.bf16.msra.mxu0 %v3097_v41 }
 0xb75   : > { %2303 = vmatpush.bf16.msra.mxu0 %v3096_v43 }
 0xbdb   : > { %v2009_v14 = vpop.xlane.xlu1 %2008 }
 0xbdc   : > { %v2010_v15 = vmul.f32 %v2009_v14, %v4356_v25 }
 0xbde   : > { %v2011_v18 = vadd.f32 1e-05, %v2010_v15  ;;  %v3299_v15 = vld [vmem:[#allocation24] ss:$0 sm:$0xff] }
 0xbe0   : > { %3337 = vrsqrt.f32 %v2011_v18  ;;  %vm2018_vm10 = vweird.f32 %v2011_v18 }
 0xbe6   : > { %v3338_v23 = vpop.eup %3337 }
 0xbe7   : > { %v2013_v24 = vmul.f32 %v3338_v23, %v2011_v18  ;;  %vm2019_vm9 = vweird.f32 %v3338_v23 }
 0xbe8   : > { %vm2020_vm11 = vmor %vm2018_vm10, %vm2019_vm9 }
 0xbe9   : > { %v2014_v29 = vmul.f32 %v3338_v23, %v2013_v24 }
 0xbeb   : > { %v2015_v26 = vmul.f32 0.5, %v2014_v29 }
 0xbed   : > { %v2016_v32 = vsub.f32 1.5, %v2015_v26 }
 0xbef   : > { %v2017_v8 = vmul.f32 %v3338_v23, %v2016_v32 }
 0xbf1   : > { %v2021_v34 = vsel %vm2020_vm11, %v3338_v23, %v2017_v8 }
 0xbf2   : > { %v2022_v35 = vmul.f32 %v2021_v34, %v4417_v31 }
 0xbf4   : > { %v2026_v37 = vmul.f32 %v3296_v33, %v2022_v35 }
 0xbf6   : > { %v2030_v39 = vadd.f32 %v3297_v36, %v2026_v37 }
 0xbf8   : > { %v2031_v40 = vpack.c.bf16 %v2030_v39, %v2030_v39 }
 0xbfa   : > { %2142 = vmatmul.bf16.vlgmr.msra.gmra.mxu2 %v2031_v40  ;;  %2155 = vmatmul.bf16.vlgmr.msrb.gmra.mxu3 %v2031_v40 }
 0xc7d   : > { %v2143_v48 = vpop.f32.mrf.mxu2  ;;  %v2156_v49 = vpop.f32.mrf.mxu3 }
 0xc7e   : > { %v2144_v31 = vadd.f32 %v2143_v48, %v2050_v46  ;;  %v2157_v51 = vadd.f32 %v2156_v49, %v2051_v47 }
 0xc80   : > { %v2160_v52 = vmax.f32 %v2144_v31, 0.0  ;;  %v2161_v53 = vmax.f32 %v2157_v51, 0.0 }
 0xc82   : > { %v2162_v54 = vpack.c.bf16 %v2160_v52, %v2160_v52  ;;  %v2163_v55 = vpack.c.bf16 %v2161_v53, %v2161_v53 }
 0xc84   : > { %2304 = vmatmul.bf16.vlgmr.msra.gmra.mxu0 %v2162_v54  ;;  %2317 = vmatmul.bf16.vlgmr.msrb.gmra.mxu1 %v2163_v55 }
 0xc85   : > { %v2145_v56 = vpop.f32.mrf.mxu2  ;;  %v2158_v57 = vpop.f32.mrf.mxu3 }
 0xd01   : > { %v2305_v59 = vpop.f32.mrf.mxu0  ;;  %v2318_v60 = vpop.f32.mrf.mxu1 }
 0xd02   : > { %v2306_v61 = vadd.f32 %v3298_v58, %v2305_v59 }
 0xd04   : > { %v2319_v63 = vadd.f32 %v2318_v60, %v2306_v61 }
 0xd06   : > { %v2322_v0 = vadd.f32 %v2319_v63, %v2030_v39 }
 0xd08   : > { %2325 = vadd.xlane.f32.xlu2 %v2322_v0 }
 0xd09   : > { %v2307_v1 = vpop.f32.mrf.mxu0  ;;  %v2320_v50 = vpop.f32.mrf.mxu1 }
 0xd7b   : > { %v2326_v2 = vpop.xlane.xlu2 %2325 }
 0xd7c   : > { %v2327_v3 = vmul.f32 %v2326_v2, %v4356_v25 }
 0xd7e   : > { %v2328_v4 = vsub.f32 %v2322_v0, %v2327_v3 }
 0xd80   : > { %v2329_v5 = vmul.f32 %v2328_v4, %v2328_v4 }
 0xd82   : > { %2330 = vadd.xlane.f32.xlu0 %v2329_v5 }
 0xdf5   : > { %v2331_v6 = vpop.xlane.xlu0 %2330 }
 0xdf6   : > { %v2332_v7 = vmul.f32 %v2331_v6, %v4356_v25 }
 0xdf8   : > { %v2333_v9 = vadd.f32 1e-05, %v2332_v7 }
 0xdfa   : > { %3339 = vrsqrt.f32 %v2333_v9  ;;  %vm2340_vm13 = vweird.f32 %v2333_v9 }
 0xe00   : > { %v3340_v62 = vpop.eup %3339 }
 0xe01   : > { %v2335_v11 = vmul.f32 %v3340_v62, %v2333_v9  ;;  %vm2341_vm12 = vweird.f32 %v3340_v62 }
 0xe02   : > { %vm2342_vm14 = vmor %vm2340_vm13, %vm2341_vm12 }
 0xe03   : > { %v2336_v38 = vmul.f32 %v3340_v62, %v2335_v11 }
 0xe05   : > { %v2337_v12 = vmul.f32 0.5, %v2336_v38 }
 0xe07   : > { %v2338_v13 = vsub.f32 1.5, %v2337_v12 }
 0xe09   : > { %v2339_v14 = vmul.f32 %v3340_v62, %v2338_v13 }
 0xe0b   : > { %v2343_v16 = vsel %vm2342_vm14, %v3340_v62, %v2339_v14 }
 0xe0c   : > { %v2344_v18 = vmul.f32 %v2343_v16, %v2328_v4 }
 0xe0e   : > { %v2348_v19 = vmul.f32 %v3299_v15, %v2344_v18 }
 0xe10   : > { %v2352_v25 = vadd.f32 %v3300_v17, %v2348_v19 }
 0xe12   : > { %2353 = vst [vmem:[%s884_s25] sm:$0xff] %v2352_v25 }
 0xe13 PF: > { %s39_s1 = sadd.s32 1, %s3863_s1  }
 0xe14   : > { %p36_p7 = scmp.ge.s32.totalorder %s39_s1, 4  }
 0xe16   :  { %38 = sbr.rel (!%p36_p7) target bundleno = 19 (0x13), region = 198 }
 0xe1b   :  { %2373 = vsyncpa [#allocation3], 1 }
 0xe1c   :  { %2375 = vsyncpa [#allocation3 + $0x1], 1 }
 0xe1d   :  { %2376 = vsyncpa [#allocation5], 1 }
 0xe1e   :  { %2377 = vsyncpa [#allocation8], 1 }
 0xe1f   :  { %2378 = vsyncpa [#allocation11], 1 }
 0xe20   :  { %2379 = vsyncpa [#allocation14], 1 }
 0xe21   :  { %2380 = vsyncpa [#allocation17], 1 }
 0xe22   :  { %2381 = vsyncpa [#allocation20], 1 }
 0xe23   :  { %2382 = vsyncpa [#allocation23], 1 }
 0xe24   :  { %2383 = vsyncpa [#allocation26], 1 }

// kernel: transformer_model_forward.11
= control target key start
LH: loop header
LB: loop body
LE: loop exit
PB: predicated region body
PF: predicated region fallthrough
CT: control target
= control target key end

     0   :  { %10 = vsyncpa [#allocation3], 0  ;;  %s1296_s18 = smov 0   ;;  %s1362_s0 = inlined_call_operand.vmem [shape: f32[2,8,128], index: 0, kind: input, shape index: {}]   ;;  %s1363_s1 = inlined_call_operand.vmem [shape: f32[1,128], index: 1, kind: input, shape index: {}]   ;;  %s1364_s2 = inlined_call_operand.vmem [shape: f32[1,128], index: 2, kind: input, shape index: {}]   ;;  %s1365_s3 = inlined_call_operand.hbm [shape: bf16[128,1024], index: 3, kind: input, shape index: {}]   ;;  %s1366_s4 = inlined_call_operand.vmem [shape: f32[1,1024], index: 4, kind: input, shape index: {}]   ;;  %s1367_s5 = inlined_call_operand.vmem [shape: f32[2,8,1024], index: 5, kind: output, shape index: {}]  }
   0x1 LB: > { %s174_s21 = sshll.u32 %s1365_s3, 4  ;;  %s859_s22 = sadd.s32 4294967295, %s1260_s18   ;;  %s1260_s18 = sphi %s1296_s18, %s16_s18   ;;  %s175_s21 = int_to_ptr.hbm [resolvable:$true] %s174_s21 }
   0x2   : > { %p861_p0 = scmp.ge.s32.totalorder %s1260_s18, 1  ;;  %p157_p1 = scmp.lt.s32.totalorder %s1260_s18, 3 }
   0x3   : > { %p1200_p2 = scmp.eq.s32.totalorder %s859_s22, 0  ;;  %s1262_s23 = smov [#allocation2]  }
   0x4   : > { %p158_p3 = pnand %p861_p0, %p157_p1  ;;  %s176_s24 = sshll.u32 %s1262_s23, 4  ;;  %s177_s24 = int_to_ptr.vmem [resolvable:$true] %s176_s24 }
   0x5   : > { %s1263_s25 = smov 512   ;;  %s1264_s26 = smov 32  }
   0x6   : > { %p1196_p4 = pneg %p158_p3  ;;  %202 = sbr.rel (%p158_p3) target bundleno = 443 (0x1bb), region = 40 }
   0x8   : > { %p1197_p5 = pnand %p1200_p2, %p1196_p4 }
   0xa   : > { %1199 = dma.hbm_to_vmem [thread:$0]  (!%p1197_p5), %s175_s21, 8192, %s177_s24, [#allocation3], %s1263_s25, %s1263_s25, %s1264_s26  }
   0xb   : > { %1255 = dma.done.wait (%p1200_p2), [#allocation3], 8192  }
   0xc   : > { %1257 = vsyncadd (%p1200_p2), [#allocation3], 4294959104  ;;  %p230_p6 = scmp.lt.s32.totalorder %s859_s22, 1  ;;  %v1265_v1 = vmov 128.0   ;;  %v1095_v4 = vld [vmem:[#allocation2 + $0x1c0] sm:$0xf] }
   0xd   : > { %1216 = vrcp.f32 %v1265_v1  ;;  %v1188_v5 = vld [vmem:[#allocation2 + $0x1dc] sm:$0xf0]  ;;  %v1184_v6 = vld [vmem:[#allocation2 + $0x1c4] sm:$0xf]  ;;  %v1103_v9 = vld [vmem:[#allocation2 + $0x1c8] sm:$0xf] }
   0xe   : > { %s1369_s22 = smov (!%p230_p6, %s859_s22), 1  ;;  %v1096_v7 = vor.u32 %v1188_v5, %v1095_v4  ;;  %v1097_v8 = vld [vmem:[#allocation2 + $0x1e0] sm:$0xf0]  ;;  %v1189_v10 = vld [vmem:[#allocation2 + $0x1e4] sm:$0xf0] }
   0xf   : > { %s866_s27 = sshll.u32 %s1369_s22, 3  ;;  %v1100_v11 = vor.u32 %v1184_v6, %v1097_v8  ;;  %v1104_v12 = vor.u32 %v1189_v10, %v1103_v9  ;;  %v1185_v13 = vld [vmem:[#allocation2 + $0x1cc] sm:$0xf]  ;;  %v1063_v15 = vld [vmem:[#allocation2 + $0x180] sm:$0xf]  ;;  %s1127_s12 = sshll.u32 %s1369_s22, 6 }
  0x10   : > { %s233_s30 = scalar_lea.vmem %s1362_s0, %s866_s27  ;;  %v1105_v14 = vld [vmem:[#allocation2 + $0x1e8] sm:$0xf0]  ;;  %680 = vmatpush.bf16.msra.mxu0 %v1096_v7  ;;  %v1180_v17 = vld [vmem:[#allocation2 + $0x19c] sm:$0xf0]  ;;  %v1176_v18 = vld [vmem:[#allocation2 + $0x184] sm:$0xf]  ;;  %s1349_s15 = scalar_lea.vmem %s1367_s5, %s1127_s12 }
  0x11   : > { %v1313_v0 = vld [vmem:[%s233_s30] sm:$0xff]  ;;  %v1108_v16 = vor.u32 %v1185_v13, %v1105_v14  ;;  %693 = vmatpush.bf16.msra.mxu1 %v1100_v11  ;;  %706 = vmatpush.bf16.msra.mxu2 %v1104_v12  ;;  %v1064_v20 = vor.u32 %v1180_v17, %v1063_v15  ;;  %v1071_v22 = vld [vmem:[#allocation2 + $0x188] sm:$0xf]  ;;  %v1177_v24 = vld [vmem:[#allocation2 + $0x18c] sm:$0xf] }
  0x12   : > { %242 = vadd.xlane.f32.xlu0 %v1313_v0  ;;  %v1065_v19 = vld [vmem:[#allocation2 + $0x1a0] sm:$0xf0]  ;;  %v1181_v23 = vld [vmem:[#allocation2 + $0x1a4] sm:$0xf0]  ;;  %v1073_v26 = vld [vmem:[#allocation2 + $0x1a8] sm:$0xf0] }
  0x13   : > { %v1316_v2 = vpop.eup %1216  ;;  %v1068_v21 = vor.u32 %v1176_v18, %v1065_v19  ;;  %719 = vmatpush.bf16.msra.mxu3 %v1108_v16  ;;  %v1072_v25 = vor.u32 %v1181_v23, %v1071_v22  ;;  %v1031_v27 = vld [vmem:[#allocation2 + $0x140] sm:$0xf]  ;;  %v1076_v29 = vor.u32 %v1177_v24, %v1073_v26  ;;  %v1168_v30 = vld [vmem:[#allocation2 + $0x144] sm:$0xf]  ;;  %v1039_v32 = vld [vmem:[#allocation2 + $0x148] sm:$0xf] }
  0x14   : > { %v1319_v3 = vmul.f32 128.0, %v1316_v2  ;;  %v1172_v28 = vld [vmem:[#allocation2 + $0x15c] sm:$0xf0]  ;;  %v1033_v31 = vld [vmem:[#allocation2 + $0x160] sm:$0xf0]  ;;  %681 = vmatpush.bf16.msra.mxu0 %v1064_v20  ;;  %vm249_vm0 = vweird.f32 %v1316_v2 }
  0x15   : > { %v1032_v33 = vor.u32 %v1172_v28, %v1031_v27  ;;  %v1173_v34 = vld [vmem:[#allocation2 + $0x164] sm:$0xf0]  ;;  %v1169_v35 = vld [vmem:[#allocation2 + $0x14c] sm:$0xf]  ;;  %694 = vmatpush.bf16.msra.mxu1 %v1068_v21  ;;  %707 = vmatpush.bf16.msra.mxu2 %v1072_v25  ;;  %v1036_v37 = vor.u32 %v1168_v30, %v1033_v31  ;;  %v999_v39 = vld [vmem:[#allocation2 + $0x100] sm:$0xf] }
  0x16   : > { %v1041_v36 = vld [vmem:[#allocation2 + $0x168] sm:$0xf0]  ;;  %v1040_v38 = vor.u32 %v1173_v34, %v1039_v32  ;;  %v1164_v40 = vld [vmem:[#allocation2 + $0x11c] sm:$0xf0]  ;;  %v1160_v41 = vld [vmem:[#allocation2 + $0x104] sm:$0xf] }
  0x17   : > { %720 = vmatpush.bf16.msra.mxu3 %v1076_v29  ;;  %v1044_v42 = vor.u32 %v1169_v35, %v1041_v36  ;;  %v1001_v43 = vld [vmem:[#allocation2 + $0x120] sm:$0xf0]  ;;  %v1007_v44 = vld [vmem:[#allocation2 + $0x108] sm:$0xf]  ;;  %v1161_v46 = vld [vmem:[#allocation2 + $0x10c] sm:$0xf]  ;;  %v1000_v49 = vor.u32 %v1164_v40, %v999_v39 }
  0x18   : > { %v1165_v45 = vld [vmem:[#allocation2 + $0x124] sm:$0xf0]  ;;  %v1009_v47 = vld [vmem:[#allocation2 + $0x128] sm:$0xf0]  ;;  %v246_v48 = vsub.f32 1.0, %v1319_v3  ;;  %682 = vmatpush.bf16.msra.mxu0 %v1032_v33  ;;  %v1004_v50 = vor.u32 %v1160_v41, %v1001_v43 }
  0x19   : > { %695 = vmatpush.bf16.msra.mxu1 %v1036_v37  ;;  %708 = vmatpush.bf16.msra.mxu2 %v1040_v38  ;;  %v1008_v51 = vor.u32 %v1165_v45, %v1007_v44  ;;  %v1012_v52 = vor.u32 %v1161_v46, %v1009_v47  ;;  %v967_v60 = vld [vmem:[#allocation2 + $0xc0] sm:$0xf]  ;;  %v1152_v62 = vld [vmem:[#allocation2 + $0xc4] sm:$0xf]  ;;  %v975_v3 = vld [vmem:[#allocation2 + $0xc8] sm:$0xf] }
  0x1a   : > { %v247_v53 = vmul.f32 %v1316_v2, %v246_v48  ;;  %v1156_v61 = vld [vmem:[#allocation2 + $0xdc] sm:$0xf0]  ;;  %v969_v1 = vld [vmem:[#allocation2 + $0xe0] sm:$0xf0]  ;;  %v1157_v4 = vld [vmem:[#allocation2 + $0xe4] sm:$0xf0] }
  0x1b   : > { %721 = vmatpush.bf16.msra.mxu3 %v1044_v42  ;;  %v968_v63 = vor.u32 %v1156_v61, %v967_v60  ;;  %v972_v5 = vor.u32 %v1152_v62, %v969_v1  ;;  %v1153_v6 = vld [vmem:[#allocation2 + $0xcc] sm:$0xf]  ;;  %v1148_v9 = vld [vmem:[#allocation2 + $0x9c] sm:$0xf0]  ;;  %v1144_v10 = vld [vmem:[#allocation2 + $0x84] sm:$0xf] }
  0x1c   : > { %683 = vmatpush.bf16.msra.mxu0 %v1000_v49  ;;  %v248_v54 = vadd.f32 %v1316_v2, %v247_v53  ;;  %v977_v7 = vld [vmem:[#allocation2 + $0xe8] sm:$0xf0]  ;;  %v937_v12 = vld [vmem:[#allocation2 + $0xa0] sm:$0xf0]  ;;  %v943_v13 = vld [vmem:[#allocation2 + $0x88] sm:$0xf] }
  0x1d   : > { %696 = vmatpush.bf16.msra.mxu1 %v1004_v50  ;;  %709 = vmatpush.bf16.msra.mxu2 %v1008_v51  ;;  %v980_v8 = vor.u32 %v1153_v6, %v977_v7  ;;  %v1149_v14 = vld [vmem:[#allocation2 + $0xa4] sm:$0xf0]  ;;  %v940_v15 = vor.u32 %v1144_v10, %v937_v12  ;;  %v1145_v17 = vld [vmem:[#allocation2 + $0x8c] sm:$0xf]  ;;  %v903_v20 = vld [vmem:[#allocation2 + $0x40] sm:$0xf] }
  0x1e   : > { %v1326_v55 = vsel %vm249_vm0, %v1316_v2, %v248_v54  ;;  %v976_v2 = vor.u32 %v1157_v4, %v975_v3  ;;  %v944_v16 = vor.u32 %v1149_v14, %v943_v13  ;;  %v945_v18 = vld [vmem:[#allocation2 + $0xa8] sm:$0xf0]  ;;  %v1140_v21 = vld [vmem:[#allocation2 + $0x5c] sm:$0xf0]  ;;  %v1136_v22 = vld [vmem:[#allocation2 + $0x44] sm:$0xf] }
  0x1f   : > { %722 = vmatpush.bf16.msra.mxu3 %v1012_v52  ;;  %v948_v19 = vor.u32 %v1145_v17, %v945_v18  ;;  %v904_v23 = vor.u32 %v1140_v21, %v903_v20  ;;  %v905_v24 = vld [vmem:[#allocation2 + $0x60] sm:$0xf0]  ;;  %v911_v25 = vld [vmem:[#allocation2 + $0x48] sm:$0xf]  ;;  %v1137_v29 = vld [vmem:[#allocation2 + $0x4c] sm:$0xf] }
  0x20   : > { %684 = vmatpush.bf16.msra.mxu0 %v968_v63  ;;  %v1141_v26 = vld [vmem:[#allocation2 + $0x64] sm:$0xf0]  ;;  %v908_v27 = vor.u32 %v1136_v22, %v905_v24  ;;  %v913_v30 = vld [vmem:[#allocation2 + $0x68] sm:$0xf0]  ;;  %v871_v32 = vld [vmem:[#allocation2] sm:$0xf] }
  0x21   : > { %697 = vmatpush.bf16.msra.mxu1 %v972_v5  ;;  %710 = vmatpush.bf16.msra.mxu2 %v976_v2  ;;  %v912_v28 = vor.u32 %v1141_v26, %v911_v25  ;;  %v916_v31 = vor.u32 %v1137_v29, %v913_v30  ;;  %v1132_v33 = vld [vmem:[#allocation2 + $0x1c] sm:$0xf0]  ;;  %v1128_v34 = vld [vmem:[#allocation2 + $0x4] sm:$0xf]  ;;  %v879_v37 = vld [vmem:[#allocation2 + $0x8] sm:$0xf] }
  0x22   : > { %v872_v35 = vor.u32 %v1132_v33, %v871_v32  ;;  %v873_v36 = vld [vmem:[#allocation2 + $0x20] sm:$0xf0]  ;;  %v1133_v38 = vld [vmem:[#allocation2 + $0x24] sm:$0xf0]  ;;  %v1129_v41 = vld [vmem:[#allocation2 + $0xc] sm:$0xf] }
  0x23   : > { %723 = vmatpush.bf16.msra.mxu3 %v980_v8  ;;  %v876_v39 = vor.u32 %v1128_v34, %v873_v36  ;;  %v880_v40 = vor.u32 %v1133_v38, %v879_v37  ;;  %v881_v42 = vld [vmem:[#allocation2 + $0x28] sm:$0xf0]  ;;  %v1111_v43 = vld [vmem:[#allocation2 + $0x1d0] sm:$0xf]  ;;  %v1186_v46 = vld [vmem:[#allocation2 + $0x1d4] sm:$0xf] }
  0x24   : > { %v884_v44 = vor.u32 %v1129_v41, %v881_v42  ;;  %v1190_v45 = vld [vmem:[#allocation2 + $0x1ec] sm:$0xf0]  ;;  %v1113_v47 = vld [vmem:[#allocation2 + $0x1f0] sm:$0xf0]  ;;  %v1119_v50 = vld [vmem:[#allocation2 + $0x1d8] sm:$0xf] }
  0x25   : > { %698 = vmatpush.bf16.msra.mxu1 %v940_v15  ;;  %711 = vmatpush.bf16.msra.mxu2 %v944_v16  ;;  %v1112_v48 = vor.u32 %v1190_v45, %v1111_v43  ;;  %v1116_v49 = vor.u32 %v1186_v46, %v1113_v47  ;;  %v1191_v51 = vld [vmem:[#allocation2 + $0x1f4] sm:$0xf0]  ;;  %v1187_v52 = vld [vmem:[#allocation2 + $0x1dc] sm:$0xf]  ;;  %v1178_v61 = vld [vmem:[#allocation2 + $0x194] sm:$0xf] }
  0x26   : > { %v1120_v53 = vor.u32 %v1191_v51, %v1119_v50  ;;  %v1121_v54 = vld [vmem:[#allocation2 + $0x1f8] sm:$0xf0]  ;;  %v1081_v62 = vld [vmem:[#allocation2 + $0x1b0] sm:$0xf0]  ;;  %v1087_v63 = vld [vmem:[#allocation2 + $0x198] sm:$0xf] }
  0x27   : > { %724 = vmatpush.bf16.msra.mxu3 %v948_v19  ;;  %v1084_v1 = vor.u32 %v1178_v61, %v1081_v62  ;;  %v1183_v3 = vld [vmem:[#allocation2 + $0x1b4] sm:$0xf0]  ;;  %v1179_v4 = vld [vmem:[#allocation2 + $0x19c] sm:$0xf]  ;;  %v1047_v7 = vld [vmem:[#allocation2 + $0x150] sm:$0xf] }
  0x28   : > { %v1089_v5 = vld [vmem:[#allocation2 + $0x1b8] sm:$0xf0]  ;;  %v1088_v2 = vor.u32 %v1183_v3, %v1087_v63  ;;  %v1174_v8 = vld [vmem:[#allocation2 + $0x16c] sm:$0xf0]  ;;  %v1049_v10 = vld [vmem:[#allocation2 + $0x170] sm:$0xf0] }
  0x29   : > { %699 = vmatpush.bf16.msra.mxu1 %v908_v27  ;;  %712 = vmatpush.bf16.msra.mxu2 %v912_v28  ;;  %v1092_v6 = vor.u32 %v1179_v4, %v1089_v5  ;;  %v1175_v12 = vld [vmem:[#allocation2 + $0x174] sm:$0xf0]  ;;  %v1171_v15 = vld [vmem:[#allocation2 + $0x15c] sm:$0xf]  ;;  %v1015_v18 = vld [vmem:[#allocation2 + $0x110] sm:$0xf] }
  0x2a   : > { %v1057_v16 = vld [vmem:[#allocation2 + $0x178] sm:$0xf0]  ;;  %v1166_v19 = vld [vmem:[#allocation2 + $0x12c] sm:$0xf0]  ;;  %v1162_v20 = vld [vmem:[#allocation2 + $0x114] sm:$0xf] }
  0x2b   : > { %725 = vmatpush.bf16.msra.mxu3 %v916_v31  ;;  %v1060_v17 = vor.u32 %v1171_v15, %v1057_v16  ;;  %v1016_v21 = vor.u32 %v1166_v19, %v1015_v18  ;;  %v1017_v22 = vld [vmem:[#allocation2 + $0x130] sm:$0xf0]  ;;  %v1167_v24 = vld [vmem:[#allocation2 + $0x134] sm:$0xf0]  ;;  %v1163_v27 = vld [vmem:[#allocation2 + $0x11c] sm:$0xf] }
  0x2c   : > { %v1020_v25 = vor.u32 %v1162_v20, %v1017_v22  ;;  %v1025_v28 = vld [vmem:[#allocation2 + $0x138] sm:$0xf0]  ;;  %v983_v30 = vld [vmem:[#allocation2 + $0xd0] sm:$0xf]  ;;  %v1154_v32 = vld [vmem:[#allocation2 + $0xd4] sm:$0xf] }
  0x2d   : > { %700 = vmatpush.bf16.msra.mxu1 %v876_v39  ;;  %713 = vmatpush.bf16.msra.mxu2 %v880_v40  ;;  %v1028_v29 = vor.u32 %v1163_v27, %v1025_v28  ;;  %v1158_v31 = vld [vmem:[#allocation2 + $0xec] sm:$0xf0]  ;;  %v985_v34 = vld [vmem:[#allocation2 + $0xf0] sm:$0xf0]  ;;  %v1159_v36 = vld [vmem:[#allocation2 + $0xf4] sm:$0xf0] }
  0x2e   : > { %v984_v33 = vor.u32 %v1158_v31, %v983_v30  ;;  %v988_v38 = vor.u32 %v1154_v32, %v985_v34  ;;  %v1155_v40 = vld [vmem:[#allocation2 + $0xdc] sm:$0xf]  ;;  %v951_v42 = vld [vmem:[#allocation2 + $0x90] sm:$0xf]  ;;  %v1146_v46 = vld [vmem:[#allocation2 + $0x94] sm:$0xf] }
  0x2f   : > { %726 = vmatpush.bf16.msra.mxu3 %v884_v44  ;;  %v993_v41 = vld [vmem:[#allocation2 + $0xf8] sm:$0xf0]  ;;  %v1150_v45 = vld [vmem:[#allocation2 + $0xac] sm:$0xf0]  ;;  %v953_v47 = vld [vmem:[#allocation2 + $0xb0] sm:$0xf0] }
  0x30   : > { %v996_v44 = vor.u32 %v1155_v40, %v993_v41  ;;  %v959_v50 = vld [vmem:[#allocation2 + $0x98] sm:$0xf]  ;;  %v921_v61 = vld [vmem:[#allocation2 + $0x70] sm:$0xf0]  ;;  %v929_v5 = vld [vmem:[#allocation2 + $0x78] sm:$0xf0] }
  0x31   : > { %745 = vmatpush.bf16.msrb.mxu1 %v1116_v49  ;;  %758 = vmatpush.bf16.msrb.mxu2 %v1120_v53  ;;  %v956_v49 = vor.u32 %v1146_v46, %v953_v47  ;;  %v1151_v51 = vld [vmem:[#allocation2 + $0xb4] sm:$0xf0]  ;;  %v342_v31 = vld [vmem:[%s1366_s4] sm:$0xff] }
  0x32   : > { %v927_v62 = vld [vmem:[#allocation2 + $0x58] sm:$0xf]  ;;  %v344_v32 = vperm.slane %v342_v31, 0  ;;  %v349_v46 = vperm.slane %v342_v31, 5 }
  0x33   : > { %v1143_v63 = vld [vmem:[#allocation2 + $0x74] sm:$0xf0] }
  0x35   : > { %746 = vmatpush.bf16.msrb.mxu1 %v1084_v1  ;;  %759 = vmatpush.bf16.msrb.mxu2 %v1088_v2  ;;  %v1139_v1 = vld [vmem:[#allocation2 + $0x5c] sm:$0xf]  ;;  %v887_v2 = vld [vmem:[#allocation2 + $0x10] sm:$0xf] }
  0x85   : > { %v243_v56 = vpop.xlane.xlu0 %242 }
  0x86   : > { %v251_v57 = vmul.f32 %v1326_v55, %v243_v56  ;;  %v1079_v56 = vld [vmem:[#allocation2 + $0x190] sm:$0xf] }
  0x88   : > { %v1330_v58 = vsub.f32 %v1313_v0, %v251_v57  ;;  %v935_v0 = vld [vmem:[#allocation2 + $0x80] sm:$0xf]  ;;  %v1182_v57 = vld [vmem:[#allocation2 + $0x1ac] sm:$0xf0] }
  0x89   : > { %v936_v11 = vor.u32 %v1148_v9, %v935_v0  ;;  %v1080_v60 = vor.u32 %v1182_v57, %v1079_v56  ;;  %v1170_v0 = vld [vmem:[#allocation2 + $0x154] sm:$0xf]  ;;  %v1048_v9 = vor.u32 %v1174_v8, %v1047_v7  ;;  %v961_v56 = vld [vmem:[#allocation2 + $0xb8] sm:$0xf0]  ;;  %v919_v57 = vld [vmem:[#allocation2 + $0x50] sm:$0xf] }
  0x8a   : > { %v253_v59 = vmul.f32 %v1330_v58, %v1330_v58  ;;  %v1052_v13 = vor.u32 %v1170_v0, %v1049_v10  ;;  %v1134_v7 = vld [vmem:[#allocation2 + $0x2c] sm:$0xf0]  ;;  %v1130_v8 = vld [vmem:[#allocation2 + $0x14] sm:$0xf]  ;;  %v895_v10 = vld [vmem:[#allocation2 + $0x18] sm:$0xf] }
  0x8b   : > { %685 = vmatpush.bf16.msra.mxu0 %v936_v11  ;;  %v1055_v11 = vld [vmem:[#allocation2 + $0x158] sm:$0xf]  ;;  %v889_v0 = vld [vmem:[#allocation2 + $0x30] sm:$0xf0] }
  0x8c   : > { %254 = vadd.xlane.f32.xlu0 %v253_v59  ;;  %v1124_v59 = vor.u32 %v1187_v52, %v1121_v54  ;;  %v1056_v14 = vor.u32 %v1175_v12, %v1055_v11  ;;  %747 = vmatpush.bf16.msrb.mxu1 %v1052_v13  ;;  %v1147_v52 = vld [vmem:[#allocation2 + $0x9c] sm:$0xf]  ;;  %v960_v54 = vor.u32 %v1151_v51, %v959_v50  ;;  %v1135_v11 = vld [vmem:[#allocation2 + $0x34] sm:$0xf0] }
  0x8d   : > { %v1131_v12 = vld [vmem:[#allocation2 + $0x1c] sm:$0xf]  ;;  %v892_v15 = vor.u32 %v1130_v8, %v889_v0 }
  0x8e   : > { %771 = vmatpush.bf16.msrb.mxu3 %v1124_v59  ;;  %760 = vmatpush.bf16.msrb.mxu2 %v1056_v14  ;;  %v964_v59 = vor.u32 %v1147_v52, %v961_v56  ;;  %v897_v13 = vld [vmem:[#allocation2 + $0x38] sm:$0xf0]  ;;  %v888_v14 = vor.u32 %v1134_v7, %v887_v2 }
  0x8f   : > { %686 = vmatpush.bf16.msra.mxu0 %v904_v23  ;;  %v1023_v23 = vld [vmem:[#allocation2 + $0x118] sm:$0xf]  ;;  %v900_v19 = vor.u32 %v1131_v12, %v897_v13 }
  0x90   : > { %v1024_v26 = vor.u32 %v1167_v24, %v1023_v23  ;;  %748 = vmatpush.bf16.msrb.mxu1 %v1020_v25  ;;  %v1214_v24 = vld [vmem:[%s1363_s1] ss:$0 sm:$0xff] }
  0x92   : > { %772 = vmatpush.bf16.msrb.mxu3 %v1092_v6  ;;  %761 = vmatpush.bf16.msrb.mxu2 %v1024_v26  ;;  %v928_v6 = vor.u32 %v1143_v63, %v927_v62  ;;  %v1215_v26 = vld [vmem:[%s1364_s2] ss:$0 sm:$0xff] }
  0x93   : > { %687 = vmatpush.bf16.msra.mxu0 %v872_v35  ;;  %v991_v35 = vld [vmem:[#allocation2 + $0xd8] sm:$0xf] }
  0x94   : > { %v992_v39 = vor.u32 %v1159_v36, %v991_v35  ;;  %749 = vmatpush.bf16.msrb.mxu1 %v988_v38  ;;  %v347_v38 = vperm.slane %v342_v31, 3 }
  0x96   : > { %773 = vmatpush.bf16.msrb.mxu3 %v1060_v17  ;;  %762 = vmatpush.bf16.msrb.mxu2 %v992_v39  ;;  %v896_v17 = vor.u32 %v1135_v11, %v895_v10 }
  0x97   : > { %732 = vmatpush.bf16.msrb.mxu0 %v1112_v48  ;;  %v952_v48 = vor.u32 %v1150_v45, %v951_v42  ;;  %v348_v45 = vperm.slane %v342_v31, 4 }
  0x98   : > { %750 = vmatpush.bf16.msrb.mxu1 %v956_v49 }
  0x9a   : > { %774 = vmatpush.bf16.msrb.mxu3 %v1028_v29  ;;  %763 = vmatpush.bf16.msrb.mxu2 %v960_v54  ;;  %v351_v54 = vperm.slane %v342_v31, 7 }
  0x9b   : > { %733 = vmatpush.bf16.msrb.mxu0 %v1080_v60  ;;  %v1142_v60 = vld [vmem:[#allocation2 + $0x6c] sm:$0xf0] }
  0x9c   : > { %v920_v3 = vor.u32 %v1142_v60, %v919_v57 }
  0x9e   : > { %775 = vmatpush.bf16.msrb.mxu3 %v996_v44  ;;  %764 = vmatpush.bf16.msrb.mxu2 %v928_v6 }
  0x9f   : > { %734 = vmatpush.bf16.msrb.mxu0 %v1048_v9  ;;  %v932_v9 = vor.u32 %v1139_v1, %v929_v5 }
  0xa2   : > { %776 = vmatpush.bf16.msrb.mxu3 %v964_v59  ;;  %765 = vmatpush.bf16.msrb.mxu2 %v896_v17 }
  0xa3   : > { %735 = vmatpush.bf16.msrb.mxu0 %v1016_v21 }
  0xa6   : > { %777 = vmatpush.bf16.msrb.mxu3 %v932_v9 }
  0xa7   : > { %736 = vmatpush.bf16.msrb.mxu0 %v984_v33  ;;  %v345_v33 = vperm.slane %v342_v31, 1 }
  0xaa   : > { %778 = vmatpush.bf16.msrb.mxu3 %v900_v19 }
  0xab   : > { %737 = vmatpush.bf16.msrb.mxu0 %v952_v48 }
  0xaf   : > { %738 = vmatpush.bf16.msrb.mxu0 %v920_v3 }
  0xb3   : > { %739 = vmatpush.bf16.msrb.mxu0 %v888_v14 }
  0xff   : > { %v255_v37 = vpop.xlane.xlu0 %254 }
 0x100   : > { %v256_v43 = vmul.f32 %v255_v37, %v1326_v55  ;;  %v1138_v55 = vld [vmem:[#allocation2 + $0x54] sm:$0xf]  ;;  %v346_v37 = vperm.slane %v342_v31, 2 }
 0x101   : > { %v924_v4 = vor.u32 %v1138_v55, %v921_v61 }
 0x102   : > { %v257_v53 = vadd.f32 1e-05, %v256_v43 }
 0x103   : > { %751 = vmatpush.bf16.msrb.mxu1 %v924_v4 }
 0x104   : > { %1218 = vrsqrt.f32 %v257_v53  ;;  %vm264_vm2 = vweird.f32 %v257_v53 }
 0x107   : > { %752 = vmatpush.bf16.msrb.mxu1 %v892_v15 }
 0x10a   : > { %v1219_v16 = vpop.eup %1218 }
 0x10b   : > { %v259_v18 = vmul.f32 %v1219_v16, %v257_v53  ;;  %vm265_vm1 = vweird.f32 %v1219_v16  ;;  %v350_v53 = vperm.slane %v342_v31, 6 }
 0x10c   : > { %vm266_vm3 = vmor %vm264_vm2, %vm265_vm1 }
 0x10d   : > { %v260_v20 = vmul.f32 %v1219_v16, %v259_v18 }
 0x10f   : > { %v261_v21 = vmul.f32 0.5, %v260_v20 }
 0x111   : > { %v262_v22 = vsub.f32 1.5, %v261_v21 }
 0x113   : > { %v263_v23 = vmul.f32 %v1219_v16, %v262_v22 }
 0x115   : > { %v267_v25 = vsel %vm266_vm3, %v1219_v16, %v263_v23 }
 0x116   : > { %v268_v27 = vmul.f32 %v267_v25, %v1330_v58 }
 0x118   : > { %v272_v28 = vmul.f32 %v1214_v24, %v268_v27 }
 0x11a   : > { %v276_v29 = vadd.f32 %v1215_v26, %v272_v28 }
 0x11c   : > { %v277_v30 = vpack.c.bf16 %v276_v29, %v276_v29 }
 0x11e   : > { %688 = vmatmul.bf16.vlgmr.msra.gmra.mxu0 %v277_v30  ;;  %701 = vmatmul.bf16.vlgmr.msra.gmra.mxu1 %v277_v30 }
 0x11f   : > { %714 = vmatmul.bf16.vlgmr.msra.gmra.mxu2 %v277_v30  ;;  %727 = vmatmul.bf16.vlgmr.msra.gmra.mxu3 %v277_v30 }
 0x12e   : > { %740 = vmatmul.bf16.vlgmr.msrb.gmra.mxu0 %v277_v30  ;;  %753 = vmatmul.bf16.vlgmr.msrb.gmra.mxu1 %v277_v30 }
 0x12f   : > { %766 = vmatmul.bf16.vlgmr.msrb.gmra.mxu2 %v277_v30  ;;  %779 = vmatmul.bf16.vlgmr.msrb.gmra.mxu3 %v277_v30 }
 0x19b   : > { %v689_v58 = vpop.f32.mrf.mxu0  ;;  %v702_v34 = vpop.f32.mrf.mxu1 }
 0x19c   : > { %v690_v35 = vadd.f32 %v689_v58, %v344_v32  ;;  %v703_v36 = vadd.f32 %v702_v34, %v345_v33 }
 0x19e   : > { %784 = vst [vmem:[%s1349_s15] sm:$0xff] %v690_v35 }
 0x19f   : > { %785 = vst [vmem:[%s1349_s15 + $0x8] sm:$0xff] %v703_v36 }
 0x1a2   : > { %v715_v39 = vpop.f32.mrf.mxu2  ;;  %v728_v40 = vpop.f32.mrf.mxu3 }
 0x1a3   : > { %v716_v41 = vadd.f32 %v715_v39, %v346_v37  ;;  %v729_v42 = vadd.f32 %v728_v40, %v347_v38  ;;  %v691_v43 = vpop.f32.mrf.mxu0  ;;  %v704_v44 = vpop.f32.mrf.mxu1 }
 0x1a5   : > { %786 = vst [vmem:[%s1349_s15 + $0x10] sm:$0xff] %v716_v41 }
 0x1a6   : > { %787 = vst [vmem:[%s1349_s15 + $0x18] sm:$0xff] %v729_v42 }
 0x1aa   : > { %v717_v47 = vpop.f32.mrf.mxu2  ;;  %v730_v48 = vpop.f32.mrf.mxu3 }
 0x1ab   : > { %v741_v49 = vpop.f32.mrf.mxu0  ;;  %v754_v50 = vpop.f32.mrf.mxu1 }
 0x1ac   : > { %v742_v51 = vadd.f32 %v741_v49, %v348_v45  ;;  %v755_v52 = vadd.f32 %v754_v50, %v349_v46 }
 0x1ae   : > { %788 = vst [vmem:[%s1349_s15 + $0x20] sm:$0xff] %v742_v51 }
 0x1af   : > { %789 = vst [vmem:[%s1349_s15 + $0x28] sm:$0xff] %v755_v52 }
 0x1b2   : > { %v767_v56 = vpop.f32.mrf.mxu2  ;;  %v780_v57 = vpop.f32.mrf.mxu3 }
 0x1b3   : > { %v768_v59 = vadd.f32 %v767_v56, %v350_v53  ;;  %v781_v60 = vadd.f32 %v780_v57, %v351_v54  ;;  %v743_v55 = vpop.f32.mrf.mxu0  ;;  %v756_v61 = vpop.f32.mrf.mxu1 }
 0x1b5   : > { %790 = vst [vmem:[%s1349_s15 + $0x30] sm:$0xff] %v768_v59 }
 0x1b6   : > { %791 = vst [vmem:[%s1349_s15 + $0x38] sm:$0xff] %v781_v60 }
 0x1ba   : > { %v769_v62 = vpop.f32.mrf.mxu2  ;;  %v782_v63 = vpop.f32.mrf.mxu3 }
 0x1bb PF: > { %s16_s18 = sadd.s32 1, %s1260_s18  }
 0x1bc   : > { %p13_p7 = scmp.ge.s32.totalorder %s16_s18, 4  }
 0x1be   :  { %15 = sbr.rel (!%p13_p7) target bundleno = 1 (0x1), region = 75 }
 0x1c3   :  { %813 = vsyncpa [#allocation3], 1 }
 0x1c4   :  { %815 = vsyncpa [#allocation3 + $0x1], 1 }

// kernel: transformer_model_forward.10
= control target key start
LH: loop header
LB: loop body
LE: loop exit
PB: predicated region body
PF: predicated region fallthrough
CT: control target
= control target key end

     0   :  { %s4302_s0 = inlined_call_operand.vmem [shape: f32[2,8,128], index: 0, kind: input, shape index: {}]   ;;  %s4303_s1 = inlined_call_operand.vmem [shape: f32[2,8,128], index: 1, kind: input, shape index: {}]   ;;  %s4304_s2 = inlined_call_operand.hbm [shape: bf16[128,384], index: 2, kind: input, shape index: {}]   ;;  %s4305_s3 = inlined_call_operand.vmem [shape: f32[1,384], index: 3, kind: input, shape index: {}]   ;;  %s4306_s4 = inlined_call_operand.hbm [shape: bf16[128,128], index: 4, kind: input, shape index: {}]   ;;  %s4307_s5 = inlined_call_operand.hbm [shape: f32[1,128], index: 5, kind: input, shape index: {}]   ;;  %s4308_s6 = inlined_call_operand.hbm [shape: f32[1,128], index: 6, kind: input, shape index: {}]   ;;  %s4309_s7 = inlined_call_operand.hbm [shape: f32[1,128], index: 7, kind: input, shape index: {}]   ;;  %s4310_s8 = inlined_call_operand.hbm [shape: bf16[128,384], index: 8, kind: input, shape index: {}]   ;;  %s4311_s9 = inlined_call_operand.vmem [shape: f32[1,384], index: 9, kind: input, shape index: {}]   ;;  %s4312_s10 = inlined_call_operand.hbm [shape: bf16[128,128], index: 10, kind: input, shape index: {}]   ;;  %s4313_s11 = inlined_call_operand.hbm [shape: f32[1,128], index: 11, kind: input, shape index: {}]   ;;  %s4314_s12 = inlined_call_operand.hbm [shape: f32[1,128], index: 12, kind: input, shape index: {}]   ;;  %s4315_s13 = inlined_call_operand.hbm [shape: f32[1,128], index: 13, kind: input, shape index: {}]   ;;  %s4316_s14 = inlined_call_operand.hbm [shape: bf16[128,256], index: 14, kind: input, shape index: {}]   ;;  %s4317_s15 = inlined_call_operand.hbm [shape: f32[1,256], index: 15, kind: input, shape index: {}]   ;;  %s4318_s16 = inlined_call_operand.hbm [shape: bf16[256,128], index: 16, kind: input, shape index: {}]   ;;  %s4319_s17 = inlined_call_operand.hbm [shape: f32[1,128], index: 17, kind: input, shape index: {}]   ;;  %s4320_s18 = inlined_call_operand.hbm [shape: f32[1,128], index: 18, kind: input, shape index: {}]   ;;  %s4321_s19 = inlined_call_operand.hbm [shape: f32[1,128], index: 19, kind: input, shape index: {}]   ;;  %s4322_s20 = inlined_call_operand.vmem [shape: f32[2,8,128], index: 20, kind: output, shape index: {}]  }
   0x1   :  { %4331 = sst [smem:[#allocation38_spill]] %s4302_s0 }
   0x2   :  { %4332 = sst [smem:[#allocation39_spill]] %s4303_s1 }
   0x3   :  { %4333 = sst [smem:[#allocation40_spill]] %s4304_s2 }
   0x4   :  { %4334 = sst [smem:[#allocation41_spill]] %s4305_s3 }
   0x5   :  { %4335 = sst [smem:[#allocation42_spill]] %s4306_s4 }
   0x6   :  { %4336 = sst [smem:[#allocation43_spill]] %s4308_s6 }
   0x7   :  { %4337 = sst [smem:[#allocation44_spill]] %s4311_s9 }
   0x8   :  { %4338 = sst [smem:[#allocation45_spill]] %s4322_s20 }
   0x9   :  { %25 = vsyncpa [#allocation3], 0 }
   0xa   :  { %26 = vsyncpa [#allocation5], 0 }
   0xb   :  { %27 = vsyncpa [#allocation8], 0 }
   0xc   :  { %28 = vsyncpa [#allocation11], 0 }
   0xd   :  { %29 = vsyncpa [#allocation14], 0 }
   0xe   :  { %30 = vsyncpa [#allocation17], 0 }
   0xf   :  { %31 = vsyncpa [#allocation20], 0 }
  0x10   :  { %32 = vsyncpa [#allocation23], 0 }
  0x11   :  { %33 = vsyncpa [#allocation26], 0  ;;  %s3998_s1 = smov 0  }
  0x12 LB: > { %4339 = sst [smem:[#allocation36_spill]] %s3865_s1  ;;  %s4007_s25 = sadd.s32 4294967295, %s3865_s1   ;;  %s3865_s1 = sphi %s3998_s1, %s39_s1  }
  0x13   : > { %s4340_s24 = sld [smem:[#allocation42_spill]]  ;;  %p2578_p0 = scmp.ge.s32.totalorder %s3865_s1, 1 }
  0x14   : > { %4341 = sst [smem:[#allocation37_spill]] %s4007_s25  ;;  %p500_p1 = scmp.lt.s32.totalorder %s3865_s1, 3 }
  0x15   : > { %p3227_p2 = scmp.eq.s32.totalorder %s4007_s25, 0  ;;  %s3867_s26 = smov [#allocation4]  }
  0x16   : > { %p4012_p3 = pnand %p2578_p0, %p500_p1  ;;  %s530_s27 = sshll.u32 %s3867_s26, 4  ;;  %s531_s27 = int_to_ptr.vmem [resolvable:$true] %s530_s27 }
  0x17   : > { %s4343_s6 = sld [smem:[#allocation43_spill]]  ;;  %s3868_s0 = smov [#allocation7]  }
  0x18   : > { %p3178_p4 = pneg %p4012_p3  ;;  %s557_s21 = sshll.u32 %s3868_s0, 4  ;;  %s558_s21 = int_to_ptr.vmem [resolvable:$true] %s557_s21 }
  0x19   : > { %s528_s2 = sshll.u32 %s4340_s24, 4  ;;  %s4327_s22 = smov 64   ;;  %s529_s2 = int_to_ptr.hbm [resolvable:$true] %s528_s2 }
  0x1a   : > { %p4023_p5 = pnand %p3227_p2, %p3178_p4  ;;  %s4329_s23 = smov 4  }
  0x1b   : > { %s578_s28 = sshll.u32 %s4310_s8, 4  ;;  %s3871_s4 = smov [#allocation10]   ;;  %s579_s28 = int_to_ptr.hbm [resolvable:$true] %s578_s28 }
  0x1c   : > { %3184 = dma.hbm_to_vmem [thread:$0]  (!%p4023_p5), %s529_s2, 1024, %s531_s27, [#allocation5], %s4327_s22, %s4327_s22, %s4329_s23  }
  0x1d   : > { %s555_s29 = sshll.u32 %s4343_s6, 4  ;;  %s580_s6 = sshll.u32 %s3871_s4, 4  ;;  %s556_s29 = int_to_ptr.hbm [resolvable:$true] %s555_s29  ;;  %s581_s6 = int_to_ptr.vmem [resolvable:$true] %s580_s6 }
  0x1e   : > { %3190 = dma.hbm_to_vmem [thread:$0]  (!%p4023_p5), %s556_s29, 16, %s558_s21, [#allocation8]  }
  0x1f   : > { %s610_s20 = sshll.u32 %s4313_s11, 4  ;;  %s3872_s9 = smov 192   ;;  %s611_s20 = int_to_ptr.hbm [resolvable:$true] %s610_s20 }
  0x20   : > { %s3873_s25 = smov 12   ;;  %s634_s29 = sshll.u32 %s4315_s13, 4  ;;  %s635_s29 = int_to_ptr.hbm [resolvable:$true] %s634_s29 }
  0x21   : > { %3196 = dma.hbm_to_vmem [thread:$0]  (!%p4023_p5), %s579_s28, 3072, %s581_s6, [#allocation11], %s3872_s9, %s3872_s9, %s3873_s25  }
  0x22   : > { %s3874_s21 = smov [#allocation13]   ;;  %s3875_s1 = smov [#allocation16]  }
  0x23   : > { %s612_s24 = sshll.u32 %s3874_s21, 4  ;;  %s636_s26 = sshll.u32 %s3875_s1, 4  ;;  %s613_s24 = int_to_ptr.vmem [resolvable:$true] %s612_s24  ;;  %s637_s26 = int_to_ptr.vmem [resolvable:$true] %s636_s26 }
  0x24   : > { %3202 = dma.hbm_to_vmem [thread:$0]  (!%p4023_p5), %s611_s20, 16, %s613_s24, [#allocation14]  }
  0x25   : > { %s660_s22 = sshll.u32 %s4317_s15, 4  ;;  %s686_s2 = sshll.u32 %s4319_s17, 4  ;;  %s661_s22 = int_to_ptr.hbm [resolvable:$true] %s660_s22  ;;  %s687_s2 = int_to_ptr.hbm [resolvable:$true] %s686_s2 }
  0x26   : > { %3208 = dma.hbm_to_vmem [thread:$0]  (!%p4023_p5), %s635_s29, 16, %s637_s26, [#allocation17]  }
  0x27   : > { %s3876_s27 = smov [#allocation19]   ;;  %s3877_s20 = smov [#allocation22]  }
  0x28   : > { %s662_s21 = sshll.u32 %s3876_s27, 4  ;;  %s688_s24 = sshll.u32 %s3877_s20, 4  ;;  %s663_s21 = int_to_ptr.vmem [resolvable:$true] %s662_s21  ;;  %s689_s24 = int_to_ptr.vmem [resolvable:$true] %s688_s24 }
  0x29   : > { %3214 = dma.hbm_to_vmem [thread:$0]  (!%p4023_p5), %s661_s22, 32, %s663_s21, [#allocation20]  }
  0x2a   : > { %s4345_s0 = sld [smem:[#allocation40_spill]]  ;;  %s543_s6 = sshll.u32 %s4307_s5, 4  ;;  %s544_s6 = int_to_ptr.hbm [resolvable:$true] %s543_s6 }
  0x2b   : > { %3220 = dma.hbm_to_vmem [thread:$0]  (!%p4023_p5), %s687_s2, 16, %s689_s24, [#allocation23]  }
  0x2c   : > { %s3878_s28 = smov [#allocation2]   ;;  %s3879_s22 = smov [#allocation6]  }
  0x2d   : > { %s513_s27 = sshll.u32 %s3878_s28, 4  ;;  %s545_s21 = sshll.u32 %s3879_s22, 4  ;;  %s514_s27 = int_to_ptr.vmem [resolvable:$true] %s513_s27  ;;  %s546_s21 = int_to_ptr.vmem [resolvable:$true] %s545_s21 }
  0x2e   : > { %s567_s2 = sshll.u32 %s4309_s7, 4  ;;  %s3880_s29 = smov [#allocation9]   ;;  %s568_s2 = int_to_ptr.hbm [resolvable:$true] %s567_s2 }
  0x2f   : > { %3187 = dma.hbm_to_vmem [thread:$0]  (!%p4023_p5), %s544_s6, 16, %s546_s21, [#allocation5]  }
  0x30   : > { %s511_s23 = sshll.u32 %s4345_s0, 4  ;;  %s595_s0 = sshll.u32 %s4312_s10, 4  ;;  %s512_s23 = int_to_ptr.hbm [resolvable:$true] %s511_s23  ;;  %s596_s0 = int_to_ptr.hbm [resolvable:$true] %s595_s0 }
  0x31   : > { %3181 = dma.hbm_to_vmem [thread:$0]  (!%p4023_p5), %s512_s23, 3072, %s514_s27, [#allocation3], %s3872_s9, %s3872_s9, %s3873_s25  }
  0x32   : > { %s569_s26 = sshll.u32 %s3880_s29, 4  ;;  %s3881_s9 = smov [#allocation12]   ;;  %s570_s26 = int_to_ptr.vmem [resolvable:$true] %s569_s26 }
  0x33   : > { %3193 = dma.hbm_to_vmem [thread:$0]  (!%p4023_p5), %s568_s2, 16, %s570_s26, [#allocation8]  }
  0x34   : > { %s597_s25 = sshll.u32 %s3881_s9, 4  ;;  %s622_s27 = sshll.u32 %s4314_s12, 4  ;;  %s598_s25 = int_to_ptr.vmem [resolvable:$true] %s597_s25  ;;  %s623_s27 = int_to_ptr.hbm [resolvable:$true] %s622_s27 }
  0x35   : > { %s4346_s6 = smov 4   ;;  %s4347_s22 = smov 64  }
  0x36   : > { %3199 = dma.hbm_to_vmem [thread:$0]  (!%p4023_p5), %s596_s0, 1024, %s598_s25, [#allocation11], %s4347_s22, %s4347_s22, %s4346_s6  }
  0x37   : > { %s645_s1 = sshll.u32 %s4316_s14, 4  ;;  %s3882_s24 = smov [#allocation15]   ;;  %s646_s1 = int_to_ptr.hbm [resolvable:$true] %s645_s1 }
  0x38   : > { %s624_s2 = sshll.u32 %s3882_s24, 4  ;;  %s3883_s4 = smov [#allocation18]   ;;  %s625_s2 = int_to_ptr.vmem [resolvable:$true] %s624_s2 }
  0x39   : > { %3205 = dma.hbm_to_vmem [thread:$0]  (!%p4023_p5), %s623_s27, 16, %s625_s2, [#allocation14]  }
  0x3a   : > { %s647_s29 = sshll.u32 %s3883_s4, 4  ;;  %s3884_s26 = smov 128   ;;  %s648_s29 = int_to_ptr.vmem [resolvable:$true] %s647_s29 }
  0x3b   : > { %s3885_s9 = smov 8   ;;  %s671_s23 = sshll.u32 %s4318_s16, 4  ;;  %s672_s23 = int_to_ptr.hbm [resolvable:$true] %s671_s23 }
  0x3c   : > { %3211 = dma.hbm_to_vmem [thread:$0]  (!%p4023_p5), %s646_s1, 2048, %s648_s29, [#allocation17], %s3884_s26, %s3884_s26, %s3885_s9  }
  0x3d   : > { %s3886_s28 = smov [#allocation21]   ;;  %s698_s27 = sshll.u32 %s4320_s18, 4  ;;  %s699_s27 = int_to_ptr.hbm [resolvable:$true] %s698_s27 }
  0x3e   : > { %s673_s21 = sshll.u32 %s3886_s28, 4  ;;  %s3887_s1 = smov [#allocation24]   ;;  %s674_s21 = int_to_ptr.vmem [resolvable:$true] %s673_s21 }
  0x3f   : > { %3217 = dma.hbm_to_vmem [thread:$0]  (!%p4023_p5), %s672_s23, 2048, %s674_s21, [#allocation20], %s4347_s22, %s4347_s22, %s4346_s6  }
  0x40   : > { %s700_s2 = sshll.u32 %s3887_s1, 4  ;;  %s710_s26 = sshll.u32 %s4321_s19, 4  ;;  %s701_s2 = int_to_ptr.vmem [resolvable:$true] %s700_s2  ;;  %s711_s26 = int_to_ptr.hbm [resolvable:$true] %s710_s26 }
  0x41   : > { %3223 = dma.hbm_to_vmem [thread:$0]  (!%p4023_p5), %s699_s27, 16, %s701_s2, [#allocation23]  }
  0x42   : > { %s3888_s9 = smov [#allocation25]   ;;  %739 = sbr.rel (%p4012_p3) target bundleno = 3596 (0xe0c), region = 100 }
  0x43   : > { %s712_s0 = sshll.u32 %s3888_s9, 4  ;;  %s4348_s6 = sld [smem:[#allocation37_spill]] (!%p4012_p3)  ;;  %s713_s0 = int_to_ptr.vmem [resolvable:$true] %s712_s0 }
  0x44   : > { %3226 = dma.hbm_to_vmem [thread:$0]  (!%p4023_p5), %s711_s26, 16, %s713_s0, [#allocation26]  }
  0x47   : > { %3828 = dma.done.wait (%p3227_p2), [#allocation3], 3072  }
  0x48   : > { %3830 = vsyncadd (%p3227_p2), [#allocation3], 4294964224 }
  0x49   : > { %3832 = dma.done.wait (%p3227_p2), [#allocation5], 1040  }
  0x4a   : > { %3834 = vsyncadd (%p3227_p2), [#allocation5], 4294966256 }
  0x4b   : > { %3836 = dma.done.wait (%p3227_p2), [#allocation8], 32  }
  0x4c   : > { %3838 = vsyncadd (%p3227_p2), [#allocation8], 4294967264 }
  0x4d   : > { %3840 = dma.done.wait (%p3227_p2), [#allocation11], 4096  }
  0x4e   : > { %3842 = vsyncadd (%p3227_p2), [#allocation11], 4294963200 }
  0x4f   : > { %3844 = dma.done.wait (%p3227_p2), [#allocation14], 32  }
  0x50   : > { %3846 = vsyncadd (%p3227_p2), [#allocation14], 4294967264 }
  0x51   : > { %3848 = dma.done.wait (%p3227_p2), [#allocation17], 2064  }
  0x52   : > { %3850 = vsyncadd (%p3227_p2), [#allocation17], 4294965232 }
  0x53   : > { %3852 = dma.done.wait (%p3227_p2), [#allocation20], 2080  }
  0x54   : > { %3854 = vsyncadd (%p3227_p2), [#allocation20], 4294965216 }
  0x55   : > { %3856 = dma.done.wait (%p3227_p2), [#allocation23], 32  }
  0x56   : > { %3858 = vsyncadd (%p3227_p2), [#allocation23], 4294967264 }
  0x57   : > { %3860 = dma.done.wait (%p3227_p2), [#allocation26], 16  }
  0x58   : > { %3862 = vsyncadd (%p3227_p2), [#allocation26], 4294967280  ;;  %v2702_v0 = vld [vmem:[#allocation2 + $0xa8] sm:$0xf]  ;;  %v3040_v1 = vld [vmem:[#allocation2 + $0xb0] sm:$0xf0] }
  0x59   : > { %v3039_v2 = vld [vmem:[#allocation2 + $0xac] sm:$0xf]  ;;  %v2703_v3 = vor.u32 %v3040_v1, %v2702_v0  ;;  %v2704_v4 = vld [vmem:[#allocation2 + $0xb4] sm:$0xf0]  ;;  %v2690_v5 = vld [vmem:[#allocation2 + $0x90] sm:$0xf] }
  0x5a   : > { %v3037_v6 = vld [vmem:[#allocation2 + $0x98] sm:$0xf0]  ;;  %v2707_v7 = vor.u32 %v3039_v2, %v2704_v4  ;;  %v3036_v8 = vld [vmem:[#allocation2 + $0x94] sm:$0xf]  ;;  %v2692_v9 = vld [vmem:[#allocation2 + $0x9c] sm:$0xf0] }
  0x5b   : > { %1059 = vmatpush.bf16.msra.mxu0 %v2703_v3  ;;  %v2691_v10 = vor.u32 %v3037_v6, %v2690_v5  ;;  %v2695_v11 = vor.u32 %v3036_v8, %v2692_v9  ;;  %v2678_v12 = vld [vmem:[#allocation2 + $0x78] sm:$0xf]  ;;  %v3034_v13 = vld [vmem:[#allocation2 + $0x80] sm:$0xf0]  ;;  %v3033_v14 = vld [vmem:[#allocation2 + $0x7c] sm:$0xf] }
  0x5c   : > { %1072 = vmatpush.bf16.msra.mxu1 %v2707_v7  ;;  %v2680_v15 = vld [vmem:[#allocation2 + $0x84] sm:$0xf0]  ;;  %v2679_v16 = vor.u32 %v3034_v13, %v2678_v12  ;;  %v2666_v18 = vld [vmem:[#allocation2 + $0x60] sm:$0xf]  ;;  %v3031_v19 = vld [vmem:[#allocation2 + $0x68] sm:$0xf0] }
  0x5d   : > { %v2683_v17 = vor.u32 %v3033_v14, %v2680_v15  ;;  %v3030_v20 = vld [vmem:[#allocation2 + $0x64] sm:$0xf]  ;;  %v2668_v21 = vld [vmem:[#allocation2 + $0x6c] sm:$0xf0]  ;;  %p875_p6 = scmp.lt.s32.totalorder %s4348_s6, 1  ;;  %v2667_v22 = vor.u32 %v3031_v19, %v2666_v18  ;;  %s4349_s25 = sld [smem:[#allocation38_spill]] }
  0x5e   : > { %v2710_v23 = vld [vmem:[#allocation2 + $0xb0] sm:$0xf]  ;;  %v3041_v24 = vld [vmem:[#allocation2 + $0xb8] sm:$0xf0]  ;;  %v2698_v25 = vld [vmem:[#allocation2 + $0x98] sm:$0xf]  ;;  %v2671_v26 = vor.u32 %v3030_v20, %v2668_v21 }
  0x5f   : > { %1060 = vmatpush.bf16.msra.mxu0 %v2691_v10  ;;  %v2654_v27 = vld [vmem:[#allocation2 + $0x48] sm:$0xf]  ;;  %v3028_v28 = vld [vmem:[#allocation2 + $0x50] sm:$0xf0]  ;;  %v2711_v29 = vor.u32 %v3041_v24, %v2710_v23  ;;  %v3038_v30 = vld [vmem:[#allocation2 + $0xa0] sm:$0xf0] }
  0x60   : > { %1073 = vmatpush.bf16.msra.mxu1 %v2695_v11  ;;  %v3027_v31 = vld [vmem:[#allocation2 + $0x4c] sm:$0xf]  ;;  %v2656_v32 = vld [vmem:[#allocation2 + $0x54] sm:$0xf0]  ;;  %v2642_v33 = vld [vmem:[#allocation2 + $0x30] sm:$0xf]  ;;  %v2699_v34 = vor.u32 %v3038_v30, %v2698_v25  ;;  %v2655_v35 = vor.u32 %v3028_v28, %v2654_v27 }
  0x61   : > { %s4356_s6 = smov (!%p875_p6, %s4348_s6), 1  ;;  %1085 = vmatpush.bf16.msra.mxu2 %v2711_v29  ;;  %v3025_v36 = vld [vmem:[#allocation2 + $0x38] sm:$0xf0]  ;;  %v2686_v37 = vld [vmem:[#allocation2 + $0x80] sm:$0xf]  ;;  %v2659_v39 = vor.u32 %v3027_v31, %v2656_v32  ;;  %s4350_s20 = sld [smem:[#allocation41_spill]] }
  0x62   : > { %v3035_v38 = vld [vmem:[#allocation2 + $0x88] sm:$0xf0]  ;;  %v3024_v40 = vld [vmem:[#allocation2 + $0x34] sm:$0xf]  ;;  %v2644_v41 = vld [vmem:[#allocation2 + $0x3c] sm:$0xf0]  ;;  %v2643_v45 = vor.u32 %v3025_v36, %v2642_v33 }
  0x63   : > { %1061 = vmatpush.bf16.msra.mxu0 %v2679_v16  ;;  %v2674_v42 = vld [vmem:[#allocation2 + $0x68] sm:$0xf]  ;;  %v3032_v43 = vld [vmem:[#allocation2 + $0x70] sm:$0xf0]  ;;  %v2687_v44 = vor.u32 %v3035_v38, %v2686_v37  ;;  %v2647_v46 = vor.u32 %v3024_v40, %v2644_v41  ;;  %v2630_v47 = vld [vmem:[#allocation2 + $0x18] sm:$0xf] }
  0x64   : > { %1074 = vmatpush.bf16.msra.mxu1 %v2683_v17  ;;  %v3022_v48 = vld [vmem:[#allocation2 + $0x20] sm:$0xf0]  ;;  %v3021_v49 = vld [vmem:[#allocation2 + $0x1c] sm:$0xf]  ;;  %v2632_v50 = vld [vmem:[#allocation2 + $0x24] sm:$0xf0]  ;;  %v2675_v51 = vor.u32 %v3032_v43, %v2674_v42 }
  0x65   : > { %1086 = vmatpush.bf16.msra.mxu2 %v2699_v34  ;;  %s4158_s3 = sshll.u32 %s4356_s6, 3  ;;  %v2631_v52 = vor.u32 %v3022_v48, %v2630_v47  ;;  %v2662_v53 = vld [vmem:[#allocation2 + $0x50] sm:$0xf]  ;;  %v3029_v54 = vld [vmem:[#allocation2 + $0x58] sm:$0xf0]  ;;  %v2635_v55 = vor.u32 %v3021_v49, %v2632_v50  ;;  %vm1101_vm0 = vcmask 261120  }
  0x66   : > { %v2618_v56 = vld [vmem:[#allocation2] sm:$0xf]  ;;  %v3019_v57 = vld [vmem:[#allocation2 + $0x8] sm:$0xf0]  ;;  %s878_s23 = scalar_lea.vmem %s4349_s25, %s4158_s3  ;;  %v3018_v58 = vld [vmem:[#allocation2 + $0x4] sm:$0xf]  ;;  %v2663_v60 = vor.u32 %v3029_v54, %v2662_v53 }
  0x67   : > { %1062 = vmatpush.bf16.msra.mxu0 %v2667_v22  ;;  %v2620_v59 = vld [vmem:[#allocation2 + $0xc] sm:$0xf0]  ;;  %v2619_v61 = vor.u32 %v3019_v57, %v2618_v56  ;;  %v4164_v62 = vld [vmem:[%s878_s23] sm:$0xff]  ;;  %v2650_v63 = vld [vmem:[#allocation2 + $0x38] sm:$0xf]  ;;  %s3889_s24 = smov 64  }
  0x68   : > { %1075 = vmatpush.bf16.msra.mxu1 %v2671_v26  ;;  %v3026_v0 = vld [vmem:[#allocation2 + $0x40] sm:$0xf0]  ;;  %v2623_v1 = vor.u32 %v3018_v58, %v2620_v59  ;;  %v890_v2 = vpack.c.bf16 %v4164_v62, %v4164_v62  ;;  %v2638_v4 = vld [vmem:[#allocation2 + $0x20] sm:$0xf]  ;;  %v3023_v5 = vld [vmem:[#allocation2 + $0x28] sm:$0xf0] }
  0x69   : > { %1087 = vmatpush.bf16.msra.mxu2 %v2687_v44  ;;  %v2651_v3 = vor.u32 %v3026_v0, %v2650_v63  ;;  %v2639_v6 = vor.u32 %v3023_v5, %v2638_v4  ;;  %v2626_v7 = vld [vmem:[#allocation2 + $0x8] sm:$0xf]  ;;  %v3020_v8 = vld [vmem:[#allocation2 + $0x10] sm:$0xf0]  ;;  %v923_v10 = vld [vmem:[%s4350_s20] sm:$0x7] }
  0x6a   : > { %v2627_v9 = vor.u32 %v3020_v8, %v2626_v7  ;;  %v926_v11 = vperm.slane %v923_v10, 1  ;;  %v925_v14 = vperm.slane %v923_v10, 0  ;;  %s3890_s27 = smov 96   ;;  %s3891_s1 = smov 32   ;;  %v927_v23 = vperm.slane %v923_v10, 2 }
  0x6b   : > { %1063 = vmatpush.bf16.msra.mxu0 %v2655_v35  ;;  %vm1138_vm1 = vcmask 1043456   ;;  %vm1122_vm2 = vcmask 64512   ;;  %vm1342_vm3 = vcmask 523264   ;;  %vm1344_vm4 = vcmask 785408   ;;  %s4351_s29 = sld [smem:[#allocation39_spill]] }
  0x6c   : > { %1076 = vmatpush.bf16.msra.mxu1 %v2659_v39  ;;  %s4352_s6 = sld [smem:[#allocation44_spill]] }
  0x6d   : > { %1088 = vmatpush.bf16.msra.mxu2 %v2675_v51  ;;  %s4353_s28 = sld [smem:[#allocation45_spill]] }
  0x6f   : > { %1064 = vmatpush.bf16.msra.mxu0 %v2643_v45 }
  0x70   : > { %1077 = vmatpush.bf16.msra.mxu1 %v2647_v46 }
  0x71   : > { %1089 = vmatpush.bf16.msra.mxu2 %v2663_v60  ;;  %s882_s26 = scalar_lea.vmem %s4351_s29, %s4158_s3 }
  0x73   : > { %1065 = vmatpush.bf16.msra.mxu0 %v2631_v52  ;;  %s886_s21 = scalar_lea.vmem %s4353_s28, %s4158_s3 }
  0x74   : > { %1078 = vmatpush.bf16.msra.mxu1 %v2635_v55 }
  0x75   : > { %1090 = vmatpush.bf16.msra.mxu2 %v2651_v3 }
  0x77   : > { %1066 = vmatpush.bf16.msra.mxu0 %v2619_v61 }
  0x78   : > { %1079 = vmatpush.bf16.msra.mxu1 %v2623_v1 }
  0x79   : > { %1091 = vmatpush.bf16.msra.mxu2 %v2639_v6 }
  0x7a   : > { %1067 = vmatmul.bf16.vlgmr.msra.gmra.mxu0 %v890_v2 }
  0x7b   : > { %1080 = vmatmul.bf16.vlgmr.msra.gmra.mxu1 %v890_v2 }
  0x7d   : > { %1092 = vmatpush.bf16.msra.mxu2 %v2627_v9 }
  0x80   : > { %1093 = vmatmul.bf16.vlgmr.msra.gmra.mxu2 %v890_v2 }
  0xf7   : > { %v1068_v12 = vpop.f32.mrf.mxu0 }
  0xf8   : > { %v1081_v13 = vpop.f32.mrf.mxu1  ;;  %v1069_v17 = vadd.f32 %v1068_v12, %v925_v14 }
  0xf9   : > { %v1082_v15 = vadd.f32 %v1081_v13, %v926_v11 }
  0xfa   : > { %v1098_v21 = vpack.c.bf16 %v1069_v17, %v1069_v17 }
  0xfb   : > { %v1099_v16 = vpack.c.bf16 %v1082_v15, %v1082_v15 }
  0xfd   : > { %1217 = vrot.lane.b32.xlu2 %v1099_v16, %s3889_s24  ;;  %1159 = vrot.lane.b32.xlu1 %v1099_v16, %s3890_s27  ;;  %v1106_v18 = vsel %vm1101_vm0, %v1099_v16, 0 }
  0xfe   : > { %1115 = vmatpush.bf16.xpose.msra.mxu3 %v1106_v18 }
  0xff   : > { %v1070_v19 = vpop.f32.mrf.mxu0 }
 0x100   : > { %v1083_v20 = vpop.f32.mrf.mxu1 }
 0x103   : > { %v1094_v22 = vpop.f32.mrf.mxu2 }
 0x104   : > { %v1095_v24 = vadd.f32 %v1094_v22, %v927_v23 }
 0x105   : > { %1274 = vrot.lane.b32.xlu2 %v1099_v16, %s3891_s1  ;;  %1156 = vrot.lane.b32.xlu1 %v1098_v21, %s3890_s27 }
 0x106   : > { %2712 = vmatmul.msk.bf16.vlgmr.msra.gmra.mxu3 %vm1101_vm0, %v1098_v21  ;;  %v4178_v26 = vpack.c.bf16 %v1095_v24, %v1095_v24 }
 0x108   : > { %v1140_v27 = vsel %vm1138_vm1, %v4178_v26, 0 }
 0x109   : > { %1149 = vmatpush.bf16.msrb.mxu3 %v1140_v27 }
 0x10b   : > { %v1096_v25 = vpop.f32.mrf.mxu2 }
 0x10d   : > { %1272 = vrot.lane.b32.xlu1 %v1098_v21, %s3891_s1 }
 0x157   : > { %v1218_v28 = vpop.permute.xlu2 %1217 }
 0x158   : > { %v1223_v29 = vsel %vm1101_vm0, %v1218_v28, 0 }
 0x159   : > { %1232 = vmatpush.bf16.xpose.msrb.mxu2 %v1223_v29 }
 0x15f   : > { %v1275_v44 = vpop.permute.xlu2 %1274 }
 0x160   : > { %v1280_v46 = vsel %vm1101_vm0, %v1275_v44, 0  ;;  %v3045_v44 = vld [vmem:[#allocation4 + $0x18] sm:$0xff] }
 0x16f   : > { %v1160_v30 = vpop.permute.xlu1 %1159 }
 0x170   : > { %v1165_v31 = vsel %vm1101_vm0, %v1160_v30, 0 }
 0x171   : > { %1174 = vmatpush.bf16.xpose.msra.mxu3 %v1165_v31 }
 0x177   : > { %v1157_v48 = vpop.permute.xlu1 %1156 }
 0x17f   : > { %v1273_v49 = vpop.permute.xlu1 %1272 }
 0x189   : > { %v1117_v32 = vpop.f32.mrf.mxu3 }
 0x18a   : > { %v1121_v33 = vmul.f32 0.17677669, %v1117_v32 }
 0x18c   : > { %v1123_v34 = vsel %vm1122_vm2, %v1121_v33, -inf }
 0x18d   : > { %1124 = vmax.xlane.f32.xlu0 %v1123_v34 }
 0x191   : > { %v1119_v35 = vpop.f32.mrf.mxu3 }
 0x200   : > { %v1125_v36 = vpop.xlane.xlu0 %1124 }
 0x201   : > { %v1126_v37 = vsub.f32 %v1121_v33, %v1125_v36 }
 0x203   : > { %v1127_v38 = vmul.f32 1.442695, %v1126_v37 }
 0x205   : > { %3303 = vpow2.f32 %v1127_v38 }
 0x20b   : > { %v3304_v39 = vpop.eup %3303 }
 0x20c   : > { %v1129_v40 = vsel %vm1122_vm2, %v3304_v39, 0.0 }
 0x20d   : > { %1130 = vadd.xlane.f32.xlu0 %v1129_v40  ;;  %v3049_v40 = vld [vmem:[#allocation4 + $0x38] sm:$0xff] }
 0x20e   : > { %1415 = vmatpush.bf16.msrb.mxu1 %v3049_v40  ;;  %v3055_v40 = vld [vmem:[#allocation10 + $0x80] sm:$0xf0] }
 0x221   : > { %1215 = vrot.lane.b32.xlu0 %v1098_v21, %s3889_s24 }
 0x280   : > { %v1131_v41 = vpop.xlane.xlu0 %1130 }
 0x281   : > { %3305 = vrcp.f32 %v1131_v41  ;;  %v3048_v41 = vld [vmem:[#allocation4 + $0x30] sm:$0xff] }
 0x282   : > { %1416 = vmatpush.bf16.msrb.mxu1 %v3048_v41 }
 0x287   : > { %v3306_v42 = vpop.eup %3305 }
 0x288   : > { %v1133_v43 = vmul.f32 %v3306_v42, %v3304_v39  ;;  %v3047_v42 = vld [vmem:[#allocation4 + $0x28] sm:$0xff] }
 0x289   : > { %1417 = vmatpush.bf16.msrb.mxu1 %v3047_v42  ;;  %v2770_v42 = vld [vmem:[#allocation10 + $0x60] sm:$0xf] }
 0x28a   : > { %v1134_v45 = vpack.c.bf16 %v1133_v43, %v1133_v43  ;;  %v3046_v43 = vld [vmem:[#allocation4 + $0x20] sm:$0xff] }
 0x28c   : > { %2713 = vmatmul.msk.bf16.vlgmr.msrb.gmra.mxu3 %vm1122_vm2, %v1134_v45  ;;  %v3044_v45 = vld [vmem:[#allocation4 + $0x10] sm:$0xff] }
 0x28d   : > { %1289 = vmatpush.bf16.xpose.msrb.mxu3 %v1280_v46  ;;  %1418 = vmatpush.bf16.msrb.mxu1 %v3046_v43  ;;  %v3043_v46 = vld [vmem:[#allocation4 + $0x8] sm:$0xff]  ;;  %v3054_v43 = vld [vmem:[#allocation10 + $0x68] sm:$0xf0] }
 0x291   : > { %1419 = vmatpush.bf16.msrb.mxu1 %v3045_v44  ;;  %v2771_v44 = vor.u32 %v3054_v43, %v2770_v42  ;;  %v3062_v43 = vld [vmem:[#allocation10 + $0x38] sm:$0xf] }
 0x293   : > { %v1216_v47 = vpop.permute.xlu0 %1215 }
 0x294   : > { %2716 = vmatmul.msk.bf16.vlgmr.msrb.gmra.mxu2 %vm1101_vm0, %v1216_v47  ;;  %v3042_v47 = vld [vmem:[#allocation4] sm:$0xff] }
 0x295   : > { %1420 = vmatpush.bf16.msrb.mxu1 %v3044_v45  ;;  %v2766_v45 = vld [vmem:[#allocation10 + $0x48] sm:$0xf] }
 0x299   : > { %1421 = vmatpush.bf16.msrb.mxu1 %v3043_v46  ;;  %v3053_v46 = vld [vmem:[#allocation10 + $0x50] sm:$0xf0] }
 0x29c   : > { %2714 = vmatmul.msk.bf16.vlgmr.msra.gmra.mxu3 %vm1101_vm0, %v1157_v48 }
 0x29d   : > { %1422 = vmatpush.bf16.msrb.mxu1 %v3042_v47  ;;  %v2767_v47 = vor.u32 %v3053_v46, %v2766_v45 }
 0x2ac   : > { %2718 = vmatmul.msk.bf16.vlgmr.msrb.gmra.mxu3 %vm1101_vm0, %v1273_v49 }
 0x30f   : > { %v4192_v50 = vpop.f32.mrf.mxu3 }
 0x317   : > { %v1153_v51 = vpop.f32.mrf.mxu3  ;;  %v1234_v52 = vpop.f32.mrf.mxu2 }
 0x318   : > { %v1238_v53 = vmul.f32 0.17677669, %v1234_v52 }
 0x31a   : > { %v1239_v54 = vsel %vm1122_vm2, %v1238_v53, -inf }
 0x31b   : > { %1240 = vmax.xlane.f32.xlu1 %v1239_v54 }
 0x31f   : > { %v1176_v55 = vpop.f32.mrf.mxu3  ;;  %v1236_v56 = vpop.f32.mrf.mxu2 }
 0x320   : > { %v1180_v57 = vmul.f32 0.17677669, %v1176_v55  ;;  %v3293_v56 = vld [vmem:[#allocation6] ss:$0 sm:$0xff] }
 0x322   : > { %v1181_v58 = vsel %vm1122_vm2, %v1180_v57, -inf }
 0x323   : > { %1182 = vmax.xlane.f32.xlu2 %v1181_v58 }
 0x327   : > { %v1178_v59 = vpop.f32.mrf.mxu3 }
 0x32f   : > { %v1291_v60 = vpop.f32.mrf.mxu3 }
 0x330   : > { %v1295_v61 = vmul.f32 0.17677669, %v1291_v60 }
 0x332   : > { %v1296_v63 = vsel %vm1122_vm2, %v1295_v61, -inf }
 0x333   : > { %1297 = vmax.xlane.f32.xlu0 %v1296_v63  ;;  %v2842_v63 = vld [vmem:[#allocation10 + $0xac] sm:$0xf] }
 0x337   : > { %v1293_v0 = vpop.f32.mrf.mxu3 }
 0x338   : > { %v3073_v0 = vld [vmem:[#allocation10 + $0xb4] sm:$0xf0] }
 0x347   : > { %1251 = vrot.lane.b32.xlu0 %v4178_v26, %s3889_s24 }
 0x38e   : > { %v1241_v1 = vpop.xlane.xlu1 %1240 }
 0x38f   : > { %v1242_v2 = vsub.f32 %v1238_v53, %v1241_v1  ;;  %v2834_v1 = vld [vmem:[#allocation10 + $0x94] sm:$0xf] }
 0x391   : > { %v1243_v3 = vmul.f32 1.442695, %v1242_v2  ;;  %v3071_v2 = vld [vmem:[#allocation10 + $0x9c] sm:$0xf0] }
 0x393   : > { %3307 = vpow2.f32 %v1243_v3  ;;  %v2835_v3 = vor.u32 %v3071_v2, %v2834_v1 }
 0x396   : > { %v1183_v4 = vpop.xlane.xlu2 %1182 }
 0x397   : > { %v1184_v5 = vsub.f32 %v1180_v57, %v1183_v4  ;;  %v2826_v4 = vld [vmem:[#allocation10 + $0x7c] sm:$0xf] }
 0x399   : > { %v3308_v6 = vpop.eup %3307  ;;  %v1185_v7 = vmul.f32 1.442695, %v1184_v5 }
 0x39a   : > { %v1245_v8 = vsel %vm1122_vm2, %v3308_v6, 0.0 }
 0x39b   : > { %3309 = vpow2.f32 %v1185_v7  ;;  %1246 = vadd.xlane.f32.xlu1 %v1245_v8  ;;  %v2782_v7 = vld [vmem:[#allocation10 + $0xa8] sm:$0xf]  ;;  %v3057_v8 = vld [vmem:[#allocation10 + $0xb0] sm:$0xf0] }
 0x3a1   : > { %v3310_v9 = vpop.eup %3309 }
 0x3a2   : > { %v1187_v10 = vsel %vm1122_vm2, %v3310_v9, 0.0 }
 0x3a3   : > { %1188 = vadd.xlane.f32.xlu2 %v1187_v10 }
 0x3a6   : > { %v1298_v11 = vpop.xlane.xlu0 %1297 }
 0x3a7   : > { %v1299_v12 = vsub.f32 %v1295_v61, %v1298_v11  ;;  %v3892_v61 = vmov 128.0   ;;  %v2818_v11 = vld [vmem:[#allocation10 + $0x64] sm:$0xf] }
 0x3a9   : > { %v1300_v13 = vmul.f32 1.442695, %v1299_v12  ;;  %v3067_v12 = vld [vmem:[#allocation10 + $0x6c] sm:$0xf0] }
 0x3ab   : > { %3311 = vpow2.f32 %v1300_v13 }
 0x3b1   : > { %v3312_v14 = vpop.eup %3311 }
 0x3b2   : > { %v1302_v15 = vsel %vm1122_vm2, %v3312_v14, 0.0 }
 0x3b3   : > { %1303 = vadd.xlane.f32.xlu1 %v1302_v15  ;;  %v2810_v15 = vld [vmem:[#allocation10 + $0x4c] sm:$0xf] }
 0x3b9   : > { %v1252_v16 = vpop.permute.xlu0 %1251 }
 0x3ba   : > { %v1257_v17 = vsel %vm1138_vm1, %v1252_v16, 0  ;;  %v3065_v16 = vld [vmem:[#allocation10 + $0x54] sm:$0xf0] }
 0x3bb   : > { %1194 = vrot.lane.b32.xlu2 %v4178_v26, %s3890_s27  ;;  %1266 = vmatpush.bf16.msra.mxu2 %v1257_v17 }
 0x3cc   : > { %1308 = vrot.lane.b32.xlu1 %v4178_v26, %s3891_s1 }
 0x40e   : > { %v1247_v18 = vpop.xlane.xlu1 %1246 }
 0x40f   : > { %3313 = vrcp.f32 %v1247_v18  ;;  %v2811_v18 = vor.u32 %v3065_v16, %v2810_v15  ;;  %v3296_v16 = vld [vmem:[%s4352_s6] ss:$0 sm:$0xff] }
 0x415   : > { %v3314_v19 = vpop.eup %3313 }
 0x416   : > { %v1249_v20 = vmul.f32 %v3314_v19, %v3308_v6  ;;  %v1189_v21 = vpop.xlane.xlu2 %1188  ;;  %v3069_v6 = vld [vmem:[#allocation10 + $0x84] sm:$0xf0]  ;;  %v2802_v19 = vld [vmem:[#allocation10 + $0x34] sm:$0xf] }
 0x417   : > { %3315 = vrcp.f32 %v1189_v21 }
 0x418   : > { %v1250_v22 = vpack.c.bf16 %v1249_v20, %v1249_v20  ;;  %v3063_v20 = vld [vmem:[#allocation10 + $0x3c] sm:$0xf0] }
 0x41a   : > { %2717 = vmatmul.msk.bf16.vlgmr.msra.gmra.mxu2 %vm1122_vm2, %v1250_v22  ;;  %v2803_v22 = vor.u32 %v3063_v20, %v2802_v19 }
 0x41d   : > { %v3316_v23 = vpop.eup %3315 }
 0x41e   : > { %v1191_v24 = vmul.f32 %v3316_v23, %v3310_v9  ;;  %v1195_v25 = vpop.permute.xlu2 %1194  ;;  %v2783_v9 = vor.u32 %v3057_v8, %v2782_v7  ;;  %v2794_v23 = vld [vmem:[#allocation10 + $0x1c] sm:$0xf] }
 0x41f   : > { %v1200_v27 = vsel %vm1138_vm1, %v1195_v25, 0 }
 0x420   : > { %1209 = vmatpush.bf16.msrb.mxu0 %v1200_v27  ;;  %v1192_v28 = vpack.c.bf16 %v1191_v24, %v1191_v24  ;;  %1535 = vmatpush.bf16.msrb.mxu2 %v2783_v9  ;;  %v3061_v24 = vld [vmem:[#allocation10 + $0x24] sm:$0xf0] }
 0x421   : > { %v2795_v27 = vor.u32 %v3061_v24, %v2794_v23 }
 0x423   : > { %2715 = vmatmul.msk.bf16.vlgmr.msrb.gmra.mxu0 %vm1122_vm2, %v1192_v28 }
 0x426   : > { %v1304_v29 = vpop.xlane.xlu1 %1303 }
 0x427   : > { %3317 = vrcp.f32 %v1304_v29 }
 0x428   : > { %3319 = vrcp.f32 %v3892_v61 }
 0x42d   : > { %v3318_v26 = vpop.eup %3317 }
 0x42e   : > { %v1306_v30 = vmul.f32 %v3318_v26, %v3312_v14  ;;  %v3320_v5 = vpop.eup %3319  ;;  %v2819_v14 = vor.u32 %v3067_v12, %v2818_v11 }
 0x42f   : > { %v1434_v10 = vmul.f32 128.0, %v3320_v5  ;;  %vm1438_vm5 = vweird.f32 %v3320_v5 }
 0x430   : > { %v1307_v33 = vpack.c.bf16 %v1306_v30, %v1306_v30 }
 0x431   : > { %v1435_v13 = vsub.f32 1.0, %v1434_v10  ;;  %v4238_v10 = vld [vmem:[%s4352_s6 + $0x1] sm:$0x3] }
 0x433   : > { %v1436_v17 = vmul.f32 %v3320_v5, %v1435_v13 }
 0x435   : > { %v1437_v21 = vadd.f32 %v3320_v5, %v1436_v17 }
 0x437   : > { %v4220_v25 = vsel %vm1438_vm5, %v3320_v5, %v1437_v21 }
 0x43e   : > { %v1309_v31 = vpop.permute.xlu1 %1308 }
 0x43f   : > { %v1314_v32 = vsel %vm1138_vm1, %v1309_v31, 0  ;;  %v2778_v31 = vld [vmem:[#allocation10 + $0x90] sm:$0xf] }
 0x440   : > { %1323 = vmatpush.bf16.msra.mxu0 %v1314_v32  ;;  %v3056_v32 = vld [vmem:[#allocation10 + $0x98] sm:$0xf0] }
 0x443   : > { %2719 = vmatmul.msk.bf16.vlgmr.msra.gmra.mxu0 %vm1122_vm2, %v1307_v33  ;;  %v2786_v33 = vld [vmem:[#allocation10 + $0x4] sm:$0xf] }
 0x49d   : > { %v1268_v34 = vpop.f32.mrf.mxu2 }
 0x4a0   : > { %v1211_v35 = vpop.f32.mrf.mxu0 }
 0x4a1   : > { %1330 = vrot.lane.b32.xlu2 %v1211_v35, %s3891_s1  ;;  %v3059_v35 = vld [vmem:[#allocation10 + $0xc] sm:$0xf0] }
 0x4a5   : > { %v1270_v36 = vpop.f32.mrf.mxu2 }
 0x4a6   : > { %v2787_v36 = vor.u32 %v3059_v35, %v2786_v33  ;;  %v2828_v33 = vld [vmem:[#allocation10 + $0x88] sm:$0xf0]  ;;  %v3066_v35 = vld [vmem:[#allocation10 + $0x68] sm:$0xf] }
 0x4a8   : > { %v1213_v37 = vpop.f32.mrf.mxu0 }
 0x4a9   : > { %1334 = vrot.lane.b32.xlu2 %v1268_v34, %s3889_s24  ;;  %v2779_v34 = vor.u32 %v3056_v32, %v2778_v31  ;;  %v889_v37 = vld [vmem:[%s882_s26] sm:$0xff] }
 0x4aa   : > { %v3068_v32 = vld [vmem:[#allocation10 + $0x80] sm:$0xf] }
 0x4ab   : > { %1536 = vmatpush.bf16.msrb.mxu2 %v2779_v34  ;;  %v2831_v34 = vor.u32 %v3068_v32, %v2828_v33 }
 0x4c0   : > { %v1325_v38 = vpop.f32.mrf.mxu0 }
 0x4c1   : > { %1338 = vrot.lane.b32.xlu0 %v1325_v38, %s3890_s27  ;;  %v4227_v38 = vpack.c.bf16 %v889_v37, %v889_v37 }
 0x4c8   : > { %v1327_v39 = vpop.f32.mrf.mxu0 }
 0x4c9   : > { %v2774_v39 = vld [vmem:[#allocation10 + $0x78] sm:$0xf] }
 0x4ca   : > { %v2775_v41 = vor.u32 %v3055_v40, %v2774_v39  ;;  %v3064_v40 = vld [vmem:[#allocation10 + $0x50] sm:$0xf] }
 0x4cc   : > { %1537 = vmatpush.bf16.msrb.mxu2 %v2775_v41  ;;  %v2812_v41 = vld [vmem:[#allocation10 + $0x58] sm:$0xf0] }
 0x4cd   : > { %v2815_v42 = vor.u32 %v3064_v40, %v2812_v41 }
 0x4d0   : > { %1538 = vmatpush.bf16.msrb.mxu2 %v2771_v44  ;;  %v2804_v44 = vld [vmem:[#allocation10 + $0x40] sm:$0xf0] }
 0x4d1   : > { %v2807_v45 = vor.u32 %v3062_v43, %v2804_v44 }
 0x4d4   : > { %1539 = vmatpush.bf16.msrb.mxu2 %v2767_v47  ;;  %v3060_v47 = vld [vmem:[#allocation10 + $0x20] sm:$0xf] }
 0x4fb   : > { %v1331_v48 = vpop.permute.xlu2 %1330 }
 0x4fc   : > { %v1341_v51 = vsel %vm1101_vm0, %v4192_v50, %v1331_v48  ;;  %v2843_v50 = vor.u32 %v3073_v0, %v2842_v63  ;;  %v2762_v48 = vld [vmem:[#allocation10 + $0x30] sm:$0xf] }
 0x4fe   : > { %1651 = vmatpush.bf16.msra.mxu3 %v2843_v50 }
 0x502   : > { %1652 = vmatpush.bf16.msra.mxu3 %v2835_v3  ;;  %v3294_v3 = vld [vmem:[#allocation7] ss:$0 sm:$0xff] }
 0x503   : > { %v1335_v49 = vpop.permute.xlu2 %1334 }
 0x504   : > { %v1343_v52 = vsel %vm1342_vm3, %v1341_v51, %v1335_v49  ;;  %v3052_v49 = vld [vmem:[#allocation10 + $0x38] sm:$0xf0] }
 0x505   : > { %v2763_v51 = vor.u32 %v3052_v49, %v2762_v48  ;;  %v2796_v48 = vld [vmem:[#allocation10 + $0x28] sm:$0xf0] }
 0x507   : > { %1540 = vmatpush.bf16.msrb.mxu2 %v2763_v51  ;;  %v2799_v51 = vor.u32 %v3060_v47, %v2796_v48 }
 0x533   : > { %v1339_v53 = vpop.permute.xlu0 %1338 }
 0x534   : > { %v1345_v54 = vsel %vm1344_vm4, %v1343_v52, %v1339_v53  ;;  %v2758_v52 = vld [vmem:[#allocation10 + $0x18] sm:$0xf]  ;;  %v3051_v53 = vld [vmem:[#allocation10 + $0x20] sm:$0xf0] }
 0x535   : > { %v1346_v55 = vpack.c.bf16 %v1345_v54, %v1345_v54  ;;  %v2759_v54 = vor.u32 %v3051_v53, %v2758_v52  ;;  %v3058_v53 = vld [vmem:[#allocation10 + $0x8] sm:$0xf] }
 0x537   : > { %1423 = vmatmul.bf16.vlgmr.msrb.gmra.mxu1 %v1346_v55  ;;  %v2754_v55 = vld [vmem:[#allocation10] sm:$0xf]  ;;  %1541 = vmatpush.bf16.msrb.mxu2 %v2759_v54  ;;  %v2788_v54 = vld [vmem:[#allocation10 + $0x10] sm:$0xf0] }
 0x5b4   : > { %v1424_v57 = vpop.f32.mrf.mxu1 }
 0x5b5   : > { %v1425_v58 = vadd.f32 %v3293_v56, %v1424_v57  ;;  %v3050_v56 = vld [vmem:[#allocation10 + $0x8] sm:$0xf0] }
 0x5b6   : > { %v2755_v57 = vor.u32 %v3050_v56, %v2754_v55 }
 0x5b7   : > { %v1428_v59 = vadd.f32 %v1425_v58, %v4164_v62  ;;  %v2827_v62 = vor.u32 %v3069_v6, %v2826_v4  ;;  %v3295_v6 = vld [vmem:[#allocation9] ss:$0 sm:$0xff] }
 0x5b8   : > { %1542 = vmatpush.bf16.msrb.mxu2 %v2755_v57  ;;  %v2791_v57 = vor.u32 %v3058_v53, %v2788_v54 }
 0x5b9   : > { %1431 = vadd.xlane.f32.xlu2 %v1428_v59  ;;  %1653 = vmatpush.bf16.msra.mxu3 %v2827_v62  ;;  %v1567_v62 = vperm.slane %v4238_v10, 0 }
 0x5bc   : > { %v1426_v60 = vpop.f32.mrf.mxu1 }
 0x5bd   : > { %1654 = vmatpush.bf16.msra.mxu3 %v2819_v14 }
 0x5c1   : > { %1655 = vmatpush.bf16.msra.mxu3 %v2811_v18 }
 0x5c5   : > { %1656 = vmatpush.bf16.msra.mxu3 %v2803_v22 }
 0x5c9   : > { %1657 = vmatpush.bf16.msra.mxu3 %v2795_v27  ;;  %v3072_v27 = vld [vmem:[#allocation10 + $0xb0] sm:$0xf] }
 0x5cd   : > { %1658 = vmatpush.bf16.msra.mxu3 %v2787_v36  ;;  %v2820_v36 = vld [vmem:[#allocation10 + $0x70] sm:$0xf0] }
 0x5ce   : > { %v2823_v37 = vor.u32 %v3066_v35, %v2820_v36 }
 0x5d0   : > { %1659 = vmatmul.bf16.vlgmr.msra.gmra.mxu3 %v4227_v38 }
 0x62c   : > { %v1432_v28 = vpop.xlane.xlu2 %1431 }
 0x62d   : > { %v1440_v29 = vmul.f32 %v4220_v25, %v1432_v28  ;;  %v2844_v28 = vld [vmem:[#allocation10 + $0xb8] sm:$0xf0] }
 0x62f   : > { %v1441_v26 = vsub.f32 %v1428_v59, %v1440_v29  ;;  %v3070_v29 = vld [vmem:[#allocation10 + $0x98] sm:$0xf] }
 0x631   : > { %v1442_v30 = vmul.f32 %v1441_v26, %v1441_v26 }
 0x633   : > { %1443 = vadd.xlane.f32.xlu0 %v1442_v30  ;;  %v2836_v30 = vld [vmem:[#allocation10 + $0xa0] sm:$0xf0] }
 0x634   : > { %v2839_v31 = vor.u32 %v3070_v29, %v2836_v30 }
 0x653   : > { %v1660_v11 = vpop.f32.mrf.mxu3 }
 0x654   : > { %v1661_v12 = vadd.f32 %v1660_v11, %v1567_v62 }
 0x656   : > { %v1678_v13 = vpack.c.bf16 %v1661_v12, %v1661_v12 }
 0x658   : > { %1735 = vrot.lane.b32.xlu1 %v1678_v13, %s3890_s27  ;;  %v1684_v14 = vsel %vm1101_vm0, %v1678_v13, 0 }
 0x659   : > { %1693 = vmatpush.bf16.xpose.msra.mxu1 %v1684_v14 }
 0x65b   : > { %v1662_v15 = vpop.f32.mrf.mxu3 }
 0x660   : > { %1793 = vrot.lane.b32.xlu1 %v1678_v13, %s3889_s24 }
 0x6a6   : > { %v1444_v58 = vpop.xlane.xlu0 %1443 }
 0x6a7   : > { %v1445_v59 = vmul.f32 %v1444_v58, %v4220_v25 }
 0x6a9   : > { %v1446_v60 = vadd.f32 1e-05, %v1445_v59 }
 0x6ab   : > { %3321 = vrsqrt.f32 %v1446_v60  ;;  %vm1453_vm7 = vweird.f32 %v1446_v60 }
 0x6b1   : > { %v3322_v61 = vpop.eup %3321 }
 0x6b2   : > { %v1448_v63 = vmul.f32 %v3322_v61, %v1446_v60  ;;  %vm1454_vm6 = vweird.f32 %v3322_v61 }
 0x6b3   : > { %vm1455_vm8 = vmor %vm1453_vm7, %vm1454_vm6 }
 0x6b4   : > { %v1449_v0 = vmul.f32 %v3322_v61, %v1448_v63 }
 0x6b6   : > { %v1450_v1 = vmul.f32 0.5, %v1449_v0 }
 0x6b8   : > { %v1451_v50 = vsub.f32 1.5, %v1450_v1 }
 0x6ba   : > { %v1452_v2 = vmul.f32 %v3322_v61, %v1451_v50 }
 0x6bc   : > { %v1456_v4 = vsel %vm1455_vm8, %v3322_v61, %v1452_v2 }
 0x6bd   : > { %v1457_v5 = vmul.f32 %v1456_v4, %v1441_v26  ;;  %v2847_v26 = vor.u32 %v3072_v27, %v2844_v28 }
 0x6bf   : > { %v1461_v7 = vmul.f32 %v3294_v3, %v1457_v5  ;;  %1664 = vmatpush.bf16.msrb.mxu0 %v2847_v26 }
 0x6c1   : > { %v4231_v8 = vadd.f32 %v3295_v6, %v1461_v7 }
 0x6c3   : > { %v1466_v9 = vpack.c.bf16 %v4231_v8, %v4231_v8  ;;  %1665 = vmatpush.bf16.msrb.mxu0 %v2839_v31 }
 0x6c5   : > { %1543 = vmatmul.bf16.vlgmr.msrb.gmra.mxu2 %v1466_v9 }
 0x6c7   : > { %1666 = vmatpush.bf16.msrb.mxu0 %v2831_v34 }
 0x6ca   : > { %v1736_v21 = vpop.permute.xlu1 %1735 }
 0x6cb   : > { %v1741_v22 = vsel %vm1101_vm0, %v1736_v21, 0  ;;  %1667 = vmatpush.bf16.msrb.mxu0 %v2823_v37 }
 0x6cc   : > { %1750 = vmatpush.bf16.xpose.msrb.mxu3 %v1741_v22 }
 0x6cf   : > { %1668 = vmatpush.bf16.msrb.mxu0 %v2815_v42 }
 0x6d2   : > { %v1794_v23 = vpop.permute.xlu1 %1793 }
 0x6d3   : > { %v1799_v24 = vsel %vm1101_vm0, %v1794_v23, 0  ;;  %1669 = vmatpush.bf16.msrb.mxu0 %v2807_v45 }
 0x6d4   : > { %1808 = vmatpush.bf16.xpose.msrb.mxu1 %v1799_v24 }
 0x6d7   : > { %1670 = vmatpush.bf16.msrb.mxu0 %v2799_v51 }
 0x6db   : > { %1671 = vmatpush.bf16.msrb.mxu0 %v2791_v57 }
 0x6de   : > { %1672 = vmatmul.bf16.vlgmr.msrb.gmra.mxu0 %v4227_v38 }
 0x748   : > { %v1544_v17 = vpop.f32.mrf.mxu2 }
 0x749   : > { %v1545_v18 = vadd.f32 %v3296_v16, %v1544_v17  ;;  %v1568_v16 = vperm.slane %v4238_v10, 1 }
 0x74b   : > { %v1677_v19 = vpack.c.bf16 %v1545_v18, %v1545_v18 }
 0x74d   : > { %1848 = vrot.lane.b32.xlu2 %v1677_v19, %s3891_s1  ;;  %1732 = vrot.lane.b32.xlu1 %v1677_v19, %s3890_s27 }
 0x74e   : > { %2848 = vmatmul.msk.bf16.vlgmr.msra.gmra.mxu1 %vm1101_vm0, %v1677_v19 }
 0x750   : > { %v1546_v20 = vpop.f32.mrf.mxu2 }
 0x755   : > { %1850 = vrot.lane.b32.xlu1 %v1678_v13, %s3891_s1 }
 0x75b   : > { %v1673_v7 = vpop.f32.mrf.mxu0 }
 0x75c   : > { %v1674_v17 = vadd.f32 %v1673_v7, %v1568_v16  ;;  %v3077_v7 = vld [vmem:[#allocation12 + $0x18] sm:$0xff] }
 0x75d   : > { %1791 = vrot.lane.b32.xlu1 %v1677_v19, %s3889_s24 }
 0x75e   : > { %v1679_v18 = vpack.c.bf16 %v1674_v17, %v1674_v17 }
 0x760   : > { %v1716_v19 = vsel %vm1138_vm1, %v1679_v18, 0 }
 0x761   : > { %1725 = vmatpush.bf16.msra.mxu2 %v1716_v19 }
 0x763   : > { %v1675_v12 = vpop.f32.mrf.mxu0 }
 0x7a7   : > { %v1849_v58 = vpop.permute.xlu2 %1848 }
 0x7bf   : > { %v1733_v39 = vpop.permute.xlu1 %1732 }
 0x7c0   : > { %2850 = vmatmul.msk.bf16.vlgmr.msrb.gmra.mxu3 %vm1101_vm0, %v1733_v39 }
 0x7c7   : > { %v1851_v46 = vpop.permute.xlu1 %1850 }
 0x7c8   : > { %v1856_v49 = vsel %vm1101_vm0, %v1851_v46, 0 }
 0x7c9   : > { %1865 = vmatpush.bf16.xpose.msra.mxu3 %v1856_v49 }
 0x7cb   : > { %v1695_v52 = vpop.f32.mrf.mxu1 }
 0x7cc   : > { %v1699_v55 = vmul.f32 0.17677669, %v1695_v52 }
 0x7ce   : > { %v1700_v56 = vsel %vm1122_vm2, %v1699_v55, -inf }
 0x7cf   : > { %1701 = vmax.xlane.f32.xlu1 %v1700_v56  ;;  %v1792_v59 = vpop.permute.xlu1 %1791 }
 0x7d0   : > { %2852 = vmatmul.msk.bf16.vlgmr.msrb.gmra.mxu1 %vm1101_vm0, %v1792_v59  ;;  %2854 = vmatmul.msk.bf16.vlgmr.msra.gmra.mxu3 %vm1101_vm0, %v1849_v58 }
 0x7d3   : > { %v1697_v60 = vpop.f32.mrf.mxu1 }
 0x842   : > { %v1702_v61 = vpop.xlane.xlu1 %1701 }
 0x843   : > { %v1703_v63 = vsub.f32 %v1699_v55, %v1702_v61  ;;  %v1752_v0 = vpop.f32.mrf.mxu3 }
 0x844   : > { %v1756_v62 = vmul.f32 0.17677669, %v1752_v0 }
 0x845   : > { %v1704_v1 = vmul.f32 1.442695, %v1703_v63 }
 0x846   : > { %v1757_v38 = vsel %vm1122_vm2, %v1756_v62, -inf }
 0x847   : > { %3323 = vpow2.f32 %v1704_v1 }
 0x84b   : > { %v1754_v50 = vpop.f32.mrf.mxu3 }
 0x84d   : > { %v3324_v2 = vpop.eup %3323  ;;  %v1810_v3 = vpop.f32.mrf.mxu1 }
 0x84e   : > { %v1814_v4 = vmul.f32 0.17677669, %v1810_v3  ;;  %v1706_v5 = vsel %vm1122_vm2, %v3324_v2, 0.0  ;;  %v3081_v3 = vld [vmem:[#allocation12 + $0x38] sm:$0xff] }
 0x84f   : > { %1707 = vadd.xlane.f32.xlu2 %v1706_v5  ;;  %1989 = vmatpush.bf16.msra.mxu1 %v3081_v3  ;;  %v3079_v5 = vld [vmem:[#allocation12 + $0x28] sm:$0xff] }
 0x850   : > { %v1815_v6 = vsel %vm1122_vm2, %v1814_v4, -inf }
 0x851   : > { %1816 = vmax.xlane.f32.xlu0 %v1815_v6  ;;  %v3078_v6 = vld [vmem:[#allocation12 + $0x20] sm:$0xff] }
 0x853   : > { %v1867_v9 = vpop.f32.mrf.mxu3 }
 0x854   : > { %v1871_v14 = vmul.f32 0.17677669, %v1867_v9  ;;  %v3076_v9 = vld [vmem:[#allocation12 + $0x10] sm:$0xff] }
 0x855   : > { %v1812_v11 = vpop.f32.mrf.mxu1 }
 0x856   : > { %v1872_v15 = vsel %vm1122_vm2, %v1871_v14, -inf  ;;  %v3074_v11 = vld [vmem:[#allocation12] sm:$0xff] }
 0x859   : > { %1758 = vmax.xlane.f32.xlu0 %v1757_v38 }
 0x85b   : > { %v1869_v13 = vpop.f32.mrf.mxu3 }
 0x861   : > { %1873 = vmax.xlane.f32.xlu0 %v1872_v15 }
 0x875   : > { %1770 = vrot.lane.b32.xlu0 %v1679_v18, %s3890_s27 }
 0x8c2   : > { %v1708_v20 = vpop.xlane.xlu2 %1707 }
 0x8c3   : > { %3325 = vrcp.f32 %v1708_v20 }
 0x8c4   : > { %v1817_v21 = vpop.xlane.xlu0 %1816 }
 0x8c5   : > { %v1818_v22 = vsub.f32 %v1814_v4, %v1817_v21  ;;  %v3080_v4 = vld [vmem:[#allocation12 + $0x30] sm:$0xff] }
 0x8c6   : > { %1990 = vmatpush.bf16.msra.mxu1 %v3080_v4  ;;  %v2900_v4 = vld [vmem:[#allocation18 + $0x18] sm:$0xf0] }
 0x8c7   : > { %v1819_v23 = vmul.f32 1.442695, %v1818_v22 }
 0x8c9   : > { %v3326_v24 = vpop.eup %3325  ;;  %3327 = vpow2.f32 %v1819_v23  ;;  %v2946_v23 = vld [vmem:[#allocation18 + $0x70] sm:$0xf] }
 0x8ca   : > { %v1710_v27 = vmul.f32 %v3326_v24, %v3324_v2  ;;  %1991 = vmatpush.bf16.msra.mxu1 %v3079_v5  ;;  %v3097_v24 = vld [vmem:[#allocation18 + $0x74] sm:$0xf0]  ;;  %v2890_v5 = vld [vmem:[#allocation18] sm:$0xf] }
 0x8cc   : > { %v1711_v28 = vpack.c.bf16 %v1710_v27, %v1710_v27  ;;  %v1759_v29 = vpop.xlane.xlu0 %1758  ;;  %v3096_v27 = vld [vmem:[#allocation18 + $0x74] sm:$0xf] }
 0x8cd   : > { %v1760_v26 = vsub.f32 %v1756_v62, %v1759_v29  ;;  %v3075_v62 = vld [vmem:[#allocation12 + $0x8] sm:$0xff]  ;;  %v2948_v29 = vld [vmem:[#allocation18 + $0x78] sm:$0xf0] }
 0x8ce   : > { %2849 = vmatmul.msk.bf16.vlgmr.msra.gmra.mxu2 %vm1122_vm2, %v1711_v28  ;;  %1992 = vmatpush.bf16.msra.mxu1 %v3078_v6  ;;  %v2947_v28 = vor.u32 %v3097_v24, %v2946_v23  ;;  %v3083_v6 = vld [vmem:[#allocation18 + $0x4] sm:$0xf0] }
 0x8cf   : > { %v3328_v10 = vpop.eup %3327  ;;  %v1761_v30 = vmul.f32 1.442695, %v1760_v26  ;;  %v2951_v26 = vor.u32 %v3096_v27, %v2948_v29  ;;  %v3101_v27 = vld [vmem:[#allocation21 + $0x18] sm:$0xff] }
 0x8d0   : > { %v1821_v31 = vsel %vm1122_vm2, %v3328_v10, 0.0 }
 0x8d1   : > { %3329 = vpow2.f32 %v1761_v30  ;;  %1822 = vadd.xlane.f32.xlu1 %v1821_v31  ;;  %2149 = vmatpush.bf16.msrb.mxu3 %v2951_v26 }
 0x8d2   : > { %1993 = vmatpush.bf16.msra.mxu1 %v3077_v7 }
 0x8d4   : > { %v1874_v32 = vpop.xlane.xlu0 %1873 }
 0x8d5   : > { %v1875_v33 = vsub.f32 %v1871_v14, %v1874_v32 }
 0x8d6   : > { %1994 = vmatpush.bf16.msra.mxu1 %v3076_v9  ;;  %v3082_v9 = vld [vmem:[#allocation18 + $0x4] sm:$0xf] }
 0x8d7   : > { %v3330_v34 = vpop.eup %3329  ;;  %v1876_v35 = vmul.f32 1.442695, %v1875_v33  ;;  %v3095_v33 = vld [vmem:[#allocation18 + $0x64] sm:$0xf0] }
 0x8d8   : > { %v1763_v36 = vsel %vm1122_vm2, %v3330_v34, 0.0 }
 0x8d9   : > { %3331 = vpow2.f32 %v1876_v35  ;;  %1764 = vadd.xlane.f32.xlu0 %v1763_v36  ;;  %v2940_v36 = vld [vmem:[#allocation18 + $0x68] sm:$0xf0] }
 0x8da   : > { %1995 = vmatpush.bf16.msra.mxu1 %v3075_v62  ;;  %v2892_v62 = vld [vmem:[#allocation18 + $0x8] sm:$0xf0] }
 0x8de   : > { %1996 = vmatpush.bf16.msra.mxu1 %v3074_v11  ;;  %v2891_v11 = vor.u32 %v3083_v6, %v2890_v5 }
 0x8df   : > { %v3332_v37 = vpop.eup %3331 }
 0x8e0   : > { %v1878_v39 = vsel %vm1122_vm2, %v3332_v37, 0.0 }
 0x8e1   : > { %1879 = vadd.xlane.f32.xlu1 %v1878_v39  ;;  %v2930_v39 = vld [vmem:[#allocation18 + $0x50] sm:$0xf] }
 0x8e7   : > { %v1771_v40 = vpop.permute.xlu0 %1770 }
 0x8e8   : > { %v1776_v41 = vsel %vm1138_vm1, %v1771_v40, 0  ;;  %v3093_v40 = vld [vmem:[#allocation18 + $0x54] sm:$0xf0] }
 0x8e9   : > { %1785 = vmatpush.bf16.msra.mxu0 %v1776_v41  ;;  %v3092_v41 = vld [vmem:[#allocation18 + $0x54] sm:$0xf] }
 0x8ed   : > { %1827 = vrot.lane.b32.xlu0 %v1679_v18, %s3889_s24 }
 0x8fa   : > { %1884 = vrot.lane.b32.xlu1 %v1679_v18, %s3891_s1  ;;  %v3297_v18 = vld [vmem:[#allocation13] ss:$0 sm:$0xff] }
 0x944   : > { %v1823_v44 = vpop.xlane.xlu1 %1822 }
 0x94c   : > { %v1765_v42 = vpop.xlane.xlu0 %1764 }
 0x94d   : > { %3333 = vrcp.f32 %v1765_v42  ;;  %v2931_v42 = vor.u32 %v3093_v40, %v2930_v39 }
 0x94e   : > { %3335 = vrcp.f32 %v1823_v44 }
 0x951   : > { %v1727_v43 = vpop.f32.mrf.mxu2 }
 0x953   : > { %v3334_v45 = vpop.eup %3333 }
 0x954   : > { %v1767_v46 = vmul.f32 %v3334_v45, %v3330_v34  ;;  %v3336_v49 = vpop.eup %3335  ;;  %v1880_v52 = vpop.xlane.xlu1 %1879  ;;  %v3094_v34 = vld [vmem:[#allocation18 + $0x64] sm:$0xf]  ;;  %v2922_v45 = vld [vmem:[#allocation18 + $0x40] sm:$0xf] }
 0x955   : > { %v1825_v51 = vmul.f32 %v3336_v49, %v3328_v10  ;;  %3337 = vrcp.f32 %v1880_v52  ;;  %v2924_v49 = vld [vmem:[#allocation18 + $0x48] sm:$0xf0]  ;;  %v2914_v52 = vld [vmem:[#allocation18 + $0x30] sm:$0xf] }
 0x956   : > { %v1768_v47 = vpack.c.bf16 %v1767_v46, %v1767_v46  ;;  %v3091_v46 = vld [vmem:[#allocation18 + $0x44] sm:$0xf0] }
 0x957   : > { %v1826_v55 = vpack.c.bf16 %v1825_v51, %v1825_v51 }
 0x958   : > { %2851 = vmatmul.msk.bf16.vlgmr.msra.gmra.mxu0 %vm1122_vm2, %v1768_v47  ;;  %v3090_v47 = vld [vmem:[#allocation18 + $0x44] sm:$0xf] }
 0x959   : > { %v1729_v48 = vpop.f32.mrf.mxu2  ;;  %v2927_v51 = vor.u32 %v3090_v47, %v2924_v49 }
 0x95a   : > { %v2923_v48 = vor.u32 %v3091_v46, %v2922_v45  ;;  %v2050_v45 = vld [vmem:[#allocation19] sm:$0x3] }
 0x95b   : > { %v3338_v56 = vpop.eup %3337  ;;  %v2052_v46 = vperm.slane %v2050_v45, 0  ;;  %v2053_v47 = vperm.slane %v2050_v45, 1 }
 0x95c   : > { %v1882_v57 = vmul.f32 %v3338_v56, %v3332_v37  ;;  %v2943_v37 = vor.u32 %v3094_v34, %v2940_v36  ;;  %v2916_v56 = vld [vmem:[#allocation18 + $0x38] sm:$0xf0] }
 0x95d   : > { %v3299_v36 = vld [vmem:[#allocation16] ss:$0 sm:$0xff] }
 0x95e   : > { %v1883_v60 = vpack.c.bf16 %v1882_v57, %v1882_v57  ;;  %2150 = vmatpush.bf16.msrb.mxu3 %v2943_v37 }
 0x95f   : > { %v1828_v53 = vpop.permute.xlu0 %1827 }
 0x960   : > { %v1833_v54 = vsel %vm1138_vm1, %v1828_v53, 0  ;;  %v3089_v53 = vld [vmem:[#allocation18 + $0x34] sm:$0xf0] }
 0x961   : > { %1842 = vmatpush.bf16.msrb.mxu2 %v1833_v54  ;;  %v3088_v54 = vld [vmem:[#allocation18 + $0x34] sm:$0xf] }
 0x962   : > { %v2919_v57 = vor.u32 %v3088_v54, %v2916_v56 }
 0x964   : > { %2853 = vmatmul.msk.bf16.vlgmr.msrb.gmra.mxu2 %vm1122_vm2, %v1826_v55  ;;  %v2915_v55 = vor.u32 %v3089_v53, %v2914_v52 }
 0x965   : > { %2136 = vmatpush.bf16.msra.mxu2 %v2947_v28  ;;  %v3109_v28 = vld [vmem:[#allocation21 + $0x58] sm:$0xff] }
 0x96c   : > { %v1885_v58 = vpop.permute.xlu1 %1884 }
 0x96d   : > { %v1890_v59 = vsel %vm1138_vm1, %v1885_v58, 0  ;;  %v2906_v58 = vld [vmem:[#allocation18 + $0x20] sm:$0xf] }
 0x96e   : > { %1899 = vmatpush.bf16.msrb.mxu0 %v1890_v59  ;;  %v3087_v59 = vld [vmem:[#allocation18 + $0x24] sm:$0xf0] }
 0x971   : > { %2855 = vmatmul.msk.bf16.vlgmr.msrb.gmra.mxu0 %vm1122_vm2, %v1883_v60  ;;  %v3086_v60 = vld [vmem:[#allocation18 + $0x24] sm:$0xf] }
 0x9d5   : > { %v1787_v61 = vpop.f32.mrf.mxu0 }
 0x9d6   : > { %1906 = vrot.lane.b32.xlu0 %v1787_v61, %s3891_s1  ;;  %v2907_v61 = vor.u32 %v3087_v59, %v2906_v58  ;;  %v3300_v58 = vld [vmem:[#allocation22] ss:$0 sm:$0xff] }
 0x9dd   : > { %v1789_v63 = vpop.f32.mrf.mxu0 }
 0x9de   : > { %v2908_v63 = vld [vmem:[#allocation18 + $0x28] sm:$0xf0] }
 0x9e7   : > { %v1844_v0 = vpop.f32.mrf.mxu2 }
 0x9e8   : > { %1910 = vrot.lane.b32.xlu2 %v1844_v0, %s3889_s24  ;;  %v2911_v0 = vor.u32 %v3086_v60, %v2908_v63 }
 0x9ee   : > { %v1901_v1 = vpop.f32.mrf.mxu0 }
 0x9ef   : > { %1914 = vrot.lane.b32.xlu0 %v1901_v1, %s3890_s27  ;;  %v1846_v50 = vpop.f32.mrf.mxu2  ;;  %v2898_v1 = vld [vmem:[#allocation18 + $0x10] sm:$0xf] }
 0x9f0   : > { %v3085_v50 = vld [vmem:[#allocation18 + $0x14] sm:$0xf0] }
 0x9f1   : > { %v2899_v3 = vor.u32 %v3085_v50, %v2898_v1 }
 0x9f6   : > { %v1903_v2 = vpop.f32.mrf.mxu0 }
 0x9f7   : > { %v3084_v2 = vld [vmem:[#allocation18 + $0x14] sm:$0xf] }
 0x9f8   : > { %v2903_v7 = vor.u32 %v3084_v2, %v2900_v4 }
 0xa42   : > { %v1911_v13 = vpop.permute.xlu2 %1910 }
 0xa48   : > { %v1907_v38 = vpop.permute.xlu0 %1906 }
 0xa49   : > { %v1917_v12 = vsel %vm1101_vm0, %v1727_v43, %v1907_v38  ;;  %v2932_v43 = vld [vmem:[#allocation18 + $0x58] sm:$0xf0]  ;;  %v2895_v38 = vor.u32 %v3082_v9, %v2892_v62 }
 0xa4a   : > { %v1918_v14 = vsel %vm1342_vm3, %v1917_v12, %v1911_v13  ;;  %v2935_v44 = vor.u32 %v3092_v41, %v2932_v43  ;;  %v3105_v12 = vld [vmem:[#allocation21 + $0x38] sm:$0xff]  ;;  %v3099_v41 = vld [vmem:[#allocation21 + $0x8] sm:$0xff]  ;;  %v3098_v43 = vld [vmem:[#allocation21] sm:$0xff] }
 0xa4b   : > { %v3113_v13 = vld [vmem:[#allocation21 + $0x78] sm:$0xff]  ;;  %2298 = vmatpush.bf16.msra.mxu0 %v3105_v12 }
 0xa4c   : > { %2151 = vmatpush.bf16.msrb.mxu3 %v2935_v44  ;;  %2311 = vmatpush.bf16.msrb.mxu1 %v3113_v13  ;;  %v3106_v44 = vld [vmem:[#allocation21 + $0x40] sm:$0xff] }
 0xa50   : > { %2152 = vmatpush.bf16.msrb.mxu3 %v2927_v51 }
 0xa54   : > { %2153 = vmatpush.bf16.msrb.mxu3 %v2919_v57 }
 0xa58   : > { %2154 = vmatpush.bf16.msrb.mxu3 %v2911_v0 }
 0xa5c   : > { %2155 = vmatpush.bf16.msrb.mxu3 %v2903_v7 }
 0xa60   : > { %2156 = vmatpush.bf16.msrb.mxu3 %v2895_v38 }
 0xa61   : > { %v1915_v15 = vpop.permute.xlu0 %1914 }
 0xa62   : > { %v1919_v16 = vsel %vm1344_vm4, %v1918_v14, %v1915_v15 }
 0xa63   : > { %v1920_v17 = vpack.c.bf16 %v1919_v16, %v1919_v16  ;;  %v3104_v16 = vld [vmem:[#allocation21 + $0x30] sm:$0xff] }
 0xa64   : > { %2299 = vmatpush.bf16.msra.mxu0 %v3104_v16 }
 0xa65   : > { %1997 = vmatmul.bf16.vlgmr.msra.gmra.mxu1 %v1920_v17  ;;  %v3112_v17 = vld [vmem:[#allocation21 + $0x70] sm:$0xff] }
 0xa66   : > { %2312 = vmatpush.bf16.msrb.mxu1 %v3112_v17  ;;  %v3302_v17 = vld [vmem:[#allocation25] ss:$0 sm:$0xff] }
 0xae2   : > { %v1998_v19 = vpop.f32.mrf.mxu1 }
 0xae3   : > { %v1999_v20 = vadd.f32 %v3297_v18, %v1998_v19  ;;  %v3103_v19 = vld [vmem:[#allocation21 + $0x28] sm:$0xff] }
 0xae4   : > { %2300 = vmatpush.bf16.msra.mxu0 %v3103_v19 }
 0xae5   : > { %v2002_v21 = vadd.f32 %v1999_v20, %v4231_v8  ;;  %v2938_v8 = vld [vmem:[#allocation18 + $0x60] sm:$0xf]  ;;  %v3111_v20 = vld [vmem:[#allocation21 + $0x68] sm:$0xff] }
 0xae6   : > { %v2939_v35 = vor.u32 %v3095_v33, %v2938_v8  ;;  %2313 = vmatpush.bf16.msrb.mxu1 %v3111_v20  ;;  %v3298_v33 = vld [vmem:[#allocation15] ss:$0 sm:$0xff] }
 0xae7   : > { %2005 = vadd.xlane.f32.xlu0 %v2002_v21 }
 0xae8   : > { %2137 = vmatpush.bf16.msra.mxu2 %v2939_v35 }
 0xaea   : > { %v2000_v22 = vpop.f32.mrf.mxu1 }
 0xaeb   : > { %v3110_v22 = vld [vmem:[#allocation21 + $0x60] sm:$0xff] }
 0xaec   : > { %2138 = vmatpush.bf16.msra.mxu2 %v2931_v42  ;;  %2314 = vmatpush.bf16.msrb.mxu1 %v3110_v22  ;;  %v3107_v42 = vld [vmem:[#allocation21 + $0x48] sm:$0xff] }
 0xaf0   : > { %2139 = vmatpush.bf16.msra.mxu2 %v2923_v48  ;;  %2315 = vmatpush.bf16.msrb.mxu1 %v3109_v28 }
 0xaf4   : > { %2140 = vmatpush.bf16.msra.mxu2 %v2915_v55 }
 0xaf8   : > { %2141 = vmatpush.bf16.msra.mxu2 %v2907_v61 }
 0xafc   : > { %2142 = vmatpush.bf16.msra.mxu2 %v2899_v3 }
 0xb00   : > { %2143 = vmatpush.bf16.msra.mxu2 %v2891_v11 }
 0xb5a   : > { %v2006_v10 = vpop.xlane.xlu0 %2005 }
 0xb5b   : > { %v2007_v30 = vmul.f32 %v2006_v10, %v4220_v25  ;;  %v3100_v10 = vld [vmem:[#allocation21 + $0x10] sm:$0xff] }
 0xb5d   : > { %v4287_v31 = vsub.f32 %v2002_v21, %v2007_v30  ;;  %v3102_v21 = vld [vmem:[#allocation21 + $0x20] sm:$0xff]  ;;  %v3108_v30 = vld [vmem:[#allocation21 + $0x50] sm:$0xff] }
 0xb5e   : > { %2301 = vmatpush.bf16.msra.mxu0 %v3102_v21  ;;  %2316 = vmatpush.bf16.msrb.mxu1 %v3108_v30 }
 0xb5f   : > { %v2009_v32 = vmul.f32 %v4287_v31, %v4287_v31 }
 0xb61   : > { %2010 = vadd.xlane.f32.xlu1 %v2009_v32 }
 0xb62   : > { %2302 = vmatpush.bf16.msra.mxu0 %v3101_v27  ;;  %2317 = vmatpush.bf16.msrb.mxu1 %v3107_v42 }
 0xb66   : > { %2303 = vmatpush.bf16.msra.mxu0 %v3100_v10  ;;  %2318 = vmatpush.bf16.msrb.mxu1 %v3106_v44 }
 0xb6a   : > { %2304 = vmatpush.bf16.msra.mxu0 %v3099_v41 }
 0xb6e   : > { %2305 = vmatpush.bf16.msra.mxu0 %v3098_v43 }
 0xbd4   : > { %v2011_v14 = vpop.xlane.xlu1 %2010 }
 0xbd5   : > { %v2012_v15 = vmul.f32 %v2011_v14, %v4220_v25 }
 0xbd7   : > { %v2013_v18 = vadd.f32 1e-05, %v2012_v15  ;;  %v3301_v15 = vld [vmem:[#allocation24] ss:$0 sm:$0xff] }
 0xbd9   : > { %3339 = vrsqrt.f32 %v2013_v18  ;;  %vm2020_vm10 = vweird.f32 %v2013_v18 }
 0xbdf   : > { %v3340_v23 = vpop.eup %3339 }
 0xbe0   : > { %v2015_v24 = vmul.f32 %v3340_v23, %v2013_v18  ;;  %vm2021_vm9 = vweird.f32 %v3340_v23 }
 0xbe1   : > { %vm2022_vm11 = vmor %vm2020_vm10, %vm2021_vm9 }
 0xbe2   : > { %v2016_v29 = vmul.f32 %v3340_v23, %v2015_v24 }
 0xbe4   : > { %v2017_v26 = vmul.f32 0.5, %v2016_v29 }
 0xbe6   : > { %v2018_v32 = vsub.f32 1.5, %v2017_v26 }
 0xbe8   : > { %v2019_v8 = vmul.f32 %v3340_v23, %v2018_v32 }
 0xbea   : > { %v2023_v34 = vsel %vm2022_vm11, %v3340_v23, %v2019_v8 }
 0xbeb   : > { %v2024_v35 = vmul.f32 %v2023_v34, %v4287_v31 }
 0xbed   : > { %v2028_v37 = vmul.f32 %v3298_v33, %v2024_v35 }
 0xbef   : > { %v2032_v39 = vadd.f32 %v3299_v36, %v2028_v37 }
 0xbf1   : > { %v2033_v40 = vpack.c.bf16 %v2032_v39, %v2032_v39 }
 0xbf3   : > { %2144 = vmatmul.bf16.vlgmr.msra.gmra.mxu2 %v2033_v40  ;;  %2157 = vmatmul.bf16.vlgmr.msrb.gmra.mxu3 %v2033_v40 }
 0xc76   : > { %v2145_v48 = vpop.f32.mrf.mxu2  ;;  %v2158_v49 = vpop.f32.mrf.mxu3 }
 0xc77   : > { %v2146_v31 = vadd.f32 %v2145_v48, %v2052_v46  ;;  %v2159_v51 = vadd.f32 %v2158_v49, %v2053_v47 }
 0xc79   : > { %v2162_v52 = vmax.f32 %v2146_v31, 0.0  ;;  %v2163_v53 = vmax.f32 %v2159_v51, 0.0 }
 0xc7b   : > { %v2164_v54 = vpack.c.bf16 %v2162_v52, %v2162_v52  ;;  %v2165_v55 = vpack.c.bf16 %v2163_v53, %v2163_v53 }
 0xc7d   : > { %2306 = vmatmul.bf16.vlgmr.msra.gmra.mxu0 %v2164_v54  ;;  %2319 = vmatmul.bf16.vlgmr.msrb.gmra.mxu1 %v2165_v55 }
 0xc7e   : > { %v2147_v56 = vpop.f32.mrf.mxu2  ;;  %v2160_v57 = vpop.f32.mrf.mxu3 }
 0xcfa   : > { %v2307_v59 = vpop.f32.mrf.mxu0  ;;  %v2320_v60 = vpop.f32.mrf.mxu1 }
 0xcfb   : > { %v2308_v61 = vadd.f32 %v3300_v58, %v2307_v59 }
 0xcfd   : > { %v2321_v63 = vadd.f32 %v2320_v60, %v2308_v61 }
 0xcff   : > { %v2324_v0 = vadd.f32 %v2321_v63, %v2032_v39 }
 0xd01   : > { %2327 = vadd.xlane.f32.xlu2 %v2324_v0 }
 0xd02   : > { %v2309_v1 = vpop.f32.mrf.mxu0  ;;  %v2322_v50 = vpop.f32.mrf.mxu1 }
 0xd74   : > { %v2328_v2 = vpop.xlane.xlu2 %2327 }
 0xd75   : > { %v2329_v3 = vmul.f32 %v2328_v2, %v4220_v25 }
 0xd77   : > { %v2330_v4 = vsub.f32 %v2324_v0, %v2329_v3 }
 0xd79   : > { %v2331_v5 = vmul.f32 %v2330_v4, %v2330_v4 }
 0xd7b   : > { %2332 = vadd.xlane.f32.xlu0 %v2331_v5 }
 0xdee   : > { %v2333_v6 = vpop.xlane.xlu0 %2332 }
 0xdef   : > { %v2334_v7 = vmul.f32 %v2333_v6, %v4220_v25 }
 0xdf1   : > { %v2335_v9 = vadd.f32 1e-05, %v2334_v7 }
 0xdf3   : > { %3341 = vrsqrt.f32 %v2335_v9  ;;  %vm2342_vm13 = vweird.f32 %v2335_v9 }
 0xdf9   : > { %v3342_v62 = vpop.eup %3341 }
 0xdfa   : > { %v2337_v11 = vmul.f32 %v3342_v62, %v2335_v9  ;;  %vm2343_vm12 = vweird.f32 %v3342_v62 }
 0xdfb   : > { %vm2344_vm14 = vmor %vm2342_vm13, %vm2343_vm12 }
 0xdfc   : > { %v2338_v38 = vmul.f32 %v3342_v62, %v2337_v11 }
 0xdfe   : > { %v2339_v12 = vmul.f32 0.5, %v2338_v38 }
 0xe00   : > { %v2340_v13 = vsub.f32 1.5, %v2339_v12 }
 0xe02   : > { %v2341_v14 = vmul.f32 %v3342_v62, %v2340_v13 }
 0xe04   : > { %v2345_v16 = vsel %vm2344_vm14, %v3342_v62, %v2341_v14 }
 0xe05   : > { %v2346_v18 = vmul.f32 %v2345_v16, %v2330_v4 }
 0xe07   : > { %v2350_v19 = vmul.f32 %v3301_v15, %v2346_v18 }
 0xe09   : > { %v2354_v25 = vadd.f32 %v3302_v17, %v2350_v19 }
 0xe0b   : > { %2355 = vst [vmem:[%s886_s21] sm:$0xff] %v2354_v25 }
 0xe0c PF: > { %s4354_s20 = sld [smem:[#allocation36_spill]] }
 0xe12   : > { %s39_s1 = sadd.s32 1, %s4354_s20  }
 0xe13   : > { %p36_p7 = scmp.ge.s32.totalorder %s39_s1, 4  }
 0xe15   :  { %38 = sbr.rel (!%p36_p7) target bundleno = 18 (0x12), region = 198 }
 0xe1a   :  { %2375 = vsyncpa [#allocation3], 1 }
 0xe1b   :  { %2377 = vsyncpa [#allocation3 + $0x1], 1 }
 0xe1c   :  { %2378 = vsyncpa [#allocation5], 1 }
 0xe1d   :  { %2379 = vsyncpa [#allocation8], 1 }
 0xe1e   :  { %2380 = vsyncpa [#allocation11], 1 }
 0xe1f   :  { %2381 = vsyncpa [#allocation14], 1 }
 0xe20   :  { %2382 = vsyncpa [#allocation17], 1 }
 0xe21   :  { %2383 = vsyncpa [#allocation20], 1 }
 0xe22   :  { %2384 = vsyncpa [#allocation23], 1 }
 0xe23   :  { %2385 = vsyncpa [#allocation26], 1 }

</bundles_post_ra>
